<compile_context>
chip_gen: v7x
topology: tpu7x:2x2x1
jax: 0.10.0
libtpu: 0.0.40
codegen_flags: <defaults>
</compile_context>

<pallas_src>
import functools

import jax
import jax.numpy as jnp
from jax.experimental import pallas as pl
from jax.experimental.pallas import tpu as pltpu


def _round_up(v, m):
    return ((v + m - 1) // m) * m


# ----------------------------------------------------------------------------
# Fused Pallas kernel: m1 -> RK4 graph ODE -> relu -> m2 (everything in VMEM)
# ----------------------------------------------------------------------------
def _wgnn_fused_kernel(x_ref, w1_ref, a2_ref, weff_ref, w2_ref, b2_ref,
                       o_ref, *, num_steps, dt):
    bf16 = jnp.bfloat16

    # m1 (+ folded b1 via the ones column of x) + zero-concat:
    # zero-padded columns of w1 make x0 == [x@W1+b1, 0...]; padded rows are 0.
    x0 = jnp.dot(x_ref[...], w1_ref[...],
                 preferred_element_type=jnp.float32)       # [Np, 2Hp]  f32
    a2 = a2_ref[...]                                        # [Np, Np]   bf16
    weff = weff_ref[...]                                    # [2Hp, 2Hp] bf16

    def rhs(y):
        # rhs(y) = A2 @ y + y @ (Weff - I) + x0  (alpha, 0.5 and both -y terms
        # pre-folded into A2 / WeffI in the wrapper).  bf16 MXU operands,
        # f32 accumulation; the surrounding combines stay f32.
        yb = y.astype(bf16)
        return (jnp.dot(a2, yb, preferred_element_type=jnp.float32)
                + jnp.dot(yb, weff, preferred_element_type=jnp.float32)
                + x0)

    c16 = dt / 6.0
    c13 = dt / 3.0
    y = x0
    # Statically unrolled fixed-step RK4 with incremental combine (small live
    # set: y, acc, k, x0).
    # TODO(synk): switch to lax.fori_loop(..., unroll=True) when N grows large
    #             enough that the unrolled live set would force VMEM spills.
    for _ in range(num_steps):
        k = rhs(y)                         # k1
        acc = y + c16 * k
        k = rhs(y + (0.5 * dt) * k)        # k2
        acc = acc + c13 * k
        k = rhs(y + (0.5 * dt) * k)        # k3
        acc = acc + c13 * k
        k = rhs(y + dt * k)                # k4
        y = acc + c16 * k

    # relu + m2: zero rows (>= H) of the padded W2 implement the z[:, :H] slice.
    z = jnp.maximum(y, 0.0).astype(bf16)
    o_ref[...] = (jnp.dot(z, w2_ref[...], preferred_element_type=jnp.float32)
                  + b2_ref[...])


# ----------------------------------------------------------------------------
# WGNN forward: parameter-only prep + zero padding in XLA, one fused kernel call
# ----------------------------------------------------------------------------
def wgnn_forward(params, x, adj, *, t_end=1.0, num_steps=8):
    n, f = x.shape
    hidden = params["w1"].shape[1]
    num_class = params["w2"].shape[1]
    two_h = 2 * hidden

    # Lane-dense padding everywhere (incl. both dims of A2 -> rows of x/y/out).
    n_p = _round_up(n, 128)
    f_p = _round_up(f + 1, 128)      # +1: ones column carrying the folded b1
    h2_p = _round_up(two_h, 128)
    c_p = _round_up(num_class, 128)

    f32, bf16 = jnp.float32, jnp.bfloat16

    # Parameter-only prep (once per forward, fused under jit with the kernel).
    alph = jax.nn.sigmoid(params["alpha_train"])                           # [N]
    d = jnp.clip(params["d"], 0.0, 1.0)
    weff = (params["w"] * d) @ params["w"].T - jnp.eye(two_h, dtype=f32)   # [2H,2H]
    a2 = alph[:, None] * 0.5 * (adj - jnp.eye(n, dtype=f32))               # [N,N]

    # Zero-pad everything to lane-dense shapes; MXU operands in bf16.
    x_p = jnp.zeros((n_p, f_p), bf16).at[:n, :f].set(x.astype(bf16))
    x_p = x_p.at[:n, f].set(1.0)                      # ones column -> b1 fold
    w1_p = jnp.zeros((f_p, h2_p), bf16).at[:f, :hidden].set(
        params["w1"].astype(bf16))
    w1_p = w1_p.at[f, :hidden].set(params["b1"].astype(bf16))
    a2_p = jnp.zeros((n_p, n_p), bf16).at[:n, :n].set(a2.astype(bf16))
    weff_p = jnp.zeros((h2_p, h2_p), bf16).at[:two_h, :two_h].set(
        weff.astype(bf16))
    w2_p = jnp.zeros((h2_p, c_p), bf16).at[:hidden, :num_class].set(
        params["w2"].astype(bf16))
    b2_p = jnp.zeros((1, c_p), f32).at[0, :num_class].set(params["b2"])

    kern = functools.partial(_wgnn_fused_kernel,
                             num_steps=int(num_steps),
                             dt=float(t_end) / float(num_steps))
    # No grid: a single invocation with whole (padded, lane-dense) arrays
    # resident in VMEM (<~0.25 MiB total at these sizes -> fits v5e/v6e/v7x).
    vmem_spec = pl.BlockSpec(memory_space=pltpu.MemorySpace.VMEM)
    out_p = pl.pallas_call(
        kern,
        out_shape=jax.ShapeDtypeStruct((n_p, c_p), jnp.float32),
        in_specs=[vmem_spec] * 6,
        out_specs=vmem_spec,
    )(x_p, w1_p, a2_p, weff_p, w2_p, b2_p)
    return out_p[:n, :num_class]


# ----------------------------------------------------------------------------
# Pure-JAX reference (mirrors the PyTorch forward, fixed-step RK4, full f32)
# ----------------------------------------------------------------------------
def wgnn_reference(params, x, adj, *, t_end=1.0, num_steps=8):
    hidden = params["w1"].shape[1]
    h = x @ params["w1"] + params["b1"]
    x0 = jnp.concatenate([h, jnp.zeros_like(h)], axis=1)
    d = jnp.clip(params["d"], 0.0, 1.0)
    w_eff = (params["w"] * d) @ params["w"].T
    alph = jax.nn.sigmoid(params["alpha_train"])[:, None]
    dt = float(t_end) / float(num_steps)

    def rhs(y):
        return alph * 0.5 * (adj @ y - y) + y @ w_eff - y + x0

    y = x0
    for _ in range(num_steps):
        k1 = rhs(y)
        k2 = rhs(y + 0.5 * dt * k1)
        k3 = rhs(y + 0.5 * dt * k2)
        k4 = rhs(y + dt * k3)
        y = y + (dt / 6.0) * (k1 + 2.0 * k2 + 2.0 * k3 + k4)
    z = jnp.maximum(y[:, :hidden], 0.0)
    return z @ params["w2"] + params["b2"]


# ----------------------------------------------------------------------------
# Deterministic parameter / input construction
# ----------------------------------------------------------------------------
def make_params(key, num_nodes, num_feature, hidden_dim, num_class, alpha):
    k1, k2, k3, k4, k5, k6 = jax.random.split(key, 6)
    lim1 = 1.0 / jnp.sqrt(num_feature)
    lim2 = 1.0 / jnp.sqrt(hidden_dim)
    two_h = 2 * hidden_dim
    return {
        "w1": jax.random.uniform(k1, (num_feature, hidden_dim), jnp.float32, -lim1, lim1),
        "b1": jax.random.uniform(k2, (hidden_dim,), jnp.float32, -lim1, lim1),
        "w2": jax.random.uniform(k3, (hidden_dim, num_class), jnp.float32, -lim2, lim2),
        "b2": jax.random.uniform(k4, (num_class,), jnp.float32, -lim2, lim2),
        "alpha_train": alpha * jnp.ones((num_nodes,), jnp.float32),
        # Module default init is w = I, d = 1; perturb slightly so the
        # y @ Weff path and the clamp(d, 0, 1) are actually exercised.
        "w": (jnp.eye(two_h, dtype=jnp.float32)
              + 0.05 * jax.random.normal(k5, (two_h, two_h), jnp.float32)),
        "d": jax.random.uniform(k6, (two_h,), jnp.float32, -0.25, 1.25),
    }


def make_adjacency(key, num_nodes):
    a = (jax.random.uniform(key, (num_nodes, num_nodes)) < 0.3).astype(jnp.float32)
    a = jnp.maximum(a, a.T)
    a = a + jnp.eye(num_nodes, dtype=jnp.float32)
    row_sum = jnp.sum(a, axis=1, keepdims=True)
    return a / row_sum


if __name__ == "__main__":
    NUM_NODES = 16
    NUM_FEATURE = 8
    HIDDEN_DIM = 16
    NUM_CLASS = 4
    ALPHA = 1.0
    T_END = 1.0
    NUM_STEPS = 8

    key = jax.random.PRNGKey(0)
    k_x, k_adj, k_p = jax.random.split(key, 3)

    x = jax.random.normal(k_x, (NUM_NODES, NUM_FEATURE), jnp.float32)
    adj = make_adjacency(k_adj, NUM_NODES)
    params = make_params(k_p, NUM_NODES, NUM_FEATURE, HIDDEN_DIM, NUM_CLASS, ALPHA)

    fwd = jax.jit(functools.partial(wgnn_forward, t_end=T_END, num_steps=NUM_STEPS))
    out = jax.block_until_ready(fwd(params, x, adj))

    assert out.shape == (NUM_NODES, NUM_CLASS)
    assert bool(jnp.all(jnp.isfinite(out)))

    ref = wgnn_reference(params, x, adj, t_end=T_END, num_steps=NUM_STEPS)
    max_err = float(jnp.max(jnp.abs(out - ref)))
    assert bool(jnp.allclose(out, ref, rtol=5e-2, atol=5e-2)), max_err

    print("KERNEL_OK")
</pallas_src>

<mosaic_0001>
module attributes {stable_mosaic.version = 11 : i64} {
  func.func @_wgnn_fused_kernel(%arg0: memref<128x128xbf16, #tpu.memory_space<vmem>>, %arg1: memref<128x128xbf16, #tpu.memory_space<vmem>>, %arg2: memref<128x128xbf16, #tpu.memory_space<vmem>>, %arg3: memref<128x128xbf16, #tpu.memory_space<vmem>>, %arg4: memref<128x128xbf16, #tpu.memory_space<vmem>>, %arg5: memref<1x128xf32, #tpu.memory_space<vmem>>, %arg6: memref<128x128xf32, #tpu.memory_space<vmem>>) attributes {dimension_semantics = [], scalar_prefetch = 0 : i64, scratch_operands = 0 : i64, tpu.core_type = #tpu.core_type<tc>} {
    %c0 = arith.constant 0 : index
    %c0_0 = arith.constant 0 : index
    %0 = vector.load %arg0[%c0, %c0_0] : memref<128x128xbf16, #tpu.memory_space<vmem>>, vector<128x128xbf16>
    %c0_1 = arith.constant 0 : index
    %c0_2 = arith.constant 0 : index
    %1 = vector.load %arg1[%c0_1, %c0_2] : memref<128x128xbf16, #tpu.memory_space<vmem>>, vector<128x128xbf16>
    %cst = arith.constant dense<0.000000e+00> : vector<128x128xf32>
    %2 = tpu.matmul %0, %1, %cst {dimension_numbers = #tpu.dot_dimension_numbers<[1], [0], [0], [1], [0, 0, 1, 1], [], []>} : vector<128x128xbf16>, vector<128x128xbf16>, vector<128x128xf32> -> vector<128x128xf32>
    %c0_3 = arith.constant 0 : index
    %c0_4 = arith.constant 0 : index
    %3 = vector.load %arg2[%c0_3, %c0_4] : memref<128x128xbf16, #tpu.memory_space<vmem>>, vector<128x128xbf16>
    %c0_5 = arith.constant 0 : index
    %c0_6 = arith.constant 0 : index
    %4 = vector.load %arg3[%c0_5, %c0_6] : memref<128x128xbf16, #tpu.memory_space<vmem>>, vector<128x128xbf16>
    %5 = arith.truncf %2 : vector<128x128xf32> to vector<128x128xbf16>
    %cst_7 = arith.constant dense<0.000000e+00> : vector<128x128xf32>
    %6 = tpu.matmul %3, %5, %cst_7 {dimension_numbers = #tpu.dot_dimension_numbers<[1], [0], [0], [1], [0, 0, 1, 1], [], []>} : vector<128x128xbf16>, vector<128x128xbf16>, vector<128x128xf32> -> vector<128x128xf32>
    %cst_8 = arith.constant dense<0.000000e+00> : vector<128x128xf32>
    %7 = tpu.matmul %5, %4, %cst_8 {dimension_numbers = #tpu.dot_dimension_numbers<[1], [0], [0], [1], [0, 0, 1, 1], [], []>} : vector<128x128xbf16>, vector<128x128xbf16>, vector<128x128xf32> -> vector<128x128xf32>
    %8 = arith.addf %6, %7 : vector<128x128xf32>
    %9 = arith.addf %8, %2 : vector<128x128xf32>
    %cst_9 = arith.constant 0.020833334 : f32
    %10 = vector.broadcast %cst_9 : f32 to vector<128x128xf32>
    %11 = arith.mulf %10, %9 : vector<128x128xf32>
    %12 = arith.addf %2, %11 : vector<128x128xf32>
    %cst_10 = arith.constant 6.250000e-02 : f32
    %13 = vector.broadcast %cst_10 : f32 to vector<128x128xf32>
    %14 = arith.mulf %13, %9 : vector<128x128xf32>
    %15 = arith.addf %2, %14 : vector<128x128xf32>
    %16 = arith.truncf %15 : vector<128x128xf32> to vector<128x128xbf16>
    %cst_11 = arith.constant dense<0.000000e+00> : vector<128x128xf32>
    %17 = tpu.matmul %3, %16, %cst_11 {dimension_numbers = #tpu.dot_dimension_numbers<[1], [0], [0], [1], [0, 0, 1, 1], [], []>} : vector<128x128xbf16>, vector<128x128xbf16>, vector<128x128xf32> -> vector<128x128xf32>
    %cst_12 = arith.constant dense<0.000000e+00> : vector<128x128xf32>
    %18 = tpu.matmul %16, %4, %cst_12 {dimension_numbers = #tpu.dot_dimension_numbers<[1], [0], [0], [1], [0, 0, 1, 1], [], []>} : vector<128x128xbf16>, vector<128x128xbf16>, vector<128x128xf32> -> vector<128x128xf32>
    %19 = arith.addf %17, %18 : vector<128x128xf32>
    %20 = arith.addf %19, %2 : vector<128x128xf32>
    %cst_13 = arith.constant 0.0416666679 : f32
    %21 = vector.broadcast %cst_13 : f32 to vector<128x128xf32>
    %22 = arith.mulf %21, %20 : vector<128x128xf32>
    %23 = arith.addf %12, %22 : vector<128x128xf32>
    %cst_14 = arith.constant 6.250000e-02 : f32
    %24 = vector.broadcast %cst_14 : f32 to vector<128x128xf32>
    %25 = arith.mulf %24, %20 : vector<128x128xf32>
    %26 = arith.addf %2, %25 : vector<128x128xf32>
    %27 = arith.truncf %26 : vector<128x128xf32> to vector<128x128xbf16>
    %cst_15 = arith.constant dense<0.000000e+00> : vector<128x128xf32>
    %28 = tpu.matmul %3, %27, %cst_15 {dimension_numbers = #tpu.dot_dimension_numbers<[1], [0], [0], [1], [0, 0, 1, 1], [], []>} : vector<128x128xbf16>, vector<128x128xbf16>, vector<128x128xf32> -> vector<128x128xf32>
    %cst_16 = arith.constant dense<0.000000e+00> : vector<128x128xf32>
    %29 = tpu.matmul %27, %4, %cst_16 {dimension_numbers = #tpu.dot_dimension_numbers<[1], [0], [0], [1], [0, 0, 1, 1], [], []>} : vector<128x128xbf16>, vector<128x128xbf16>, vector<128x128xf32> -> vector<128x128xf32>
    %30 = arith.addf %28, %29 : vector<128x128xf32>
    %31 = arith.addf %30, %2 : vector<128x128xf32>
    %cst_17 = arith.constant 0.0416666679 : f32
    %32 = vector.broadcast %cst_17 : f32 to vector<128x128xf32>
    %33 = arith.mulf %32, %31 : vector<128x128xf32>
    %34 = arith.addf %23, %33 : vector<128x128xf32>
    %cst_18 = arith.constant 1.250000e-01 : f32
    %35 = vector.broadcast %cst_18 : f32 to vector<128x128xf32>
    %36 = arith.mulf %35, %31 : vector<128x128xf32>
    %37 = arith.addf %2, %36 : vector<128x128xf32>
    %38 = arith.truncf %37 : vector<128x128xf32> to vector<128x128xbf16>
    %cst_19 = arith.constant dense<0.000000e+00> : vector<128x128xf32>
    %39 = tpu.matmul %3, %38, %cst_19 {dimension_numbers = #tpu.dot_dimension_numbers<[1], [0], [0], [1], [0, 0, 1, 1], [], []>} : vector<128x128xbf16>, vector<128x128xbf16>, vector<128x128xf32> -> vector<128x128xf32>
    %cst_20 = arith.constant dense<0.000000e+00> : vector<128x128xf32>
    %40 = tpu.matmul %38, %4, %cst_20 {dimension_numbers = #tpu.dot_dimension_numbers<[1], [0], [0], [1], [0, 0, 1, 1], [], []>} : vector<128x128xbf16>, vector<128x128xbf16>, vector<128x128xf32> -> vector<128x128xf32>
    %41 = arith.addf %39, %40 : vector<128x128xf32>
    %42 = arith.addf %41, %2 : vector<128x128xf32>
    %cst_21 = arith.constant 0.020833334 : f32
    %43 = vector.broadcast %cst_21 : f32 to vector<128x128xf32>
    %44 = arith.mulf %43, %42 : vector<128x128xf32>
    %45 = arith.addf %34, %44 : vector<128x128xf32>
    %46 = arith.truncf %45 : vector<128x128xf32> to vector<128x128xbf16>
    %cst_22 = arith.constant dense<0.000000e+00> : vector<128x128xf32>
    %47 = tpu.matmul %3, %46, %cst_22 {dimension_numbers = #tpu.dot_dimension_numbers<[1], [0], [0], [1], [0, 0, 1, 1], [], []>} : vector<128x128xbf16>, vector<128x128xbf16>, vector<128x128xf32> -> vector<128x128xf32>
    %cst_23 = arith.constant dense<0.000000e+00> : vector<128x128xf32>
    %48 = tpu.matmul %46, %4, %cst_23 {dimension_numbers = #tpu.dot_dimension_numbers<[1], [0], [0], [1], [0, 0, 1, 1], [], []>} : vector<128x128xbf16>, vector<128x128xbf16>, vector<128x128xf32> -> vector<128x128xf32>
    %49 = arith.addf %47, %48 : vector<128x128xf32>
    %50 = arith.addf %49, %2 : vector<128x128xf32>
    %cst_24 = arith.constant 0.020833334 : f32
    %51 = vector.broadcast %cst_24 : f32 to vector<128x128xf32>
    %52 = arith.mulf %51, %50 : vector<128x128xf32>
    %53 = arith.addf %45, %52 : vector<128x128xf32>
    %cst_25 = arith.constant 6.250000e-02 : f32
    %54 = vector.broadcast %cst_25 : f32 to vector<128x128xf32>
    %55 = arith.mulf %54, %50 : vector<128x128xf32>
    %56 = arith.addf %45, %55 : vector<128x128xf32>
    %57 = arith.truncf %56 : vector<128x128xf32> to vector<128x128xbf16>
    %cst_26 = arith.constant dense<0.000000e+00> : vector<128x128xf32>
    %58 = tpu.matmul %3, %57, %cst_26 {dimension_numbers = #tpu.dot_dimension_numbers<[1], [0], [0], [1], [0, 0, 1, 1], [], []>} : vector<128x128xbf16>, vector<128x128xbf16>, vector<128x128xf32> -> vector<128x128xf32>
    %cst_27 = arith.constant dense<0.000000e+00> : vector<128x128xf32>
    %59 = tpu.matmul %57, %4, %cst_27 {dimension_numbers = #tpu.dot_dimension_numbers<[1], [0], [0], [1], [0, 0, 1, 1], [], []>} : vector<128x128xbf16>, vector<128x128xbf16>, vector<128x128xf32> -> vector<128x128xf32>
    %60 = arith.addf %58, %59 : vector<128x128xf32>
    %61 = arith.addf %60, %2 : vector<128x128xf32>
    %cst_28 = arith.constant 0.0416666679 : f32
    %62 = vector.broadcast %cst_28 : f32 to vector<128x128xf32>
    %63 = arith.mulf %62, %61 : vector<128x128xf32>
    %64 = arith.addf %53, %63 : vector<128x128xf32>
    %cst_29 = arith.constant 6.250000e-02 : f32
    %65 = vector.broadcast %cst_29 : f32 to vector<128x128xf32>
    %66 = arith.mulf %65, %61 : vector<128x128xf32>
    %67 = arith.addf %45, %66 : vector<128x128xf32>
    %68 = arith.truncf %67 : vector<128x128xf32> to vector<128x128xbf16>
    %cst_30 = arith.constant dense<0.000000e+00> : vector<128x128xf32>
    %69 = tpu.matmul %3, %68, %cst_30 {dimension_numbers = #tpu.dot_dimension_numbers<[1], [0], [0], [1], [0, 0, 1, 1], [], []>} : vector<128x128xbf16>, vector<128x128xbf16>, vector<128x128xf32> -> vector<128x128xf32>
    %cst_31 = arith.constant dense<0.000000e+00> : vector<128x128xf32>
    %70 = tpu.matmul %68, %4, %cst_31 {dimension_numbers = #tpu.dot_dimension_numbers<[1], [0], [0], [1], [0, 0, 1, 1], [], []>} : vector<128x128xbf16>, vector<128x128xbf16>, vector<128x128xf32> -> vector<128x128xf32>
    %71 = arith.addf %69, %70 : vector<128x128xf32>
    %72 = arith.addf %71, %2 : vector<128x128xf32>
    %cst_32 = arith.constant 0.0416666679 : f32
    %73 = vector.broadcast %cst_32 : f32 to vector<128x128xf32>
    %74 = arith.mulf %73, %72 : vector<128x128xf32>
    %75 = arith.addf %64, %74 : vector<128x128xf32>
    %cst_33 = arith.constant 1.250000e-01 : f32
    %76 = vector.broadcast %cst_33 : f32 to vector<128x128xf32>
    %77 = arith.mulf %76, %72 : vector<128x128xf32>
    %78 = arith.addf %45, %77 : vector<128x128xf32>
    %79 = arith.truncf %78 : vector<128x128xf32> to vector<128x128xbf16>
    %cst_34 = arith.constant dense<0.000000e+00> : vector<128x128xf32>
    %80 = tpu.matmul %3, %79, %cst_34 {dimension_numbers = #tpu.dot_dimension_numbers<[1], [0], [0], [1], [0, 0, 1, 1], [], []>} : vector<128x128xbf16>, vector<128x128xbf16>, vector<128x128xf32> -> vector<128x128xf32>
    %cst_35 = arith.constant dense<0.000000e+00> : vector<128x128xf32>
    %81 = tpu.matmul %79, %4, %cst_35 {dimension_numbers = #tpu.dot_dimension_numbers<[1], [0], [0], [1], [0, 0, 1, 1], [], []>} : vector<128x128xbf16>, vector<128x128xbf16>, vector<128x128xf32> -> vector<128x128xf32>
    %82 = arith.addf %80, %81 : vector<128x128xf32>
    %83 = arith.addf %82, %2 : vector<128x128xf32>
    %cst_36 = arith.constant 0.020833334 : f32
    %84 = vector.broadcast %cst_36 : f32 to vector<128x128xf32>
    %85 = arith.mulf %84, %83 : vector<128x128xf32>
    %86 = arith.addf %75, %85 : vector<128x128xf32>
    %87 = arith.truncf %86 : vector<128x128xf32> to vector<128x128xbf16>
    %cst_37 = arith.constant dense<0.000000e+00> : vector<128x128xf32>
    %88 = tpu.matmul %3, %87, %cst_37 {dimension_numbers = #tpu.dot_dimension_numbers<[1], [0], [0], [1], [0, 0, 1, 1], [], []>} : vector<128x128xbf16>, vector<128x128xbf16>, vector<128x128xf32> -> vector<128x128xf32>
    %cst_38 = arith.constant dense<0.000000e+00> : vector<128x128xf32>
    %89 = tpu.matmul %87, %4, %cst_38 {dimension_numbers = #tpu.dot_dimension_numbers<[1], [0], [0], [1], [0, 0, 1, 1], [], []>} : vector<128x128xbf16>, vector<128x128xbf16>, vector<128x128xf32> -> vector<128x128xf32>
    %90 = arith.addf %88, %89 : vector<128x128xf32>
    %91 = arith.addf %90, %2 : vector<128x128xf32>
    %cst_39 = arith.constant 0.020833334 : f32
    %92 = vector.broadcast %cst_39 : f32 to vector<128x128xf32>
    %93 = arith.mulf %92, %91 : vector<128x128xf32>
    %94 = arith.addf %86, %93 : vector<128x128xf32>
    %cst_40 = arith.constant 6.250000e-02 : f32
    %95 = vector.broadcast %cst_40 : f32 to vector<128x128xf32>
    %96 = arith.mulf %95, %91 : vector<128x128xf32>
    %97 = arith.addf %86, %96 : vector<128x128xf32>
    %98 = arith.truncf %97 : vector<128x128xf32> to vector<128x128xbf16>
    %cst_41 = arith.constant dense<0.000000e+00> : vector<128x128xf32>
    %99 = tpu.matmul %3, %98, %cst_41 {dimension_numbers = #tpu.dot_dimension_numbers<[1], [0], [0], [1], [0, 0, 1, 1], [], []>} : vector<128x128xbf16>, vector<128x128xbf16>, vector<128x128xf32> -> vector<128x128xf32>
    %cst_42 = arith.constant dense<0.000000e+00> : vector<128x128xf32>
    %100 = tpu.matmul %98, %4, %cst_42 {dimension_numbers = #tpu.dot_dimension_numbers<[1], [0], [0], [1], [0, 0, 1, 1], [], []>} : vector<128x128xbf16>, vector<128x128xbf16>, vector<128x128xf32> -> vector<128x128xf32>
    %101 = arith.addf %99, %100 : vector<128x128xf32>
    %102 = arith.addf %101, %2 : vector<128x128xf32>
    %cst_43 = arith.constant 0.0416666679 : f32
    %103 = vector.broadcast %cst_43 : f32 to vector<128x128xf32>
    %104 = arith.mulf %103, %102 : vector<128x128xf32>
    %105 = arith.addf %94, %104 : vector<128x128xf32>
    %cst_44 = arith.constant 6.250000e-02 : f32
    %106 = vector.broadcast %cst_44 : f32 to vector<128x128xf32>
    %107 = arith.mulf %106, %102 : vector<128x128xf32>
    %108 = arith.addf %86, %107 : vector<128x128xf32>
    %109 = arith.truncf %108 : vector<128x128xf32> to vector<128x128xbf16>
    %cst_45 = arith.constant dense<0.000000e+00> : vector<128x128xf32>
    %110 = tpu.matmul %3, %109, %cst_45 {dimension_numbers = #tpu.dot_dimension_numbers<[1], [0], [0], [1], [0, 0, 1, 1], [], []>} : vector<128x128xbf16>, vector<128x128xbf16>, vector<128x128xf32> -> vector<128x128xf32>
    %cst_46 = arith.constant dense<0.000000e+00> : vector<128x128xf32>
    %111 = tpu.matmul %109, %4, %cst_46 {dimension_numbers = #tpu.dot_dimension_numbers<[1], [0], [0], [1], [0, 0, 1, 1], [], []>} : vector<128x128xbf16>, vector<128x128xbf16>, vector<128x128xf32> -> vector<128x128xf32>
    %112 = arith.addf %110, %111 : vector<128x128xf32>
    %113 = arith.addf %112, %2 : vector<128x128xf32>
    %cst_47 = arith.constant 0.0416666679 : f32
    %114 = vector.broadcast %cst_47 : f32 to vector<128x128xf32>
    %115 = arith.mulf %114, %113 : vector<128x128xf32>
    %116 = arith.addf %105, %115 : vector<128x128xf32>
    %cst_48 = arith.constant 1.250000e-01 : f32
    %117 = vector.broadcast %cst_48 : f32 to vector<128x128xf32>
    %118 = arith.mulf %117, %113 : vector<128x128xf32>
    %119 = arith.addf %86, %118 : vector<128x128xf32>
    %120 = arith.truncf %119 : vector<128x128xf32> to vector<128x128xbf16>
    %cst_49 = arith.constant dense<0.000000e+00> : vector<128x128xf32>
    %121 = tpu.matmul %3, %120, %cst_49 {dimension_numbers = #tpu.dot_dimension_numbers<[1], [0], [0], [1], [0, 0, 1, 1], [], []>} : vector<128x128xbf16>, vector<128x128xbf16>, vector<128x128xf32> -> vector<128x128xf32>
    %cst_50 = arith.constant dense<0.000000e+00> : vector<128x128xf32>
    %122 = tpu.matmul %120, %4, %cst_50 {dimension_numbers = #tpu.dot_dimension_numbers<[1], [0], [0], [1], [0, 0, 1, 1], [], []>} : vector<128x128xbf16>, vector<128x128xbf16>, vector<128x128xf32> -> vector<128x128xf32>
    %123 = arith.addf %121, %122 : vector<128x128xf32>
    %124 = arith.addf %123, %2 : vector<128x128xf32>
    %cst_51 = arith.constant 0.020833334 : f32
    %125 = vector.broadcast %cst_51 : f32 to vector<128x128xf32>
    %126 = arith.mulf %125, %124 : vector<128x128xf32>
    %127 = arith.addf %116, %126 : vector<128x128xf32>
    %128 = arith.truncf %127 : vector<128x128xf32> to vector<128x128xbf16>
    %cst_52 = arith.constant dense<0.000000e+00> : vector<128x128xf32>
    %129 = tpu.matmul %3, %128, %cst_52 {dimension_numbers = #tpu.dot_dimension_numbers<[1], [0], [0], [1], [0, 0, 1, 1], [], []>} : vector<128x128xbf16>, vector<128x128xbf16>, vector<128x128xf32> -> vector<128x128xf32>
    %cst_53 = arith.constant dense<0.000000e+00> : vector<128x128xf32>
    %130 = tpu.matmul %128, %4, %cst_53 {dimension_numbers = #tpu.dot_dimension_numbers<[1], [0], [0], [1], [0, 0, 1, 1], [], []>} : vector<128x128xbf16>, vector<128x128xbf16>, vector<128x128xf32> -> vector<128x128xf32>
    %131 = arith.addf %129, %130 : vector<128x128xf32>
    %132 = arith.addf %131, %2 : vector<128x128xf32>
    %cst_54 = arith.constant 0.020833334 : f32
    %133 = vector.broadcast %cst_54 : f32 to vector<128x128xf32>
    %134 = arith.mulf %133, %132 : vector<128x128xf32>
    %135 = arith.addf %127, %134 : vector<128x128xf32>
    %cst_55 = arith.constant 6.250000e-02 : f32
    %136 = vector.broadcast %cst_55 : f32 to vector<128x128xf32>
    %137 = arith.mulf %136, %132 : vector<128x128xf32>
    %138 = arith.addf %127, %137 : vector<128x128xf32>
    %139 = arith.truncf %138 : vector<128x128xf32> to vector<128x128xbf16>
    %cst_56 = arith.constant dense<0.000000e+00> : vector<128x128xf32>
    %140 = tpu.matmul %3, %139, %cst_56 {dimension_numbers = #tpu.dot_dimension_numbers<[1], [0], [0], [1], [0, 0, 1, 1], [], []>} : vector<128x128xbf16>, vector<128x128xbf16>, vector<128x128xf32> -> vector<128x128xf32>
    %cst_57 = arith.constant dense<0.000000e+00> : vector<128x128xf32>
    %141 = tpu.matmul %139, %4, %cst_57 {dimension_numbers = #tpu.dot_dimension_numbers<[1], [0], [0], [1], [0, 0, 1, 1], [], []>} : vector<128x128xbf16>, vector<128x128xbf16>, vector<128x128xf32> -> vector<128x128xf32>
    %142 = arith.addf %140, %141 : vector<128x128xf32>
    %143 = arith.addf %142, %2 : vector<128x128xf32>
    %cst_58 = arith.constant 0.0416666679 : f32
    %144 = vector.broadcast %cst_58 : f32 to vector<128x128xf32>
    %145 = arith.mulf %144, %143 : vector<128x128xf32>
    %146 = arith.addf %135, %145 : vector<128x128xf32>
    %cst_59 = arith.constant 6.250000e-02 : f32
    %147 = vector.broadcast %cst_59 : f32 to vector<128x128xf32>
    %148 = arith.mulf %147, %143 : vector<128x128xf32>
    %149 = arith.addf %127, %148 : vector<128x128xf32>
    %150 = arith.truncf %149 : vector<128x128xf32> to vector<128x128xbf16>
    %cst_60 = arith.constant dense<0.000000e+00> : vector<128x128xf32>
    %151 = tpu.matmul %3, %150, %cst_60 {dimension_numbers = #tpu.dot_dimension_numbers<[1], [0], [0], [1], [0, 0, 1, 1], [], []>} : vector<128x128xbf16>, vector<128x128xbf16>, vector<128x128xf32> -> vector<128x128xf32>
    %cst_61 = arith.constant dense<0.000000e+00> : vector<128x128xf32>
    %152 = tpu.matmul %150, %4, %cst_61 {dimension_numbers = #tpu.dot_dimension_numbers<[1], [0], [0], [1], [0, 0, 1, 1], [], []>} : vector<128x128xbf16>, vector<128x128xbf16>, vector<128x128xf32> -> vector<128x128xf32>
    %153 = arith.addf %151, %152 : vector<128x128xf32>
    %154 = arith.addf %153, %2 : vector<128x128xf32>
    %cst_62 = arith.constant 0.0416666679 : f32
    %155 = vector.broadcast %cst_62 : f32 to vector<128x128xf32>
    %156 = arith.mulf %155, %154 : vector<128x128xf32>
    %157 = arith.addf %146, %156 : vector<128x128xf32>
    %cst_63 = arith.constant 1.250000e-01 : f32
    %158 = vector.broadcast %cst_63 : f32 to vector<128x128xf32>
    %159 = arith.mulf %158, %154 : vector<128x128xf32>
    %160 = arith.addf %127, %159 : vector<128x128xf32>
    %161 = arith.truncf %160 : vector<128x128xf32> to vector<128x128xbf16>
    %cst_64 = arith.constant dense<0.000000e+00> : vector<128x128xf32>
    %162 = tpu.matmul %3, %161, %cst_64 {dimension_numbers = #tpu.dot_dimension_numbers<[1], [0], [0], [1], [0, 0, 1, 1], [], []>} : vector<128x128xbf16>, vector<128x128xbf16>, vector<128x128xf32> -> vector<128x128xf32>
    %cst_65 = arith.constant dense<0.000000e+00> : vector<128x128xf32>
    %163 = tpu.matmul %161, %4, %cst_65 {dimension_numbers = #tpu.dot_dimension_numbers<[1], [0], [0], [1], [0, 0, 1, 1], [], []>} : vector<128x128xbf16>, vector<128x128xbf16>, vector<128x128xf32> -> vector<128x128xf32>
    %164 = arith.addf %162, %163 : vector<128x128xf32>
    %165 = arith.addf %164, %2 : vector<128x128xf32>
    %cst_66 = arith.constant 0.020833334 : f32
    %166 = vector.broadcast %cst_66 : f32 to vector<128x128xf32>
    %167 = arith.mulf %166, %165 : vector<128x128xf32>
    %168 = arith.addf %157, %167 : vector<128x128xf32>
    %169 = arith.truncf %168 : vector<128x128xf32> to vector<128x128xbf16>
    %cst_67 = arith.constant dense<0.000000e+00> : vector<128x128xf32>
    %170 = tpu.matmul %3, %169, %cst_67 {dimension_numbers = #tpu.dot_dimension_numbers<[1], [0], [0], [1], [0, 0, 1, 1], [], []>} : vector<128x128xbf16>, vector<128x128xbf16>, vector<128x128xf32> -> vector<128x128xf32>
    %cst_68 = arith.constant dense<0.000000e+00> : vector<128x128xf32>
    %171 = tpu.matmul %169, %4, %cst_68 {dimension_numbers = #tpu.dot_dimension_numbers<[1], [0], [0], [1], [0, 0, 1, 1], [], []>} : vector<128x128xbf16>, vector<128x128xbf16>, vector<128x128xf32> -> vector<128x128xf32>
    %172 = arith.addf %170, %171 : vector<128x128xf32>
    %173 = arith.addf %172, %2 : vector<128x128xf32>
    %cst_69 = arith.constant 0.020833334 : f32
    %174 = vector.broadcast %cst_69 : f32 to vector<128x128xf32>
    %175 = arith.mulf %174, %173 : vector<128x128xf32>
    %176 = arith.addf %168, %175 : vector<128x128xf32>
    %cst_70 = arith.constant 6.250000e-02 : f32
    %177 = vector.broadcast %cst_70 : f32 to vector<128x128xf32>
    %178 = arith.mulf %177, %173 : vector<128x128xf32>
    %179 = arith.addf %168, %178 : vector<128x128xf32>
    %180 = arith.truncf %179 : vector<128x128xf32> to vector<128x128xbf16>
    %cst_71 = arith.constant dense<0.000000e+00> : vector<128x128xf32>
    %181 = tpu.matmul %3, %180, %cst_71 {dimension_numbers = #tpu.dot_dimension_numbers<[1], [0], [0], [1], [0, 0, 1, 1], [], []>} : vector<128x128xbf16>, vector<128x128xbf16>, vector<128x128xf32> -> vector<128x128xf32>
    %cst_72 = arith.constant dense<0.000000e+00> : vector<128x128xf32>
    %182 = tpu.matmul %180, %4, %cst_72 {dimension_numbers = #tpu.dot_dimension_numbers<[1], [0], [0], [1], [0, 0, 1, 1], [], []>} : vector<128x128xbf16>, vector<128x128xbf16>, vector<128x128xf32> -> vector<128x128xf32>
    %183 = arith.addf %181, %182 : vector<128x128xf32>
    %184 = arith.addf %183, %2 : vector<128x128xf32>
    %cst_73 = arith.constant 0.0416666679 : f32
    %185 = vector.broadcast %cst_73 : f32 to vector<128x128xf32>
    %186 = arith.mulf %185, %184 : vector<128x128xf32>
    %187 = arith.addf %176, %186 : vector<128x128xf32>
    %cst_74 = arith.constant 6.250000e-02 : f32
    %188 = vector.broadcast %cst_74 : f32 to vector<128x128xf32>
    %189 = arith.mulf %188, %184 : vector<128x128xf32>
    %190 = arith.addf %168, %189 : vector<128x128xf32>
    %191 = arith.truncf %190 : vector<128x128xf32> to vector<128x128xbf16>
    %cst_75 = arith.constant dense<0.000000e+00> : vector<128x128xf32>
    %192 = tpu.matmul %3, %191, %cst_75 {dimension_numbers = #tpu.dot_dimension_numbers<[1], [0], [0], [1], [0, 0, 1, 1], [], []>} : vector<128x128xbf16>, vector<128x128xbf16>, vector<128x128xf32> -> vector<128x128xf32>
    %cst_76 = arith.constant dense<0.000000e+00> : vector<128x128xf32>
    %193 = tpu.matmul %191, %4, %cst_76 {dimension_numbers = #tpu.dot_dimension_numbers<[1], [0], [0], [1], [0, 0, 1, 1], [], []>} : vector<128x128xbf16>, vector<128x128xbf16>, vector<128x128xf32> -> vector<128x128xf32>
    %194 = arith.addf %192, %193 : vector<128x128xf32>
    %195 = arith.addf %194, %2 : vector<128x128xf32>
    %cst_77 = arith.constant 0.0416666679 : f32
    %196 = vector.broadcast %cst_77 : f32 to vector<128x128xf32>
    %197 = arith.mulf %196, %195 : vector<128x128xf32>
    %198 = arith.addf %187, %197 : vector<128x128xf32>
    %cst_78 = arith.constant 1.250000e-01 : f32
    %199 = vector.broadcast %cst_78 : f32 to vector<128x128xf32>
    %200 = arith.mulf %199, %195 : vector<128x128xf32>
    %201 = arith.addf %168, %200 : vector<128x128xf32>
    %202 = arith.truncf %201 : vector<128x128xf32> to vector<128x128xbf16>
    %cst_79 = arith.constant dense<0.000000e+00> : vector<128x128xf32>
    %203 = tpu.matmul %3, %202, %cst_79 {dimension_numbers = #tpu.dot_dimension_numbers<[1], [0], [0], [1], [0, 0, 1, 1], [], []>} : vector<128x128xbf16>, vector<128x128xbf16>, vector<128x128xf32> -> vector<128x128xf32>
    %cst_80 = arith.constant dense<0.000000e+00> : vector<128x128xf32>
    %204 = tpu.matmul %202, %4, %cst_80 {dimension_numbers = #tpu.dot_dimension_numbers<[1], [0], [0], [1], [0, 0, 1, 1], [], []>} : vector<128x128xbf16>, vector<128x128xbf16>, vector<128x128xf32> -> vector<128x128xf32>
    %205 = arith.addf %203, %204 : vector<128x128xf32>
    %206 = arith.addf %205, %2 : vector<128x128xf32>
    %cst_81 = arith.constant 0.020833334 : f32
    %207 = vector.broadcast %cst_81 : f32 to vector<128x128xf32>
    %208 = arith.mulf %207, %206 : vector<128x128xf32>
    %209 = arith.addf %198, %208 : vector<128x128xf32>
    %210 = arith.truncf %209 : vector<128x128xf32> to vector<128x128xbf16>
    %cst_82 = arith.constant dense<0.000000e+00> : vector<128x128xf32>
    %211 = tpu.matmul %3, %210, %cst_82 {dimension_numbers = #tpu.dot_dimension_numbers<[1], [0], [0], [1], [0, 0, 1, 1], [], []>} : vector<128x128xbf16>, vector<128x128xbf16>, vector<128x128xf32> -> vector<128x128xf32>
    %cst_83 = arith.constant dense<0.000000e+00> : vector<128x128xf32>
    %212 = tpu.matmul %210, %4, %cst_83 {dimension_numbers = #tpu.dot_dimension_numbers<[1], [0], [0], [1], [0, 0, 1, 1], [], []>} : vector<128x128xbf16>, vector<128x128xbf16>, vector<128x128xf32> -> vector<128x128xf32>
    %213 = arith.addf %211, %212 : vector<128x128xf32>
    %214 = arith.addf %213, %2 : vector<128x128xf32>
    %cst_84 = arith.constant 0.020833334 : f32
    %215 = vector.broadcast %cst_84 : f32 to vector<128x128xf32>
    %216 = arith.mulf %215, %214 : vector<128x128xf32>
    %217 = arith.addf %209, %216 : vector<128x128xf32>
    %cst_85 = arith.constant 6.250000e-02 : f32
    %218 = vector.broadcast %cst_85 : f32 to vector<128x128xf32>
    %219 = arith.mulf %218, %214 : vector<128x128xf32>
    %220 = arith.addf %209, %219 : vector<128x128xf32>
    %221 = arith.truncf %220 : vector<128x128xf32> to vector<128x128xbf16>
    %cst_86 = arith.constant dense<0.000000e+00> : vector<128x128xf32>
    %222 = tpu.matmul %3, %221, %cst_86 {dimension_numbers = #tpu.dot_dimension_numbers<[1], [0], [0], [1], [0, 0, 1, 1], [], []>} : vector<128x128xbf16>, vector<128x128xbf16>, vector<128x128xf32> -> vector<128x128xf32>
    %cst_87 = arith.constant dense<0.000000e+00> : vector<128x128xf32>
    %223 = tpu.matmul %221, %4, %cst_87 {dimension_numbers = #tpu.dot_dimension_numbers<[1], [0], [0], [1], [0, 0, 1, 1], [], []>} : vector<128x128xbf16>, vector<128x128xbf16>, vector<128x128xf32> -> vector<128x128xf32>
    %224 = arith.addf %222, %223 : vector<128x128xf32>
    %225 = arith.addf %224, %2 : vector<128x128xf32>
    %cst_88 = arith.constant 0.0416666679 : f32
    %226 = vector.broadcast %cst_88 : f32 to vector<128x128xf32>
    %227 = arith.mulf %226, %225 : vector<128x128xf32>
    %228 = arith.addf %217, %227 : vector<128x128xf32>
    %cst_89 = arith.constant 6.250000e-02 : f32
    %229 = vector.broadcast %cst_89 : f32 to vector<128x128xf32>
    %230 = arith.mulf %229, %225 : vector<128x128xf32>
    %231 = arith.addf %209, %230 : vector<128x128xf32>
    %232 = arith.truncf %231 : vector<128x128xf32> to vector<128x128xbf16>
    %cst_90 = arith.constant dense<0.000000e+00> : vector<128x128xf32>
    %233 = tpu.matmul %3, %232, %cst_90 {dimension_numbers = #tpu.dot_dimension_numbers<[1], [0], [0], [1], [0, 0, 1, 1], [], []>} : vector<128x128xbf16>, vector<128x128xbf16>, vector<128x128xf32> -> vector<128x128xf32>
    %cst_91 = arith.constant dense<0.000000e+00> : vector<128x128xf32>
    %234 = tpu.matmul %232, %4, %cst_91 {dimension_numbers = #tpu.dot_dimension_numbers<[1], [0], [0], [1], [0, 0, 1, 1], [], []>} : vector<128x128xbf16>, vector<128x128xbf16>, vector<128x128xf32> -> vector<128x128xf32>
    %235 = arith.addf %233, %234 : vector<128x128xf32>
    %236 = arith.addf %235, %2 : vector<128x128xf32>
    %cst_92 = arith.constant 0.0416666679 : f32
    %237 = vector.broadcast %cst_92 : f32 to vector<128x128xf32>
    %238 = arith.mulf %237, %236 : vector<128x128xf32>
    %239 = arith.addf %228, %238 : vector<128x128xf32>
    %cst_93 = arith.constant 1.250000e-01 : f32
    %240 = vector.broadcast %cst_93 : f32 to vector<128x128xf32>
    %241 = arith.mulf %240, %236 : vector<128x128xf32>
    %242 = arith.addf %209, %241 : vector<128x128xf32>
    %243 = arith.truncf %242 : vector<128x128xf32> to vector<128x128xbf16>
    %cst_94 = arith.constant dense<0.000000e+00> : vector<128x128xf32>
    %244 = tpu.matmul %3, %243, %cst_94 {dimension_numbers = #tpu.dot_dimension_numbers<[1], [0], [0], [1], [0, 0, 1, 1], [], []>} : vector<128x128xbf16>, vector<128x128xbf16>, vector<128x128xf32> -> vector<128x128xf32>
    %cst_95 = arith.constant dense<0.000000e+00> : vector<128x128xf32>
    %245 = tpu.matmul %243, %4, %cst_95 {dimension_numbers = #tpu.dot_dimension_numbers<[1], [0], [0], [1], [0, 0, 1, 1], [], []>} : vector<128x128xbf16>, vector<128x128xbf16>, vector<128x128xf32> -> vector<128x128xf32>
    %246 = arith.addf %244, %245 : vector<128x128xf32>
    %247 = arith.addf %246, %2 : vector<128x128xf32>
    %cst_96 = arith.constant 0.020833334 : f32
    %248 = vector.broadcast %cst_96 : f32 to vector<128x128xf32>
    %249 = arith.mulf %248, %247 : vector<128x128xf32>
    %250 = arith.addf %239, %249 : vector<128x128xf32>
    %251 = arith.truncf %250 : vector<128x128xf32> to vector<128x128xbf16>
    %cst_97 = arith.constant dense<0.000000e+00> : vector<128x128xf32>
    %252 = tpu.matmul %3, %251, %cst_97 {dimension_numbers = #tpu.dot_dimension_numbers<[1], [0], [0], [1], [0, 0, 1, 1], [], []>} : vector<128x128xbf16>, vector<128x128xbf16>, vector<128x128xf32> -> vector<128x128xf32>
    %cst_98 = arith.constant dense<0.000000e+00> : vector<128x128xf32>
    %253 = tpu.matmul %251, %4, %cst_98 {dimension_numbers = #tpu.dot_dimension_numbers<[1], [0], [0], [1], [0, 0, 1, 1], [], []>} : vector<128x128xbf16>, vector<128x128xbf16>, vector<128x128xf32> -> vector<128x128xf32>
    %254 = arith.addf %252, %253 : vector<128x128xf32>
    %255 = arith.addf %254, %2 : vector<128x128xf32>
    %cst_99 = arith.constant 0.020833334 : f32
    %256 = vector.broadcast %cst_99 : f32 to vector<128x128xf32>
    %257 = arith.mulf %256, %255 : vector<128x128xf32>
    %258 = arith.addf %250, %257 : vector<128x128xf32>
    %cst_100 = arith.constant 6.250000e-02 : f32
    %259 = vector.broadcast %cst_100 : f32 to vector<128x128xf32>
    %260 = arith.mulf %259, %255 : vector<128x128xf32>
    %261 = arith.addf %250, %260 : vector<128x128xf32>
    %262 = arith.truncf %261 : vector<128x128xf32> to vector<128x128xbf16>
    %cst_101 = arith.constant dense<0.000000e+00> : vector<128x128xf32>
    %263 = tpu.matmul %3, %262, %cst_101 {dimension_numbers = #tpu.dot_dimension_numbers<[1], [0], [0], [1], [0, 0, 1, 1], [], []>} : vector<128x128xbf16>, vector<128x128xbf16>, vector<128x128xf32> -> vector<128x128xf32>
    %cst_102 = arith.constant dense<0.000000e+00> : vector<128x128xf32>
    %264 = tpu.matmul %262, %4, %cst_102 {dimension_numbers = #tpu.dot_dimension_numbers<[1], [0], [0], [1], [0, 0, 1, 1], [], []>} : vector<128x128xbf16>, vector<128x128xbf16>, vector<128x128xf32> -> vector<128x128xf32>
    %265 = arith.addf %263, %264 : vector<128x128xf32>
    %266 = arith.addf %265, %2 : vector<128x128xf32>
    %cst_103 = arith.constant 0.0416666679 : f32
    %267 = vector.broadcast %cst_103 : f32 to vector<128x128xf32>
    %268 = arith.mulf %267, %266 : vector<128x128xf32>
    %269 = arith.addf %258, %268 : vector<128x128xf32>
    %cst_104 = arith.constant 6.250000e-02 : f32
    %270 = vector.broadcast %cst_104 : f32 to vector<128x128xf32>
    %271 = arith.mulf %270, %266 : vector<128x128xf32>
    %272 = arith.addf %250, %271 : vector<128x128xf32>
    %273 = arith.truncf %272 : vector<128x128xf32> to vector<128x128xbf16>
    %cst_105 = arith.constant dense<0.000000e+00> : vector<128x128xf32>
    %274 = tpu.matmul %3, %273, %cst_105 {dimension_numbers = #tpu.dot_dimension_numbers<[1], [0], [0], [1], [0, 0, 1, 1], [], []>} : vector<128x128xbf16>, vector<128x128xbf16>, vector<128x128xf32> -> vector<128x128xf32>
    %cst_106 = arith.constant dense<0.000000e+00> : vector<128x128xf32>
    %275 = tpu.matmul %273, %4, %cst_106 {dimension_numbers = #tpu.dot_dimension_numbers<[1], [0], [0], [1], [0, 0, 1, 1], [], []>} : vector<128x128xbf16>, vector<128x128xbf16>, vector<128x128xf32> -> vector<128x128xf32>
    %276 = arith.addf %274, %275 : vector<128x128xf32>
    %277 = arith.addf %276, %2 : vector<128x128xf32>
    %cst_107 = arith.constant 0.0416666679 : f32
    %278 = vector.broadcast %cst_107 : f32 to vector<128x128xf32>
    %279 = arith.mulf %278, %277 : vector<128x128xf32>
    %280 = arith.addf %269, %279 : vector<128x128xf32>
    %cst_108 = arith.constant 1.250000e-01 : f32
    %281 = vector.broadcast %cst_108 : f32 to vector<128x128xf32>
    %282 = arith.mulf %281, %277 : vector<128x128xf32>
    %283 = arith.addf %250, %282 : vector<128x128xf32>
    %284 = arith.truncf %283 : vector<128x128xf32> to vector<128x128xbf16>
    %cst_109 = arith.constant dense<0.000000e+00> : vector<128x128xf32>
    %285 = tpu.matmul %3, %284, %cst_109 {dimension_numbers = #tpu.dot_dimension_numbers<[1], [0], [0], [1], [0, 0, 1, 1], [], []>} : vector<128x128xbf16>, vector<128x128xbf16>, vector<128x128xf32> -> vector<128x128xf32>
    %cst_110 = arith.constant dense<0.000000e+00> : vector<128x128xf32>
    %286 = tpu.matmul %284, %4, %cst_110 {dimension_numbers = #tpu.dot_dimension_numbers<[1], [0], [0], [1], [0, 0, 1, 1], [], []>} : vector<128x128xbf16>, vector<128x128xbf16>, vector<128x128xf32> -> vector<128x128xf32>
    %287 = arith.addf %285, %286 : vector<128x128xf32>
    %288 = arith.addf %287, %2 : vector<128x128xf32>
    %cst_111 = arith.constant 0.020833334 : f32
    %289 = vector.broadcast %cst_111 : f32 to vector<128x128xf32>
    %290 = arith.mulf %289, %288 : vector<128x128xf32>
    %291 = arith.addf %280, %290 : vector<128x128xf32>
    %292 = arith.truncf %291 : vector<128x128xf32> to vector<128x128xbf16>
    %cst_112 = arith.constant dense<0.000000e+00> : vector<128x128xf32>
    %293 = tpu.matmul %3, %292, %cst_112 {dimension_numbers = #tpu.dot_dimension_numbers<[1], [0], [0], [1], [0, 0, 1, 1], [], []>} : vector<128x128xbf16>, vector<128x128xbf16>, vector<128x128xf32> -> vector<128x128xf32>
    %cst_113 = arith.constant dense<0.000000e+00> : vector<128x128xf32>
    %294 = tpu.matmul %292, %4, %cst_113 {dimension_numbers = #tpu.dot_dimension_numbers<[1], [0], [0], [1], [0, 0, 1, 1], [], []>} : vector<128x128xbf16>, vector<128x128xbf16>, vector<128x128xf32> -> vector<128x128xf32>
    %295 = arith.addf %293, %294 : vector<128x128xf32>
    %296 = arith.addf %295, %2 : vector<128x128xf32>
    %cst_114 = arith.constant 0.020833334 : f32
    %297 = vector.broadcast %cst_114 : f32 to vector<128x128xf32>
    %298 = arith.mulf %297, %296 : vector<128x128xf32>
    %299 = arith.addf %291, %298 : vector<128x128xf32>
    %cst_115 = arith.constant 6.250000e-02 : f32
    %300 = vector.broadcast %cst_115 : f32 to vector<128x128xf32>
    %301 = arith.mulf %300, %296 : vector<128x128xf32>
    %302 = arith.addf %291, %301 : vector<128x128xf32>
    %303 = arith.truncf %302 : vector<128x128xf32> to vector<128x128xbf16>
    %cst_116 = arith.constant dense<0.000000e+00> : vector<128x128xf32>
    %304 = tpu.matmul %3, %303, %cst_116 {dimension_numbers = #tpu.dot_dimension_numbers<[1], [0], [0], [1], [0, 0, 1, 1], [], []>} : vector<128x128xbf16>, vector<128x128xbf16>, vector<128x128xf32> -> vector<128x128xf32>
    %cst_117 = arith.constant dense<0.000000e+00> : vector<128x128xf32>
    %305 = tpu.matmul %303, %4, %cst_117 {dimension_numbers = #tpu.dot_dimension_numbers<[1], [0], [0], [1], [0, 0, 1, 1], [], []>} : vector<128x128xbf16>, vector<128x128xbf16>, vector<128x128xf32> -> vector<128x128xf32>
    %306 = arith.addf %304, %305 : vector<128x128xf32>
    %307 = arith.addf %306, %2 : vector<128x128xf32>
    %cst_118 = arith.constant 0.0416666679 : f32
    %308 = vector.broadcast %cst_118 : f32 to vector<128x128xf32>
    %309 = arith.mulf %308, %307 : vector<128x128xf32>
    %310 = arith.addf %299, %309 : vector<128x128xf32>
    %cst_119 = arith.constant 6.250000e-02 : f32
    %311 = vector.broadcast %cst_119 : f32 to vector<128x128xf32>
    %312 = arith.mulf %311, %307 : vector<128x128xf32>
    %313 = arith.addf %291, %312 : vector<128x128xf32>
    %314 = arith.truncf %313 : vector<128x128xf32> to vector<128x128xbf16>
    %cst_120 = arith.constant dense<0.000000e+00> : vector<128x128xf32>
    %315 = tpu.matmul %3, %314, %cst_120 {dimension_numbers = #tpu.dot_dimension_numbers<[1], [0], [0], [1], [0, 0, 1, 1], [], []>} : vector<128x128xbf16>, vector<128x128xbf16>, vector<128x128xf32> -> vector<128x128xf32>
    %cst_121 = arith.constant dense<0.000000e+00> : vector<128x128xf32>
    %316 = tpu.matmul %314, %4, %cst_121 {dimension_numbers = #tpu.dot_dimension_numbers<[1], [0], [0], [1], [0, 0, 1, 1], [], []>} : vector<128x128xbf16>, vector<128x128xbf16>, vector<128x128xf32> -> vector<128x128xf32>
    %317 = arith.addf %315, %316 : vector<128x128xf32>
    %318 = arith.addf %317, %2 : vector<128x128xf32>
    %cst_122 = arith.constant 0.0416666679 : f32
    %319 = vector.broadcast %cst_122 : f32 to vector<128x128xf32>
    %320 = arith.mulf %319, %318 : vector<128x128xf32>
    %321 = arith.addf %310, %320 : vector<128x128xf32>
    %cst_123 = arith.constant 1.250000e-01 : f32
    %322 = vector.broadcast %cst_123 : f32 to vector<128x128xf32>
    %323 = arith.mulf %322, %318 : vector<128x128xf32>
    %324 = arith.addf %291, %323 : vector<128x128xf32>
    %325 = arith.truncf %324 : vector<128x128xf32> to vector<128x128xbf16>
    %cst_124 = arith.constant dense<0.000000e+00> : vector<128x128xf32>
    %326 = tpu.matmul %3, %325, %cst_124 {dimension_numbers = #tpu.dot_dimension_numbers<[1], [0], [0], [1], [0, 0, 1, 1], [], []>} : vector<128x128xbf16>, vector<128x128xbf16>, vector<128x128xf32> -> vector<128x128xf32>
    %cst_125 = arith.constant dense<0.000000e+00> : vector<128x128xf32>
    %327 = tpu.matmul %325, %4, %cst_125 {dimension_numbers = #tpu.dot_dimension_numbers<[1], [0], [0], [1], [0, 0, 1, 1], [], []>} : vector<128x128xbf16>, vector<128x128xbf16>, vector<128x128xf32> -> vector<128x128xf32>
    %328 = arith.addf %326, %327 : vector<128x128xf32>
    %329 = arith.addf %328, %2 : vector<128x128xf32>
    %cst_126 = arith.constant 0.020833334 : f32
    %330 = vector.broadcast %cst_126 : f32 to vector<128x128xf32>
    %331 = arith.mulf %330, %329 : vector<128x128xf32>
    %332 = arith.addf %321, %331 : vector<128x128xf32>
    %cst_127 = arith.constant 0.000000e+00 : f32
    %333 = vector.broadcast %cst_127 : f32 to vector<128x128xf32>
    %334 = arith.maximumf %332, %333 : vector<128x128xf32>
    %335 = arith.truncf %334 : vector<128x128xf32> to vector<128x128xbf16>
    %c0_128 = arith.constant 0 : index
    %c0_129 = arith.constant 0 : index
    %336 = vector.load %arg4[%c0_128, %c0_129] : memref<128x128xbf16, #tpu.memory_space<vmem>>, vector<128x128xbf16>
    %cst_130 = arith.constant dense<0.000000e+00> : vector<128x128xf32>
    %337 = tpu.matmul %335, %336, %cst_130 {dimension_numbers = #tpu.dot_dimension_numbers<[1], [0], [0], [1], [0, 0, 1, 1], [], []>} : vector<128x128xbf16>, vector<128x128xbf16>, vector<128x128xf32> -> vector<128x128xf32>
    %c0_131 = arith.constant 0 : index
    %c0_132 = arith.constant 0 : index
    %338 = vector.load %arg5[%c0_131, %c0_132] : memref<1x128xf32, #tpu.memory_space<vmem>>, vector<1x128xf32>
    %339 = vector.broadcast %338 : vector<1x128xf32> to vector<128x128xf32>
    %340 = arith.addf %337, %339 : vector<128x128xf32>
    %c0_133 = arith.constant 0 : index
    %c0_134 = arith.constant 0 : index
    %341 = vector.load %arg6[%c0_133, %c0_134] : memref<128x128xf32, #tpu.memory_space<vmem>>, vector<128x128xf32>
    tpu.vector_store %arg6[%c0_133, %c0_134], %340 {strides = array<i32>} : memref<128x128xf32, #tpu.memory_space<vmem>>, vector<128x128xf32>,
    return
  }
}

</mosaic_0001>

<bundles_post_ra>
// kernel: wgnn_forward.1
= control target key start
LH: loop header
LB: loop body
LE: loop exit
PB: predicated region body
PF: predicated region fallthrough
CT: control target
= control target key end

     0   :  { %s17468_s1 = inlined_call_operand.vmem [shape: bf16[128,128], index: 1, kind: input, shape index: {}]   ;;  %s17469_s0 = inlined_call_operand.vmem [shape: bf16[128,128], index: 0, kind: input, shape index: {}]   ;;  %s17470_s3 = inlined_call_operand.vmem [shape: bf16[128,128], index: 3, kind: input, shape index: {}]   ;;  %s17471_s2 = inlined_call_operand.vmem [shape: bf16[128,128], index: 2, kind: input, shape index: {}]   ;;  %s17472_s4 = inlined_call_operand.vmem [shape: bf16[128,128], index: 4, kind: input, shape index: {}]   ;;  %s17473_s5 = inlined_call_operand.vmem [shape: f32[1,128], index: 5, kind: input, shape index: {}]   ;;  %s17474_s6 = inlined_call_operand.vmem [shape: f32[128,128], index: 6, kind: output, shape index: {}]  }
   0x1   :  { %v13078_v0 = vld [vmem:[%s17468_s1] sm:$0xff]   ;;  %v13079_v1 = vld [vmem:[%s17468_s1 + $0x8] sm:$0xff]   ;;  %v13080_v2 = vld [vmem:[%s17468_s1 + $0x10] sm:$0xff]  }
   0x2   :  { %10454 = vmatprep.subr.bf16.mxu0 %v13078_v0  ;;  %v13081_v3 = vld [vmem:[%s17468_s1 + $0x18] sm:$0xff]   ;;  %v13086_v4 = vld [vmem:[%s17469_s0] sm:$0xff]   ;;  %v13083_v6 = vld [vmem:[%s17468_s1 + $0x28] sm:$0xff]  }
   0x3   :  { %10455 = vmatpush3.bf16.msra.mxu0 %v13078_v0  ;;  %10470 = vmatprep.mubr.bf16.mxu0 %v13086_v4  ;;  %v13082_v5 = vld [vmem:[%s17468_s1 + $0x20] sm:$0xff]   ;;  %v13294_v8 = vld [vmem:[%s17470_s3 + $0x8] sm:$0xff]   ;;  %v13084_v9 = vld [vmem:[%s17468_s1 + $0x30] sm:$0xff]  }
   0x4   :  { %10456 = vmatprep.subr.bf16.mxu0 %v13079_v1  ;;  %v13289_v7 = vld [vmem:[%s17470_s3] sm:$0xff]   ;;  %v13305_v10 = vld [vmem:[%s17470_s3 + $0x10] sm:$0xff]   ;;  %v13085_v11 = vld [vmem:[%s17468_s1 + $0x38] sm:$0xff]  }
   0x5   :  { %10486 = vmatprep.subr.bf16.mxu1 %v13289_v7  ;;  %v13315_v12 = vld [vmem:[%s17470_s3 + $0x18] sm:$0xff]   ;;  %v13322_v13 = vld [vmem:[%s17470_s3 + $0x20] sm:$0xff]   ;;  %v13087_v14 = vld [vmem:[%s17469_s0 + $0x8] sm:$0xff]  }
   0x6   :  { %10487 = vmatpush3.bf16.msra.mxu1 %v13289_v7  ;;  %v13088_v15 = vld [vmem:[%s17469_s0 + $0x10] sm:$0xff]   ;;  %v13335_v16 = vld [vmem:[%s17470_s3 + $0x28] sm:$0xff]   ;;  %v13089_v18 = vld [vmem:[%s17469_s0 + $0x18] sm:$0xff]  }
   0x7   :  { %10457 = vmatpush3.bf16.msra.mxu0 %v13079_v1  ;;  %10488 = vmatprep.subr.bf16.mxu1 %v13294_v8  ;;  %v13343_v17 = vld [vmem:[%s17470_s3 + $0x30] sm:$0xff]   ;;  %v13090_v19 = vld [vmem:[%s17469_s0 + $0x20] sm:$0xff]   ;;  %v13091_v20 = vld [vmem:[%s17469_s0 + $0x28] sm:$0xff]  }
   0x8   :  { %10458 = vmatprep.subr.bf16.mxu0 %v13080_v2  ;;  %v13092_v21 = vld [vmem:[%s17469_s0 + $0x30] sm:$0xff]   ;;  %v13093_v22 = vld [vmem:[%s17469_s0 + $0x38] sm:$0xff]   ;;  %v13436_v48 = vld [vmem:[%s17471_s2] sm:$0xff]  }
   0x9   :  { %v13379_v23 = vld [vmem:[%s17470_s3 + $0x38] sm:$0xff]   ;;  %v13442_v49 = vld [vmem:[%s17471_s2 + $0x8] sm:$0xff]   ;;  %v13447_v50 = vld [vmem:[%s17471_s2 + $0x10] sm:$0xff]  }
   0xa   :  { %10489 = vmatpush3.bf16.msra.mxu1 %v13294_v8  ;;  %17732 = vst [vmem:[#allocation2_spill] sm:$0xff] %v13379_v23  ;;  %v13457_v51 = vld [vmem:[%s17471_s2 + $0x18] sm:$0xff]   ;;  %v13462_v52 = vld [vmem:[%s17471_s2 + $0x20] sm:$0xff]   ;;  %v13473_v53 = vld [vmem:[%s17471_s2 + $0x28] sm:$0xff]  }
   0xb   :  { %10459 = vmatpush3.bf16.msra.mxu0 %v13080_v2  ;;  %10490 = vmatprep.subr.bf16.mxu1 %v13305_v10  ;;  %v13478_v54 = vld [vmem:[%s17471_s2 + $0x30] sm:$0xff]   ;;  %v13489_v55 = vld [vmem:[%s17471_s2 + $0x38] sm:$0xff]  }
   0xc   :  { %10460 = vmatprep.subr.bf16.mxu0 %v13081_v3 }
   0xe   :  { %10491 = vmatpush3.bf16.msra.mxu1 %v13305_v10 }
   0xf   :  { %10461 = vmatpush3.bf16.msra.mxu0 %v13081_v3  ;;  %10492 = vmatprep.subr.bf16.mxu1 %v13315_v12 }
  0x10   :  { %10462 = vmatprep.subr.bf16.mxu0 %v13082_v5 }
  0x12   :  { %10493 = vmatpush3.bf16.msra.mxu1 %v13315_v12 }
  0x13   :  { %10463 = vmatpush3.bf16.msra.mxu0 %v13082_v5  ;;  %10494 = vmatprep.subr.bf16.mxu1 %v13322_v13 }
  0x14   :  { %10464 = vmatprep.subr.bf16.mxu0 %v13083_v6 }
  0x16   :  { %10495 = vmatpush3.bf16.msra.mxu1 %v13322_v13 }
  0x17   :  { %10465 = vmatpush3.bf16.msra.mxu0 %v13083_v6  ;;  %10496 = vmatprep.subr.bf16.mxu1 %v13335_v16 }
  0x18   :  { %10466 = vmatprep.subr.bf16.mxu0 %v13084_v9 }
  0x1a   :  { %10497 = vmatpush3.bf16.msra.mxu1 %v13335_v16 }
  0x1b   :  { %10467 = vmatpush3.bf16.msra.mxu0 %v13084_v9  ;;  %10498 = vmatprep.subr.bf16.mxu1 %v13343_v17 }
  0x1c   :  { %10468 = vmatprep.subr.bf16.mxu0 %v13085_v11 }
  0x1e   :  { %10499 = vmatpush3.bf16.msra.mxu1 %v13343_v17 }
  0x1f   :  { %10469 = vmatpush3.bf16.msra.mxu0 %v13085_v11  ;;  %10500 = vmatprep.subr.bf16.mxu1 %v13379_v23 }
  0x20   :  { %10550 = vmatprep.subr.bf16.mxu0 %v13289_v7 }
  0x22   :  { %10471 = vmatmul.mubr.bf16.vlgmr.msra.gmra.mrb[0].mxu0 %v13087_v14  ;;  %10501 = vmatpush3.bf16.msra.mxu1 %v13379_v23 }
  0x23   :  { %10474 = vmatprep.mubr.bf16.mxu0 %v13088_v15  ;;  %10551 = vmatpush3.bf16.msra.mxu0 %v13289_v7 }
  0x24   :  { %10552 = vmatprep.subr.bf16.mxu0 %v13294_v8 }
  0x27   :  { %10553 = vmatpush3.bf16.msra.mxu0 %v13294_v8 }
  0x28   :  { %10554 = vmatprep.subr.bf16.mxu0 %v13305_v10 }
  0x2a   :  { %10475 = vmatmul.mubr.bf16.gmra.mrb[4].mxu0 %v13089_v18 }
  0x2b   :  { %10478 = vmatprep.mubr.bf16.mxu0 %v13090_v19  ;;  %10555 = vmatpush3.bf16.msra.mxu0 %v13305_v10 }
  0x2c   :  { %10556 = vmatprep.subr.bf16.mxu0 %v13315_v12 }
  0x2f   :  { %10557 = vmatpush3.bf16.msra.mxu0 %v13315_v12 }
  0x30   :  { %10558 = vmatprep.subr.bf16.mxu0 %v13322_v13 }
  0x32   :  { %10479 = vmatmul.mubr.bf16.gmra.mrb[8].mxu0 %v13091_v20 }
  0x33   :  { %10482 = vmatprep.mubr.bf16.mxu0 %v13092_v21  ;;  %10559 = vmatpush3.bf16.msra.mxu0 %v13322_v13 }
  0x34   :  { %10560 = vmatprep.subr.bf16.mxu0 %v13335_v16 }
  0x37   :  { %10561 = vmatpush3.bf16.msra.mxu0 %v13335_v16 }
  0x38   :  { %10562 = vmatprep.subr.bf16.mxu0 %v13343_v17 }
  0x3a   :  { %10483 = vmatmul.mubr.bf16.gmra.mrb[12].mxu0 %v13093_v22 }
  0x3b   :  { %10563 = vmatpush3.bf16.msra.mxu0 %v13343_v17 }
  0x3c   :  { %10564 = vmatprep.subr.bf16.mxu0 %v13379_v23 }
  0x3f   :  { %10565 = vmatpush3.bf16.msra.mxu0 %v13379_v23 }
  0xf5   :  { %v13385_v24 = vpop.f32.mrb[0].mxu0 }
  0xf6   :  { %17733 = vst [vmem:[#allocation3_spill] sm:$0xff] %v13385_v24  ;;  %v13387_v25 = vpop.f32.mrb[1].mxu0 }
  0xf7   :  { %17734 = vst [vmem:[#allocation4_spill] sm:$0xff] %v13387_v25  ;;  %v13389_v26 = vpop.f32.mrb[2].mxu0 }
  0xf8   :  { %17735 = vst [vmem:[#allocation5_spill] sm:$0xff] %v13389_v26  ;;  %v13391_v27 = vpop.f32.mrb[3].mxu0  ;;  %v282_v28 = vpack.c.bf16 %v13389_v26, %v13385_v24 }
  0xf9   :  { %17736 = vst [vmem:[#allocation6_spill] sm:$0xff] %v13391_v27  ;;  %v281_v29 = vpack.c.bf16 %v13391_v27, %v13387_v25 }
  0xfb   :  { %10502 = vmatprep.mubr.bf16.mxu1 %v281_v29  ;;  %10518 = vmatprep.subr.bf16.mxu1 %v281_v29 }
  0xfc   :  { %10503 = vmatmul.mubr.bf16.vlgmr.msra.gmra.mrb[0].mxu1 %v282_v28 }
  0xfd   :  { %10519 = vmatpush3.bf16.msra.mxu1 %v281_v29  ;;  %v13397_v30 = vpop.f32.mrb[4].mxu0 }
  0xfe   :  { %10520 = vmatprep.subr.bf16.mxu1 %v282_v28  ;;  %v13399_v31 = vpop.f32.mrb[5].mxu0 }
  0xff   :  { %17737 = vst [vmem:[#allocation7_spill] sm:$0xff] %v13399_v31  ;;  %v13401_v32 = vpop.f32.mrb[6].mxu0 }
 0x100   :  { %17738 = vst [vmem:[#allocation8_spill] sm:$0xff] %v13401_v32  ;;  %v13403_v33 = vpop.f32.mrb[7].mxu0  ;;  %v284_v34 = vpack.c.bf16 %v13401_v32, %v13397_v30 }
 0x101   :  { %17739 = vst [vmem:[#allocation9_spill] sm:$0xff] %v13403_v33  ;;  %10521 = vmatpush3.bf16.msra.mxu1 %v282_v28  ;;  %v283_v35 = vpack.c.bf16 %v13403_v33, %v13399_v31 }
 0x103   :  { %10506 = vmatprep.mubr.bf16.mxu1 %v283_v35  ;;  %10522 = vmatprep.subr.bf16.mxu1 %v283_v35 }
 0x104   :  { %10507 = vmatmul.mubr.bf16.gmra.mrb[4].mxu1 %v284_v34 }
 0x105   :  { %10523 = vmatpush3.bf16.msra.mxu1 %v283_v35  ;;  %v13409_v36 = vpop.f32.mrb[8].mxu0 }
 0x106   :  { %17740 = vst [vmem:[#allocation10_spill] sm:$0xff] %v13409_v36  ;;  %10524 = vmatprep.subr.bf16.mxu1 %v284_v34  ;;  %v13411_v37 = vpop.f32.mrb[9].mxu0 }
 0x107   :  { %17741 = vst [vmem:[#allocation11_spill] sm:$0xff] %v13411_v37  ;;  %v13413_v38 = vpop.f32.mrb[10].mxu0 }
 0x108   :  { %17742 = vst [vmem:[#allocation12_spill] sm:$0xff] %v13413_v38  ;;  %v13415_v39 = vpop.f32.mrb[11].mxu0  ;;  %v286_v40 = vpack.c.bf16 %v13413_v38, %v13409_v36 }
 0x109   :  { %17743 = vst [vmem:[#allocation13_spill] sm:$0xff] %v13415_v39  ;;  %10525 = vmatpush3.bf16.msra.mxu1 %v284_v34  ;;  %v285_v41 = vpack.c.bf16 %v13415_v39, %v13411_v37 }
 0x10b   :  { %10510 = vmatprep.mubr.bf16.mxu1 %v285_v41  ;;  %10526 = vmatprep.subr.bf16.mxu1 %v285_v41 }
 0x10c   :  { %10511 = vmatmul.mubr.bf16.gmra.mrb[8].mxu1 %v286_v40 }
 0x10d   :  { %10527 = vmatpush3.bf16.msra.mxu1 %v285_v41  ;;  %v13421_v42 = vpop.f32.mrb[12].mxu0 }
 0x10e   :  { %10528 = vmatprep.subr.bf16.mxu1 %v286_v40  ;;  %v13423_v43 = vpop.f32.mrb[13].mxu0 }
 0x10f   :  { %v13425_v44 = vpop.f32.mrb[14].mxu0 }
 0x110   :  { %v13427_v45 = vpop.f32.mrb[15].mxu0  ;;  %v288_v46 = vpack.c.bf16 %v13425_v44, %v13421_v42 }
 0x111   :  { %10529 = vmatpush3.bf16.msra.mxu1 %v286_v40  ;;  %v287_v47 = vpack.c.bf16 %v13427_v45, %v13423_v43 }
 0x113   :  { %10514 = vmatprep.mubr.bf16.mxu1 %v287_v47  ;;  %10530 = vmatprep.subr.bf16.mxu1 %v287_v47 }
 0x114   :  { %10515 = vmatmul.mubr.bf16.gmra.mrb[12].mxu1 %v288_v46 }
 0x115   :  { %10531 = vmatpush3.bf16.msra.mxu1 %v287_v47  ;;  %10534 = vmatprep.mubr.bf16.mxu1 %v13436_v48 }
 0x116   :  { %10532 = vmatprep.subr.bf16.mxu1 %v288_v46 }
 0x119   :  { %10533 = vmatpush3.bf16.msra.mxu1 %v288_v46 }
 0x11a   :  { %10614 = vmatprep.subr.bf16.mxu1 %v13289_v7 }
 0x11c   :  { %10535 = vmatmul.mubr.bf16.vlgmr.msra.gmra.mrb[0].mxu1 %v13442_v49 }
 0x11d   :  { %10538 = vmatprep.mubr.bf16.mxu1 %v13447_v50  ;;  %10615 = vmatpush3.bf16.msra.mxu1 %v13289_v7 }
 0x11e   :  { %10616 = vmatprep.subr.bf16.mxu1 %v13294_v8 }
 0x121   :  { %10617 = vmatpush3.bf16.msra.mxu1 %v13294_v8 }
 0x122   :  { %10618 = vmatprep.subr.bf16.mxu1 %v13305_v10 }
 0x124   :  { %10539 = vmatmul.mubr.bf16.gmra.mrb[4].mxu1 %v13457_v51 }
 0x125   :  { %10542 = vmatprep.mubr.bf16.mxu1 %v13462_v52  ;;  %10619 = vmatpush3.bf16.msra.mxu1 %v13305_v10 }
 0x126   :  { %10620 = vmatprep.subr.bf16.mxu1 %v13315_v12 }
 0x129   :  { %10621 = vmatpush3.bf16.msra.mxu1 %v13315_v12 }
 0x12a   :  { %10622 = vmatprep.subr.bf16.mxu1 %v13322_v13 }
 0x12c   :  { %10543 = vmatmul.mubr.bf16.gmra.mrb[8].mxu1 %v13473_v53 }
 0x12d   :  { %10546 = vmatprep.mubr.bf16.mxu1 %v13478_v54  ;;  %10623 = vmatpush3.bf16.msra.mxu1 %v13322_v13 }
 0x12e   :  { %10624 = vmatprep.subr.bf16.mxu1 %v13335_v16 }
 0x131   :  { %10625 = vmatpush3.bf16.msra.mxu1 %v13335_v16 }
 0x132   :  { %10626 = vmatprep.subr.bf16.mxu1 %v13343_v17 }
 0x134   :  { %10547 = vmatmul.mubr.bf16.gmra.mrb[12].mxu1 %v13489_v55 }
 0x135   :  { %10627 = vmatpush3.bf16.msra.mxu1 %v13343_v17 }
 0x136   :  { %10628 = vmatprep.subr.bf16.mxu1 %v13379_v23 }
 0x139   :  { %10629 = vmatpush3.bf16.msra.mxu1 %v13379_v23 }
 0x1ef   :  { %v10536_v56 = vpop.f32.mrb[0].mxu1 }
 0x1f0   :  { %v581_v57 = vadd.f32 %v10536_v56, %v13385_v24  ;;  %v516_v58 = vpop.f32.mrb[1].mxu1 }
 0x1f1   :  { %v579_v59 = vadd.f32 %v516_v58, %v13387_v25  ;;  %v10537_v60 = vpop.f32.mrb[2].mxu1 }
 0x1f2   :  { %v597_v61 = vmul.f32 0.020833334, %v581_v57  ;;  %v629_v62 = vmul.f32 0.0625, %v581_v57  ;;  %v582_v63 = vadd.f32 %v10537_v60, %v13389_v26  ;;  %v519_v0 = vpop.f32.mrb[3].mxu1 }
 0x1f3   :  { %v595_v1 = vmul.f32 0.020833334, %v579_v59  ;;  %v627_v2 = vmul.f32 0.0625, %v579_v59  ;;  %v580_v3 = vadd.f32 %v519_v0, %v13391_v27 }
 0x1f4   :  { %v645_v4 = vadd.f32 %v13385_v24, %v629_v62  ;;  %v598_v5 = vmul.f32 0.020833334, %v582_v63  ;;  %v630_v6 = vmul.f32 0.0625, %v582_v63  ;;  %v13503_v9 = vadd.f32 %v13385_v24, %v597_v61 }
 0x1f5   :  { %v596_v11 = vmul.f32 0.020833334, %v580_v3  ;;  %v628_v14 = vmul.f32 0.0625, %v580_v3  ;;  %v643_v15 = vadd.f32 %v627_v2, %v13387_v25  ;;  %v13507_v18 = vadd.f32 %v595_v1, %v13387_v25 }
 0x1f6   :  { %v646_v19 = vadd.f32 %v13389_v26, %v630_v6  ;;  %v13511_v20 = vadd.f32 %v13389_v26, %v598_v5 }
 0x1f7   :  { %v10540_v21 = vpop.f32.mrb[4].mxu1  ;;  %v644_v22 = vadd.f32 %v628_v14, %v13391_v27  ;;  %v13515_v28 = vadd.f32 %v596_v11, %v13391_v27 }
 0x1f8   :  { %v660_v29 = vpack.c.bf16 %v646_v19, %v645_v4  ;;  %v585_v34 = vadd.f32 %v10540_v21, %v13397_v30  ;;  %v532_v35 = vpop.f32.mrb[5].mxu1 }
 0x1f9   :  { %v583_v40 = vadd.f32 %v532_v35, %v13399_v31  ;;  %v10541_v41 = vpop.f32.mrb[6].mxu1  ;;  %v659_v46 = vpack.c.bf16 %v644_v22, %v643_v15 }
 0x1fa   :  { %v601_v47 = vmul.f32 0.020833334, %v585_v34  ;;  %v633_v56 = vmul.f32 0.0625, %v585_v34  ;;  %v586_v57 = vadd.f32 %v10541_v41, %v13401_v32  ;;  %v535_v58 = vpop.f32.mrb[7].mxu1 }
 0x1fb   :  { %v599_v59 = vmul.f32 0.020833334, %v583_v40  ;;  %v631_v60 = vmul.f32 0.0625, %v583_v40  ;;  %v584_v61 = vadd.f32 %v535_v58, %v13403_v33  ;;  %10566 = vmatprep.mubr.bf16.mxu0 %v659_v46  ;;  %10582 = vmatprep.subr.bf16.mxu0 %v659_v46 }
 0x1fc   :  { %v602_v62 = vmul.f32 0.020833334, %v586_v57  ;;  %v634_v63 = vmul.f32 0.0625, %v586_v57  ;;  %10567 = vmatmul.mubr.bf16.vlgmr.msra.gmra.mrb[16].mxu0 %v660_v29  ;;  %v649_v0 = vadd.f32 %v13397_v30, %v633_v56  ;;  %v13523_v1 = vadd.f32 %v13397_v30, %v601_v47 }
 0x1fd   :  { %v600_v2 = vmul.f32 0.020833334, %v584_v61  ;;  %v632_v3 = vmul.f32 0.0625, %v584_v61  ;;  %10583 = vmatpush3.bf16.msra.mxu0 %v659_v46  ;;  %v647_v4 = vadd.f32 %v631_v60, %v13399_v31  ;;  %v13527_v5 = vadd.f32 %v599_v59, %v13399_v31 }
 0x1fe   :  { %10584 = vmatprep.subr.bf16.mxu0 %v660_v29  ;;  %v650_v6 = vadd.f32 %v13401_v32, %v634_v63  ;;  %v13531_v11 = vadd.f32 %v13401_v32, %v602_v62 }
 0x1ff   :  { %v10544_v14 = vpop.f32.mrb[8].mxu1  ;;  %v648_v15 = vadd.f32 %v632_v3, %v13403_v33  ;;  %v13535_v19 = vadd.f32 %v600_v2, %v13403_v33 }
 0x200   :  { %v589_v21 = vadd.f32 %v10544_v14, %v13409_v36  ;;  %v548_v22 = vpop.f32.mrb[9].mxu1  ;;  %v662_v34 = vpack.c.bf16 %v650_v6, %v649_v0 }
 0x201   :  { %v587_v35 = vadd.f32 %v548_v22, %v13411_v37  ;;  %10585 = vmatpush3.bf16.msra.mxu0 %v660_v29  ;;  %v10545_v40 = vpop.f32.mrb[10].mxu1  ;;  %v661_v41 = vpack.c.bf16 %v648_v15, %v647_v4 }
 0x202   :  { %v605_v46 = vmul.f32 0.020833334, %v589_v21  ;;  %v637_v47 = vmul.f32 0.0625, %v589_v21  ;;  %v590_v56 = vadd.f32 %v10545_v40, %v13413_v38  ;;  %v551_v57 = vpop.f32.mrb[11].mxu1 }
 0x203   :  { %v603_v58 = vmul.f32 0.020833334, %v587_v35  ;;  %v635_v59 = vmul.f32 0.0625, %v587_v35  ;;  %v588_v60 = vadd.f32 %v551_v57, %v13415_v39  ;;  %10570 = vmatprep.mubr.bf16.mxu0 %v661_v41  ;;  %10586 = vmatprep.subr.bf16.mxu0 %v661_v41 }
 0x204   :  { %v606_v61 = vmul.f32 0.020833334, %v590_v56  ;;  %v638_v62 = vmul.f32 0.0625, %v590_v56  ;;  %10571 = vmatmul.mubr.bf16.gmra.mrb[20].mxu0 %v662_v34  ;;  %v653_v63 = vadd.f32 %v13409_v36, %v637_v47  ;;  %v13543_v29 = vadd.f32 %v13409_v36, %v605_v46 }
 0x205   :  { %v604_v0 = vmul.f32 0.020833334, %v588_v60  ;;  %v636_v2 = vmul.f32 0.0625, %v588_v60  ;;  %10587 = vmatpush3.bf16.msra.mxu0 %v661_v41  ;;  %v651_v3 = vadd.f32 %v635_v59, %v13411_v37  ;;  %v13547_v4 = vadd.f32 %v603_v58, %v13411_v37 }
 0x206   :  { %10588 = vmatprep.subr.bf16.mxu0 %v662_v34  ;;  %v654_v6 = vadd.f32 %v13413_v38, %v638_v62  ;;  %v13551_v14 = vadd.f32 %v13413_v38, %v606_v61 }
 0x207   :  { %v10548_v15 = vpop.f32.mrb[12].mxu1  ;;  %v652_v21 = vadd.f32 %v636_v2, %v13415_v39  ;;  %v13555_v22 = vadd.f32 %v604_v0, %v13415_v39 }
 0x208   :  { %v593_v35 = vadd.f32 %v10548_v15, %v13421_v42  ;;  %v564_v40 = vpop.f32.mrb[13].mxu1  ;;  %v664_v41 = vpack.c.bf16 %v654_v6, %v653_v63 }
 0x209   :  { %v591_v46 = vadd.f32 %v564_v40, %v13423_v43  ;;  %10589 = vmatpush3.bf16.msra.mxu0 %v662_v34  ;;  %v10549_v47 = vpop.f32.mrb[14].mxu1  ;;  %v663_v56 = vpack.c.bf16 %v652_v21, %v651_v3 }
 0x20a   :  { %v609_v57 = vmul.f32 0.020833334, %v593_v35  ;;  %v641_v58 = vmul.f32 0.0625, %v593_v35  ;;  %v594_v59 = vadd.f32 %v10549_v47, %v13425_v44  ;;  %v567_v60 = vpop.f32.mrb[15].mxu1 }
 0x20b   :  { %v607_v61 = vmul.f32 0.020833334, %v591_v46  ;;  %v639_v62 = vmul.f32 0.0625, %v591_v46  ;;  %v592_v2 = vadd.f32 %v567_v60, %v13427_v45  ;;  %10574 = vmatprep.mubr.bf16.mxu0 %v663_v56  ;;  %10590 = vmatprep.subr.bf16.mxu0 %v663_v56 }
 0x20c   :  { %v610_v0 = vmul.f32 0.020833334, %v594_v59  ;;  %v642_v15 = vmul.f32 0.0625, %v594_v59  ;;  %10575 = vmatmul.mubr.bf16.gmra.mrb[24].mxu0 %v664_v41  ;;  %v657_v63 = vadd.f32 %v13421_v42, %v641_v58  ;;  %v13563_v34 = vadd.f32 %v13421_v42, %v609_v57 }
 0x20d   :  { %v608_v3 = vmul.f32 0.020833334, %v592_v2  ;;  %v640_v6 = vmul.f32 0.0625, %v592_v2  ;;  %10591 = vmatpush3.bf16.msra.mxu0 %v663_v56  ;;  %v655_v21 = vadd.f32 %v639_v62, %v13423_v43  ;;  %v13567_v35 = vadd.f32 %v607_v61, %v13423_v43 }
 0x20e   :  { %10592 = vmatprep.subr.bf16.mxu0 %v664_v41  ;;  %v658_v40 = vadd.f32 %v13425_v44, %v642_v15  ;;  %v13571_v46 = vadd.f32 %v13425_v44, %v610_v0 }
 0x20f   :  { %v656_v47 = vadd.f32 %v640_v6, %v13427_v45  ;;  %v13575_v58 = vadd.f32 %v608_v3, %v13427_v45 }
 0x210   :  { %v666_v57 = vpack.c.bf16 %v658_v40, %v657_v63 }
 0x211   :  { %10593 = vmatpush3.bf16.msra.mxu0 %v664_v41  ;;  %v665_v59 = vpack.c.bf16 %v656_v47, %v655_v21 }
 0x213   :  { %10578 = vmatprep.mubr.bf16.mxu0 %v665_v59  ;;  %10594 = vmatprep.subr.bf16.mxu0 %v665_v59 }
 0x214   :  { %10579 = vmatmul.mubr.bf16.gmra.mrb[28].mxu0 %v666_v57 }
 0x215   :  { %10595 = vmatpush3.bf16.msra.mxu0 %v665_v59  ;;  %10598 = vmatprep.mubr.bf16.mxu0 %v13436_v48 }
 0x216   :  { %10596 = vmatprep.subr.bf16.mxu0 %v666_v57 }
 0x219   :  { %10597 = vmatpush3.bf16.msra.mxu0 %v666_v57 }
 0x21a   :  { %10678 = vmatprep.subr.bf16.mxu0 %v13289_v7 }
 0x21c   :  { %10599 = vmatmul.mubr.bf16.vlgmr.msra.gmra.mrb[16].mxu0 %v13442_v49 }
 0x21d   :  { %10602 = vmatprep.mubr.bf16.mxu0 %v13447_v50  ;;  %10679 = vmatpush3.bf16.msra.mxu0 %v13289_v7 }
 0x21e   :  { %10680 = vmatprep.subr.bf16.mxu0 %v13294_v8 }
 0x221   :  { %10681 = vmatpush3.bf16.msra.mxu0 %v13294_v8 }
 0x222   :  { %10682 = vmatprep.subr.bf16.mxu0 %v13305_v10 }
 0x224   :  { %10603 = vmatmul.mubr.bf16.gmra.mrb[20].mxu0 %v13457_v51 }
 0x225   :  { %10606 = vmatprep.mubr.bf16.mxu0 %v13462_v52  ;;  %10683 = vmatpush3.bf16.msra.mxu0 %v13305_v10 }
 0x226   :  { %10684 = vmatprep.subr.bf16.mxu0 %v13315_v12 }
 0x229   :  { %10685 = vmatpush3.bf16.msra.mxu0 %v13315_v12 }
 0x22a   :  { %10686 = vmatprep.subr.bf16.mxu0 %v13322_v13 }
 0x22c   :  { %10607 = vmatmul.mubr.bf16.gmra.mrb[24].mxu0 %v13473_v53 }
 0x22d   :  { %10610 = vmatprep.mubr.bf16.mxu0 %v13478_v54  ;;  %10687 = vmatpush3.bf16.msra.mxu0 %v13322_v13 }
 0x22e   :  { %10688 = vmatprep.subr.bf16.mxu0 %v13335_v16 }
 0x231   :  { %10689 = vmatpush3.bf16.msra.mxu0 %v13335_v16 }
 0x232   :  { %10690 = vmatprep.subr.bf16.mxu0 %v13343_v17 }
 0x234   :  { %10611 = vmatmul.mubr.bf16.gmra.mrb[28].mxu0 %v13489_v55 }
 0x235   :  { %10691 = vmatpush3.bf16.msra.mxu0 %v13343_v17 }
 0x236   :  { %10692 = vmatprep.subr.bf16.mxu0 %v13379_v23 }
 0x239   :  { %10693 = vmatpush3.bf16.msra.mxu0 %v13379_v23 }
 0x2ef   :  { %v10600_v41 = vpop.f32.mrb[16].mxu0 }
 0x2f0   :  { %v863_v56 = vadd.f32 %v10600_v41, %v13385_v24  ;;  %v798_v60 = vpop.f32.mrb[17].mxu0 }
 0x2f1   :  { %v861_v61 = vadd.f32 %v798_v60, %v13387_v25  ;;  %v10601_v62 = vpop.f32.mrb[18].mxu0 }
 0x2f2   :  { %v879_v2 = vmul.f32 0.041666668, %v863_v56  ;;  %v911_v0 = vmul.f32 0.0625, %v863_v56  ;;  %v864_v15 = vadd.f32 %v10601_v62, %v13389_v26  ;;  %v801_v63 = vpop.f32.mrb[19].mxu0 }
 0x2f3   :  { %v877_v3 = vmul.f32 0.041666668, %v861_v61  ;;  %v909_v6 = vmul.f32 0.0625, %v861_v61  ;;  %v862_v21 = vadd.f32 %v801_v63, %v13391_v27 }
 0x2f4   :  { %v13606_v40 = vadd.f32 %v879_v2, %v13503_v9  ;;  %v927_v47 = vadd.f32 %v13385_v24, %v911_v0  ;;  %v880_v57 = vmul.f32 0.041666668, %v864_v15  ;;  %v912_v59 = vmul.f32 0.0625, %v864_v15 }
 0x2f5   :  { %v13610_v41 = vadd.f32 %v877_v3, %v13507_v18  ;;  %v925_v60 = vadd.f32 %v909_v6, %v13387_v25  ;;  %v878_v56 = vmul.f32 0.041666668, %v862_v21  ;;  %v910_v23 = vmul.f32 0.0625, %v862_v21 }
 0x2f6   :  { %17744 = vst [vmem:[#allocation14_spill] sm:$0xff] %v13606_v40  ;;  %v13614_v62 = vadd.f32 %v880_v57, %v13511_v20  ;;  %v928_v61 = vadd.f32 %v13389_v26, %v912_v59 }
 0x2f7   :  { %17745 = vst [vmem:[#allocation15_spill] sm:$0xff] %v13610_v41  ;;  %v13618_v63 = vadd.f32 %v878_v56, %v13515_v28  ;;  %v926_v9 = vadd.f32 %v910_v23, %v13391_v27  ;;  %v10604_v2 = vpop.f32.mrb[20].mxu0 }
 0x2f8   :  { %17746 = vst [vmem:[#allocation16_spill] sm:$0xff] %v13614_v62  ;;  %v942_v0 = vpack.c.bf16 %v928_v61, %v927_v47  ;;  %v867_v15 = vadd.f32 %v10604_v2, %v13397_v30  ;;  %v814_v18 = vpop.f32.mrb[21].mxu0 }
 0x2f9   :  { %v865_v3 = vadd.f32 %v814_v18, %v13399_v31  ;;  %v10605_v6 = vpop.f32.mrb[22].mxu0  ;;  %v941_v41 = vpack.c.bf16 %v926_v9, %v925_v60 }
 0x2fa   :  { %v883_v21 = vmul.f32 0.041666668, %v867_v15  ;;  %v915_v40 = vmul.f32 0.0625, %v867_v15  ;;  %v868_v20 = vadd.f32 %v10605_v6, %v13401_v32  ;;  %v817_v57 = vpop.f32.mrb[23].mxu0 }
 0x2fb   :  { %v881_v59 = vmul.f32 0.041666668, %v865_v3  ;;  %v913_v62 = vmul.f32 0.0625, %v865_v3  ;;  %v866_v28 = vadd.f32 %v817_v57, %v13403_v33  ;;  %10630 = vmatprep.mubr.bf16.mxu1 %v941_v41  ;;  %10646 = vmatprep.subr.bf16.mxu1 %v941_v41 }
 0x2fc   :  { %v13626_v23 = vadd.f32 %v883_v21, %v13523_v1  ;;  %v931_v47 = vadd.f32 %v13397_v30, %v915_v40  ;;  %v884_v56 = vmul.f32 0.041666668, %v868_v20  ;;  %v916_v61 = vmul.f32 0.0625, %v868_v20  ;;  %10631 = vmatmul.mubr.bf16.vlgmr.msra.gmra.mrb[16].mxu1 %v942_v0 }
 0x2fd   :  { %v13630_v60 = vadd.f32 %v881_v59, %v13527_v5  ;;  %v929_v9 = vadd.f32 %v913_v62, %v13399_v31  ;;  %v882_v2 = vmul.f32 0.041666668, %v866_v28  ;;  %v914_v15 = vmul.f32 0.0625, %v866_v28  ;;  %10647 = vmatpush3.bf16.msra.mxu1 %v941_v41 }
 0x2fe   :  { %v13634_v18 = vadd.f32 %v884_v56, %v13531_v11  ;;  %v932_v3 = vadd.f32 %v13401_v32, %v916_v61  ;;  %10648 = vmatprep.subr.bf16.mxu1 %v942_v0 }
 0x2ff   :  { %v13638_v1 = vadd.f32 %v882_v2, %v13535_v19  ;;  %v930_v40 = vadd.f32 %v914_v15, %v13403_v33  ;;  %v10608_v6 = vpop.f32.mrb[24].mxu0 }
 0x300   :  { %v871_v5 = vadd.f32 %v10608_v6, %v13409_v36  ;;  %v830_v21 = vpop.f32.mrb[25].mxu0  ;;  %v944_v20 = vpack.c.bf16 %v932_v3, %v931_v47 }
 0x301   :  { %v869_v62 = vadd.f32 %v830_v21, %v13411_v37  ;;  %10649 = vmatpush3.bf16.msra.mxu1 %v942_v0  ;;  %v10609_v41 = vpop.f32.mrb[26].mxu0  ;;  %v943_v57 = vpack.c.bf16 %v930_v40, %v929_v9 }
 0x302   :  { %v887_v11 = vmul.f32 0.041666668, %v871_v5  ;;  %v919_v59 = vmul.f32 0.0625, %v871_v5  ;;  %v872_v28 = vadd.f32 %v10609_v41, %v13413_v38  ;;  %v833_v56 = vpop.f32.mrb[27].mxu0 }
 0x303   :  { %v885_v61 = vmul.f32 0.041666668, %v869_v62  ;;  %v917_v19 = vmul.f32 0.0625, %v869_v62  ;;  %v870_v2 = vadd.f32 %v833_v56, %v13415_v39  ;;  %10634 = vmatprep.mubr.bf16.mxu1 %v943_v57  ;;  %10650 = vmatprep.subr.bf16.mxu1 %v943_v57 }
 0x304   :  { %v13646_v15 = vadd.f32 %v887_v11, %v13543_v29  ;;  %v935_v47 = vadd.f32 %v13409_v36, %v919_v59  ;;  %v888_v3 = vmul.f32 0.041666668, %v872_v28  ;;  %v920_v0 = vmul.f32 0.0625, %v872_v28  ;;  %10635 = vmatmul.mubr.bf16.gmra.mrb[20].mxu1 %v944_v20 }
 0x305   :  { %v13650_v9 = vadd.f32 %v885_v61, %v13547_v4  ;;  %v933_v40 = vadd.f32 %v917_v19, %v13411_v37  ;;  %v886_v6 = vmul.f32 0.041666668, %v870_v2  ;;  %v918_v5 = vmul.f32 0.0625, %v870_v2  ;;  %10651 = vmatpush3.bf16.msra.mxu1 %v943_v57 }
 0x306   :  { %v13654_v21 = vadd.f32 %v888_v3, %v13551_v14  ;;  %v936_v62 = vadd.f32 %v13413_v38, %v920_v0  ;;  %10652 = vmatprep.subr.bf16.mxu1 %v944_v20 }
 0x307   :  { %v13658_v29 = vadd.f32 %v886_v6, %v13555_v22  ;;  %v934_v41 = vadd.f32 %v918_v5, %v13415_v39  ;;  %v10612_v11 = vpop.f32.mrb[28].mxu0 }
 0x308   :  { %v875_v4 = vadd.f32 %v10612_v11, %v13421_v42  ;;  %v846_v59 = vpop.f32.mrb[29].mxu0  ;;  %v946_v28 = vpack.c.bf16 %v936_v62, %v935_v47 }
 0x309   :  { %v873_v56 = vadd.f32 %v846_v59, %v13423_v43  ;;  %10653 = vmatpush3.bf16.msra.mxu1 %v944_v20  ;;  %v10613_v57 = vpop.f32.mrb[30].mxu0  ;;  %v945_v61 = vpack.c.bf16 %v934_v41, %v933_v40 }
 0x30a   :  { %v891_v14 = vmul.f32 0.041666668, %v875_v4  ;;  %v923_v19 = vmul.f32 0.0625, %v875_v4  ;;  %v876_v2 = vadd.f32 %v10613_v57, %v13425_v44  ;;  %v849_v3 = vpop.f32.mrb[31].mxu0 }
 0x30b   :  { %v889_v0 = vmul.f32 0.041666668, %v873_v56  ;;  %v921_v22 = vmul.f32 0.0625, %v873_v56  ;;  %v874_v6 = vadd.f32 %v849_v3, %v13427_v45  ;;  %10638 = vmatprep.mubr.bf16.mxu1 %v945_v61  ;;  %10654 = vmatprep.subr.bf16.mxu1 %v945_v61  ;;  %v17748_v3 = vld [vmem:[#allocation14_spill] sm:$0xff] }
 0x30c   :  { %v13666_v5 = vadd.f32 %v891_v14, %v13563_v34  ;;  %v939_v47 = vadd.f32 %v13421_v42, %v923_v19  ;;  %v892_v62 = vmul.f32 0.041666668, %v876_v2  ;;  %v924_v20 = vmul.f32 0.0625, %v876_v2  ;;  %10639 = vmatmul.mubr.bf16.gmra.mrb[24].mxu1 %v946_v28 }
 0x30d   :  { %v13670_v40 = vadd.f32 %v889_v0, %v13567_v35  ;;  %v937_v41 = vadd.f32 %v921_v22, %v13423_v43  ;;  %v890_v11 = vmul.f32 0.041666668, %v874_v6  ;;  %v922_v4 = vmul.f32 0.0625, %v874_v6  ;;  %10655 = vmatpush3.bf16.msra.mxu1 %v945_v61 }
 0x30e   :  { %v13674_v59 = vadd.f32 %v892_v62, %v13571_v46  ;;  %v940_v56 = vadd.f32 %v13425_v44, %v924_v20  ;;  %10656 = vmatprep.subr.bf16.mxu1 %v946_v28  ;;  %v17749_v62 = vld [vmem:[#allocation15_spill] sm:$0xff] }
 0x30f   :  { %v13678_v34 = vadd.f32 %v890_v11, %v13575_v58  ;;  %v938_v57 = vadd.f32 %v922_v4, %v13427_v45 }
 0x310   :  { %v948_v14 = vpack.c.bf16 %v940_v56, %v939_v47  ;;  %v17750_v56 = vld [vmem:[#allocation16_spill] sm:$0xff] }
 0x311   :  { %10657 = vmatpush3.bf16.msra.mxu1 %v946_v28  ;;  %v947_v35 = vpack.c.bf16 %v938_v57, %v937_v41 }
 0x313   :  { %10642 = vmatprep.mubr.bf16.mxu1 %v947_v35  ;;  %10658 = vmatprep.subr.bf16.mxu1 %v947_v35 }
 0x314   :  { %10643 = vmatmul.mubr.bf16.gmra.mrb[28].mxu1 %v948_v14 }
 0x315   :  { %10659 = vmatpush3.bf16.msra.mxu1 %v947_v35  ;;  %10662 = vmatprep.mubr.bf16.mxu1 %v13436_v48 }
 0x316   :  { %10660 = vmatprep.subr.bf16.mxu1 %v948_v14 }
 0x319   :  { %10661 = vmatpush3.bf16.msra.mxu1 %v948_v14 }
 0x31a   :  { %10742 = vmatprep.subr.bf16.mxu1 %v13289_v7 }
 0x31c   :  { %10663 = vmatmul.mubr.bf16.vlgmr.msra.gmra.mrb[16].mxu1 %v13442_v49 }
 0x31d   :  { %10666 = vmatprep.mubr.bf16.mxu1 %v13447_v50  ;;  %10743 = vmatpush3.bf16.msra.mxu1 %v13289_v7  ;;  %v17747_v7 = vld [vmem:[#allocation2_spill] sm:$0xff] }
 0x31e   :  { %10744 = vmatprep.subr.bf16.mxu1 %v13294_v8 }
 0x321   :  { %10745 = vmatpush3.bf16.msra.mxu1 %v13294_v8 }
 0x322   :  { %10746 = vmatprep.subr.bf16.mxu1 %v13305_v10 }
 0x324   :  { %10667 = vmatmul.mubr.bf16.gmra.mrb[20].mxu1 %v13457_v51 }
 0x325   :  { %10670 = vmatprep.mubr.bf16.mxu1 %v13462_v52  ;;  %10747 = vmatpush3.bf16.msra.mxu1 %v13305_v10 }
 0x326   :  { %10748 = vmatprep.subr.bf16.mxu1 %v13315_v12 }
 0x329   :  { %10749 = vmatpush3.bf16.msra.mxu1 %v13315_v12 }
 0x32a   :  { %10750 = vmatprep.subr.bf16.mxu1 %v13322_v13 }
 0x32c   :  { %10671 = vmatmul.mubr.bf16.gmra.mrb[24].mxu1 %v13473_v53 }
 0x32d   :  { %10674 = vmatprep.mubr.bf16.mxu1 %v13478_v54  ;;  %10751 = vmatpush3.bf16.msra.mxu1 %v13322_v13 }
 0x32e   :  { %10752 = vmatprep.subr.bf16.mxu1 %v13335_v16 }
 0x331   :  { %10753 = vmatpush3.bf16.msra.mxu1 %v13335_v16 }
 0x332   :  { %10754 = vmatprep.subr.bf16.mxu1 %v13343_v17 }
 0x334   :  { %10675 = vmatmul.mubr.bf16.gmra.mrb[28].mxu1 %v13489_v55 }
 0x335   :  { %10755 = vmatpush3.bf16.msra.mxu1 %v13343_v17 }
 0x336   :  { %10756 = vmatprep.subr.bf16.mxu1 %v17747_v7 }
 0x339   :  { %10757 = vmatpush3.bf16.msra.mxu1 %v17747_v7 }
 0x3ef   :  { %v10664_v8 = vpop.f32.mrb[16].mxu1 }
 0x3f0   :  { %v1145_v10 = vadd.f32 %v10664_v8, %v13385_v24  ;;  %v1080_v12 = vpop.f32.mrb[17].mxu1 }
 0x3f1   :  { %v1143_v13 = vadd.f32 %v1080_v12, %v13387_v25  ;;  %v10665_v46 = vpop.f32.mrb[18].mxu1 }
 0x3f2   :  { %v1161_v58 = vmul.f32 0.041666668, %v1145_v10  ;;  %v1193_v28 = vmul.f32 0.125, %v1145_v10  ;;  %v1146_v16 = vadd.f32 %v10665_v46, %v13389_v26  ;;  %v1083_v61 = vpop.f32.mrb[19].mxu1 }
 0x3f3   :  { %v1159_v19 = vmul.f32 0.041666668, %v1143_v13  ;;  %v1191_v2 = vmul.f32 0.125, %v1143_v13  ;;  %v1144_v17 = vadd.f32 %v1083_v61, %v13391_v27 }
 0x3f4   :  { %v13710_v0 = vadd.f32 %v1161_v58, %v17748_v3  ;;  %v1209_v22 = vadd.f32 %v13385_v24, %v1193_v28  ;;  %v1162_v6 = vmul.f32 0.041666668, %v1146_v16  ;;  %v1194_v47 = vmul.f32 0.125, %v1146_v16 }
 0x3f5   :  { %v13714_v20 = vadd.f32 %v1159_v19, %v17749_v62  ;;  %v1207_v41 = vadd.f32 %v1191_v2, %v13387_v25  ;;  %v1160_v11 = vmul.f32 0.041666668, %v1144_v17  ;;  %v1192_v4 = vmul.f32 0.125, %v1144_v17 }
 0x3f6   :  { %v13718_v57 = vadd.f32 %v1162_v6, %v17750_v56  ;;  %v1210_v14 = vadd.f32 %v13389_v26, %v1194_v47 }
 0x3f7   :  { %v13722_v35 = vadd.f32 %v1160_v11, %v13618_v63  ;;  %v1208_v7 = vadd.f32 %v1192_v4, %v13391_v27  ;;  %v10668_v8 = vpop.f32.mrb[20].mxu1 }
 0x3f8   :  { %v1224_v10 = vpack.c.bf16 %v1210_v14, %v1209_v22  ;;  %v1149_v12 = vadd.f32 %v10668_v8, %v13397_v30  ;;  %v1096_v13 = vpop.f32.mrb[21].mxu1 }
 0x3f9   :  { %v1147_v46 = vadd.f32 %v1096_v13, %v13399_v31  ;;  %v10669_v58 = vpop.f32.mrb[22].mxu1  ;;  %v1223_v28 = vpack.c.bf16 %v1208_v7, %v1207_v41 }
 0x3fa   :  { %v1165_v16 = vmul.f32 0.041666668, %v1149_v12  ;;  %v1197_v61 = vmul.f32 0.125, %v1149_v12  ;;  %v1150_v19 = vadd.f32 %v10669_v58, %v13401_v32  ;;  %v1099_v2 = vpop.f32.mrb[23].mxu1 }
 0x3fb   :  { %v1163_v17 = vmul.f32 0.041666668, %v1147_v46  ;;  %v1195_v3 = vmul.f32 0.125, %v1147_v46  ;;  %v1148_v63 = vadd.f32 %v1099_v2, %v13403_v33  ;;  %10694 = vmatprep.mubr.bf16.mxu0 %v1223_v28  ;;  %10710 = vmatprep.subr.bf16.mxu0 %v1223_v28 }
 0x3fc   :  { %v13730_v22 = vadd.f32 %v1165_v16, %v13626_v23  ;;  %v1213_v6 = vadd.f32 %v13397_v30, %v1197_v61  ;;  %v1166_v47 = vmul.f32 0.041666668, %v1150_v19  ;;  %v1198_v62 = vmul.f32 0.125, %v1150_v19  ;;  %10695 = vmatmul.mubr.bf16.vlgmr.msra.gmra.mrb[32].mxu0 %v1224_v10 }
 0x3fd   :  { %v13734_v41 = vadd.f32 %v1163_v17, %v13630_v60  ;;  %v1211_v11 = vadd.f32 %v1195_v3, %v13399_v31  ;;  %v1164_v4 = vmul.f32 0.041666668, %v1148_v63  ;;  %v1196_v56 = vmul.f32 0.125, %v1148_v63  ;;  %10711 = vmatpush3.bf16.msra.mxu0 %v1223_v28 }
 0x3fe   :  { %v13738_v14 = vadd.f32 %v1166_v47, %v13634_v18  ;;  %v1214_v7 = vadd.f32 %v13401_v32, %v1198_v62  ;;  %10712 = vmatprep.subr.bf16.mxu0 %v1224_v10 }
 0x3ff   :  { %v13742_v23 = vadd.f32 %v1164_v4, %v13638_v1  ;;  %v1212_v8 = vadd.f32 %v1196_v56, %v13403_v33  ;;  %v10672_v12 = vpop.f32.mrb[24].mxu1 }
 0x400   :  { %v1153_v60 = vadd.f32 %v10672_v12, %v13409_v36  ;;  %v1112_v13 = vpop.f32.mrb[25].mxu1  ;;  %v1226_v46 = vpack.c.bf16 %v1214_v7, %v1213_v6 }
 0x401   :  { %v1151_v58 = vadd.f32 %v1112_v13, %v13411_v37  ;;  %10713 = vmatpush3.bf16.msra.mxu0 %v1224_v10  ;;  %v10673_v28 = vpop.f32.mrb[26].mxu1  ;;  %v1225_v16 = vpack.c.bf16 %v1212_v8, %v1211_v11 }
 0x402   :  { %v1169_v18 = vmul.f32 0.041666668, %v1153_v60  ;;  %v1201_v61 = vmul.f32 0.125, %v1153_v60  ;;  %v1154_v19 = vadd.f32 %v10673_v28, %v13413_v38  ;;  %v1115_v2 = vpop.f32.mrb[27].mxu1 }
 0x403   :  { %v1167_v17 = vmul.f32 0.041666668, %v1151_v58  ;;  %v1199_v1 = vmul.f32 0.125, %v1151_v58  ;;  %v1152_v3 = vadd.f32 %v1115_v2, %v13415_v39  ;;  %10698 = vmatprep.mubr.bf16.mxu0 %v1225_v16  ;;  %10714 = vmatprep.subr.bf16.mxu0 %v1225_v16 }
 0x404   :  { %v13750_v63 = vadd.f32 %v1169_v18, %v13646_v15  ;;  %v1217_v6 = vadd.f32 %v13409_v36, %v1201_v61  ;;  %v1170_v47 = vmul.f32 0.041666668, %v1154_v19  ;;  %v1202_v10 = vmul.f32 0.125, %v1154_v19  ;;  %10699 = vmatmul.mubr.bf16.gmra.mrb[36].mxu0 %v1226_v46 }
 0x405   :  { %v13754_v62 = vadd.f32 %v1167_v17, %v13650_v9  ;;  %v1215_v11 = vadd.f32 %v1199_v1, %v13411_v37  ;;  %v1168_v4 = vmul.f32 0.041666668, %v1152_v3  ;;  %v1200_v56 = vmul.f32 0.125, %v1152_v3  ;;  %10715 = vmatpush3.bf16.msra.mxu0 %v1225_v16 }
 0x406   :  { %v13758_v7 = vadd.f32 %v1170_v47, %v13654_v21  ;;  %v1218_v8 = vadd.f32 %v13413_v38, %v1202_v10  ;;  %10716 = vmatprep.subr.bf16.mxu0 %v1226_v46 }
 0x407   :  { %v13762_v15 = vadd.f32 %v1168_v4, %v13658_v29  ;;  %v1216_v12 = vadd.f32 %v1200_v56, %v13415_v39  ;;  %v10676_v60 = vpop.f32.mrb[28].mxu1 }
 0x408   :  { %v1157_v9 = vadd.f32 %v10676_v60, %v13421_v42  ;;  %v1128_v13 = vpop.f32.mrb[29].mxu1  ;;  %v1228_v58 = vpack.c.bf16 %v1218_v8, %v1217_v6 }
 0x409   :  { %v1155_v28 = vadd.f32 %v1128_v13, %v13423_v43  ;;  %10717 = vmatpush3.bf16.msra.mxu0 %v1226_v46  ;;  %v10677_v16 = vpop.f32.mrb[30].mxu1  ;;  %v1227_v18 = vpack.c.bf16 %v1216_v12, %v1215_v11 }
 0x40a   :  { %v1173_v21 = vmul.f32 0.041666668, %v1157_v9  ;;  %v1205_v61 = vmul.f32 0.125, %v1157_v9  ;;  %v1158_v19 = vadd.f32 %v10677_v16, %v13425_v44  ;;  %v1131_v2 = vpop.f32.mrb[31].mxu1 }
 0x40b   :  { %v1171_v17 = vmul.f32 0.041666668, %v1155_v28  ;;  %v1203_v29 = vmul.f32 0.125, %v1155_v28  ;;  %v1156_v1 = vadd.f32 %v1131_v2, %v13427_v45  ;;  %10702 = vmatprep.mubr.bf16.mxu0 %v1227_v18  ;;  %10718 = vmatprep.subr.bf16.mxu0 %v1227_v18 }
 0x40c   :  { %v13770_v3 = vadd.f32 %v1173_v21, %v13666_v5  ;;  %v1221_v6 = vadd.f32 %v13421_v42, %v1205_v61  ;;  %v1174_v47 = vmul.f32 0.041666668, %v1158_v19  ;;  %v1206_v46 = vmul.f32 0.125, %v1158_v19  ;;  %10703 = vmatmul.mubr.bf16.gmra.mrb[40].mxu0 %v1228_v58 }
 0x40d   :  { %v13774_v10 = vadd.f32 %v1171_v17, %v13670_v40  ;;  %v1219_v11 = vadd.f32 %v1203_v29, %v13423_v43  ;;  %v1172_v4 = vmul.f32 0.041666668, %v1156_v1  ;;  %v1204_v56 = vmul.f32 0.125, %v1156_v1  ;;  %10719 = vmatpush3.bf16.msra.mxu0 %v1227_v18 }
 0x40e   :  { %v13778_v8 = vadd.f32 %v1174_v47, %v13674_v59  ;;  %v1222_v12 = vadd.f32 %v13425_v44, %v1206_v46  ;;  %10720 = vmatprep.subr.bf16.mxu0 %v1228_v58  ;;  %v13789_v59 = vld [vmem:[%s17470_s3] sm:$0xff]  }
 0x40f   :  { %v13782_v5 = vadd.f32 %v1172_v4, %v13678_v34  ;;  %v1220_v60 = vadd.f32 %v1204_v56, %v13427_v45  ;;  %v13798_v34 = vld [vmem:[%s17470_s3 + $0x8] sm:$0xff]  }
 0x410   :  { %v1230_v9 = vpack.c.bf16 %v1222_v12, %v1221_v6 }
 0x411   :  { %10721 = vmatpush3.bf16.msra.mxu0 %v1228_v58  ;;  %v1229_v40 = vpack.c.bf16 %v1220_v60, %v1219_v11 }
 0x413   :  { %10706 = vmatprep.mubr.bf16.mxu0 %v1229_v40  ;;  %10722 = vmatprep.subr.bf16.mxu0 %v1229_v40 }
 0x414   :  { %10707 = vmatmul.mubr.bf16.gmra.mrb[44].mxu0 %v1230_v9 }
 0x415   :  { %10723 = vmatpush3.bf16.msra.mxu0 %v1229_v40  ;;  %10726 = vmatprep.mubr.bf16.mxu0 %v13436_v48  ;;  %v13805_v48 = vld [vmem:[%s17470_s3 + $0x10] sm:$0xff]  }
 0x416   :  { %10724 = vmatprep.subr.bf16.mxu0 %v1230_v9 }
 0x419   :  { %10725 = vmatpush3.bf16.msra.mxu0 %v1230_v9 }
 0x41a   :  { %10806 = vmatprep.subr.bf16.mxu0 %v13789_v59 }
 0x41c   :  { %10727 = vmatmul.mubr.bf16.vlgmr.msra.gmra.mrb[32].mxu0 %v13442_v49  ;;  %v13814_v49 = vld [vmem:[%s17470_s3 + $0x18] sm:$0xff]  }
 0x41d   :  { %10730 = vmatprep.mubr.bf16.mxu0 %v13447_v50  ;;  %10807 = vmatpush3.bf16.msra.mxu0 %v13789_v59  ;;  %v13821_v50 = vld [vmem:[%s17470_s3 + $0x20] sm:$0xff]  }
 0x41e   :  { %10808 = vmatprep.subr.bf16.mxu0 %v13798_v34  ;;  %17751 = vst [vmem:[#allocation2_spill] sm:$0xff] %v13821_v50 }
 0x421   :  { %10809 = vmatpush3.bf16.msra.mxu0 %v13798_v34 }
 0x422   :  { %10810 = vmatprep.subr.bf16.mxu0 %v13805_v48 }
 0x424   :  { %10731 = vmatmul.mubr.bf16.gmra.mrb[36].mxu0 %v13457_v51  ;;  %v13830_v51 = vld [vmem:[%s17470_s3 + $0x28] sm:$0xff]  }
 0x425   :  { %10734 = vmatprep.mubr.bf16.mxu0 %v13462_v52  ;;  %10811 = vmatpush3.bf16.msra.mxu0 %v13805_v48  ;;  %17752 = vst [vmem:[#allocation14_spill] sm:$0xff] %v13830_v51  ;;  %v13837_v52 = vld [vmem:[%s17470_s3 + $0x30] sm:$0xff]  }
 0x426   :  { %10812 = vmatprep.subr.bf16.mxu0 %v13814_v49  ;;  %17753 = vst [vmem:[#allocation15_spill] sm:$0xff] %v13837_v52 }
 0x429   :  { %10813 = vmatpush3.bf16.msra.mxu0 %v13814_v49 }
 0x42a   :  { %10814 = vmatprep.subr.bf16.mxu0 %v13821_v50 }
 0x42c   :  { %10735 = vmatmul.mubr.bf16.gmra.mrb[40].mxu0 %v13473_v53  ;;  %v13845_v53 = vld [vmem:[%s17470_s3 + $0x38] sm:$0xff]  }
 0x42d   :  { %10738 = vmatprep.mubr.bf16.mxu0 %v13478_v54  ;;  %10815 = vmatpush3.bf16.msra.mxu0 %v13821_v50  ;;  %17754 = vst [vmem:[#allocation16_spill] sm:$0xff] %v13845_v53 }
 0x42e   :  { %10816 = vmatprep.subr.bf16.mxu0 %v13830_v51 }
 0x431   :  { %10817 = vmatpush3.bf16.msra.mxu0 %v13830_v51 }
 0x432   :  { %10818 = vmatprep.subr.bf16.mxu0 %v13837_v52 }
 0x434   :  { %10739 = vmatmul.mubr.bf16.gmra.mrb[44].mxu0 %v13489_v55 }
 0x435   :  { %10819 = vmatpush3.bf16.msra.mxu0 %v13837_v52 }
 0x436   :  { %10820 = vmatprep.subr.bf16.mxu0 %v13845_v53 }
 0x439   :  { %10821 = vmatpush3.bf16.msra.mxu0 %v13845_v53 }
 0x4ef   :  { %v10728_v54 = vpop.f32.mrb[32].mxu0 }
 0x4f0   :  { %v1427_v13 = vadd.f32 %v10728_v54, %v13385_v24  ;;  %v1362_v58 = vpop.f32.mrb[33].mxu0 }
 0x4f1   :  { %v1425_v28 = vadd.f32 %v1362_v58, %v13387_v25  ;;  %v10729_v16 = vpop.f32.mrb[34].mxu0 }
 0x4f2   :  { %v1443_v18 = vmul.f32 0.020833334, %v1427_v13  ;;  %v1428_v55 = vadd.f32 %v10729_v16, %v13389_v26  ;;  %v1365_v21 = vpop.f32.mrb[35].mxu0 }
 0x4f3   :  { %v1441_v61 = vmul.f32 0.020833334, %v1425_v28  ;;  %v1426_v19 = vadd.f32 %v1365_v21, %v13391_v27 }
 0x4f4   :  { %v13854_v2 = vadd.f32 %v1443_v18, %v13710_v0  ;;  %v1444_v17 = vmul.f32 0.020833334, %v1428_v55 }
 0x4f5   :  { %v13857_v29 = vadd.f32 %v1441_v61, %v13714_v20  ;;  %v1442_v1 = vmul.f32 0.020833334, %v1426_v19 }
 0x4f6   :  { %v13860_v6 = vadd.f32 %v1444_v17, %v13718_v57 }
 0x4f7   :  { %v13863_v47 = vadd.f32 %v1442_v1, %v13722_v35  ;;  %v10732_v46 = vpop.f32.mrb[36].mxu0 }
 0x4f8   :  { %17755 = vst [vmem:[#allocation17_spill] sm:$0xff] %v13860_v6  ;;  %v1431_v11 = vadd.f32 %v10732_v46, %v13397_v30  ;;  %v1378_v4 = vpop.f32.mrb[37].mxu0  ;;  %v1474_v57 = vpack.c.bf16 %v13860_v6, %v13854_v2 }
 0x4f9   :  { %17756 = vst [vmem:[#allocation18_spill] sm:$0xff] %v13863_v47  ;;  %v1429_v56 = vadd.f32 %v1378_v4, %v13399_v31  ;;  %v10733_v12 = vpop.f32.mrb[38].mxu0  ;;  %v1473_v0 = vpack.c.bf16 %v13863_v47, %v13857_v29 }
 0x4fa   :  { %v1447_v60 = vmul.f32 0.020833334, %v1431_v11  ;;  %v1432_v20 = vadd.f32 %v10733_v12, %v13401_v32  ;;  %v1381_v9 = vpop.f32.mrb[39].mxu0 }
 0x4fb   :  { %v1445_v40 = vmul.f32 0.020833334, %v1429_v56  ;;  %v1430_v35 = vadd.f32 %v1381_v9, %v13403_v33  ;;  %10758 = vmatprep.mubr.bf16.mxu1 %v1473_v0  ;;  %10774 = vmatprep.subr.bf16.mxu1 %v1473_v0 }
 0x4fc   :  { %v13874_v54 = vadd.f32 %v1447_v60, %v13730_v22  ;;  %v1448_v13 = vmul.f32 0.020833334, %v1432_v20  ;;  %10759 = vmatmul.mubr.bf16.vlgmr.msra.gmra.mrb[32].mxu1 %v1474_v57 }
 0x4fd   :  { %v13877_v58 = vadd.f32 %v1445_v40, %v13734_v41  ;;  %v1446_v28 = vmul.f32 0.020833334, %v1430_v35  ;;  %10775 = vmatpush3.bf16.msra.mxu1 %v1473_v0 }
 0x4fe   :  { %v13880_v16 = vadd.f32 %v1448_v13, %v13738_v14  ;;  %10776 = vmatprep.subr.bf16.mxu1 %v1474_v57 }
 0x4ff   :  { %17757 = vst [vmem:[#allocation19_spill] sm:$0xff] %v13877_v58  ;;  %v13883_v18 = vadd.f32 %v1446_v28, %v13742_v23  ;;  %v10736_v55 = vpop.f32.mrb[40].mxu0 }
 0x500   :  { %v1435_v21 = vadd.f32 %v10736_v55, %v13409_v36  ;;  %v1394_v61 = vpop.f32.mrb[41].mxu0  ;;  %v1476_v46 = vpack.c.bf16 %v13880_v16, %v13874_v54 }
 0x501   :  { %17758 = vst [vmem:[#allocation20_spill] sm:$0xff] %v13883_v18  ;;  %v1433_v22 = vadd.f32 %v1394_v61, %v13411_v37  ;;  %10777 = vmatpush3.bf16.msra.mxu1 %v1474_v57  ;;  %v10737_v19 = vpop.f32.mrb[42].mxu0  ;;  %v1475_v41 = vpack.c.bf16 %v13883_v18, %v13877_v58 }
 0x502   :  { %v1451_v17 = vmul.f32 0.020833334, %v1435_v21  ;;  %v1436_v1 = vadd.f32 %v10737_v19, %v13413_v38  ;;  %v1397_v14 = vpop.f32.mrb[43].mxu0 }
 0x503   :  { %v1449_v23 = vmul.f32 0.020833334, %v1433_v22  ;;  %v1434_v11 = vadd.f32 %v1397_v14, %v13415_v39  ;;  %10762 = vmatprep.mubr.bf16.mxu1 %v1475_v41  ;;  %10778 = vmatprep.subr.bf16.mxu1 %v1475_v41 }
 0x504   :  { %v13894_v4 = vadd.f32 %v1451_v17, %v13750_v63  ;;  %v1452_v56 = vmul.f32 0.020833334, %v1436_v1  ;;  %10763 = vmatmul.mubr.bf16.gmra.mrb[36].mxu1 %v1476_v46 }
 0x505   :  { %v13897_v12 = vadd.f32 %v1449_v23, %v13754_v62  ;;  %v1450_v0 = vmul.f32 0.020833334, %v1434_v11  ;;  %10779 = vmatpush3.bf16.msra.mxu1 %v1475_v41  ;;  %v13961_v23 = vld [vmem:[%s17471_s2 + $0x20] sm:$0xff]   ;;  %v13971_v11 = vld [vmem:[%s17471_s2 + $0x28] sm:$0xff]  }
 0x506   :  { %v13900_v60 = vadd.f32 %v1452_v56, %v13758_v7  ;;  %10780 = vmatprep.subr.bf16.mxu1 %v1476_v46  ;;  %17760 = vst [vmem:[#allocation22_spill] sm:$0xff] %v13971_v11  ;;  %v13977_v56 = vld [vmem:[%s17471_s2 + $0x30] sm:$0xff]  }
 0x507   :  { %v13903_v20 = vadd.f32 %v1450_v0, %v13762_v15  ;;  %v10740_v9 = vpop.f32.mrb[44].mxu0  ;;  %17761 = vst [vmem:[#allocation23_spill] sm:$0xff] %v13977_v56  ;;  %v13987_v0 = vld [vmem:[%s17471_s2 + $0x38] sm:$0xff]  }
 0x508   :  { %v1439_v57 = vadd.f32 %v10740_v9, %v13421_v42  ;;  %v1410_v40 = vpop.f32.mrb[45].mxu0  ;;  %v1478_v55 = vpack.c.bf16 %v13900_v60, %v13894_v4  ;;  %17762 = vst [vmem:[#allocation24_spill] sm:$0xff] %v13987_v0 }
 0x509   :  { %17759 = vst [vmem:[#allocation21_spill] sm:$0xff] %v13903_v20  ;;  %v1437_v63 = vadd.f32 %v1410_v40, %v13423_v43  ;;  %10781 = vmatpush3.bf16.msra.mxu1 %v1476_v46  ;;  %v10741_v35 = vpop.f32.mrb[46].mxu0  ;;  %v1477_v62 = vpack.c.bf16 %v13903_v20, %v13897_v12  ;;  %v13955_v46 = vld [vmem:[%s17471_s2 + $0x18] sm:$0xff]  }
 0x50a   :  { %v1455_v13 = vmul.f32 0.020833334, %v1439_v57  ;;  %v1440_v28 = vadd.f32 %v10741_v35, %v13425_v44  ;;  %v1413_v7 = vpop.f32.mrb[47].mxu0 }
 0x50b   :  { %v1453_v15 = vmul.f32 0.020833334, %v1437_v63  ;;  %v1438_v21 = vadd.f32 %v1413_v7, %v13427_v45  ;;  %10766 = vmatprep.mubr.bf16.mxu1 %v1477_v62  ;;  %10782 = vmatprep.subr.bf16.mxu1 %v1477_v62 }
 0x50c   :  { %v13914_v61 = vadd.f32 %v1455_v13, %v13770_v3  ;;  %v1456_v22 = vmul.f32 0.020833334, %v1440_v28  ;;  %10767 = vmatmul.mubr.bf16.gmra.mrb[40].mxu1 %v1478_v55 }
 0x50d   :  { %v13917_v19 = vadd.f32 %v1453_v15, %v13774_v10  ;;  %v1454_v41 = vmul.f32 0.020833334, %v1438_v21  ;;  %10783 = vmatpush3.bf16.msra.mxu1 %v1477_v62  ;;  %v13932_v10 = vld [vmem:[%s17471_s2] sm:$0xff]  }
 0x50e   :  { %v13920_v17 = vadd.f32 %v1456_v22, %v13778_v8  ;;  %10784 = vmatprep.subr.bf16.mxu1 %v1478_v55  ;;  %v13939_v8 = vld [vmem:[%s17471_s2 + $0x8] sm:$0xff]  }
 0x50f   :  { %v13923_v1 = vadd.f32 %v1454_v41, %v13782_v5  ;;  %v13945_v5 = vld [vmem:[%s17471_s2 + $0x10] sm:$0xff]  }
 0x510   :  { %v1480_v3 = vpack.c.bf16 %v13920_v17, %v13914_v61 }
 0x511   :  { %10785 = vmatpush3.bf16.msra.mxu1 %v1478_v55  ;;  %v1479_v14 = vpack.c.bf16 %v13923_v1, %v13917_v19 }
 0x513   :  { %10770 = vmatprep.mubr.bf16.mxu1 %v1479_v14  ;;  %10786 = vmatprep.subr.bf16.mxu1 %v1479_v14 }
 0x514   :  { %10771 = vmatmul.mubr.bf16.gmra.mrb[44].mxu1 %v1480_v3 }
 0x515   :  { %10787 = vmatpush3.bf16.msra.mxu1 %v1479_v14  ;;  %10790 = vmatprep.mubr.bf16.mxu1 %v13932_v10 }
 0x516   :  { %10788 = vmatprep.subr.bf16.mxu1 %v1480_v3 }
 0x519   :  { %10789 = vmatpush3.bf16.msra.mxu1 %v1480_v3 }
 0x51a   :  { %10870 = vmatprep.subr.bf16.mxu1 %v13789_v59 }
 0x51c   :  { %10791 = vmatmul.mubr.bf16.vlgmr.msra.gmra.mrb[32].mxu1 %v13939_v8 }
 0x51d   :  { %10794 = vmatprep.mubr.bf16.mxu1 %v13945_v5  ;;  %10871 = vmatpush3.bf16.msra.mxu1 %v13789_v59 }
 0x51e   :  { %10872 = vmatprep.subr.bf16.mxu1 %v13798_v34 }
 0x521   :  { %10873 = vmatpush3.bf16.msra.mxu1 %v13798_v34 }
 0x522   :  { %10874 = vmatprep.subr.bf16.mxu1 %v13805_v48 }
 0x524   :  { %10795 = vmatmul.mubr.bf16.gmra.mrb[36].mxu1 %v13955_v46 }
 0x525   :  { %10798 = vmatprep.mubr.bf16.mxu1 %v13961_v23  ;;  %10875 = vmatpush3.bf16.msra.mxu1 %v13805_v48 }
 0x526   :  { %10876 = vmatprep.subr.bf16.mxu1 %v13814_v49 }
 0x529   :  { %10877 = vmatpush3.bf16.msra.mxu1 %v13814_v49 }
 0x52a   :  { %10878 = vmatprep.subr.bf16.mxu1 %v13821_v50 }
 0x52c   :  { %10799 = vmatmul.mubr.bf16.gmra.mrb[40].mxu1 %v13971_v11 }
 0x52d   :  { %10802 = vmatprep.mubr.bf16.mxu1 %v13977_v56  ;;  %10879 = vmatpush3.bf16.msra.mxu1 %v13821_v50 }
 0x52e   :  { %10880 = vmatprep.subr.bf16.mxu1 %v13830_v51 }
 0x531   :  { %10881 = vmatpush3.bf16.msra.mxu1 %v13830_v51 }
 0x532   :  { %10882 = vmatprep.subr.bf16.mxu1 %v13837_v52 }
 0x534   :  { %10803 = vmatmul.mubr.bf16.gmra.mrb[44].mxu1 %v13987_v0 }
 0x535   :  { %10883 = vmatpush3.bf16.msra.mxu1 %v13837_v52 }
 0x536   :  { %10884 = vmatprep.subr.bf16.mxu1 %v13845_v53 }
 0x539   :  { %10885 = vmatpush3.bf16.msra.mxu1 %v13845_v53 }
 0x5ef   :  { %v10792_v9 = vpop.f32.mrb[32].mxu1 }
 0x5f0   :  { %v13994_v57 = vadd.f32 %v10792_v9, %v13385_v24  ;;  %v1612_v40 = vpop.f32.mrb[33].mxu1 }
 0x5f1   :  { %v13997_v63 = vadd.f32 %v1612_v40, %v13387_v25  ;;  %v10793_v35 = vpop.f32.mrb[34].mxu1 }
 0x5f2   :  { %v1725_v62 = vmul.f32 0.0625, %v13994_v57  ;;  %v14001_v13 = vadd.f32 %v10793_v35, %v13389_v26  ;;  %v1615_v28 = vpop.f32.mrb[35].mxu1 }
 0x5f3   :  { %v1723_v7 = vmul.f32 0.0625, %v13997_v63  ;;  %v14005_v55 = vadd.f32 %v1615_v28, %v13391_v27 }
 0x5f4   :  { %v1726_v15 = vmul.f32 0.0625, %v14001_v13  ;;  %v1741_v22 = vadd.f32 %v1725_v62, %v13854_v2 }
 0x5f5   :  { %17763 = vst [vmem:[#allocation25_spill] sm:$0xff] %v14005_v55  ;;  %v1724_v21 = vmul.f32 0.0625, %v14005_v55  ;;  %v1739_v14 = vadd.f32 %v1723_v7, %v13857_v29 }
 0x5f6   :  { %v1742_v41 = vadd.f32 %v1726_v15, %v13860_v6 }
 0x5f7   :  { %v1740_v3 = vadd.f32 %v1724_v21, %v13863_v47  ;;  %v10796_v9 = vpop.f32.mrb[36].mxu1 }
 0x5f8   :  { %v1756_v40 = vpack.c.bf16 %v1742_v41, %v1741_v22  ;;  %v14014_v35 = vadd.f32 %v10796_v9, %v13397_v30  ;;  %v1628_v26 = vpop.f32.mrb[37].mxu1 }
 0x5f9   :  { %v14017_v28 = vadd.f32 %v1628_v26, %v13399_v31  ;;  %v10797_v27 = vpop.f32.mrb[38].mxu1  ;;  %v1755_v25 = vpack.c.bf16 %v1740_v3, %v1739_v14 }
 0x5fa   :  { %v1729_v55 = vmul.f32 0.0625, %v14014_v35  ;;  %v14021_v62 = vadd.f32 %v10797_v27, %v13401_v32  ;;  %v1631_v15 = vpop.f32.mrb[39].mxu1 }
 0x5fb   :  { %v1727_v7 = vmul.f32 0.0625, %v14017_v28  ;;  %v14025_v21 = vadd.f32 %v1631_v15, %v13403_v33  ;;  %10822 = vmatprep.mubr.bf16.mxu0 %v1755_v25  ;;  %10838 = vmatprep.subr.bf16.mxu0 %v1755_v25 }
 0x5fc   :  { %v1730_v22 = vmul.f32 0.0625, %v14021_v62  ;;  %10823 = vmatmul.mubr.bf16.vlgmr.msra.gmra.mrb[48].mxu0 %v1756_v40  ;;  %v1745_v41 = vadd.f32 %v1729_v55, %v13874_v54 }
 0x5fd   :  { %17764 = vst [vmem:[#allocation26_spill] sm:$0xff] %v14025_v21  ;;  %v1728_v26 = vmul.f32 0.0625, %v14025_v21  ;;  %10839 = vmatpush3.bf16.msra.mxu0 %v1755_v25  ;;  %v1743_v27 = vadd.f32 %v1727_v7, %v13877_v58 }
 0x5fe   :  { %v1746_v14 = vadd.f32 %v1730_v22, %v13880_v16  ;;  %10840 = vmatprep.subr.bf16.mxu0 %v1756_v40 }
 0x5ff   :  { %v1744_v3 = vadd.f32 %v1728_v26, %v13883_v18  ;;  %v10800_v9 = vpop.f32.mrb[40].mxu1 }
 0x600   :  { %v14034_v15 = vadd.f32 %v10800_v9, %v13409_v36  ;;  %v1644_v33 = vpop.f32.mrb[41].mxu1  ;;  %v1758_v32 = vpack.c.bf16 %v1746_v14, %v1745_v41 }
 0x601   :  { %v14037_v31 = vadd.f32 %v1644_v33, %v13411_v37  ;;  %10841 = vmatpush3.bf16.msra.mxu0 %v1756_v40  ;;  %v10801_v25 = vpop.f32.mrb[42].mxu1  ;;  %v1757_v21 = vpack.c.bf16 %v1744_v3, %v1743_v27 }
 0x602   :  { %v1733_v55 = vmul.f32 0.0625, %v14034_v15  ;;  %v14041_v22 = vadd.f32 %v10801_v25, %v13413_v38  ;;  %v1647_v7 = vpop.f32.mrb[43].mxu1 }
 0x603   :  { %v1731_v26 = vmul.f32 0.0625, %v14037_v31  ;;  %v14045_v18 = vadd.f32 %v1647_v7, %v13415_v39  ;;  %10826 = vmatprep.mubr.bf16.mxu0 %v1757_v21  ;;  %10842 = vmatprep.subr.bf16.mxu0 %v1757_v21 }
 0x604   :  { %v1734_v41 = vmul.f32 0.0625, %v14041_v22  ;;  %10827 = vmatmul.mubr.bf16.gmra.mrb[52].mxu0 %v1758_v32  ;;  %v1749_v40 = vadd.f32 %v1733_v55, %v13894_v4 }
 0x605   :  { %v1732_v33 = vmul.f32 0.0625, %v14045_v18  ;;  %10843 = vmatpush3.bf16.msra.mxu0 %v1757_v21  ;;  %v1747_v27 = vadd.f32 %v1731_v26, %v13897_v12 }
 0x606   :  { %v1750_v14 = vadd.f32 %v1734_v41, %v13900_v60  ;;  %10844 = vmatprep.subr.bf16.mxu0 %v1758_v32 }
 0x607   :  { %v1748_v3 = vadd.f32 %v1732_v33, %v13903_v20  ;;  %v10804_v9 = vpop.f32.mrb[44].mxu1 }
 0x608   :  { %v14054_v25 = vadd.f32 %v10804_v9, %v13421_v42  ;;  %v1660_v7 = vpop.f32.mrb[45].mxu1  ;;  %v1760_v39 = vpack.c.bf16 %v1750_v14, %v1749_v40 }
 0x609   :  { %v14057_v38 = vadd.f32 %v1660_v7, %v13423_v43  ;;  %10845 = vmatpush3.bf16.msra.mxu0 %v1758_v32  ;;  %v10805_v21 = vpop.f32.mrb[46].mxu1  ;;  %v1759_v37 = vpack.c.bf16 %v1748_v3, %v1747_v27 }
 0x60a   :  { %v1737_v55 = vmul.f32 0.0625, %v14054_v25  ;;  %v14061_v41 = vadd.f32 %v10805_v21, %v13425_v44  ;;  %v1663_v26 = vpop.f32.mrb[47].mxu1 }
 0x60b   :  { %v1735_v33 = vmul.f32 0.0625, %v14057_v38  ;;  %v14065_v20 = vadd.f32 %v1663_v26, %v13427_v45  ;;  %10830 = vmatprep.mubr.bf16.mxu0 %v1759_v37  ;;  %10846 = vmatprep.subr.bf16.mxu0 %v1759_v37  ;;  %v1694_v26 = vmul.f32 0.020833334, %v14001_v13  ;;  %v17768_v13 = vld [vmem:[#allocation6_spill] sm:$0xff] }
 0x60c   :  { %v1738_v40 = vmul.f32 0.0625, %v14061_v41  ;;  %10831 = vmatmul.mubr.bf16.gmra.mrb[56].mxu0 %v1760_v39  ;;  %v1753_v14 = vadd.f32 %v1737_v55, %v13914_v61 }
 0x60d   :  { %v1736_v32 = vmul.f32 0.0625, %v14065_v20  ;;  %10847 = vmatpush3.bf16.msra.mxu0 %v1759_v37  ;;  %v1751_v3 = vadd.f32 %v1735_v33, %v13917_v19  ;;  %v1693_v37 = vmul.f32 0.020833334, %v13994_v57 }
 0x60e   :  { %v1754_v27 = vadd.f32 %v1738_v40, %v13920_v17  ;;  %10848 = vmatprep.subr.bf16.mxu0 %v1760_v39 }
 0x60f   :  { %v1752_v9 = vadd.f32 %v1736_v32, %v13923_v1  ;;  %v17765_v32 = vld [vmem:[#allocation25_spill] sm:$0xff] }
 0x610   :  { %v1762_v7 = vpack.c.bf16 %v1754_v27, %v1753_v14  ;;  %v1692_v14 = vmul.f32 0.020833334, %v17765_v32  ;;  %v17766_v27 = vld [vmem:[#allocation4_spill] sm:$0xff] }
 0x611   :  { %10849 = vmatpush3.bf16.msra.mxu0 %v1760_v39  ;;  %v1761_v21 = vpack.c.bf16 %v1752_v9, %v1751_v3  ;;  %v1691_v39 = vmul.f32 0.020833334, %v13997_v63 }
 0x613   :  { %10834 = vmatprep.mubr.bf16.mxu0 %v1761_v21  ;;  %10850 = vmatprep.subr.bf16.mxu0 %v1761_v21  ;;  %v1707_v63 = vadd.f32 %v1691_v39, %v13857_v29 }
 0x614   :  { %10835 = vmatmul.mubr.bf16.gmra.mrb[60].mxu0 %v1762_v7 }
 0x615   :  { %10851 = vmatpush3.bf16.msra.mxu0 %v1761_v21  ;;  %10854 = vmatprep.mubr.bf16.mxu0 %v13932_v10 }
 0x616   :  { %10852 = vmatprep.subr.bf16.mxu0 %v1762_v7 }
 0x619   :  { %10853 = vmatpush3.bf16.msra.mxu0 %v1762_v7  ;;  %v1709_v7 = vadd.f32 %v1693_v37, %v13854_v2 }
 0x61a   :  { %10934 = vmatprep.subr.bf16.mxu0 %v13789_v59 }
 0x61c   :  { %10855 = vmatmul.mubr.bf16.vlgmr.msra.gmra.mrb[48].mxu0 %v13939_v8 }
 0x61d   :  { %10858 = vmatprep.mubr.bf16.mxu0 %v13945_v5  ;;  %10935 = vmatpush3.bf16.msra.mxu0 %v13789_v59 }
 0x61e   :  { %10936 = vmatprep.subr.bf16.mxu0 %v13798_v34 }
 0x621   :  { %10937 = vmatpush3.bf16.msra.mxu0 %v13798_v34 }
 0x622   :  { %10938 = vmatprep.subr.bf16.mxu0 %v13805_v48 }
 0x624   :  { %10859 = vmatmul.mubr.bf16.gmra.mrb[52].mxu0 %v13955_v46 }
 0x625   :  { %10862 = vmatprep.mubr.bf16.mxu0 %v13961_v23  ;;  %10939 = vmatpush3.bf16.msra.mxu0 %v13805_v48 }
 0x626   :  { %10940 = vmatprep.subr.bf16.mxu0 %v13814_v49 }
 0x629   :  { %10941 = vmatpush3.bf16.msra.mxu0 %v13814_v49 }
 0x62a   :  { %10942 = vmatprep.subr.bf16.mxu0 %v13821_v50 }
 0x62c   :  { %10863 = vmatmul.mubr.bf16.gmra.mrb[56].mxu0 %v13971_v11 }
 0x62d   :  { %10866 = vmatprep.mubr.bf16.mxu0 %v13977_v56  ;;  %10943 = vmatpush3.bf16.msra.mxu0 %v13821_v50 }
 0x62e   :  { %10944 = vmatprep.subr.bf16.mxu0 %v13830_v51 }
 0x631   :  { %10945 = vmatpush3.bf16.msra.mxu0 %v13830_v51 }
 0x632   :  { %10946 = vmatprep.subr.bf16.mxu0 %v13837_v52 }
 0x634   :  { %10867 = vmatmul.mubr.bf16.gmra.mrb[60].mxu0 %v13987_v0 }
 0x635   :  { %10947 = vmatpush3.bf16.msra.mxu0 %v13837_v52 }
 0x636   :  { %10948 = vmatprep.subr.bf16.mxu0 %v13845_v53 }
 0x639   :  { %10949 = vmatpush3.bf16.msra.mxu0 %v13845_v53  ;;  %v17767_v53 = vld [vmem:[#allocation5_spill] sm:$0xff] }
 0x6ef   :  { %v10856_v55 = vpop.f32.mrb[48].mxu0 }
 0x6f0   :  { %v1959_v33 = vadd.f32 %v10856_v55, %v13385_v24  ;;  %v1894_v40 = vpop.f32.mrb[49].mxu0  ;;  %v1710_v55 = vadd.f32 %v1694_v26, %v13860_v6  ;;  %v1695_v26 = vmul.f32 0.020833334, %v14017_v28 }
 0x6f1   :  { %v1957_v3 = vadd.f32 %v1894_v40, %v17766_v27  ;;  %v10857_v9 = vpop.f32.mrb[50].mxu0  ;;  %v1708_v27 = vadd.f32 %v1692_v14, %v13863_v47  ;;  %v1698_v14 = vmul.f32 0.020833334, %v14021_v62 }
 0x6f2   :  { %v1975_v21 = vmul.f32 0.041666668, %v1959_v33  ;;  %v2007_v0 = vmul.f32 0.0625, %v1959_v33  ;;  %v1960_v52 = vadd.f32 %v10857_v9, %v17767_v53  ;;  %v1897_v57 = vpop.f32.mrb[51].mxu0  ;;  %v1697_v9 = vmul.f32 0.020833334, %v14014_v35 }
 0x6f3   :  { %v1973_v51 = vmul.f32 0.041666668, %v1957_v3  ;;  %v2005_v56 = vmul.f32 0.0625, %v1957_v3  ;;  %v1958_v11 = vadd.f32 %v1897_v57, %v17768_v13 }
 0x6f4   :  { %v14108_v24 = vadd.f32 %v1975_v21, %v1709_v7  ;;  %v1976_v32 = vmul.f32 0.041666668, %v1960_v52  ;;  %v2008_v40 = vmul.f32 0.0625, %v1960_v52  ;;  %v2023_v39 = vadd.f32 %v2007_v0, %v13854_v2  ;;  %v17770_v0 = vld [vmem:[#allocation26_spill] sm:$0xff] }
 0x6f5   :  { %v14111_v37 = vadd.f32 %v1973_v51, %v1707_v63  ;;  %v1974_v33 = vmul.f32 0.041666668, %v1958_v11  ;;  %v2006_v50 = vmul.f32 0.0625, %v1958_v11  ;;  %v2021_v7 = vadd.f32 %v2005_v56, %v13857_v29 }
 0x6f6   :  { %v14115_v53 = vadd.f32 %v1976_v32, %v1710_v55  ;;  %v2024_v3 = vadd.f32 %v2008_v40, %v13860_v6  ;;  %v1696_v63 = vmul.f32 0.020833334, %v17770_v0  ;;  %v17771_v55 = vld [vmem:[#allocation7_spill] sm:$0xff]  ;;  %v1713_v28 = vadd.f32 %v1697_v9, %v13874_v54  ;;  %v17774_v9 = vld [vmem:[#allocation20_spill] sm:$0xff] }
 0x6f7   :  { %v14120_v21 = vadd.f32 %v1974_v33, %v1708_v27  ;;  %v2022_v52 = vadd.f32 %v2006_v50, %v13863_v47  ;;  %v10860_v51 = vpop.f32.mrb[52].mxu0  ;;  %v17772_v33 = vld [vmem:[#allocation8_spill] sm:$0xff]  ;;  %v1711_v47 = vadd.f32 %v1695_v26, %v13877_v58  ;;  %v1714_v0 = vadd.f32 %v1698_v14, %v13880_v16 }
 0x6f8   :  { %v2038_v11 = vpack.c.bf16 %v2024_v3, %v2023_v39  ;;  %v1963_v35 = vadd.f32 %v10860_v51, %v13397_v30  ;;  %v1910_v57 = vpop.f32.mrb[53].mxu0  ;;  %v17773_v3 = vld [vmem:[#allocation9_spill] sm:$0xff]  ;;  %v1701_v26 = vmul.f32 0.020833334, %v14034_v15 }
 0x6f9   :  { %17769 = vst [vmem:[#allocation25_spill] sm:$0xff] %v14120_v21  ;;  %v1961_v32 = vadd.f32 %v1910_v57, %v17771_v55  ;;  %v10861_v40 = vpop.f32.mrb[54].mxu0  ;;  %v2037_v6 = vpack.c.bf16 %v2022_v52, %v2021_v7 }
 0x6fa   :  { %v1979_v56 = vmul.f32 0.041666668, %v1963_v35  ;;  %v2011_v27 = vmul.f32 0.0625, %v1963_v35  ;;  %v1964_v21 = vadd.f32 %v10861_v40, %v17772_v33  ;;  %v1913_v50 = vpop.f32.mrb[55].mxu0  ;;  %v1712_v35 = vadd.f32 %v1696_v63, %v17774_v9 }
 0x6fb   :  { %v1977_v62 = vmul.f32 0.041666668, %v1961_v32  ;;  %v2009_v39 = vmul.f32 0.0625, %v1961_v32  ;;  %v1962_v51 = vadd.f32 %v1913_v50, %v17773_v3  ;;  %10886 = vmatprep.mubr.bf16.mxu1 %v2037_v6  ;;  %10902 = vmatprep.subr.bf16.mxu1 %v2037_v6 }
 0x6fc   :  { %v14132_v57 = vadd.f32 %v1979_v56, %v1713_v28  ;;  %v1980_v7 = vmul.f32 0.041666668, %v1964_v21  ;;  %v2012_v52 = vmul.f32 0.0625, %v1964_v21  ;;  %10887 = vmatmul.mubr.bf16.vlgmr.msra.gmra.mrb[48].mxu1 %v2038_v11  ;;  %v2027_v32 = vadd.f32 %v2011_v27, %v13874_v54 }
 0x6fd   :  { %v14135_v55 = vadd.f32 %v1977_v62, %v1711_v47  ;;  %v1978_v40 = vmul.f32 0.041666668, %v1962_v51  ;;  %v2010_v33 = vmul.f32 0.0625, %v1962_v51  ;;  %10903 = vmatpush3.bf16.msra.mxu1 %v2037_v6  ;;  %v1699_v28 = vmul.f32 0.020833334, %v14037_v31 }
 0x6fe   :  { %v14139_v50 = vadd.f32 %v1980_v7, %v1714_v0  ;;  %v2028_v14 = vadd.f32 %v2012_v52, %v13880_v16  ;;  %10904 = vmatprep.subr.bf16.mxu1 %v2038_v11  ;;  %v2025_v21 = vadd.f32 %v2009_v39, %v13877_v58  ;;  %v1702_v6 = vmul.f32 0.020833334, %v14041_v22  ;;  %v17776_v0 = vld [vmem:[#allocation11_spill] sm:$0xff] }
 0x6ff   :  { %v14144_v56 = vadd.f32 %v1978_v40, %v1712_v35  ;;  %v2026_v47 = vadd.f32 %v2010_v33, %v17774_v9  ;;  %v10864_v63 = vpop.f32.mrb[56].mxu0  ;;  %v1700_v51 = vmul.f32 0.020833334, %v14045_v18  ;;  %v1717_v39 = vadd.f32 %v1701_v26, %v13894_v4  ;;  %v17779_v26 = vld [vmem:[#allocation21_spill] sm:$0xff] }
 0x700   :  { %v1967_v15 = vadd.f32 %v10864_v63, %v13409_v36  ;;  %v1926_v62 = vpop.f32.mrb[57].mxu0  ;;  %v2040_v27 = vpack.c.bf16 %v2028_v14, %v2027_v32  ;;  %v1715_v22 = vadd.f32 %v1699_v28, %v13897_v12  ;;  %v17778_v36 = vld [vmem:[#allocation13_spill] sm:$0xff]  ;;  %v1718_v18 = vadd.f32 %v1702_v6, %v13900_v60 }
 0x701   :  { %17775 = vst [vmem:[#allocation26_spill] sm:$0xff] %v14144_v56  ;;  %v1965_v7 = vadd.f32 %v1926_v62, %v17776_v0  ;;  %10905 = vmatpush3.bf16.msra.mxu1 %v2038_v11  ;;  %v10865_v52 = vpop.f32.mrb[58].mxu0  ;;  %v2039_v31 = vpack.c.bf16 %v2026_v47, %v2025_v21  ;;  %v17777_v56 = vld [vmem:[#allocation12_spill] sm:$0xff]  ;;  %v1716_v47 = vadd.f32 %v1700_v51, %v17779_v26  ;;  %v1705_v28 = vmul.f32 0.020833334, %v14054_v25 }
 0x702   :  { %v1983_v35 = vmul.f32 0.041666668, %v1967_v15  ;;  %v2015_v40 = vmul.f32 0.0625, %v1967_v15  ;;  %v1968_v33 = vadd.f32 %v10865_v52, %v17777_v56  ;;  %v1929_v9 = vpop.f32.mrb[59].mxu0 }
 0x703   :  { %v1981_v58 = vmul.f32 0.041666668, %v1965_v7  ;;  %v2013_v63 = vmul.f32 0.0625, %v1965_v7  ;;  %v1966_v32 = vadd.f32 %v1929_v9, %v17778_v36  ;;  %10890 = vmatprep.mubr.bf16.mxu1 %v2039_v31  ;;  %10906 = vmatprep.subr.bf16.mxu1 %v2039_v31 }
 0x704   :  { %v14156_v11 = vadd.f32 %v1983_v35, %v1717_v39  ;;  %v1984_v14 = vmul.f32 0.041666668, %v1968_v33  ;;  %v2016_v21 = vmul.f32 0.0625, %v1968_v33  ;;  %10891 = vmatmul.mubr.bf16.gmra.mrb[52].mxu1 %v2040_v27  ;;  %v2031_v9 = vadd.f32 %v2015_v40, %v13894_v4 }
 0x705   :  { %v14159_v15 = vadd.f32 %v1981_v58, %v1715_v22  ;;  %v1982_v62 = vmul.f32 0.041666668, %v1966_v32  ;;  %v2014_v52 = vmul.f32 0.0625, %v1966_v32  ;;  %10907 = vmatpush3.bf16.msra.mxu1 %v2039_v31  ;;  %v1703_v39 = vmul.f32 0.020833334, %v14057_v38 }
 0x706   :  { %v14163_v7 = vadd.f32 %v1984_v14, %v1718_v18  ;;  %v2032_v6 = vadd.f32 %v2016_v21, %v13900_v60  ;;  %10908 = vmatprep.subr.bf16.mxu1 %v2040_v27  ;;  %v2029_v35 = vadd.f32 %v2013_v63, %v13897_v12  ;;  %v1706_v31 = vmul.f32 0.020833334, %v14061_v41 }
 0x707   :  { %v14168_v33 = vadd.f32 %v1982_v62, %v1716_v47  ;;  %v2030_v58 = vadd.f32 %v2014_v52, %v17779_v26  ;;  %v10868_v51 = vpop.f32.mrb[60].mxu0  ;;  %v1704_v32 = vmul.f32 0.020833334, %v14065_v20  ;;  %v1721_v63 = vadd.f32 %v1705_v28, %v13914_v61 }
 0x708   :  { %v1971_v25 = vadd.f32 %v10868_v51, %v13421_v42  ;;  %v1942_v22 = vpop.f32.mrb[61].mxu0  ;;  %v2042_v40 = vpack.c.bf16 %v2032_v6, %v2031_v9  ;;  %v1719_v41 = vadd.f32 %v1703_v39, %v13917_v19  ;;  %v1722_v20 = vadd.f32 %v1706_v31, %v13920_v17 }
 0x709   :  { %v1969_v18 = vadd.f32 %v1942_v22, %v13423_v43  ;;  %10909 = vmatpush3.bf16.msra.mxu1 %v2040_v27  ;;  %v10869_v14 = vpop.f32.mrb[62].mxu0  ;;  %v2041_v38 = vpack.c.bf16 %v2030_v58, %v2029_v35  ;;  %v1720_v28 = vadd.f32 %v1704_v32, %v13923_v1  ;;  %v17781_v32 = vld [vmem:[#allocation22_spill] sm:$0xff] }
 0x70a   :  { %v1987_v21 = vmul.f32 0.041666668, %v1971_v25  ;;  %v2019_v47 = vmul.f32 0.0625, %v1971_v25  ;;  %v1972_v62 = vadd.f32 %v10869_v14, %v13425_v44  ;;  %v1945_v52 = vpop.f32.mrb[63].mxu0 }
 0x70b   :  { %v1985_v26 = vmul.f32 0.041666668, %v1969_v18  ;;  %v2017_v51 = vmul.f32 0.0625, %v1969_v18  ;;  %v1970_v9 = vadd.f32 %v1945_v52, %v13427_v45  ;;  %10894 = vmatprep.mubr.bf16.mxu1 %v2041_v38  ;;  %10910 = vmatprep.subr.bf16.mxu1 %v2041_v38  ;;  %v17787_v52 = vld [vmem:[#allocation3_spill] sm:$0xff] }
 0x70c   :  { %v14180_v27 = vadd.f32 %v1987_v21, %v1721_v63  ;;  %v1988_v6 = vmul.f32 0.041666668, %v1972_v62  ;;  %v2020_v35 = vmul.f32 0.0625, %v1972_v62  ;;  %10895 = vmatmul.mubr.bf16.gmra.mrb[56].mxu1 %v2042_v40  ;;  %v2035_v39 = vadd.f32 %v2019_v47, %v13914_v61  ;;  %v17785_v47 = vld [vmem:[#allocation24_spill] sm:$0xff] }
 0x70d   :  { %v14183_v58 = vadd.f32 %v1985_v26, %v1719_v41  ;;  %v1986_v25 = vmul.f32 0.041666668, %v1970_v9  ;;  %v2018_v22 = vmul.f32 0.0625, %v1970_v9  ;;  %10911 = vmatpush3.bf16.msra.mxu1 %v2041_v38  ;;  %v2033_v31 = vadd.f32 %v2017_v51, %v13917_v19  ;;  %v17784_v38 = vld [vmem:[#allocation15_spill] sm:$0xff]  ;;  %v17788_v9 = vld [vmem:[#allocation4_spill] sm:$0xff] }
 0x70e   :  { %v14186_v18 = vadd.f32 %v1988_v6, %v1722_v20  ;;  %v2036_v14 = vadd.f32 %v2020_v35, %v13920_v17  ;;  %10912 = vmatprep.subr.bf16.mxu1 %v2042_v40 }
 0x70f   :  { %v14190_v63 = vadd.f32 %v1986_v25, %v1720_v28  ;;  %v2034_v21 = vadd.f32 %v2018_v22, %v13923_v1  ;;  %v17789_v25 = vld [vmem:[#allocation5_spill] sm:$0xff] }
 0x710   :  { %v2044_v62 = vpack.c.bf16 %v2036_v14, %v2035_v39 }
 0x711   :  { %10913 = vmatpush3.bf16.msra.mxu1 %v2042_v40  ;;  %v2043_v26 = vpack.c.bf16 %v2034_v21, %v2033_v31  ;;  %v17780_v40 = vld [vmem:[#allocation2_spill] sm:$0xff] }
 0x713   :  { %10898 = vmatprep.mubr.bf16.mxu1 %v2043_v26  ;;  %10914 = vmatprep.subr.bf16.mxu1 %v2043_v26 }
 0x714   :  { %10899 = vmatmul.mubr.bf16.gmra.mrb[60].mxu1 %v2044_v62 }
 0x715   :  { %10915 = vmatpush3.bf16.msra.mxu1 %v2043_v26  ;;  %10918 = vmatprep.mubr.bf16.mxu1 %v13932_v10 }
 0x716   :  { %10916 = vmatprep.subr.bf16.mxu1 %v2044_v62 }
 0x719   :  { %10917 = vmatpush3.bf16.msra.mxu1 %v2044_v62 }
 0x71a   :  { %10998 = vmatprep.subr.bf16.mxu1 %v13789_v59 }
 0x71c   :  { %10919 = vmatmul.mubr.bf16.vlgmr.msra.gmra.mrb[48].mxu1 %v13939_v8 }
 0x71d   :  { %10922 = vmatprep.mubr.bf16.mxu1 %v13945_v5  ;;  %10999 = vmatpush3.bf16.msra.mxu1 %v13789_v59  ;;  %v17782_v59 = vld [vmem:[#allocation23_spill] sm:$0xff] }
 0x71e   :  { %11000 = vmatprep.subr.bf16.mxu1 %v13798_v34 }
 0x721   :  { %11001 = vmatpush3.bf16.msra.mxu1 %v13798_v34  ;;  %v17783_v34 = vld [vmem:[#allocation14_spill] sm:$0xff] }
 0x722   :  { %11002 = vmatprep.subr.bf16.mxu1 %v13805_v48 }
 0x724   :  { %10923 = vmatmul.mubr.bf16.gmra.mrb[52].mxu1 %v13955_v46 }
 0x725   :  { %10926 = vmatprep.mubr.bf16.mxu1 %v13961_v23  ;;  %11003 = vmatpush3.bf16.msra.mxu1 %v13805_v48  ;;  %v17786_v48 = vld [vmem:[#allocation16_spill] sm:$0xff] }
 0x726   :  { %11004 = vmatprep.subr.bf16.mxu1 %v13814_v49 }
 0x729   :  { %11005 = vmatpush3.bf16.msra.mxu1 %v13814_v49 }
 0x72a   :  { %11006 = vmatprep.subr.bf16.mxu1 %v17780_v40 }
 0x72c   :  { %10927 = vmatmul.mubr.bf16.gmra.mrb[56].mxu1 %v17781_v32 }
 0x72d   :  { %10930 = vmatprep.mubr.bf16.mxu1 %v17782_v59  ;;  %11007 = vmatpush3.bf16.msra.mxu1 %v17780_v40 }
 0x72e   :  { %11008 = vmatprep.subr.bf16.mxu1 %v17783_v34 }
 0x731   :  { %11009 = vmatpush3.bf16.msra.mxu1 %v17783_v34 }
 0x732   :  { %11010 = vmatprep.subr.bf16.mxu1 %v17784_v38 }
 0x734   :  { %10931 = vmatmul.mubr.bf16.gmra.mrb[60].mxu1 %v17785_v47 }
 0x735   :  { %11011 = vmatpush3.bf16.msra.mxu1 %v17784_v38 }
 0x736   :  { %11012 = vmatprep.subr.bf16.mxu1 %v17786_v48 }
 0x739   :  { %11013 = vmatpush3.bf16.msra.mxu1 %v17786_v48 }
 0x7ef   :  { %v10920_v49 = vpop.f32.mrb[48].mxu1 }
 0x7f0   :  { %v2241_v41 = vadd.f32 %v10920_v49, %v17787_v52  ;;  %v2176_v51 = vpop.f32.mrb[49].mxu1 }
 0x7f1   :  { %v2239_v20 = vadd.f32 %v2176_v51, %v17788_v9  ;;  %v10921_v6 = vpop.f32.mrb[50].mxu1  ;;  %v17793_v51 = vld [vmem:[#allocation17_spill] sm:$0xff] }
 0x7f2   :  { %v2257_v35 = vmul.f32 0.041666668, %v2241_v41  ;;  %v2289_v28 = vmul.f32 0.125, %v2241_v41  ;;  %v2242_v22 = vadd.f32 %v10921_v6, %v17789_v25  ;;  %v2179_v39 = vpop.f32.mrb[51].mxu1 }
 0x7f3   :  { %v2255_v14 = vmul.f32 0.041666668, %v2239_v20  ;;  %v2287_v31 = vmul.f32 0.125, %v2239_v20  ;;  %v2240_v21 = vadd.f32 %v2179_v39, %v17768_v13  ;;  %v17794_v39 = vld [vmem:[#allocation25_spill] sm:$0xff] }
 0x7f4   :  { %v14222_v62 = vadd.f32 %v2257_v35, %v14108_v24  ;;  %v2258_v26 = vmul.f32 0.041666668, %v2242_v22  ;;  %v2290_v40 = vmul.f32 0.125, %v2242_v22  ;;  %v2305_v49 = vadd.f32 %v2289_v28, %v13854_v2  ;;  %v17795_v24 = vld [vmem:[#allocation18_spill] sm:$0xff] }
 0x7f5   :  { %v14225_v34 = vadd.f32 %v2255_v14, %v14111_v37  ;;  %v2256_v38 = vmul.f32 0.041666668, %v2240_v21  ;;  %v2288_v48 = vmul.f32 0.125, %v2240_v21  ;;  %v2303_v20 = vadd.f32 %v2287_v31, %v13857_v29  ;;  %v17796_v21 = vld [vmem:[#allocation7_spill] sm:$0xff] }
 0x7f6   :  { %17790 = vst [vmem:[#allocation2_spill] sm:$0xff] %v14222_v62  ;;  %v14229_v41 = vadd.f32 %v2258_v26, %v14115_v53  ;;  %v2306_v6 = vadd.f32 %v2290_v40, %v17793_v51 }
 0x7f7   :  { %17791 = vst [vmem:[#allocation22_spill] sm:$0xff] %v14225_v34  ;;  %v14234_v13 = vadd.f32 %v2256_v38, %v17794_v39  ;;  %v2304_v35 = vadd.f32 %v2288_v48, %v17795_v24  ;;  %v10924_v22 = vpop.f32.mrb[52].mxu1 }
 0x7f8   :  { %17792 = vst [vmem:[#allocation23_spill] sm:$0xff] %v14229_v41  ;;  %v2320_v62 = vpack.c.bf16 %v2306_v6, %v2305_v49  ;;  %v2245_v37 = vadd.f32 %v10924_v22, %v13397_v30  ;;  %v2192_v14 = vpop.f32.mrb[53].mxu1  ;;  %v17797_v41 = vld [vmem:[#allocation8_spill] sm:$0xff] }
 0x7f9   :  { %v2243_v34 = vadd.f32 %v2192_v14, %v17796_v21  ;;  %v10925_v2 = vpop.f32.mrb[54].mxu1  ;;  %v2319_v28 = vpack.c.bf16 %v2304_v35, %v2303_v20  ;;  %v17799_v14 = vld [vmem:[#allocation26_spill] sm:$0xff] }
 0x7fa   :  { %v2261_v53 = vmul.f32 0.041666668, %v2245_v37  ;;  %v2293_v26 = vmul.f32 0.125, %v2245_v37  ;;  %v2246_v40 = vadd.f32 %v10925_v2, %v17797_v41  ;;  %v2195_v51 = vpop.f32.mrb[55].mxu1  ;;  %v17798_v37 = vld [vmem:[#allocation19_spill] sm:$0xff] }
 0x7fb   :  { %v2259_v29 = vmul.f32 0.041666668, %v2243_v34  ;;  %v2291_v31 = vmul.f32 0.125, %v2243_v34  ;;  %v2244_v38 = vadd.f32 %v2195_v51, %v17773_v3  ;;  %10950 = vmatprep.mubr.bf16.mxu0 %v2319_v28  ;;  %10966 = vmatprep.subr.bf16.mxu0 %v2319_v28  ;;  %v17801_v51 = vld [vmem:[#allocation10_spill] sm:$0xff] }
 0x7fc   :  { %v14242_v48 = vadd.f32 %v2261_v53, %v14132_v57  ;;  %v2262_v49 = vmul.f32 0.041666668, %v2246_v40  ;;  %v2294_v6 = vmul.f32 0.125, %v2246_v40  ;;  %10951 = vmatmul.mubr.bf16.vlgmr.msra.gmra.mrb[64].mxu0 %v2320_v62  ;;  %v2309_v35 = vadd.f32 %v2293_v26, %v13874_v54  ;;  %v17800_v53 = vld [vmem:[#allocation20_spill] sm:$0xff] }
 0x7fd   :  { %v14245_v39 = vadd.f32 %v2259_v29, %v14135_v55  ;;  %v2260_v20 = vmul.f32 0.041666668, %v2244_v38  ;;  %v2292_v24 = vmul.f32 0.125, %v2244_v38  ;;  %10967 = vmatpush3.bf16.msra.mxu0 %v2319_v28  ;;  %v2307_v57 = vadd.f32 %v2291_v31, %v17798_v37 }
 0x7fe   :  { %v14249_v34 = vadd.f32 %v2262_v49, %v14139_v50  ;;  %v2310_v22 = vadd.f32 %v2294_v6, %v13880_v16  ;;  %10968 = vmatprep.subr.bf16.mxu0 %v2320_v62 }
 0x7ff   :  { %v14254_v2 = vadd.f32 %v2260_v20, %v17799_v14  ;;  %v2308_v40 = vadd.f32 %v2292_v24, %v17800_v53  ;;  %v10928_v55 = vpop.f32.mrb[56].mxu1 }
 0x800   :  { %v2249_v29 = vadd.f32 %v10928_v55, %v17801_v51  ;;  %v2208_v38 = vpop.f32.mrb[57].mxu1  ;;  %v2322_v28 = vpack.c.bf16 %v2310_v22, %v2309_v35 }
 0x801   :  { %v2247_v54 = vadd.f32 %v2208_v38, %v17776_v0  ;;  %10969 = vmatpush3.bf16.msra.mxu0 %v2320_v62  ;;  %v10929_v50 = vpop.f32.mrb[58].mxu1  ;;  %v2321_v26 = vpack.c.bf16 %v2308_v40, %v2307_v57 }
 0x802   :  { %v2265_v49 = vmul.f32 0.041666668, %v2249_v29  ;;  %v2297_v16 = vmul.f32 0.125, %v2249_v29  ;;  %v2250_v6 = vadd.f32 %v10929_v50, %v17777_v56  ;;  %v2211_v31 = vpop.f32.mrb[59].mxu1 }
 0x803   :  { %v2263_v37 = vmul.f32 0.041666668, %v2247_v54  ;;  %v2295_v20 = vmul.f32 0.125, %v2247_v54  ;;  %v2248_v14 = vadd.f32 %v2211_v31, %v17778_v36  ;;  %10954 = vmatprep.mubr.bf16.mxu0 %v2321_v26  ;;  %10970 = vmatprep.subr.bf16.mxu0 %v2321_v26  ;;  %v17802_v54 = vld [vmem:[#allocation21_spill] sm:$0xff] }
 0x804   :  { %v14262_v24 = vadd.f32 %v2265_v49, %v14156_v11  ;;  %v2266_v35 = vmul.f32 0.041666668, %v2250_v6  ;;  %v2298_v22 = vmul.f32 0.125, %v2250_v6  ;;  %10955 = vmatmul.mubr.bf16.gmra.mrb[68].mxu0 %v2322_v28  ;;  %v2313_v40 = vadd.f32 %v2297_v16, %v13894_v4 }
 0x805   :  { %v14265_v62 = vadd.f32 %v2263_v37, %v14159_v15  ;;  %v2264_v57 = vmul.f32 0.041666668, %v2248_v14  ;;  %v2296_v53 = vmul.f32 0.125, %v2248_v14  ;;  %10971 = vmatpush3.bf16.msra.mxu0 %v2321_v26  ;;  %v2311_v11 = vadd.f32 %v2295_v20, %v13897_v12 }
 0x806   :  { %v14269_v55 = vadd.f32 %v2266_v35, %v14163_v7  ;;  %v2314_v29 = vadd.f32 %v2298_v22, %v13900_v60  ;;  %10972 = vmatprep.subr.bf16.mxu0 %v2322_v28 }
 0x807   :  { %v14274_v38 = vadd.f32 %v2264_v57, %v14168_v33  ;;  %v2312_v50 = vadd.f32 %v2296_v53, %v17802_v54  ;;  %v10932_v15 = vpop.f32.mrb[60].mxu1 }
 0x808   :  { %v2253_v49 = vadd.f32 %v10932_v15, %v13421_v42  ;;  %v2224_v6 = vpop.f32.mrb[61].mxu1  ;;  %v2324_v26 = vpack.c.bf16 %v2314_v29, %v2313_v40 }
 0x809   :  { %v2251_v4 = vadd.f32 %v2224_v6, %v13423_v43  ;;  %10973 = vmatpush3.bf16.msra.mxu0 %v2322_v28  ;;  %v10933_v7 = vpop.f32.mrb[62].mxu1  ;;  %v2323_v16 = vpack.c.bf16 %v2312_v50, %v2311_v11 }
 0x80a   :  { %v2269_v31 = vmul.f32 0.041666668, %v2253_v49  ;;  %v2301_v60 = vmul.f32 0.125, %v2253_v49  ;;  %v2254_v37 = vadd.f32 %v10933_v7, %v13425_v44  ;;  %v2227_v12 = vpop.f32.mrb[63].mxu1  ;;  %v17807_v7 = vld [vmem:[#allocation6_spill] sm:$0xff] }
 0x80b   :  { %v2267_v20 = vmul.f32 0.041666668, %v2251_v4  ;;  %v2299_v33 = vmul.f32 0.125, %v2251_v4  ;;  %v2252_v14 = vadd.f32 %v2227_v12, %v13427_v45  ;;  %10958 = vmatprep.mubr.bf16.mxu0 %v2323_v16  ;;  %10974 = vmatprep.subr.bf16.mxu0 %v2323_v16  ;;  %v17809_v12 = vld [vmem:[#allocation22_spill] sm:$0xff] }
 0x80c   :  { %v14282_v35 = vadd.f32 %v2269_v31, %v14180_v27  ;;  %v2270_v22 = vmul.f32 0.041666668, %v2254_v37  ;;  %v2302_v57 = vmul.f32 0.125, %v2254_v37  ;;  %10959 = vmatmul.mubr.bf16.gmra.mrb[72].mxu0 %v2324_v26  ;;  %v2317_v29 = vadd.f32 %v2301_v60, %v13914_v61  ;;  %v14301_v61 = vld [vmem:[%s17470_s3] sm:$0xff]  }
 0x80d   :  { %v14285_v28 = vadd.f32 %v2267_v20, %v14183_v58  ;;  %v2268_v53 = vmul.f32 0.041666668, %v2252_v14  ;;  %v2300_v40 = vmul.f32 0.125, %v2252_v14  ;;  %10975 = vmatpush3.bf16.msra.mxu0 %v2323_v16  ;;  %v2315_v27 = vadd.f32 %v2299_v33, %v13917_v19  ;;  %v14310_v19 = vld [vmem:[%s17470_s3 + $0x8] sm:$0xff]   ;;  %v17808_v31 = vld [vmem:[#allocation2_spill] sm:$0xff] }
 0x80e   :  { %v14289_v11 = vadd.f32 %v2270_v22, %v14186_v18  ;;  %v2318_v54 = vadd.f32 %v2302_v57, %v13920_v17  ;;  %10976 = vmatprep.subr.bf16.mxu0 %v2324_v26  ;;  %v14317_v17 = vld [vmem:[%s17470_s3 + $0x10] sm:$0xff]   ;;  %v17810_v14 = vld [vmem:[#allocation23_spill] sm:$0xff] }
 0x80f   :  { %v14294_v50 = vadd.f32 %v2268_v53, %v14190_v63  ;;  %v2316_v15 = vadd.f32 %v2300_v40, %v13923_v1  ;;  %v14326_v1 = vld [vmem:[%s17470_s3 + $0x18] sm:$0xff]  }
 0x810   :  { %v2326_v58 = vpack.c.bf16 %v2318_v54, %v2317_v29 }
 0x811   :  { %10977 = vmatpush3.bf16.msra.mxu0 %v2324_v26  ;;  %v2325_v49 = vpack.c.bf16 %v2316_v15, %v2315_v27 }
 0x813   :  { %10962 = vmatprep.mubr.bf16.mxu0 %v2325_v49  ;;  %10978 = vmatprep.subr.bf16.mxu0 %v2325_v49 }
 0x814   :  { %10963 = vmatmul.mubr.bf16.gmra.mrb[76].mxu0 %v2326_v58 }
 0x815   :  { %10979 = vmatpush3.bf16.msra.mxu0 %v2325_v49  ;;  %10982 = vmatprep.mubr.bf16.mxu0 %v13932_v10  ;;  %v14333_v10 = vld [vmem:[%s17470_s3 + $0x20] sm:$0xff]  }
 0x816   :  { %10980 = vmatprep.subr.bf16.mxu0 %v2326_v58  ;;  %17803 = vst [vmem:[#allocation14_spill] sm:$0xff] %v14333_v10 }
 0x819   :  { %10981 = vmatpush3.bf16.msra.mxu0 %v2326_v58 }
 0x81a   :  { %11062 = vmatprep.subr.bf16.mxu0 %v14301_v61 }
 0x81c   :  { %10983 = vmatmul.mubr.bf16.vlgmr.msra.gmra.mrb[64].mxu0 %v13939_v8  ;;  %v14342_v8 = vld [vmem:[%s17470_s3 + $0x28] sm:$0xff]  }
 0x81d   :  { %10986 = vmatprep.mubr.bf16.mxu0 %v13945_v5  ;;  %11063 = vmatpush3.bf16.msra.mxu0 %v14301_v61  ;;  %17804 = vst [vmem:[#allocation15_spill] sm:$0xff] %v14342_v8  ;;  %v14349_v5 = vld [vmem:[%s17470_s3 + $0x30] sm:$0xff]  }
 0x81e   :  { %11064 = vmatprep.subr.bf16.mxu0 %v14310_v19  ;;  %17805 = vst [vmem:[#allocation24_spill] sm:$0xff] %v14349_v5 }
 0x821   :  { %11065 = vmatpush3.bf16.msra.mxu0 %v14310_v19 }
 0x822   :  { %11066 = vmatprep.subr.bf16.mxu0 %v14317_v17 }
 0x824   :  { %10987 = vmatmul.mubr.bf16.gmra.mrb[68].mxu0 %v13955_v46  ;;  %v14357_v46 = vld [vmem:[%s17470_s3 + $0x38] sm:$0xff]  }
 0x825   :  { %10990 = vmatprep.mubr.bf16.mxu0 %v13961_v23  ;;  %11067 = vmatpush3.bf16.msra.mxu0 %v14317_v17  ;;  %17806 = vst [vmem:[#allocation16_spill] sm:$0xff] %v14357_v46 }
 0x826   :  { %11068 = vmatprep.subr.bf16.mxu0 %v14326_v1 }
 0x829   :  { %11069 = vmatpush3.bf16.msra.mxu0 %v14326_v1 }
 0x82a   :  { %11070 = vmatprep.subr.bf16.mxu0 %v14333_v10 }
 0x82c   :  { %10991 = vmatmul.mubr.bf16.gmra.mrb[72].mxu0 %v17781_v32 }
 0x82d   :  { %10994 = vmatprep.mubr.bf16.mxu0 %v17782_v59  ;;  %11071 = vmatpush3.bf16.msra.mxu0 %v14333_v10 }
 0x82e   :  { %11072 = vmatprep.subr.bf16.mxu0 %v14342_v8 }
 0x831   :  { %11073 = vmatpush3.bf16.msra.mxu0 %v14342_v8 }
 0x832   :  { %11074 = vmatprep.subr.bf16.mxu0 %v14349_v5 }
 0x834   :  { %10995 = vmatmul.mubr.bf16.gmra.mrb[76].mxu0 %v17785_v47 }
 0x835   :  { %11075 = vmatpush3.bf16.msra.mxu0 %v14349_v5 }
 0x836   :  { %11076 = vmatprep.subr.bf16.mxu0 %v14357_v46 }
 0x839   :  { %11077 = vmatpush3.bf16.msra.mxu0 %v14357_v46 }
 0x8ef   :  { %v10984_v23 = vpop.f32.mrb[64].mxu0 }
 0x8f0   :  { %v2523_v18 = vadd.f32 %v10984_v23, %v17787_v52  ;;  %v2458_v63 = vpop.f32.mrb[65].mxu0 }
 0x8f1   :  { %v2521_v32 = vadd.f32 %v2458_v63, %v17788_v9  ;;  %v10985_v59 = vpop.f32.mrb[66].mxu0 }
 0x8f2   :  { %v2539_v6 = vmul.f32 0.020833334, %v2523_v18  ;;  %v2524_v47 = vadd.f32 %v10985_v59, %v17789_v25  ;;  %v2461_v26 = vpop.f32.mrb[67].mxu0 }
 0x8f3   :  { %v2537_v4 = vmul.f32 0.020833334, %v2521_v32  ;;  %v2522_v16 = vadd.f32 %v2461_v26, %v17807_v7 }
 0x8f4   :  { %v14366_v60 = vadd.f32 %v2539_v6, %v17808_v31  ;;  %v2540_v37 = vmul.f32 0.020833334, %v2524_v47 }
 0x8f5   :  { %v14369_v20 = vadd.f32 %v2537_v4, %v17809_v12  ;;  %v2538_v33 = vmul.f32 0.020833334, %v2522_v16 }
 0x8f6   :  { %v14372_v22 = vadd.f32 %v2540_v37, %v17810_v14 }
 0x8f7   :  { %v14375_v57 = vadd.f32 %v2538_v33, %v14234_v13  ;;  %v10988_v53 = vpop.f32.mrb[68].mxu0 }
 0x8f8   :  { %17811 = vst [vmem:[#allocation17_spill] sm:$0xff] %v14372_v22  ;;  %v2527_v40 = vadd.f32 %v10988_v53, %v13397_v30  ;;  %v2474_v29 = vpop.f32.mrb[69].mxu0  ;;  %v2570_v18 = vpack.c.bf16 %v14372_v22, %v14366_v60 }
 0x8f9   :  { %17812 = vst [vmem:[#allocation25_spill] sm:$0xff] %v14375_v57  ;;  %v2525_v54 = vadd.f32 %v2474_v29, %v17796_v21  ;;  %v10989_v27 = vpop.f32.mrb[70].mxu0  ;;  %v2569_v15 = vpack.c.bf16 %v14375_v57, %v14369_v20 }
 0x8fa   :  { %v2543_v58 = vmul.f32 0.020833334, %v2527_v40  ;;  %v2528_v49 = vadd.f32 %v10989_v27, %v17797_v41  ;;  %v2477_v23 = vpop.f32.mrb[71].mxu0 }
 0x8fb   :  { %v2541_v63 = vmul.f32 0.020833334, %v2525_v54  ;;  %v2526_v13 = vadd.f32 %v2477_v23, %v17773_v3  ;;  %11014 = vmatprep.mubr.bf16.mxu1 %v2569_v15  ;;  %11030 = vmatprep.subr.bf16.mxu1 %v2569_v15 }
 0x8fc   :  { %v14386_v32 = vadd.f32 %v2543_v58, %v14242_v48  ;;  %v2544_v59 = vmul.f32 0.020833334, %v2528_v49  ;;  %11015 = vmatmul.mubr.bf16.vlgmr.msra.gmra.mrb[64].mxu1 %v2570_v18 }
 0x8fd   :  { %v14389_v6 = vadd.f32 %v2541_v63, %v14245_v39  ;;  %v2542_v47 = vmul.f32 0.020833334, %v2526_v13  ;;  %11031 = vmatpush3.bf16.msra.mxu1 %v2569_v15 }
 0x8fe   :  { %v14392_v26 = vadd.f32 %v2544_v59, %v14249_v34  ;;  %11032 = vmatprep.subr.bf16.mxu1 %v2570_v18 }
 0x8ff   :  { %17813 = vst [vmem:[#allocation18_spill] sm:$0xff] %v14389_v6  ;;  %v14395_v4 = vadd.f32 %v2542_v47, %v14254_v2  ;;  %v10992_v16 = vpop.f32.mrb[72].mxu0 }
 0x900   :  { %v2531_v31 = vadd.f32 %v10992_v16, %v17801_v51  ;;  %v2490_v37 = vpop.f32.mrb[73].mxu0  ;;  %v2572_v53 = vpack.c.bf16 %v14392_v26, %v14386_v32 }
 0x901   :  { %17814 = vst [vmem:[#allocation19_spill] sm:$0xff] %v14395_v4  ;;  %v2529_v48 = vadd.f32 %v2490_v37, %v17776_v0  ;;  %11033 = vmatpush3.bf16.msra.mxu1 %v2570_v18  ;;  %v10993_v12 = vpop.f32.mrb[74].mxu0  ;;  %v2571_v39 = vpack.c.bf16 %v14395_v4, %v14389_v6 }
 0x902   :  { %v2547_v33 = vmul.f32 0.020833334, %v2531_v31  ;;  %v2532_v14 = vadd.f32 %v10993_v12, %v17777_v56  ;;  %v2493_v34 = vpop.f32.mrb[75].mxu0 }
 0x903   :  { %v2545_v2 = vmul.f32 0.020833334, %v2529_v48  ;;  %v2530_v40 = vadd.f32 %v2493_v34, %v17778_v36  ;;  %11018 = vmatprep.mubr.bf16.mxu1 %v2571_v39  ;;  %11034 = vmatprep.subr.bf16.mxu1 %v2571_v39 }
 0x904   :  { %v14406_v29 = vadd.f32 %v2547_v33, %v14262_v24  ;;  %v2548_v54 = vmul.f32 0.020833334, %v2532_v14  ;;  %11019 = vmatmul.mubr.bf16.gmra.mrb[68].mxu1 %v2572_v53 }
 0x905   :  { %v14409_v27 = vadd.f32 %v2545_v2, %v14265_v62  ;;  %v2546_v15 = vmul.f32 0.020833334, %v2530_v40  ;;  %11035 = vmatpush3.bf16.msra.mxu1 %v2571_v39  ;;  %v14473_v2 = vld [vmem:[%s17471_s2 + $0x20] sm:$0xff]   ;;  %v14483_v40 = vld [vmem:[%s17471_s2 + $0x28] sm:$0xff]  }
 0x906   :  { %v14412_v58 = vadd.f32 %v2548_v54, %v14269_v55  ;;  %11036 = vmatprep.subr.bf16.mxu1 %v2572_v53  ;;  %17816 = vst [vmem:[#allocation20_spill] sm:$0xff] %v14483_v40  ;;  %v14489_v54 = vld [vmem:[%s17471_s2 + $0x30] sm:$0xff]  }
 0x907   :  { %v14415_v49 = vadd.f32 %v2546_v15, %v14274_v38  ;;  %v10996_v23 = vpop.f32.mrb[76].mxu0  ;;  %17817 = vst [vmem:[#allocation21_spill] sm:$0xff] %v14489_v54  ;;  %v14499_v15 = vld [vmem:[%s17471_s2 + $0x38] sm:$0xff]  }
 0x908   :  { %v2535_v18 = vadd.f32 %v10996_v23, %v13421_v42  ;;  %v2506_v63 = vpop.f32.mrb[77].mxu0  ;;  %v2574_v16 = vpack.c.bf16 %v14412_v58, %v14406_v29  ;;  %17818 = vst [vmem:[#allocation2_spill] sm:$0xff] %v14499_v15 }
 0x909   :  { %17815 = vst [vmem:[#allocation26_spill] sm:$0xff] %v14415_v49  ;;  %v2533_v24 = vadd.f32 %v2506_v63, %v13423_v43  ;;  %11037 = vmatpush3.bf16.msra.mxu1 %v2572_v53  ;;  %v10997_v13 = vpop.f32.mrb[78].mxu0  ;;  %v2573_v62 = vpack.c.bf16 %v14415_v49, %v14409_v27  ;;  %v14467_v53 = vld [vmem:[%s17471_s2 + $0x18] sm:$0xff]  }
 0x90a   :  { %v2551_v59 = vmul.f32 0.020833334, %v2535_v18  ;;  %v2536_v47 = vadd.f32 %v10997_v13, %v13425_v44  ;;  %v2509_v55 = vpop.f32.mrb[79].mxu0 }
 0x90b   :  { %v2549_v38 = vmul.f32 0.020833334, %v2533_v24  ;;  %v2534_v31 = vadd.f32 %v2509_v55, %v13427_v45  ;;  %11022 = vmatprep.mubr.bf16.mxu1 %v2573_v62  ;;  %11038 = vmatprep.subr.bf16.mxu1 %v2573_v62 }
 0x90c   :  { %v14426_v37 = vadd.f32 %v2551_v59, %v14282_v35  ;;  %v2552_v48 = vmul.f32 0.020833334, %v2536_v47  ;;  %11023 = vmatmul.mubr.bf16.gmra.mrb[72].mxu1 %v2574_v16 }
 0x90d   :  { %v14429_v12 = vadd.f32 %v2549_v38, %v14285_v28  ;;  %v2550_v39 = vmul.f32 0.020833334, %v2534_v31  ;;  %11039 = vmatpush3.bf16.msra.mxu1 %v2573_v62  ;;  %v14444_v28 = vld [vmem:[%s17471_s2] sm:$0xff]  }
 0x90e   :  { %v14432_v33 = vadd.f32 %v2552_v48, %v14289_v11  ;;  %11040 = vmatprep.subr.bf16.mxu1 %v2574_v16  ;;  %v14451_v11 = vld [vmem:[%s17471_s2 + $0x8] sm:$0xff]  }
 0x90f   :  { %v14435_v14 = vadd.f32 %v2550_v39, %v14294_v50  ;;  %v14457_v50 = vld [vmem:[%s17471_s2 + $0x10] sm:$0xff]  }
 0x910   :  { %v2576_v35 = vpack.c.bf16 %v14432_v33, %v14426_v37 }
 0x911   :  { %11041 = vmatpush3.bf16.msra.mxu1 %v2574_v16  ;;  %v2575_v34 = vpack.c.bf16 %v14435_v14, %v14429_v12 }
 0x913   :  { %11026 = vmatprep.mubr.bf16.mxu1 %v2575_v34  ;;  %11042 = vmatprep.subr.bf16.mxu1 %v2575_v34 }
 0x914   :  { %11027 = vmatmul.mubr.bf16.gmra.mrb[76].mxu1 %v2576_v35 }
 0x915   :  { %11043 = vmatpush3.bf16.msra.mxu1 %v2575_v34  ;;  %11046 = vmatprep.mubr.bf16.mxu1 %v14444_v28 }
 0x916   :  { %11044 = vmatprep.subr.bf16.mxu1 %v2576_v35 }
 0x919   :  { %11045 = vmatpush3.bf16.msra.mxu1 %v2576_v35 }
 0x91a   :  { %11126 = vmatprep.subr.bf16.mxu1 %v14301_v61 }
 0x91c   :  { %11047 = vmatmul.mubr.bf16.vlgmr.msra.gmra.mrb[64].mxu1 %v14451_v11 }
 0x91d   :  { %11050 = vmatprep.mubr.bf16.mxu1 %v14457_v50  ;;  %11127 = vmatpush3.bf16.msra.mxu1 %v14301_v61 }
 0x91e   :  { %11128 = vmatprep.subr.bf16.mxu1 %v14310_v19 }
 0x921   :  { %11129 = vmatpush3.bf16.msra.mxu1 %v14310_v19 }
 0x922   :  { %11130 = vmatprep.subr.bf16.mxu1 %v14317_v17 }
 0x924   :  { %11051 = vmatmul.mubr.bf16.gmra.mrb[68].mxu1 %v14467_v53 }
 0x925   :  { %11054 = vmatprep.mubr.bf16.mxu1 %v14473_v2  ;;  %11131 = vmatpush3.bf16.msra.mxu1 %v14317_v17 }
 0x926   :  { %11132 = vmatprep.subr.bf16.mxu1 %v14326_v1 }
 0x929   :  { %11133 = vmatpush3.bf16.msra.mxu1 %v14326_v1 }
 0x92a   :  { %11134 = vmatprep.subr.bf16.mxu1 %v14333_v10 }
 0x92c   :  { %11055 = vmatmul.mubr.bf16.gmra.mrb[72].mxu1 %v14483_v40 }
 0x92d   :  { %11058 = vmatprep.mubr.bf16.mxu1 %v14489_v54  ;;  %11135 = vmatpush3.bf16.msra.mxu1 %v14333_v10 }
 0x92e   :  { %11136 = vmatprep.subr.bf16.mxu1 %v14342_v8 }
 0x931   :  { %11137 = vmatpush3.bf16.msra.mxu1 %v14342_v8 }
 0x932   :  { %11138 = vmatprep.subr.bf16.mxu1 %v14349_v5 }
 0x934   :  { %11059 = vmatmul.mubr.bf16.gmra.mrb[76].mxu1 %v14499_v15 }
 0x935   :  { %11139 = vmatpush3.bf16.msra.mxu1 %v14349_v5 }
 0x936   :  { %11140 = vmatprep.subr.bf16.mxu1 %v14357_v46 }
 0x939   :  { %11141 = vmatpush3.bf16.msra.mxu1 %v14357_v46 }
 0x9ef   :  { %v11048_v23 = vpop.f32.mrb[64].mxu1 }
 0x9f0   :  { %v14506_v18 = vadd.f32 %v11048_v23, %v17787_v52  ;;  %v2708_v63 = vpop.f32.mrb[65].mxu1 }
 0x9f1   :  { %v14509_v24 = vadd.f32 %v2708_v63, %v17788_v9  ;;  %v11049_v13 = vpop.f32.mrb[66].mxu1 }
 0x9f2   :  { %v2821_v62 = vmul.f32 0.0625, %v14506_v18  ;;  %v14513_v59 = vadd.f32 %v11049_v13, %v17789_v25  ;;  %v2711_v47 = vpop.f32.mrb[67].mxu1 }
 0x9f3   :  { %v2819_v55 = vmul.f32 0.0625, %v14509_v24  ;;  %v14517_v16 = vadd.f32 %v2711_v47, %v17807_v7 }
 0x9f4   :  { %v2822_v38 = vmul.f32 0.0625, %v14513_v59  ;;  %v2837_v48 = vadd.f32 %v2821_v62, %v14366_v60 }
 0x9f5   :  { %17819 = vst [vmem:[#allocation22_spill] sm:$0xff] %v14517_v16  ;;  %v2820_v31 = vmul.f32 0.0625, %v14517_v16  ;;  %v2835_v34 = vadd.f32 %v2819_v55, %v14369_v20 }
 0x9f6   :  { %v2838_v39 = vadd.f32 %v2822_v38, %v14372_v22 }
 0x9f7   :  { %v2836_v35 = vadd.f32 %v2820_v31, %v14375_v57  ;;  %v11052_v23 = vpop.f32.mrb[68].mxu1 }
 0x9f8   :  { %v2852_v63 = vpack.c.bf16 %v2838_v39, %v2837_v48  ;;  %v14526_v13 = vadd.f32 %v11052_v23, %v13397_v30  ;;  %v2724_v25 = vpop.f32.mrb[69].mxu1 }
 0x9f9   :  { %v14529_v47 = vadd.f32 %v2724_v25, %v17796_v21  ;;  %v11053_v7 = vpop.f32.mrb[70].mxu1  ;;  %v2851_v9 = vpack.c.bf16 %v2836_v35, %v2835_v34 }
 0x9fa   :  { %v2825_v16 = vmul.f32 0.0625, %v14526_v13  ;;  %v14533_v62 = vadd.f32 %v11053_v7, %v17797_v41  ;;  %v2727_v38 = vpop.f32.mrb[71].mxu1 }
 0x9fb   :  { %v2823_v55 = vmul.f32 0.0625, %v14529_v47  ;;  %v14537_v31 = vadd.f32 %v2727_v38, %v17773_v3  ;;  %11078 = vmatprep.mubr.bf16.mxu0 %v2851_v9  ;;  %11094 = vmatprep.subr.bf16.mxu0 %v2851_v9 }
 0x9fc   :  { %v2826_v48 = vmul.f32 0.0625, %v14533_v62  ;;  %11079 = vmatmul.mubr.bf16.vlgmr.msra.gmra.mrb[80].mxu0 %v2852_v63  ;;  %v2841_v39 = vadd.f32 %v2825_v16, %v14386_v32 }
 0x9fd   :  { %17820 = vst [vmem:[#allocation23_spill] sm:$0xff] %v14537_v31  ;;  %v2824_v25 = vmul.f32 0.0625, %v14537_v31  ;;  %11095 = vmatpush3.bf16.msra.mxu0 %v2851_v9  ;;  %v2839_v7 = vadd.f32 %v2823_v55, %v14389_v6 }
 0x9fe   :  { %v2842_v34 = vadd.f32 %v2826_v48, %v14392_v26  ;;  %11096 = vmatprep.subr.bf16.mxu0 %v2852_v63 }
 0x9ff   :  { %v2840_v35 = vadd.f32 %v2824_v25, %v14395_v4  ;;  %v11056_v23 = vpop.f32.mrb[72].mxu1 }
 0xa00   :  { %v14546_v38 = vadd.f32 %v11056_v23, %v17801_v51  ;;  %v2740_v3 = vpop.f32.mrb[73].mxu1  ;;  %v2854_v41 = vpack.c.bf16 %v2842_v34, %v2841_v39 }
 0xa01   :  { %v14549_v21 = vadd.f32 %v2740_v3, %v17776_v0  ;;  %11097 = vmatpush3.bf16.msra.mxu0 %v2852_v63  ;;  %v11057_v9 = vpop.f32.mrb[74].mxu1  ;;  %v2853_v31 = vpack.c.bf16 %v2840_v35, %v2839_v7 }
 0xa02   :  { %v2829_v16 = vmul.f32 0.0625, %v14546_v38  ;;  %v14553_v48 = vadd.f32 %v11057_v9, %v17777_v56  ;;  %v2743_v55 = vpop.f32.mrb[75].mxu1 }
 0xa03   :  { %v2827_v25 = vmul.f32 0.0625, %v14549_v21  ;;  %v14557_v4 = vadd.f32 %v2743_v55, %v17778_v36  ;;  %11082 = vmatprep.mubr.bf16.mxu0 %v2853_v31  ;;  %11098 = vmatprep.subr.bf16.mxu0 %v2853_v31 }
 0xa04   :  { %v2830_v39 = vmul.f32 0.0625, %v14553_v48  ;;  %11083 = vmatmul.mubr.bf16.gmra.mrb[84].mxu0 %v2854_v41  ;;  %v2845_v63 = vadd.f32 %v2829_v16, %v14406_v29 }
 0xa05   :  { %v2828_v3 = vmul.f32 0.0625, %v14557_v4  ;;  %11099 = vmatpush3.bf16.msra.mxu0 %v2853_v31  ;;  %v2843_v7 = vadd.f32 %v2827_v25, %v14409_v27 }
 0xa06   :  { %v2846_v34 = vadd.f32 %v2830_v39, %v14412_v58  ;;  %11100 = vmatprep.subr.bf16.mxu0 %v2854_v41 }
 0xa07   :  { %v2844_v35 = vadd.f32 %v2828_v3, %v14415_v49  ;;  %v11060_v23 = vpop.f32.mrb[76].mxu1 }
 0xa08   :  { %v14566_v9 = vadd.f32 %v11060_v23, %v13421_v42  ;;  %v2756_v55 = vpop.f32.mrb[77].mxu1  ;;  %v2856_v36 = vpack.c.bf16 %v2846_v34, %v2845_v63 }
 0xa09   :  { %v14569_v56 = vadd.f32 %v2756_v55, %v13423_v43  ;;  %11101 = vmatpush3.bf16.msra.mxu0 %v2854_v41  ;;  %v11061_v31 = vpop.f32.mrb[78].mxu1  ;;  %v2855_v0 = vpack.c.bf16 %v2844_v35, %v2843_v7 }
 0xa0a   :  { %v2833_v16 = vmul.f32 0.0625, %v14566_v9  ;;  %v14573_v39 = vadd.f32 %v11061_v31, %v13425_v44  ;;  %v2759_v25 = vpop.f32.mrb[79].mxu1 }
 0xa0b   :  { %v2831_v3 = vmul.f32 0.0625, %v14569_v56  ;;  %v14577_v49 = vadd.f32 %v2759_v25, %v13427_v45  ;;  %11086 = vmatprep.mubr.bf16.mxu0 %v2855_v0  ;;  %11102 = vmatprep.subr.bf16.mxu0 %v2855_v0  ;;  %v2790_v25 = vmul.f32 0.020833334, %v14513_v59  ;;  %v17824_v59 = vld [vmem:[#allocation6_spill] sm:$0xff] }
 0xa0c   :  { %v2834_v63 = vmul.f32 0.0625, %v14573_v39  ;;  %11087 = vmatmul.mubr.bf16.gmra.mrb[88].mxu0 %v2856_v36  ;;  %v2849_v34 = vadd.f32 %v2833_v16, %v14426_v37 }
 0xa0d   :  { %v2832_v41 = vmul.f32 0.0625, %v14577_v49  ;;  %11103 = vmatpush3.bf16.msra.mxu0 %v2855_v0  ;;  %v2847_v35 = vadd.f32 %v2831_v3, %v14429_v12  ;;  %v2787_v0 = vmul.f32 0.020833334, %v14509_v24 }
 0xa0e   :  { %v2850_v7 = vadd.f32 %v2834_v63, %v14432_v33  ;;  %11104 = vmatprep.subr.bf16.mxu0 %v2856_v36 }
 0xa0f   :  { %v2848_v23 = vadd.f32 %v2832_v41, %v14435_v14  ;;  %v17821_v41 = vld [vmem:[#allocation22_spill] sm:$0xff]  ;;  %v2803_v24 = vadd.f32 %v2787_v0, %v14369_v20 }
 0xa10   :  { %v2858_v55 = vpack.c.bf16 %v2850_v7, %v2849_v34  ;;  %v2788_v34 = vmul.f32 0.020833334, %v17821_v41  ;;  %v17822_v7 = vld [vmem:[#allocation4_spill] sm:$0xff] }
 0xa11   :  { %11105 = vmatpush3.bf16.msra.mxu0 %v2856_v36  ;;  %v2857_v31 = vpack.c.bf16 %v2848_v23, %v2847_v35  ;;  %v2789_v36 = vmul.f32 0.020833334, %v14506_v18 }
 0xa13   :  { %11090 = vmatprep.mubr.bf16.mxu0 %v2857_v31  ;;  %11106 = vmatprep.subr.bf16.mxu0 %v2857_v31 }
 0xa14   :  { %11091 = vmatmul.mubr.bf16.gmra.mrb[92].mxu0 %v2858_v55 }
 0xa15   :  { %11107 = vmatpush3.bf16.msra.mxu0 %v2857_v31  ;;  %11110 = vmatprep.mubr.bf16.mxu0 %v14444_v28 }
 0xa16   :  { %11108 = vmatprep.subr.bf16.mxu0 %v2858_v55 }
 0xa19   :  { %11109 = vmatpush3.bf16.msra.mxu0 %v2858_v55  ;;  %v2805_v55 = vadd.f32 %v2789_v36, %v14366_v60 }
 0xa1a   :  { %11190 = vmatprep.subr.bf16.mxu0 %v14301_v61 }
 0xa1c   :  { %11111 = vmatmul.mubr.bf16.vlgmr.msra.gmra.mrb[80].mxu0 %v14451_v11 }
 0xa1d   :  { %11114 = vmatprep.mubr.bf16.mxu0 %v14457_v50  ;;  %11191 = vmatpush3.bf16.msra.mxu0 %v14301_v61 }
 0xa1e   :  { %11192 = vmatprep.subr.bf16.mxu0 %v14310_v19 }
 0xa21   :  { %11193 = vmatpush3.bf16.msra.mxu0 %v14310_v19 }
 0xa22   :  { %11194 = vmatprep.subr.bf16.mxu0 %v14317_v17 }
 0xa24   :  { %11115 = vmatmul.mubr.bf16.gmra.mrb[84].mxu0 %v14467_v53 }
 0xa25   :  { %11118 = vmatprep.mubr.bf16.mxu0 %v14473_v2  ;;  %11195 = vmatpush3.bf16.msra.mxu0 %v14317_v17 }
 0xa26   :  { %11196 = vmatprep.subr.bf16.mxu0 %v14326_v1 }
 0xa29   :  { %11197 = vmatpush3.bf16.msra.mxu0 %v14326_v1 }
 0xa2a   :  { %11198 = vmatprep.subr.bf16.mxu0 %v14333_v10 }
 0xa2c   :  { %11119 = vmatmul.mubr.bf16.gmra.mrb[88].mxu0 %v14483_v40 }
 0xa2d   :  { %11122 = vmatprep.mubr.bf16.mxu0 %v14489_v54  ;;  %11199 = vmatpush3.bf16.msra.mxu0 %v14333_v10 }
 0xa2e   :  { %11200 = vmatprep.subr.bf16.mxu0 %v14342_v8 }
 0xa31   :  { %11201 = vmatpush3.bf16.msra.mxu0 %v14342_v8 }
 0xa32   :  { %11202 = vmatprep.subr.bf16.mxu0 %v14349_v5 }
 0xa34   :  { %11123 = vmatmul.mubr.bf16.gmra.mrb[92].mxu0 %v14499_v15 }
 0xa35   :  { %11203 = vmatpush3.bf16.msra.mxu0 %v14349_v5 }
 0xa36   :  { %11204 = vmatprep.subr.bf16.mxu0 %v14357_v46 }
 0xa39   :  { %11205 = vmatpush3.bf16.msra.mxu0 %v14357_v46  ;;  %v17823_v46 = vld [vmem:[#allocation5_spill] sm:$0xff] }
 0xaef   :  { %v11112_v16 = vpop.f32.mrb[80].mxu0 }
 0xaf0   :  { %v3055_v3 = vadd.f32 %v11112_v16, %v17787_v52  ;;  %v2990_v63 = vpop.f32.mrb[81].mxu0  ;;  %v2806_v16 = vadd.f32 %v2790_v25, %v14372_v22  ;;  %v2791_v25 = vmul.f32 0.020833334, %v14529_v47 }
 0xaf1   :  { %v3053_v35 = vadd.f32 %v2990_v63, %v17822_v7  ;;  %v11113_v23 = vpop.f32.mrb[82].mxu0  ;;  %v2804_v7 = vadd.f32 %v2788_v34, %v14375_v57  ;;  %v2794_v34 = vmul.f32 0.020833334, %v14533_v62 }
 0xaf2   :  { %v3071_v31 = vmul.f32 0.041666668, %v3055_v3  ;;  %v3103_v15 = vmul.f32 0.0625, %v3055_v3  ;;  %v3056_v5 = vadd.f32 %v11113_v23, %v17823_v46  ;;  %v2993_v18 = vpop.f32.mrb[83].mxu0  ;;  %v2793_v23 = vmul.f32 0.020833334, %v14526_v13 }
 0xaf3   :  { %v3069_v8 = vmul.f32 0.041666668, %v3053_v35  ;;  %v3101_v54 = vmul.f32 0.0625, %v3053_v35  ;;  %v3054_v40 = vadd.f32 %v2993_v18, %v17824_v59 }
 0xaf4   :  { %v14620_v52 = vadd.f32 %v3071_v31, %v2805_v55  ;;  %v3072_v41 = vmul.f32 0.041666668, %v3056_v5  ;;  %v3104_v63 = vmul.f32 0.0625, %v3056_v5  ;;  %v3119_v0 = vadd.f32 %v3103_v15, %v14366_v60  ;;  %v17826_v15 = vld [vmem:[#allocation23_spill] sm:$0xff] }
 0xaf5   :  { %v14623_v36 = vadd.f32 %v3069_v8, %v2803_v24  ;;  %v3070_v3 = vmul.f32 0.041666668, %v3054_v40  ;;  %v3102_v10 = vmul.f32 0.0625, %v3054_v40  ;;  %v3117_v55 = vadd.f32 %v3101_v54, %v14369_v20 }
 0xaf6   :  { %v14627_v46 = vadd.f32 %v3072_v41, %v2806_v16  ;;  %v3120_v35 = vadd.f32 %v3104_v63, %v14372_v22  ;;  %v2792_v24 = vmul.f32 0.020833334, %v17826_v15  ;;  %v17827_v16 = vld [vmem:[#allocation7_spill] sm:$0xff]  ;;  %v2809_v47 = vadd.f32 %v2793_v23, %v14386_v32 }
 0xaf7   :  { %v14632_v31 = vadd.f32 %v3070_v3, %v2804_v7  ;;  %v3118_v5 = vadd.f32 %v3102_v10, %v14375_v57  ;;  %v11116_v8 = vpop.f32.mrb[84].mxu0  ;;  %v17828_v3 = vld [vmem:[#allocation8_spill] sm:$0xff]  ;;  %v2807_v57 = vadd.f32 %v2791_v25, %v14389_v6  ;;  %v2810_v15 = vadd.f32 %v2794_v34, %v14392_v26  ;;  %v17830_v23 = vld [vmem:[#allocation19_spill] sm:$0xff] }
 0xaf8   :  { %v3134_v40 = vpack.c.bf16 %v3120_v35, %v3119_v0  ;;  %v3059_v13 = vadd.f32 %v11116_v8, %v13397_v30  ;;  %v3006_v18 = vpop.f32.mrb[85].mxu0  ;;  %v17829_v35 = vld [vmem:[#allocation9_spill] sm:$0xff]  ;;  %v2797_v25 = vmul.f32 0.020833334, %v14546_v38 }
 0xaf9   :  { %17825 = vst [vmem:[#allocation22_spill] sm:$0xff] %v14632_v31  ;;  %v3057_v41 = vadd.f32 %v3006_v18, %v17827_v16  ;;  %v11117_v63 = vpop.f32.mrb[86].mxu0  ;;  %v3133_v22 = vpack.c.bf16 %v3118_v5, %v3117_v55 }
 0xafa   :  { %v3075_v54 = vmul.f32 0.041666668, %v3059_v13  ;;  %v3107_v7 = vmul.f32 0.0625, %v3059_v13  ;;  %v3060_v31 = vadd.f32 %v11117_v63, %v17828_v3  ;;  %v3009_v10 = vpop.f32.mrb[87].mxu0  ;;  %v2808_v13 = vadd.f32 %v2792_v24, %v17830_v23 }
 0xafb   :  { %v3073_v62 = vmul.f32 0.041666668, %v3057_v41  ;;  %v3105_v0 = vmul.f32 0.0625, %v3057_v41  ;;  %v3058_v8 = vadd.f32 %v3009_v10, %v17829_v35  ;;  %11142 = vmatprep.mubr.bf16.mxu1 %v3133_v22  ;;  %11158 = vmatprep.subr.bf16.mxu1 %v3133_v22 }
 0xafc   :  { %v14644_v18 = vadd.f32 %v3075_v54, %v2809_v47  ;;  %v3076_v55 = vmul.f32 0.041666668, %v3060_v31  ;;  %v3108_v5 = vmul.f32 0.0625, %v3060_v31  ;;  %11143 = vmatmul.mubr.bf16.vlgmr.msra.gmra.mrb[80].mxu1 %v3134_v40  ;;  %v3123_v41 = vadd.f32 %v3107_v7, %v14386_v32 }
 0xafd   :  { %v14647_v16 = vadd.f32 %v3073_v62, %v2807_v57  ;;  %v3074_v63 = vmul.f32 0.041666668, %v3058_v8  ;;  %v3106_v3 = vmul.f32 0.0625, %v3058_v8  ;;  %11159 = vmatpush3.bf16.msra.mxu1 %v3133_v22  ;;  %v2795_v47 = vmul.f32 0.020833334, %v14549_v21 }
 0xafe   :  { %v14651_v10 = vadd.f32 %v3076_v55, %v2810_v15  ;;  %v3124_v34 = vadd.f32 %v3108_v5, %v14392_v26  ;;  %11160 = vmatprep.subr.bf16.mxu1 %v3134_v40  ;;  %v3121_v31 = vadd.f32 %v3105_v0, %v14389_v6  ;;  %v2798_v22 = vmul.f32 0.020833334, %v14553_v48  ;;  %v17832_v15 = vld [vmem:[#allocation11_spill] sm:$0xff] }
 0xaff   :  { %v14656_v54 = vadd.f32 %v3074_v63, %v2808_v13  ;;  %v3122_v57 = vadd.f32 %v3106_v3, %v17830_v23  ;;  %v11120_v24 = vpop.f32.mrb[88].mxu0  ;;  %v2796_v8 = vmul.f32 0.020833334, %v14557_v4  ;;  %v2813_v0 = vadd.f32 %v2797_v25, %v14406_v29  ;;  %v17835_v25 = vld [vmem:[#allocation26_spill] sm:$0xff] }
 0xb00   :  { %v3063_v38 = vadd.f32 %v11120_v24, %v17801_v51  ;;  %v3022_v62 = vpop.f32.mrb[89].mxu0  ;;  %v3136_v7 = vpack.c.bf16 %v3124_v34, %v3123_v41  ;;  %v2811_v48 = vadd.f32 %v2795_v47, %v14409_v27  ;;  %v17834_v51 = vld [vmem:[#allocation13_spill] sm:$0xff]  ;;  %v2814_v4 = vadd.f32 %v2798_v22, %v14412_v58 }
 0xb01   :  { %17831 = vst [vmem:[#allocation23_spill] sm:$0xff] %v14656_v54  ;;  %v3061_v55 = vadd.f32 %v3022_v62, %v17832_v15  ;;  %11161 = vmatpush3.bf16.msra.mxu1 %v3134_v40  ;;  %v11121_v5 = vpop.f32.mrb[90].mxu0  ;;  %v3135_v21 = vpack.c.bf16 %v3122_v57, %v3121_v31  ;;  %v17833_v54 = vld [vmem:[#allocation12_spill] sm:$0xff]  ;;  %v2812_v57 = vadd.f32 %v2796_v8, %v17835_v25  ;;  %v2801_v47 = vmul.f32 0.020833334, %v14566_v9 }
 0xb02   :  { %v3079_v13 = vmul.f32 0.041666668, %v3063_v38  ;;  %v3111_v63 = vmul.f32 0.0625, %v3063_v38  ;;  %v3064_v3 = vadd.f32 %v11121_v5, %v17833_v54  ;;  %v3025_v23 = vpop.f32.mrb[91].mxu0 }
 0xb03   :  { %v3077_v6 = vmul.f32 0.041666668, %v3061_v55  ;;  %v3109_v24 = vmul.f32 0.0625, %v3061_v55  ;;  %v3062_v41 = vadd.f32 %v3025_v23, %v17834_v51  ;;  %11146 = vmatprep.mubr.bf16.mxu1 %v3135_v21  ;;  %11162 = vmatprep.subr.bf16.mxu1 %v3135_v21 }
 0xb04   :  { %v14668_v40 = vadd.f32 %v3079_v13, %v2813_v0  ;;  %v3080_v34 = vmul.f32 0.041666668, %v3064_v3  ;;  %v3112_v31 = vmul.f32 0.0625, %v3064_v3  ;;  %11147 = vmatmul.mubr.bf16.gmra.mrb[84].mxu1 %v3136_v7  ;;  %v3127_v23 = vadd.f32 %v3111_v63, %v14406_v29 }
 0xb05   :  { %v14671_v38 = vadd.f32 %v3077_v6, %v2811_v48  ;;  %v3078_v62 = vmul.f32 0.041666668, %v3062_v41  ;;  %v3110_v5 = vmul.f32 0.0625, %v3062_v41  ;;  %11163 = vmatpush3.bf16.msra.mxu1 %v3135_v21  ;;  %v2799_v0 = vmul.f32 0.020833334, %v14569_v56 }
 0xb06   :  { %v14675_v55 = vadd.f32 %v3080_v34, %v2814_v4  ;;  %v3128_v22 = vadd.f32 %v3112_v31, %v14412_v58  ;;  %11164 = vmatprep.subr.bf16.mxu1 %v3136_v7  ;;  %v3125_v13 = vadd.f32 %v3109_v24, %v14409_v27  ;;  %v2802_v21 = vmul.f32 0.020833334, %v14573_v39 }
 0xb07   :  { %v14680_v3 = vadd.f32 %v3078_v62, %v2812_v57  ;;  %v3126_v6 = vadd.f32 %v3110_v5, %v17835_v25  ;;  %v11124_v8 = vpop.f32.mrb[92].mxu0  ;;  %v2800_v41 = vmul.f32 0.020833334, %v14577_v49  ;;  %v2817_v24 = vadd.f32 %v2801_v47, %v14426_v37 }
 0xb08   :  { %v3067_v9 = vadd.f32 %v11124_v8, %v13421_v42  ;;  %v3038_v48 = vpop.f32.mrb[93].mxu0  ;;  %v3138_v63 = vpack.c.bf16 %v3128_v22, %v3127_v23  ;;  %v2815_v39 = vadd.f32 %v2799_v0, %v14429_v12  ;;  %v2818_v49 = vadd.f32 %v2802_v21, %v14432_v33 }
 0xb09   :  { %v3065_v4 = vadd.f32 %v3038_v48, %v13423_v43  ;;  %11165 = vmatpush3.bf16.msra.mxu1 %v3136_v7  ;;  %v11125_v34 = vpop.f32.mrb[94].mxu0  ;;  %v3137_v56 = vpack.c.bf16 %v3126_v6, %v3125_v13  ;;  %v2816_v47 = vadd.f32 %v2800_v41, %v14435_v14  ;;  %v17837_v41 = vld [vmem:[#allocation20_spill] sm:$0xff] }
 0xb0a   :  { %v3083_v31 = vmul.f32 0.041666668, %v3067_v9  ;;  %v3115_v57 = vmul.f32 0.0625, %v3067_v9  ;;  %v3068_v62 = vadd.f32 %v11125_v34, %v13425_v44  ;;  %v3041_v5 = vpop.f32.mrb[95].mxu0 }
 0xb0b   :  { %v3081_v25 = vmul.f32 0.041666668, %v3065_v4  ;;  %v3113_v8 = vmul.f32 0.0625, %v3065_v4  ;;  %v3066_v23 = vadd.f32 %v3041_v5, %v13427_v45  ;;  %11150 = vmatprep.mubr.bf16.mxu1 %v3137_v56  ;;  %11166 = vmatprep.subr.bf16.mxu1 %v3137_v56  ;;  %v17843_v5 = vld [vmem:[#allocation3_spill] sm:$0xff] }
 0xb0c   :  { %v14692_v7 = vadd.f32 %v3083_v31, %v2817_v24  ;;  %v3084_v22 = vmul.f32 0.041666668, %v3068_v62  ;;  %v3116_v13 = vmul.f32 0.0625, %v3068_v62  ;;  %11151 = vmatmul.mubr.bf16.gmra.mrb[88].mxu1 %v3138_v63  ;;  %v3131_v0 = vadd.f32 %v3115_v57, %v14426_v37  ;;  %v17841_v57 = vld [vmem:[#allocation2_spill] sm:$0xff] }
 0xb0d   :  { %v14695_v6 = vadd.f32 %v3081_v25, %v2815_v39  ;;  %v3082_v9 = vmul.f32 0.041666668, %v3066_v23  ;;  %v3114_v48 = vmul.f32 0.0625, %v3066_v23  ;;  %11167 = vmatpush3.bf16.msra.mxu1 %v3137_v56  ;;  %v3129_v21 = vadd.f32 %v3113_v8, %v14429_v12  ;;  %v17840_v56 = vld [vmem:[#allocation24_spill] sm:$0xff] }
 0xb0e   :  { %v14698_v4 = vadd.f32 %v3084_v22, %v2818_v49  ;;  %v3132_v34 = vadd.f32 %v3116_v13, %v14432_v33  ;;  %11168 = vmatprep.subr.bf16.mxu1 %v3138_v63  ;;  %v17844_v23 = vld [vmem:[#allocation4_spill] sm:$0xff] }
 0xb0f   :  { %v14702_v24 = vadd.f32 %v3082_v9, %v2816_v47  ;;  %v3130_v31 = vadd.f32 %v3114_v48, %v14435_v14  ;;  %v17845_v9 = vld [vmem:[#allocation5_spill] sm:$0xff] }
 0xb10   :  { %v3140_v62 = vpack.c.bf16 %v3132_v34, %v3131_v0 }
 0xb11   :  { %11169 = vmatpush3.bf16.msra.mxu1 %v3138_v63  ;;  %v3139_v25 = vpack.c.bf16 %v3130_v31, %v3129_v21  ;;  %v17836_v63 = vld [vmem:[#allocation14_spill] sm:$0xff] }
 0xb13   :  { %11154 = vmatprep.mubr.bf16.mxu1 %v3139_v25  ;;  %11170 = vmatprep.subr.bf16.mxu1 %v3139_v25 }
 0xb14   :  { %11155 = vmatmul.mubr.bf16.gmra.mrb[92].mxu1 %v3140_v62 }
 0xb15   :  { %11171 = vmatpush3.bf16.msra.mxu1 %v3139_v25  ;;  %11174 = vmatprep.mubr.bf16.mxu1 %v14444_v28 }
 0xb16   :  { %11172 = vmatprep.subr.bf16.mxu1 %v3140_v62 }
 0xb19   :  { %11173 = vmatpush3.bf16.msra.mxu1 %v3140_v62 }
 0xb1a   :  { %11254 = vmatprep.subr.bf16.mxu1 %v14301_v61 }
 0xb1c   :  { %11175 = vmatmul.mubr.bf16.vlgmr.msra.gmra.mrb[80].mxu1 %v14451_v11 }
 0xb1d   :  { %11178 = vmatprep.mubr.bf16.mxu1 %v14457_v50  ;;  %11255 = vmatpush3.bf16.msra.mxu1 %v14301_v61  ;;  %v17838_v61 = vld [vmem:[#allocation21_spill] sm:$0xff] }
 0xb1e   :  { %11256 = vmatprep.subr.bf16.mxu1 %v14310_v19 }
 0xb21   :  { %11257 = vmatpush3.bf16.msra.mxu1 %v14310_v19  ;;  %v17839_v19 = vld [vmem:[#allocation15_spill] sm:$0xff] }
 0xb22   :  { %11258 = vmatprep.subr.bf16.mxu1 %v14317_v17 }
 0xb24   :  { %11179 = vmatmul.mubr.bf16.gmra.mrb[84].mxu1 %v14467_v53 }
 0xb25   :  { %11182 = vmatprep.mubr.bf16.mxu1 %v14473_v2  ;;  %11259 = vmatpush3.bf16.msra.mxu1 %v14317_v17  ;;  %v17842_v17 = vld [vmem:[#allocation16_spill] sm:$0xff] }
 0xb26   :  { %11260 = vmatprep.subr.bf16.mxu1 %v14326_v1 }
 0xb29   :  { %11261 = vmatpush3.bf16.msra.mxu1 %v14326_v1 }
 0xb2a   :  { %11262 = vmatprep.subr.bf16.mxu1 %v17836_v63 }
 0xb2c   :  { %11183 = vmatmul.mubr.bf16.gmra.mrb[88].mxu1 %v17837_v41 }
 0xb2d   :  { %11186 = vmatprep.mubr.bf16.mxu1 %v17838_v61  ;;  %11263 = vmatpush3.bf16.msra.mxu1 %v17836_v63 }
 0xb2e   :  { %11264 = vmatprep.subr.bf16.mxu1 %v17839_v19 }
 0xb31   :  { %11265 = vmatpush3.bf16.msra.mxu1 %v17839_v19 }
 0xb32   :  { %11266 = vmatprep.subr.bf16.mxu1 %v17840_v56 }
 0xb34   :  { %11187 = vmatmul.mubr.bf16.gmra.mrb[92].mxu1 %v17841_v57 }
 0xb35   :  { %11267 = vmatpush3.bf16.msra.mxu1 %v17840_v56 }
 0xb36   :  { %11268 = vmatprep.subr.bf16.mxu1 %v17842_v17 }
 0xb39   :  { %11269 = vmatpush3.bf16.msra.mxu1 %v17842_v17 }
 0xbef   :  { %v11176_v1 = vpop.f32.mrb[80].mxu1 }
 0xbf0   :  { %v3337_v39 = vadd.f32 %v11176_v1, %v17843_v5  ;;  %v3272_v8 = vpop.f32.mrb[81].mxu1 }
 0xbf1   :  { %v3335_v49 = vadd.f32 %v3272_v8, %v17844_v23  ;;  %v11177_v22 = vpop.f32.mrb[82].mxu1  ;;  %v17849_v8 = vld [vmem:[#allocation17_spill] sm:$0xff] }
 0xbf2   :  { %v3353_v13 = vmul.f32 0.041666668, %v3337_v39  ;;  %v3385_v47 = vmul.f32 0.125, %v3337_v39  ;;  %v3338_v48 = vadd.f32 %v11177_v22, %v17845_v9  ;;  %v3275_v0 = vpop.f32.mrb[83].mxu1 }
 0xbf3   :  { %v3351_v34 = vmul.f32 0.041666668, %v3335_v49  ;;  %v3383_v21 = vmul.f32 0.125, %v3335_v49  ;;  %v3336_v31 = vadd.f32 %v3275_v0, %v17824_v59  ;;  %v17850_v0 = vld [vmem:[#allocation22_spill] sm:$0xff] }
 0xbf4   :  { %v14734_v62 = vadd.f32 %v3353_v13, %v14620_v52  ;;  %v3354_v25 = vmul.f32 0.041666668, %v3338_v48  ;;  %v3386_v63 = vmul.f32 0.125, %v3338_v48  ;;  %v3401_v1 = vadd.f32 %v3385_v47, %v14366_v60  ;;  %v17851_v52 = vld [vmem:[#allocation25_spill] sm:$0xff] }
 0xbf5   :  { %v14737_v19 = vadd.f32 %v3351_v34, %v14623_v36  ;;  %v3352_v56 = vmul.f32 0.041666668, %v3336_v31  ;;  %v3384_v17 = vmul.f32 0.125, %v3336_v31  ;;  %v3399_v49 = vadd.f32 %v3383_v21, %v14369_v20  ;;  %v17852_v31 = vld [vmem:[#allocation7_spill] sm:$0xff] }
 0xbf6   :  { %17846 = vst [vmem:[#allocation14_spill] sm:$0xff] %v14734_v62  ;;  %v14741_v39 = vadd.f32 %v3354_v25, %v14627_v46  ;;  %v3402_v22 = vadd.f32 %v3386_v63, %v17849_v8 }
 0xbf7   :  { %17847 = vst [vmem:[#allocation20_spill] sm:$0xff] %v14737_v19  ;;  %v14746_v59 = vadd.f32 %v3352_v56, %v17850_v0  ;;  %v3400_v13 = vadd.f32 %v3384_v17, %v17851_v52  ;;  %v11180_v48 = vpop.f32.mrb[84].mxu1 }
 0xbf8   :  { %17848 = vst [vmem:[#allocation21_spill] sm:$0xff] %v14741_v39  ;;  %v3416_v62 = vpack.c.bf16 %v3402_v22, %v3401_v1  ;;  %v3341_v36 = vadd.f32 %v11180_v48, %v13397_v30  ;;  %v3288_v34 = vpop.f32.mrb[85].mxu1  ;;  %v17853_v39 = vld [vmem:[#allocation8_spill] sm:$0xff] }
 0xbf9   :  { %v3339_v19 = vadd.f32 %v3288_v34, %v17852_v31  ;;  %v11181_v60 = vpop.f32.mrb[86].mxu1  ;;  %v3415_v47 = vpack.c.bf16 %v3400_v13, %v3399_v49  ;;  %v17855_v34 = vld [vmem:[#allocation23_spill] sm:$0xff] }
 0xbfa   :  { %v3357_v46 = vmul.f32 0.041666668, %v3341_v36  ;;  %v3389_v25 = vmul.f32 0.125, %v3341_v36  ;;  %v3342_v63 = vadd.f32 %v11181_v60, %v17853_v39  ;;  %v3291_v8 = vpop.f32.mrb[87].mxu1  ;;  %v17854_v36 = vld [vmem:[#allocation18_spill] sm:$0xff] }
 0xbfb   :  { %v3355_v20 = vmul.f32 0.041666668, %v3339_v19  ;;  %v3387_v21 = vmul.f32 0.125, %v3339_v19  ;;  %v3340_v56 = vadd.f32 %v3291_v8, %v17829_v35  ;;  %11206 = vmatprep.mubr.bf16.mxu0 %v3415_v47  ;;  %11222 = vmatprep.subr.bf16.mxu0 %v3415_v47  ;;  %v17857_v8 = vld [vmem:[#allocation10_spill] sm:$0xff] }
 0xbfc   :  { %v14754_v17 = vadd.f32 %v3357_v46, %v14644_v18  ;;  %v3358_v1 = vmul.f32 0.041666668, %v3342_v63  ;;  %v3390_v22 = vmul.f32 0.125, %v3342_v63  ;;  %11207 = vmatmul.mubr.bf16.vlgmr.msra.gmra.mrb[96].mxu0 %v3416_v62  ;;  %v3405_v13 = vadd.f32 %v3389_v25, %v14386_v32  ;;  %v17856_v46 = vld [vmem:[#allocation19_spill] sm:$0xff] }
 0xbfd   :  { %v14757_v0 = vadd.f32 %v3355_v20, %v14647_v16  ;;  %v3356_v49 = vmul.f32 0.041666668, %v3340_v56  ;;  %v3388_v52 = vmul.f32 0.125, %v3340_v56  ;;  %11223 = vmatpush3.bf16.msra.mxu0 %v3415_v47  ;;  %v3403_v18 = vadd.f32 %v3387_v21, %v17854_v36 }
 0xbfe   :  { %v14761_v19 = vadd.f32 %v3358_v1, %v14651_v10  ;;  %v3406_v48 = vadd.f32 %v3390_v22, %v14392_v26  ;;  %11224 = vmatprep.subr.bf16.mxu0 %v3416_v62 }
 0xbff   :  { %v14766_v60 = vadd.f32 %v3356_v49, %v17855_v34  ;;  %v3404_v63 = vadd.f32 %v3388_v52, %v17856_v46  ;;  %v11184_v16 = vpop.f32.mrb[88].mxu1 }
 0xc00   :  { %v3345_v20 = vadd.f32 %v11184_v16, %v17857_v8  ;;  %v3304_v56 = vpop.f32.mrb[89].mxu1  ;;  %v3418_v47 = vpack.c.bf16 %v3406_v48, %v3405_v13 }
 0xc01   :  { %v3343_v32 = vadd.f32 %v3304_v56, %v17832_v15  ;;  %11225 = vmatpush3.bf16.msra.mxu0 %v3416_v62  ;;  %v11185_v10 = vpop.f32.mrb[90].mxu1  ;;  %v3417_v25 = vpack.c.bf16 %v3404_v63, %v3403_v18 }
 0xc02   :  { %v3361_v1 = vmul.f32 0.041666668, %v3345_v20  ;;  %v3393_v26 = vmul.f32 0.125, %v3345_v20  ;;  %v3346_v22 = vadd.f32 %v11185_v10, %v17833_v54  ;;  %v3307_v21 = vpop.f32.mrb[91].mxu1 }
 0xc03   :  { %v3359_v36 = vmul.f32 0.041666668, %v3343_v32  ;;  %v3391_v49 = vmul.f32 0.125, %v3343_v32  ;;  %v3344_v34 = vadd.f32 %v3307_v21, %v17834_v51  ;;  %11210 = vmatprep.mubr.bf16.mxu0 %v3417_v25  ;;  %11226 = vmatprep.subr.bf16.mxu0 %v3417_v25  ;;  %v17858_v32 = vld [vmem:[#allocation26_spill] sm:$0xff] }
 0xc04   :  { %v14774_v52 = vadd.f32 %v3361_v1, %v14668_v40  ;;  %v3362_v13 = vmul.f32 0.041666668, %v3346_v22  ;;  %v3394_v48 = vmul.f32 0.125, %v3346_v22  ;;  %11211 = vmatmul.mubr.bf16.gmra.mrb[100].mxu0 %v3418_v47  ;;  %v3409_v63 = vadd.f32 %v3393_v26, %v14406_v29 }
 0xc05   :  { %v14777_v62 = vadd.f32 %v3359_v36, %v14671_v38  ;;  %v3360_v18 = vmul.f32 0.041666668, %v3344_v34  ;;  %v3392_v46 = vmul.f32 0.125, %v3344_v34  ;;  %11227 = vmatpush3.bf16.msra.mxu0 %v3417_v25  ;;  %v3407_v40 = vadd.f32 %v3391_v49, %v14409_v27 }
 0xc06   :  { %v14781_v16 = vadd.f32 %v3362_v13, %v14675_v55  ;;  %v3410_v20 = vadd.f32 %v3394_v48, %v14412_v58  ;;  %11228 = vmatprep.subr.bf16.mxu0 %v3418_v47 }
 0xc07   :  { %v14786_v56 = vadd.f32 %v3360_v18, %v14680_v3  ;;  %v3408_v10 = vadd.f32 %v3392_v46, %v17858_v32  ;;  %v11188_v38 = vpop.f32.mrb[92].mxu1 }
 0xc08   :  { %v3349_v1 = vadd.f32 %v11188_v38, %v13421_v42  ;;  %v3320_v22 = vpop.f32.mrb[93].mxu1  ;;  %v3420_v25 = vpack.c.bf16 %v3410_v20, %v3409_v63 }
 0xc09   :  { %v3347_v29 = vadd.f32 %v3320_v22, %v13423_v43  ;;  %11229 = vmatpush3.bf16.msra.mxu0 %v3418_v47  ;;  %v11189_v55 = vpop.f32.mrb[94].mxu1  ;;  %v3419_v26 = vpack.c.bf16 %v3408_v10, %v3407_v40 }
 0xc0a   :  { %v3365_v21 = vmul.f32 0.041666668, %v3349_v1  ;;  %v3397_v58 = vmul.f32 0.125, %v3349_v1  ;;  %v3350_v36 = vadd.f32 %v11189_v55, %v13425_v44  ;;  %v3323_v27 = vpop.f32.mrb[95].mxu1  ;;  %v17863_v55 = vld [vmem:[#allocation6_spill] sm:$0xff] }
 0xc0b   :  { %v3363_v49 = vmul.f32 0.041666668, %v3347_v29  ;;  %v3395_v3 = vmul.f32 0.125, %v3347_v29  ;;  %v3348_v34 = vadd.f32 %v3323_v27, %v13427_v45  ;;  %11214 = vmatprep.mubr.bf16.mxu0 %v3419_v26  ;;  %11230 = vmatprep.subr.bf16.mxu0 %v3419_v26  ;;  %v17865_v27 = vld [vmem:[#allocation20_spill] sm:$0xff] }
 0xc0c   :  { %v14794_v13 = vadd.f32 %v3365_v21, %v14692_v7  ;;  %v3366_v48 = vmul.f32 0.041666668, %v3350_v36  ;;  %v3398_v18 = vmul.f32 0.125, %v3350_v36  ;;  %11215 = vmatmul.mubr.bf16.gmra.mrb[104].mxu0 %v3420_v25  ;;  %v3413_v20 = vadd.f32 %v3397_v58, %v14426_v37  ;;  %v14813_v37 = vld [vmem:[%s17470_s3] sm:$0xff]  }
 0xc0d   :  { %v14797_v47 = vadd.f32 %v3363_v49, %v14695_v6  ;;  %v3364_v46 = vmul.f32 0.041666668, %v3348_v34  ;;  %v3396_v63 = vmul.f32 0.125, %v3348_v34  ;;  %11231 = vmatpush3.bf16.msra.mxu0 %v3419_v26  ;;  %v3411_v7 = vadd.f32 %v3395_v3, %v14429_v12  ;;  %v14822_v12 = vld [vmem:[%s17470_s3 + $0x8] sm:$0xff]   ;;  %v17864_v21 = vld [vmem:[#allocation14_spill] sm:$0xff]  ;;  %v17866_v34 = vld [vmem:[#allocation21_spill] sm:$0xff] }
 0xc0e   :  { %v14801_v40 = vadd.f32 %v3366_v48, %v14698_v4  ;;  %v3414_v32 = vadd.f32 %v3398_v18, %v14432_v33  ;;  %11232 = vmatprep.subr.bf16.mxu0 %v3420_v25  ;;  %v14829_v33 = vld [vmem:[%s17470_s3 + $0x10] sm:$0xff]  }
 0xc0f   :  { %v14806_v10 = vadd.f32 %v3364_v46, %v14702_v24  ;;  %v3412_v38 = vadd.f32 %v3396_v63, %v14435_v14  ;;  %v14838_v14 = vld [vmem:[%s17470_s3 + $0x18] sm:$0xff]  }
 0xc10   :  { %v3422_v6 = vpack.c.bf16 %v3414_v32, %v3413_v20 }
 0xc11   :  { %11233 = vmatpush3.bf16.msra.mxu0 %v3420_v25  ;;  %v3421_v1 = vpack.c.bf16 %v3412_v38, %v3411_v7 }
 0xc13   :  { %11218 = vmatprep.mubr.bf16.mxu0 %v3421_v1  ;;  %11234 = vmatprep.subr.bf16.mxu0 %v3421_v1 }
 0xc14   :  { %11219 = vmatmul.mubr.bf16.gmra.mrb[108].mxu0 %v3422_v6 }
 0xc15   :  { %11235 = vmatpush3.bf16.msra.mxu0 %v3421_v1  ;;  %11238 = vmatprep.mubr.bf16.mxu0 %v14444_v28  ;;  %v14845_v28 = vld [vmem:[%s17470_s3 + $0x20] sm:$0xff]  }
 0xc16   :  { %11236 = vmatprep.subr.bf16.mxu0 %v3422_v6  ;;  %17859 = vst [vmem:[#allocation15_spill] sm:$0xff] %v14845_v28 }
 0xc19   :  { %11237 = vmatpush3.bf16.msra.mxu0 %v3422_v6 }
 0xc1a   :  { %11318 = vmatprep.subr.bf16.mxu0 %v14813_v37 }
 0xc1c   :  { %11239 = vmatmul.mubr.bf16.vlgmr.msra.gmra.mrb[96].mxu0 %v14451_v11  ;;  %v14854_v11 = vld [vmem:[%s17470_s3 + $0x28] sm:$0xff]  }
 0xc1d   :  { %11242 = vmatprep.mubr.bf16.mxu0 %v14457_v50  ;;  %11319 = vmatpush3.bf16.msra.mxu0 %v14813_v37  ;;  %17860 = vst [vmem:[#allocation24_spill] sm:$0xff] %v14854_v11  ;;  %v14861_v50 = vld [vmem:[%s17470_s3 + $0x30] sm:$0xff]  }
 0xc1e   :  { %11320 = vmatprep.subr.bf16.mxu0 %v14822_v12  ;;  %17861 = vst [vmem:[#allocation2_spill] sm:$0xff] %v14861_v50 }
 0xc21   :  { %11321 = vmatpush3.bf16.msra.mxu0 %v14822_v12 }
 0xc22   :  { %11322 = vmatprep.subr.bf16.mxu0 %v14829_v33 }
 0xc24   :  { %11243 = vmatmul.mubr.bf16.gmra.mrb[100].mxu0 %v14467_v53  ;;  %v14869_v53 = vld [vmem:[%s17470_s3 + $0x38] sm:$0xff]  }
 0xc25   :  { %11246 = vmatprep.mubr.bf16.mxu0 %v14473_v2  ;;  %11323 = vmatpush3.bf16.msra.mxu0 %v14829_v33  ;;  %17862 = vst [vmem:[#allocation16_spill] sm:$0xff] %v14869_v53 }
 0xc26   :  { %11324 = vmatprep.subr.bf16.mxu0 %v14838_v14 }
 0xc29   :  { %11325 = vmatpush3.bf16.msra.mxu0 %v14838_v14 }
 0xc2a   :  { %11326 = vmatprep.subr.bf16.mxu0 %v14845_v28 }
 0xc2c   :  { %11247 = vmatmul.mubr.bf16.gmra.mrb[104].mxu0 %v17837_v41 }
 0xc2d   :  { %11250 = vmatprep.mubr.bf16.mxu0 %v17838_v61  ;;  %11327 = vmatpush3.bf16.msra.mxu0 %v14845_v28 }
 0xc2e   :  { %11328 = vmatprep.subr.bf16.mxu0 %v14854_v11 }
 0xc31   :  { %11329 = vmatpush3.bf16.msra.mxu0 %v14854_v11 }
 0xc32   :  { %11330 = vmatprep.subr.bf16.mxu0 %v14861_v50 }
 0xc34   :  { %11251 = vmatmul.mubr.bf16.gmra.mrb[108].mxu0 %v17841_v57 }
 0xc35   :  { %11331 = vmatpush3.bf16.msra.mxu0 %v14861_v50 }
 0xc36   :  { %11332 = vmatprep.subr.bf16.mxu0 %v14869_v53 }
 0xc39   :  { %11333 = vmatpush3.bf16.msra.mxu0 %v14869_v53 }
 0xcef   :  { %v11240_v2 = vpop.f32.mrb[96].mxu0 }
 0xcf0   :  { %v3619_v4 = vadd.f32 %v11240_v2, %v17843_v5  ;;  %v3554_v24 = vpop.f32.mrb[97].mxu0 }
 0xcf1   :  { %v3617_v41 = vadd.f32 %v3554_v24, %v17844_v23  ;;  %v11241_v61 = vpop.f32.mrb[98].mxu0 }
 0xcf2   :  { %v3635_v22 = vmul.f32 0.020833334, %v3619_v4  ;;  %v3620_v57 = vadd.f32 %v11241_v61, %v17845_v9  ;;  %v3557_v25 = vpop.f32.mrb[99].mxu0 }
 0xcf3   :  { %v3633_v29 = vmul.f32 0.020833334, %v3617_v41  ;;  %v3618_v26 = vadd.f32 %v3557_v25, %v17863_v55 }
 0xcf4   :  { %v14878_v58 = vadd.f32 %v3635_v22, %v17864_v21  ;;  %v3636_v36 = vmul.f32 0.020833334, %v3620_v57 }
 0xcf5   :  { %v14881_v49 = vadd.f32 %v3633_v29, %v17865_v27  ;;  %v3634_v3 = vmul.f32 0.020833334, %v3618_v26 }
 0xcf6   :  { %v14884_v48 = vadd.f32 %v3636_v36, %v17866_v34 }
 0xcf7   :  { %v14887_v18 = vadd.f32 %v3634_v3, %v14746_v59  ;;  %v11244_v46 = vpop.f32.mrb[100].mxu0 }
 0xcf8   :  { %17867 = vst [vmem:[#allocation17_spill] sm:$0xff] %v14884_v48  ;;  %v3623_v63 = vadd.f32 %v11244_v46, %v13397_v30  ;;  %v3570_v20 = vpop.f32.mrb[101].mxu0  ;;  %v3666_v4 = vpack.c.bf16 %v14884_v48, %v14878_v58 }
 0xcf9   :  { %17868 = vst [vmem:[#allocation22_spill] sm:$0xff] %v14887_v18  ;;  %v3621_v32 = vadd.f32 %v3570_v20, %v17852_v31  ;;  %v11245_v7 = vpop.f32.mrb[102].mxu0  ;;  %v3665_v38 = vpack.c.bf16 %v14887_v18, %v14881_v49 }
 0xcfa   :  { %v3639_v6 = vmul.f32 0.020833334, %v3623_v63  ;;  %v3624_v1 = vadd.f32 %v11245_v7, %v17853_v39  ;;  %v3573_v2 = vpop.f32.mrb[103].mxu0 }
 0xcfb   :  { %v3637_v24 = vmul.f32 0.020833334, %v3621_v32  ;;  %v3622_v59 = vadd.f32 %v3573_v2, %v17829_v35  ;;  %11270 = vmatprep.mubr.bf16.mxu1 %v3665_v38  ;;  %11286 = vmatprep.subr.bf16.mxu1 %v3665_v38 }
 0xcfc   :  { %v14898_v41 = vadd.f32 %v3639_v6, %v14754_v17  ;;  %v3640_v61 = vmul.f32 0.020833334, %v3624_v1  ;;  %11271 = vmatmul.mubr.bf16.vlgmr.msra.gmra.mrb[96].mxu1 %v3666_v4 }
 0xcfd   :  { %v14901_v22 = vadd.f32 %v3637_v24, %v14757_v0  ;;  %v3638_v57 = vmul.f32 0.020833334, %v3622_v59  ;;  %11287 = vmatpush3.bf16.msra.mxu1 %v3665_v38 }
 0xcfe   :  { %v14904_v25 = vadd.f32 %v3640_v61, %v14761_v19  ;;  %11288 = vmatprep.subr.bf16.mxu1 %v3666_v4 }
 0xcff   :  { %17869 = vst [vmem:[#allocation25_spill] sm:$0xff] %v14901_v22  ;;  %v14907_v29 = vadd.f32 %v3638_v57, %v14766_v60  ;;  %v11248_v26 = vpop.f32.mrb[104].mxu0 }
 0xd00   :  { %v3627_v21 = vadd.f32 %v11248_v26, %v17857_v8  ;;  %v3586_v36 = vpop.f32.mrb[105].mxu0  ;;  %v3668_v46 = vpack.c.bf16 %v14904_v25, %v14898_v41 }
 0xd01   :  { %17870 = vst [vmem:[#allocation18_spill] sm:$0xff] %v14907_v29  ;;  %v3625_v17 = vadd.f32 %v3586_v36, %v17832_v15  ;;  %11289 = vmatpush3.bf16.msra.mxu1 %v3666_v4  ;;  %v11249_v27 = vpop.f32.mrb[106].mxu0  ;;  %v3667_v0 = vpack.c.bf16 %v14907_v29, %v14901_v22 }
 0xd02   :  { %v3643_v3 = vmul.f32 0.020833334, %v3627_v21  ;;  %v3628_v34 = vadd.f32 %v11249_v27, %v17833_v54  ;;  %v3589_v19 = vpop.f32.mrb[107].mxu0 }
 0xd03   :  { %v3641_v60 = vmul.f32 0.020833334, %v3625_v17  ;;  %v3626_v63 = vadd.f32 %v3589_v19, %v17834_v51  ;;  %11274 = vmatprep.mubr.bf16.mxu1 %v3667_v0  ;;  %11290 = vmatprep.subr.bf16.mxu1 %v3667_v0 }
 0xd04   :  { %v14918_v20 = vadd.f32 %v3643_v3, %v14774_v52  ;;  %v3644_v32 = vmul.f32 0.020833334, %v3628_v34  ;;  %11275 = vmatmul.mubr.bf16.gmra.mrb[100].mxu1 %v3668_v46 }
 0xd05   :  { %v14921_v7 = vadd.f32 %v3641_v60, %v14777_v62  ;;  %v3642_v38 = vmul.f32 0.020833334, %v3626_v63  ;;  %11291 = vmatpush3.bf16.msra.mxu1 %v3667_v0  ;;  %v14985_v60 = vld [vmem:[%s17471_s2 + $0x20] sm:$0xff]   ;;  %v14995_v63 = vld [vmem:[%s17471_s2 + $0x28] sm:$0xff]  }
 0xd06   :  { %v14924_v6 = vadd.f32 %v3644_v32, %v14781_v16  ;;  %11292 = vmatprep.subr.bf16.mxu1 %v3668_v46  ;;  %17872 = vst [vmem:[#allocation19_spill] sm:$0xff] %v14995_v63  ;;  %v15001_v32 = vld [vmem:[%s17471_s2 + $0x30] sm:$0xff]  }
 0xd07   :  { %v14927_v1 = vadd.f32 %v3642_v38, %v14786_v56  ;;  %v11252_v2 = vpop.f32.mrb[108].mxu0  ;;  %17873 = vst [vmem:[#allocation26_spill] sm:$0xff] %v15001_v32  ;;  %v15011_v38 = vld [vmem:[%s17471_s2 + $0x38] sm:$0xff]  }
 0xd08   :  { %v3631_v4 = vadd.f32 %v11252_v2, %v13421_v42  ;;  %v3602_v24 = vpop.f32.mrb[109].mxu0  ;;  %v3670_v26 = vpack.c.bf16 %v14924_v6, %v14918_v20  ;;  %17874 = vst [vmem:[#allocation14_spill] sm:$0xff] %v15011_v38 }
 0xd09   :  { %17871 = vst [vmem:[#allocation23_spill] sm:$0xff] %v14927_v1  ;;  %v3629_v52 = vadd.f32 %v3602_v24, %v13423_v43  ;;  %11293 = vmatpush3.bf16.msra.mxu1 %v3668_v46  ;;  %v11253_v59 = vpop.f32.mrb[110].mxu0  ;;  %v3669_v62 = vpack.c.bf16 %v14927_v1, %v14921_v7  ;;  %v14979_v46 = vld [vmem:[%s17471_s2 + $0x18] sm:$0xff]  }
 0xd0a   :  { %v3647_v61 = vmul.f32 0.020833334, %v3631_v4  ;;  %v3632_v57 = vadd.f32 %v11253_v59, %v13425_v44  ;;  %v3605_v16 = vpop.f32.mrb[111].mxu0 }
 0xd0b   :  { %v3645_v56 = vmul.f32 0.020833334, %v3629_v52  ;;  %v3630_v21 = vadd.f32 %v3605_v16, %v13427_v45  ;;  %11278 = vmatprep.mubr.bf16.mxu1 %v3669_v62  ;;  %11294 = vmatprep.subr.bf16.mxu1 %v3669_v62 }
 0xd0c   :  { %v14938_v36 = vadd.f32 %v3647_v61, %v14794_v13  ;;  %v3648_v17 = vmul.f32 0.020833334, %v3632_v57  ;;  %11279 = vmatmul.mubr.bf16.gmra.mrb[104].mxu1 %v3670_v26 }
 0xd0d   :  { %v14941_v27 = vadd.f32 %v3645_v56, %v14797_v47  ;;  %v3646_v0 = vmul.f32 0.020833334, %v3630_v21  ;;  %11295 = vmatpush3.bf16.msra.mxu1 %v3669_v62  ;;  %v14956_v47 = vld [vmem:[%s17471_s2] sm:$0xff]  }
 0xd0e   :  { %v14944_v3 = vadd.f32 %v3648_v17, %v14801_v40  ;;  %11296 = vmatprep.subr.bf16.mxu1 %v3670_v26  ;;  %v14963_v40 = vld [vmem:[%s17471_s2 + $0x8] sm:$0xff]  }
 0xd0f   :  { %v14947_v34 = vadd.f32 %v3646_v0, %v14806_v10  ;;  %v14969_v10 = vld [vmem:[%s17471_s2 + $0x10] sm:$0xff]  }
 0xd10   :  { %v3672_v13 = vpack.c.bf16 %v14944_v3, %v14938_v36 }
 0xd11   :  { %11297 = vmatpush3.bf16.msra.mxu1 %v3670_v26  ;;  %v3671_v19 = vpack.c.bf16 %v14947_v34, %v14941_v27 }
 0xd13   :  { %11282 = vmatprep.mubr.bf16.mxu1 %v3671_v19  ;;  %11298 = vmatprep.subr.bf16.mxu1 %v3671_v19 }
 0xd14   :  { %11283 = vmatmul.mubr.bf16.gmra.mrb[108].mxu1 %v3672_v13 }
 0xd15   :  { %11299 = vmatpush3.bf16.msra.mxu1 %v3671_v19  ;;  %11302 = vmatprep.mubr.bf16.mxu1 %v14956_v47 }
 0xd16   :  { %11300 = vmatprep.subr.bf16.mxu1 %v3672_v13 }
 0xd19   :  { %11301 = vmatpush3.bf16.msra.mxu1 %v3672_v13 }
 0xd1a   :  { %11382 = vmatprep.subr.bf16.mxu1 %v14813_v37 }
 0xd1c   :  { %11303 = vmatmul.mubr.bf16.vlgmr.msra.gmra.mrb[96].mxu1 %v14963_v40 }
 0xd1d   :  { %11306 = vmatprep.mubr.bf16.mxu1 %v14969_v10  ;;  %11383 = vmatpush3.bf16.msra.mxu1 %v14813_v37 }
 0xd1e   :  { %11384 = vmatprep.subr.bf16.mxu1 %v14822_v12 }
 0xd21   :  { %11385 = vmatpush3.bf16.msra.mxu1 %v14822_v12 }
 0xd22   :  { %11386 = vmatprep.subr.bf16.mxu1 %v14829_v33 }
 0xd24   :  { %11307 = vmatmul.mubr.bf16.gmra.mrb[100].mxu1 %v14979_v46 }
 0xd25   :  { %11310 = vmatprep.mubr.bf16.mxu1 %v14985_v60  ;;  %11387 = vmatpush3.bf16.msra.mxu1 %v14829_v33 }
 0xd26   :  { %11388 = vmatprep.subr.bf16.mxu1 %v14838_v14 }
 0xd29   :  { %11389 = vmatpush3.bf16.msra.mxu1 %v14838_v14 }
 0xd2a   :  { %11390 = vmatprep.subr.bf16.mxu1 %v14845_v28 }
 0xd2c   :  { %11311 = vmatmul.mubr.bf16.gmra.mrb[104].mxu1 %v14995_v63 }
 0xd2d   :  { %11314 = vmatprep.mubr.bf16.mxu1 %v15001_v32  ;;  %11391 = vmatpush3.bf16.msra.mxu1 %v14845_v28 }
 0xd2e   :  { %11392 = vmatprep.subr.bf16.mxu1 %v14854_v11 }
 0xd31   :  { %11393 = vmatpush3.bf16.msra.mxu1 %v14854_v11 }
 0xd32   :  { %11394 = vmatprep.subr.bf16.mxu1 %v14861_v50 }
 0xd34   :  { %11315 = vmatmul.mubr.bf16.gmra.mrb[108].mxu1 %v15011_v38 }
 0xd35   :  { %11395 = vmatpush3.bf16.msra.mxu1 %v14861_v50 }
 0xd36   :  { %11396 = vmatprep.subr.bf16.mxu1 %v14869_v53 }
 0xd39   :  { %11397 = vmatpush3.bf16.msra.mxu1 %v14869_v53 }
 0xdef   :  { %v11304_v2 = vpop.f32.mrb[96].mxu1 }
 0xdf0   :  { %v15018_v4 = vadd.f32 %v11304_v2, %v17843_v5  ;;  %v3804_v24 = vpop.f32.mrb[97].mxu1 }
 0xdf1   :  { %v15021_v52 = vadd.f32 %v3804_v24, %v17844_v23  ;;  %v11305_v59 = vpop.f32.mrb[98].mxu1 }
 0xdf2   :  { %v3917_v62 = vmul.f32 0.0625, %v15018_v4  ;;  %v15025_v61 = vadd.f32 %v11305_v59, %v17845_v9  ;;  %v3807_v57 = vpop.f32.mrb[99].mxu1 }
 0xdf3   :  { %v3915_v16 = vmul.f32 0.0625, %v15021_v52  ;;  %v15029_v26 = vadd.f32 %v3807_v57, %v17863_v55 }
 0xdf4   :  { %v3918_v56 = vmul.f32 0.0625, %v15025_v61  ;;  %v3933_v17 = vadd.f32 %v3917_v62, %v14878_v58 }
 0xdf5   :  { %17875 = vst [vmem:[#allocation20_spill] sm:$0xff] %v15029_v26  ;;  %v3916_v21 = vmul.f32 0.0625, %v15029_v26  ;;  %v3931_v19 = vadd.f32 %v3915_v16, %v14881_v49 }
 0xdf6   :  { %v3934_v0 = vadd.f32 %v3918_v56, %v14884_v48 }
 0xdf7   :  { %v3932_v13 = vadd.f32 %v3916_v21, %v14887_v18  ;;  %v11308_v2 = vpop.f32.mrb[100].mxu1 }
 0xdf8   :  { %v3948_v24 = vpack.c.bf16 %v3934_v0, %v3933_v17  ;;  %v15038_v59 = vadd.f32 %v11308_v2, %v13397_v30  ;;  %v3820_v9 = vpop.f32.mrb[101].mxu1 }
 0xdf9   :  { %v15041_v57 = vadd.f32 %v3820_v9, %v17852_v31  ;;  %v11309_v55 = vpop.f32.mrb[102].mxu1  ;;  %v3947_v23 = vpack.c.bf16 %v3932_v13, %v3931_v19 }
 0xdfa   :  { %v3921_v26 = vmul.f32 0.0625, %v15038_v59  ;;  %v15045_v62 = vadd.f32 %v11309_v55, %v17853_v39  ;;  %v3823_v56 = vpop.f32.mrb[103].mxu1 }
 0xdfb   :  { %v3919_v16 = vmul.f32 0.0625, %v15041_v57  ;;  %v15049_v21 = vadd.f32 %v3823_v56, %v17829_v35  ;;  %11334 = vmatprep.mubr.bf16.mxu0 %v3947_v23  ;;  %11350 = vmatprep.subr.bf16.mxu0 %v3947_v23 }
 0xdfc   :  { %v3922_v17 = vmul.f32 0.0625, %v15045_v62  ;;  %11335 = vmatmul.mubr.bf16.vlgmr.msra.gmra.mrb[112].mxu0 %v3948_v24  ;;  %v3937_v0 = vadd.f32 %v3921_v26, %v14898_v41 }
 0xdfd   :  { %17876 = vst [vmem:[#allocation21_spill] sm:$0xff] %v15049_v21  ;;  %v3920_v9 = vmul.f32 0.0625, %v15049_v21  ;;  %11351 = vmatpush3.bf16.msra.mxu0 %v3947_v23  ;;  %v3935_v55 = vadd.f32 %v3919_v16, %v14901_v22 }
 0xdfe   :  { %v3938_v19 = vadd.f32 %v3922_v17, %v14904_v25  ;;  %11352 = vmatprep.subr.bf16.mxu0 %v3948_v24 }
 0xdff   :  { %v3936_v13 = vadd.f32 %v3920_v9, %v14907_v29  ;;  %v11312_v2 = vpop.f32.mrb[104].mxu1 }
 0xe00   :  { %v15058_v56 = vadd.f32 %v11312_v2, %v17857_v8  ;;  %v3836_v35 = vpop.f32.mrb[105].mxu1  ;;  %v3950_v39 = vpack.c.bf16 %v3938_v19, %v3937_v0 }
 0xe01   :  { %v15061_v31 = vadd.f32 %v3836_v35, %v17832_v15  ;;  %11353 = vmatpush3.bf16.msra.mxu0 %v3948_v24  ;;  %v11313_v23 = vpop.f32.mrb[106].mxu1  ;;  %v3949_v21 = vpack.c.bf16 %v3936_v13, %v3935_v55 }
 0xe02   :  { %v3925_v26 = vmul.f32 0.0625, %v15058_v56  ;;  %v15065_v17 = vadd.f32 %v11313_v23, %v17833_v54  ;;  %v3839_v16 = vpop.f32.mrb[107].mxu1 }
 0xe03   :  { %v3923_v9 = vmul.f32 0.0625, %v15061_v31  ;;  %v15069_v29 = vadd.f32 %v3839_v16, %v17834_v51  ;;  %11338 = vmatprep.mubr.bf16.mxu0 %v3949_v21  ;;  %11354 = vmatprep.subr.bf16.mxu0 %v3949_v21 }
 0xe04   :  { %v3926_v0 = vmul.f32 0.0625, %v15065_v17  ;;  %11339 = vmatmul.mubr.bf16.gmra.mrb[116].mxu0 %v3950_v39  ;;  %v3941_v24 = vadd.f32 %v3925_v26, %v14918_v20 }
 0xe05   :  { %v3924_v35 = vmul.f32 0.0625, %v15069_v29  ;;  %11355 = vmatpush3.bf16.msra.mxu0 %v3949_v21  ;;  %v3939_v55 = vadd.f32 %v3923_v9, %v14921_v7 }
 0xe06   :  { %v3942_v19 = vadd.f32 %v3926_v0, %v14924_v6  ;;  %11356 = vmatprep.subr.bf16.mxu0 %v3950_v39 }
 0xe07   :  { %v3940_v13 = vadd.f32 %v3924_v35, %v14927_v1  ;;  %v11316_v2 = vpop.f32.mrb[108].mxu1 }
 0xe08   :  { %v15078_v23 = vadd.f32 %v11316_v2, %v13421_v42  ;;  %v3852_v16 = vpop.f32.mrb[109].mxu1  ;;  %v3952_v51 = vpack.c.bf16 %v3942_v19, %v3941_v24 }
 0xe09   :  { %v15081_v54 = vadd.f32 %v3852_v16, %v13423_v43  ;;  %11357 = vmatpush3.bf16.msra.mxu0 %v3950_v39  ;;  %v11317_v21 = vpop.f32.mrb[110].mxu1  ;;  %v3951_v15 = vpack.c.bf16 %v3940_v13, %v3939_v55 }
 0xe0a   :  { %v3929_v26 = vmul.f32 0.0625, %v15078_v23  ;;  %v15085_v0 = vadd.f32 %v11317_v21, %v13425_v44  ;;  %v3855_v9 = vpop.f32.mrb[111].mxu1 }
 0xe0b   :  { %v3927_v35 = vmul.f32 0.0625, %v15081_v54  ;;  %v15089_v1 = vadd.f32 %v3855_v9, %v13427_v45  ;;  %11342 = vmatprep.mubr.bf16.mxu0 %v3951_v15  ;;  %11358 = vmatprep.subr.bf16.mxu0 %v3951_v15  ;;  %v3886_v9 = vmul.f32 0.020833334, %v15025_v61  ;;  %v17880_v61 = vld [vmem:[#allocation6_spill] sm:$0xff] }
 0xe0c   :  { %v3930_v24 = vmul.f32 0.0625, %v15085_v0  ;;  %11343 = vmatmul.mubr.bf16.gmra.mrb[120].mxu0 %v3952_v51  ;;  %v3945_v19 = vadd.f32 %v3929_v26, %v14938_v36 }
 0xe0d   :  { %v3928_v39 = vmul.f32 0.0625, %v15089_v1  ;;  %11359 = vmatpush3.bf16.msra.mxu0 %v3951_v15  ;;  %v3943_v13 = vadd.f32 %v3927_v35, %v14941_v27  ;;  %v3883_v15 = vmul.f32 0.020833334, %v15021_v52 }
 0xe0e   :  { %v3946_v55 = vadd.f32 %v3930_v24, %v14944_v3  ;;  %11360 = vmatprep.subr.bf16.mxu0 %v3952_v51 }
 0xe0f   :  { %v3944_v2 = vadd.f32 %v3928_v39, %v14947_v34  ;;  %v17877_v39 = vld [vmem:[#allocation20_spill] sm:$0xff]  ;;  %v3899_v52 = vadd.f32 %v3883_v15, %v14881_v49 }
 0xe10   :  { %v3954_v16 = vpack.c.bf16 %v3946_v55, %v3945_v19  ;;  %v3884_v19 = vmul.f32 0.020833334, %v17877_v39  ;;  %v17878_v55 = vld [vmem:[#allocation4_spill] sm:$0xff] }
 0xe11   :  { %11361 = vmatpush3.bf16.msra.mxu0 %v3952_v51  ;;  %v3953_v21 = vpack.c.bf16 %v3944_v2, %v3943_v13  ;;  %v3885_v51 = vmul.f32 0.020833334, %v15018_v4 }
 0xe13   :  { %11346 = vmatprep.mubr.bf16.mxu0 %v3953_v21  ;;  %11362 = vmatprep.subr.bf16.mxu0 %v3953_v21 }
 0xe14   :  { %11347 = vmatmul.mubr.bf16.gmra.mrb[124].mxu0 %v3954_v16 }
 0xe15   :  { %11363 = vmatpush3.bf16.msra.mxu0 %v3953_v21  ;;  %11366 = vmatprep.mubr.bf16.mxu0 %v14956_v47 }
 0xe16   :  { %11364 = vmatprep.subr.bf16.mxu0 %v3954_v16 }
 0xe19   :  { %11365 = vmatpush3.bf16.msra.mxu0 %v3954_v16  ;;  %v3901_v16 = vadd.f32 %v3885_v51, %v14878_v58 }
 0xe1a   :  { %11446 = vmatprep.subr.bf16.mxu0 %v14813_v37 }
 0xe1c   :  { %11367 = vmatmul.mubr.bf16.vlgmr.msra.gmra.mrb[112].mxu0 %v14963_v40 }
 0xe1d   :  { %11370 = vmatprep.mubr.bf16.mxu0 %v14969_v10  ;;  %11447 = vmatpush3.bf16.msra.mxu0 %v14813_v37 }
 0xe1e   :  { %11448 = vmatprep.subr.bf16.mxu0 %v14822_v12 }
 0xe21   :  { %11449 = vmatpush3.bf16.msra.mxu0 %v14822_v12 }
 0xe22   :  { %11450 = vmatprep.subr.bf16.mxu0 %v14829_v33 }
 0xe24   :  { %11371 = vmatmul.mubr.bf16.gmra.mrb[116].mxu0 %v14979_v46 }
 0xe25   :  { %11374 = vmatprep.mubr.bf16.mxu0 %v14985_v60  ;;  %11451 = vmatpush3.bf16.msra.mxu0 %v14829_v33 }
 0xe26   :  { %11452 = vmatprep.subr.bf16.mxu0 %v14838_v14 }
 0xe29   :  { %11453 = vmatpush3.bf16.msra.mxu0 %v14838_v14 }
 0xe2a   :  { %11454 = vmatprep.subr.bf16.mxu0 %v14845_v28 }
 0xe2c   :  { %11375 = vmatmul.mubr.bf16.gmra.mrb[120].mxu0 %v14995_v63 }
 0xe2d   :  { %11378 = vmatprep.mubr.bf16.mxu0 %v15001_v32  ;;  %11455 = vmatpush3.bf16.msra.mxu0 %v14845_v28 }
 0xe2e   :  { %11456 = vmatprep.subr.bf16.mxu0 %v14854_v11 }
 0xe31   :  { %11457 = vmatpush3.bf16.msra.mxu0 %v14854_v11 }
 0xe32   :  { %11458 = vmatprep.subr.bf16.mxu0 %v14861_v50 }
 0xe34   :  { %11379 = vmatmul.mubr.bf16.gmra.mrb[124].mxu0 %v15011_v38 }
 0xe35   :  { %11459 = vmatpush3.bf16.msra.mxu0 %v14861_v50 }
 0xe36   :  { %11460 = vmatprep.subr.bf16.mxu0 %v14869_v53 }
 0xe39   :  { %11461 = vmatpush3.bf16.msra.mxu0 %v14869_v53  ;;  %v17879_v53 = vld [vmem:[#allocation5_spill] sm:$0xff] }
 0xeef   :  { %v11368_v26 = vpop.f32.mrb[112].mxu0 }
 0xef0   :  { %v4151_v35 = vadd.f32 %v11368_v26, %v17843_v5  ;;  %v4086_v24 = vpop.f32.mrb[113].mxu0  ;;  %v3902_v26 = vadd.f32 %v3886_v9, %v14884_v48  ;;  %v3887_v9 = vmul.f32 0.020833334, %v15041_v57 }
 0xef1   :  { %v4149_v13 = vadd.f32 %v4086_v24, %v17878_v55  ;;  %v11369_v2 = vpop.f32.mrb[114].mxu0  ;;  %v3900_v55 = vadd.f32 %v3884_v19, %v14887_v18  ;;  %v3890_v19 = vmul.f32 0.020833334, %v15045_v62 }
 0xef2   :  { %v4167_v21 = vmul.f32 0.041666668, %v4151_v35  ;;  %v4199_v38 = vmul.f32 0.0625, %v4151_v35  ;;  %v4152_v50 = vadd.f32 %v11369_v2, %v17879_v53  ;;  %v4089_v4 = vpop.f32.mrb[115].mxu0  ;;  %v3889_v2 = vmul.f32 0.020833334, %v15038_v59 }
 0xef3   :  { %v4165_v11 = vmul.f32 0.041666668, %v4149_v13  ;;  %v4197_v32 = vmul.f32 0.0625, %v4149_v13  ;;  %v4150_v63 = vadd.f32 %v4089_v4, %v17880_v61 }
 0xef4   :  { %v15132_v5 = vadd.f32 %v4167_v21, %v3901_v16  ;;  %v4168_v39 = vmul.f32 0.041666668, %v4152_v50  ;;  %v4200_v24 = vmul.f32 0.0625, %v4152_v50  ;;  %v4215_v15 = vadd.f32 %v4199_v38, %v14878_v58  ;;  %v17882_v38 = vld [vmem:[#allocation21_spill] sm:$0xff] }
 0xef5   :  { %v15135_v51 = vadd.f32 %v4165_v11, %v3899_v52  ;;  %v4166_v35 = vmul.f32 0.041666668, %v4150_v63  ;;  %v4198_v28 = vmul.f32 0.0625, %v4150_v63  ;;  %v4213_v16 = vadd.f32 %v4197_v32, %v14881_v49 }
 0xef6   :  { %v15139_v53 = vadd.f32 %v4168_v39, %v3902_v26  ;;  %v4216_v13 = vadd.f32 %v4200_v24, %v14884_v48  ;;  %v3888_v52 = vmul.f32 0.020833334, %v17882_v38  ;;  %v17883_v26 = vld [vmem:[#allocation7_spill] sm:$0xff]  ;;  %v3905_v57 = vadd.f32 %v3889_v2, %v14898_v41  ;;  %v17886_v2 = vld [vmem:[#allocation18_spill] sm:$0xff] }
 0xef7   :  { %v15144_v21 = vadd.f32 %v4166_v35, %v3900_v55  ;;  %v4214_v50 = vadd.f32 %v4198_v28, %v14887_v18  ;;  %v11372_v11 = vpop.f32.mrb[116].mxu0  ;;  %v17884_v35 = vld [vmem:[#allocation8_spill] sm:$0xff]  ;;  %v3903_v18 = vadd.f32 %v3887_v9, %v14901_v22  ;;  %v3906_v38 = vadd.f32 %v3890_v19, %v14904_v25 }
 0xef8   :  { %v4230_v63 = vpack.c.bf16 %v4216_v13, %v4215_v15  ;;  %v4155_v59 = vadd.f32 %v11372_v11, %v13397_v30  ;;  %v4102_v4 = vpop.f32.mrb[117].mxu0  ;;  %v17885_v13 = vld [vmem:[#allocation9_spill] sm:$0xff]  ;;  %v3893_v9 = vmul.f32 0.020833334, %v15058_v56 }
 0xef9   :  { %17881 = vst [vmem:[#allocation20_spill] sm:$0xff] %v15144_v21  ;;  %v4153_v39 = vadd.f32 %v4102_v4, %v17883_v26  ;;  %v11373_v24 = vpop.f32.mrb[118].mxu0  ;;  %v4229_v48 = vpack.c.bf16 %v4214_v50, %v4213_v16 }
 0xefa   :  { %v4171_v32 = vmul.f32 0.041666668, %v4155_v59  ;;  %v4203_v55 = vmul.f32 0.0625, %v4155_v59  ;;  %v4156_v21 = vadd.f32 %v11373_v24, %v17884_v35  ;;  %v4105_v28 = vpop.f32.mrb[119].mxu0  ;;  %v3904_v59 = vadd.f32 %v3888_v52, %v17886_v2 }
 0xefb   :  { %v4169_v62 = vmul.f32 0.041666668, %v4153_v39  ;;  %v4201_v15 = vmul.f32 0.0625, %v4153_v39  ;;  %v4154_v11 = vadd.f32 %v4105_v28, %v17885_v13  ;;  %11398 = vmatprep.mubr.bf16.mxu1 %v4229_v48  ;;  %11414 = vmatprep.subr.bf16.mxu1 %v4229_v48 }
 0xefc   :  { %v15156_v4 = vadd.f32 %v4171_v32, %v3905_v57  ;;  %v4172_v16 = vmul.f32 0.041666668, %v4156_v21  ;;  %v4204_v50 = vmul.f32 0.0625, %v4156_v21  ;;  %11399 = vmatmul.mubr.bf16.vlgmr.msra.gmra.mrb[112].mxu1 %v4230_v63  ;;  %v4219_v39 = vadd.f32 %v4203_v55, %v14898_v41 }
 0xefd   :  { %v15159_v26 = vadd.f32 %v4169_v62, %v3903_v18  ;;  %v4170_v24 = vmul.f32 0.041666668, %v4154_v11  ;;  %v4202_v35 = vmul.f32 0.0625, %v4154_v11  ;;  %11415 = vmatpush3.bf16.msra.mxu1 %v4229_v48  ;;  %v3891_v57 = vmul.f32 0.020833334, %v15061_v31 }
 0xefe   :  { %v15163_v28 = vadd.f32 %v4172_v16, %v3906_v38  ;;  %v4220_v19 = vadd.f32 %v4204_v50, %v14904_v25  ;;  %11416 = vmatprep.subr.bf16.mxu1 %v4230_v63  ;;  %v4217_v21 = vadd.f32 %v4201_v15, %v14901_v22  ;;  %v3894_v48 = vmul.f32 0.020833334, %v15065_v17  ;;  %v17888_v38 = vld [vmem:[#allocation11_spill] sm:$0xff] }
 0xeff   :  { %v15168_v32 = vadd.f32 %v4170_v24, %v3904_v59  ;;  %v4218_v18 = vadd.f32 %v4202_v35, %v17886_v2  ;;  %v11376_v52 = vpop.f32.mrb[120].mxu0  ;;  %v3892_v11 = vmul.f32 0.020833334, %v15069_v29  ;;  %v3909_v15 = vadd.f32 %v3893_v9, %v14918_v20  ;;  %v17891_v9 = vld [vmem:[#allocation23_spill] sm:$0xff] }
 0xf00   :  { %v4159_v56 = vadd.f32 %v11376_v52, %v17857_v8  ;;  %v4118_v62 = vpop.f32.mrb[121].mxu0  ;;  %v4232_v55 = vpack.c.bf16 %v4220_v19, %v4219_v39  ;;  %v3907_v17 = vadd.f32 %v3891_v57, %v14921_v7  ;;  %v17890_v8 = vld [vmem:[#allocation13_spill] sm:$0xff]  ;;  %v3910_v29 = vadd.f32 %v3894_v48, %v14924_v6 }
 0xf01   :  { %17887 = vst [vmem:[#allocation21_spill] sm:$0xff] %v15168_v32  ;;  %v4157_v16 = vadd.f32 %v4118_v62, %v17888_v38  ;;  %11417 = vmatpush3.bf16.msra.mxu1 %v4230_v63  ;;  %v11377_v50 = vpop.f32.mrb[122].mxu0  ;;  %v4231_v31 = vpack.c.bf16 %v4218_v18, %v4217_v21  ;;  %v17889_v32 = vld [vmem:[#allocation12_spill] sm:$0xff]  ;;  %v3908_v18 = vadd.f32 %v3892_v11, %v17891_v9  ;;  %v3897_v57 = vmul.f32 0.020833334, %v15078_v23 }
 0xf02   :  { %v4175_v59 = vmul.f32 0.041666668, %v4159_v56  ;;  %v4207_v24 = vmul.f32 0.0625, %v4159_v56  ;;  %v4160_v35 = vadd.f32 %v11377_v50, %v17889_v32  ;;  %v4121_v2 = vpop.f32.mrb[123].mxu0 }
 0xf03   :  { %v4173_v22 = vmul.f32 0.041666668, %v4157_v16  ;;  %v4205_v52 = vmul.f32 0.0625, %v4157_v16  ;;  %v4158_v39 = vadd.f32 %v4121_v2, %v17890_v8  ;;  %11402 = vmatprep.mubr.bf16.mxu1 %v4231_v31  ;;  %11418 = vmatprep.subr.bf16.mxu1 %v4231_v31 }
 0xf04   :  { %v15180_v63 = vadd.f32 %v4175_v59, %v3909_v15  ;;  %v4176_v19 = vmul.f32 0.041666668, %v4160_v35  ;;  %v4208_v21 = vmul.f32 0.0625, %v4160_v35  ;;  %11403 = vmatmul.mubr.bf16.gmra.mrb[116].mxu1 %v4232_v55  ;;  %v4223_v2 = vadd.f32 %v4207_v24, %v14918_v20 }
 0xf05   :  { %v15183_v56 = vadd.f32 %v4173_v22, %v3907_v17  ;;  %v4174_v62 = vmul.f32 0.041666668, %v4158_v39  ;;  %v4206_v50 = vmul.f32 0.0625, %v4158_v39  ;;  %11419 = vmatpush3.bf16.msra.mxu1 %v4231_v31  ;;  %v3895_v15 = vmul.f32 0.020833334, %v15081_v54 }
 0xf06   :  { %v15187_v16 = vadd.f32 %v4176_v19, %v3910_v29  ;;  %v4224_v48 = vadd.f32 %v4208_v21, %v14924_v6  ;;  %11420 = vmatprep.subr.bf16.mxu1 %v4232_v55  ;;  %v4221_v59 = vadd.f32 %v4205_v52, %v14921_v7  ;;  %v3898_v31 = vmul.f32 0.020833334, %v15085_v0 }
 0xf07   :  { %v15192_v35 = vadd.f32 %v4174_v62, %v3908_v18  ;;  %v4222_v22 = vadd.f32 %v4206_v50, %v17891_v9  ;;  %v11380_v11 = vpop.f32.mrb[124].mxu0  ;;  %v3896_v39 = vmul.f32 0.020833334, %v15089_v1  ;;  %v3913_v52 = vadd.f32 %v3897_v57, %v14938_v36 }
 0xf08   :  { %v4163_v23 = vadd.f32 %v11380_v11, %v13421_v42  ;;  %v4134_v17 = vpop.f32.mrb[125].mxu0  ;;  %v4234_v24 = vpack.c.bf16 %v4224_v48, %v4223_v2  ;;  %v3911_v0 = vadd.f32 %v3895_v15, %v14941_v27  ;;  %v3914_v1 = vadd.f32 %v3898_v31, %v14944_v3 }
 0xf09   :  { %v4161_v29 = vadd.f32 %v4134_v17, %v13423_v43  ;;  %11421 = vmatpush3.bf16.msra.mxu1 %v4232_v55  ;;  %v11381_v19 = vpop.f32.mrb[126].mxu0  ;;  %v4233_v54 = vpack.c.bf16 %v4222_v22, %v4221_v59  ;;  %v3912_v57 = vadd.f32 %v3896_v39, %v14947_v34  ;;  %v17893_v39 = vld [vmem:[#allocation19_spill] sm:$0xff] }
 0xf0a   :  { %v4179_v21 = vmul.f32 0.041666668, %v4163_v23  ;;  %v4211_v18 = vmul.f32 0.0625, %v4163_v23  ;;  %v4164_v62 = vadd.f32 %v11381_v19, %v13425_v44  ;;  %v4137_v50 = vpop.f32.mrb[127].mxu0 }
 0xf0b   :  { %v4177_v9 = vmul.f32 0.041666668, %v4161_v29  ;;  %v4209_v11 = vmul.f32 0.0625, %v4161_v29  ;;  %v4162_v2 = vadd.f32 %v4137_v50, %v13427_v45  ;;  %11406 = vmatprep.mubr.bf16.mxu1 %v4233_v54  ;;  %11422 = vmatprep.subr.bf16.mxu1 %v4233_v54  ;;  %v17899_v50 = vld [vmem:[#allocation3_spill] sm:$0xff] }
 0xf0c   :  { %v15204_v55 = vadd.f32 %v4179_v21, %v3913_v52  ;;  %v4180_v48 = vmul.f32 0.041666668, %v4164_v62  ;;  %v4212_v59 = vmul.f32 0.0625, %v4164_v62  ;;  %11407 = vmatmul.mubr.bf16.gmra.mrb[120].mxu1 %v4234_v24  ;;  %v4227_v15 = vadd.f32 %v4211_v18, %v14938_v36  ;;  %v17897_v18 = vld [vmem:[#allocation14_spill] sm:$0xff] }
 0xf0d   :  { %v15207_v22 = vadd.f32 %v4177_v9, %v3911_v0  ;;  %v4178_v23 = vmul.f32 0.041666668, %v4162_v2  ;;  %v4210_v17 = vmul.f32 0.0625, %v4162_v2  ;;  %11423 = vmatpush3.bf16.msra.mxu1 %v4233_v54  ;;  %v4225_v31 = vadd.f32 %v4209_v11, %v14941_v27  ;;  %v17896_v54 = vld [vmem:[#allocation2_spill] sm:$0xff]  ;;  %v17900_v2 = vld [vmem:[#allocation4_spill] sm:$0xff] }
 0xf0e   :  { %v15210_v29 = vadd.f32 %v4180_v48, %v3914_v1  ;;  %v4228_v19 = vadd.f32 %v4212_v59, %v14944_v3  ;;  %11424 = vmatprep.subr.bf16.mxu1 %v4234_v24 }
 0xf0f   :  { %v15214_v52 = vadd.f32 %v4178_v23, %v3912_v57  ;;  %v4226_v21 = vadd.f32 %v4210_v17, %v14947_v34  ;;  %v17901_v23 = vld [vmem:[#allocation5_spill] sm:$0xff] }
 0xf10   :  { %v4236_v62 = vpack.c.bf16 %v4228_v19, %v4227_v15 }
 0xf11   :  { %11425 = vmatpush3.bf16.msra.mxu1 %v4234_v24  ;;  %v4235_v9 = vpack.c.bf16 %v4226_v21, %v4225_v31  ;;  %v17892_v24 = vld [vmem:[#allocation15_spill] sm:$0xff] }
 0xf13   :  { %11410 = vmatprep.mubr.bf16.mxu1 %v4235_v9  ;;  %11426 = vmatprep.subr.bf16.mxu1 %v4235_v9 }
 0xf14   :  { %11411 = vmatmul.mubr.bf16.gmra.mrb[124].mxu1 %v4236_v62 }
 0xf15   :  { %11427 = vmatpush3.bf16.msra.mxu1 %v4235_v9  ;;  %11430 = vmatprep.mubr.bf16.mxu1 %v14956_v47 }
 0xf16   :  { %11428 = vmatprep.subr.bf16.mxu1 %v4236_v62 }
 0xf19   :  { %11429 = vmatpush3.bf16.msra.mxu1 %v4236_v62 }
 0xf1a   :  { %11510 = vmatprep.subr.bf16.mxu1 %v14813_v37 }
 0xf1c   :  { %11431 = vmatmul.mubr.bf16.vlgmr.msra.gmra.mrb[112].mxu1 %v14963_v40 }
 0xf1d   :  { %11434 = vmatprep.mubr.bf16.mxu1 %v14969_v10  ;;  %11511 = vmatpush3.bf16.msra.mxu1 %v14813_v37  ;;  %v17894_v37 = vld [vmem:[#allocation26_spill] sm:$0xff] }
 0xf1e   :  { %11512 = vmatprep.subr.bf16.mxu1 %v14822_v12 }
 0xf21   :  { %11513 = vmatpush3.bf16.msra.mxu1 %v14822_v12  ;;  %v17895_v12 = vld [vmem:[#allocation24_spill] sm:$0xff] }
 0xf22   :  { %11514 = vmatprep.subr.bf16.mxu1 %v14829_v33 }
 0xf24   :  { %11435 = vmatmul.mubr.bf16.gmra.mrb[116].mxu1 %v14979_v46 }
 0xf25   :  { %11438 = vmatprep.mubr.bf16.mxu1 %v14985_v60  ;;  %11515 = vmatpush3.bf16.msra.mxu1 %v14829_v33  ;;  %v17898_v33 = vld [vmem:[#allocation16_spill] sm:$0xff] }
 0xf26   :  { %11516 = vmatprep.subr.bf16.mxu1 %v14838_v14 }
 0xf29   :  { %11517 = vmatpush3.bf16.msra.mxu1 %v14838_v14 }
 0xf2a   :  { %11518 = vmatprep.subr.bf16.mxu1 %v17892_v24 }
 0xf2c   :  { %11439 = vmatmul.mubr.bf16.gmra.mrb[120].mxu1 %v17893_v39 }
 0xf2d   :  { %11442 = vmatprep.mubr.bf16.mxu1 %v17894_v37  ;;  %11519 = vmatpush3.bf16.msra.mxu1 %v17892_v24 }
 0xf2e   :  { %11520 = vmatprep.subr.bf16.mxu1 %v17895_v12 }
 0xf31   :  { %11521 = vmatpush3.bf16.msra.mxu1 %v17895_v12 }
 0xf32   :  { %11522 = vmatprep.subr.bf16.mxu1 %v17896_v54 }
 0xf34   :  { %11443 = vmatmul.mubr.bf16.gmra.mrb[124].mxu1 %v17897_v18 }
 0xf35   :  { %11523 = vmatpush3.bf16.msra.mxu1 %v17896_v54 }
 0xf36   :  { %11524 = vmatprep.subr.bf16.mxu1 %v17898_v33 }
 0xf39   :  { %11525 = vmatpush3.bf16.msra.mxu1 %v17898_v33 }
 0xfef   :  { %v11432_v14 = vpop.f32.mrb[112].mxu1 }
 0xff0   :  { %v4433_v0 = vadd.f32 %v11432_v14, %v17899_v50  ;;  %v4368_v11 = vpop.f32.mrb[113].mxu1 }
 0xff1   :  { %v4431_v1 = vadd.f32 %v4368_v11, %v17900_v2  ;;  %v11433_v48 = vpop.f32.mrb[114].mxu1  ;;  %v17905_v11 = vld [vmem:[#allocation17_spill] sm:$0xff] }
 0xff2   :  { %v4449_v59 = vmul.f32 0.041666668, %v4433_v0  ;;  %v4481_v57 = vmul.f32 0.125, %v4433_v0  ;;  %v4434_v17 = vadd.f32 %v11433_v48, %v17901_v23  ;;  %v4371_v15 = vpop.f32.mrb[115].mxu1 }
 0xff3   :  { %v4447_v19 = vmul.f32 0.041666668, %v4431_v1  ;;  %v4479_v31 = vmul.f32 0.125, %v4431_v1  ;;  %v4432_v21 = vadd.f32 %v4371_v15, %v17880_v61  ;;  %v17906_v15 = vld [vmem:[#allocation20_spill] sm:$0xff] }
 0xff4   :  { %v15246_v62 = vadd.f32 %v4449_v59, %v15132_v5  ;;  %v4450_v9 = vmul.f32 0.041666668, %v4434_v17  ;;  %v4482_v24 = vmul.f32 0.125, %v4434_v17  ;;  %v4497_v14 = vadd.f32 %v4481_v57, %v14878_v58  ;;  %v17907_v5 = vld [vmem:[#allocation22_spill] sm:$0xff] }
 0xff5   :  { %v15249_v12 = vadd.f32 %v4447_v19, %v15135_v51  ;;  %v4448_v54 = vmul.f32 0.041666668, %v4432_v21  ;;  %v4480_v33 = vmul.f32 0.125, %v4432_v21  ;;  %v4495_v1 = vadd.f32 %v4479_v31, %v14881_v49  ;;  %v17908_v21 = vld [vmem:[#allocation7_spill] sm:$0xff] }
 0xff6   :  { %17902 = vst [vmem:[#allocation15_spill] sm:$0xff] %v15246_v62  ;;  %v15253_v0 = vadd.f32 %v4450_v9, %v15139_v53  ;;  %v4498_v48 = vadd.f32 %v4482_v24, %v17905_v11 }
 0xff7   :  { %17903 = vst [vmem:[#allocation19_spill] sm:$0xff] %v15249_v12  ;;  %v15258_v61 = vadd.f32 %v4448_v54, %v17906_v15  ;;  %v4496_v59 = vadd.f32 %v4480_v33, %v17907_v5  ;;  %v11436_v17 = vpop.f32.mrb[116].mxu1 }
 0xff8   :  { %17904 = vst [vmem:[#allocation26_spill] sm:$0xff] %v15253_v0  ;;  %v4512_v62 = vpack.c.bf16 %v4498_v48, %v4497_v14  ;;  %v4437_v51 = vadd.f32 %v11436_v17, %v13397_v30  ;;  %v4384_v19 = vpop.f32.mrb[117].mxu1  ;;  %v17909_v0 = vld [vmem:[#allocation8_spill] sm:$0xff] }
 0xff9   :  { %v4435_v12 = vadd.f32 %v4384_v19, %v17908_v21  ;;  %v11437_v58 = vpop.f32.mrb[118].mxu1  ;;  %v4511_v57 = vpack.c.bf16 %v4496_v59, %v4495_v1  ;;  %v17911_v19 = vld [vmem:[#allocation21_spill] sm:$0xff] }
 0xffa   :  { %v4453_v53 = vmul.f32 0.041666668, %v4437_v51  ;;  %v4485_v9 = vmul.f32 0.125, %v4437_v51  ;;  %v4438_v24 = vadd.f32 %v11437_v58, %v17909_v0  ;;  %v4387_v11 = vpop.f32.mrb[119].mxu1  ;;  %v17910_v51 = vld [vmem:[#allocation25_spill] sm:$0xff] }
 0xffb   :  { %v4451_v49 = vmul.f32 0.041666668, %v4435_v12  ;;  %v4483_v31 = vmul.f32 0.125, %v4435_v12  ;;  %v4436_v54 = vadd.f32 %v4387_v11, %v17885_v13  ;;  %11462 = vmatprep.mubr.bf16.mxu0 %v4511_v57  ;;  %11478 = vmatprep.subr.bf16.mxu0 %v4511_v57  ;;  %v17913_v11 = vld [vmem:[#allocation10_spill] sm:$0xff] }
 0xffc   :  { %v15266_v33 = vadd.f32 %v4453_v53, %v15156_v4  ;;  %v4454_v14 = vmul.f32 0.041666668, %v4438_v24  ;;  %v4486_v48 = vmul.f32 0.125, %v4438_v24  ;;  %11463 = vmatmul.mubr.bf16.vlgmr.msra.gmra.mrb[128].mxu0 %v4512_v62  ;;  %v4501_v59 = vadd.f32 %v4485_v9, %v14898_v41  ;;  %v17912_v53 = vld [vmem:[#allocation18_spill] sm:$0xff] }
 0xffd   :  { %v15269_v15 = vadd.f32 %v4451_v49, %v15159_v26  ;;  %v4452_v1 = vmul.f32 0.041666668, %v4436_v54  ;;  %v4484_v5 = vmul.f32 0.125, %v4436_v54  ;;  %11479 = vmatpush3.bf16.msra.mxu0 %v4511_v57  ;;  %v4499_v4 = vadd.f32 %v4483_v31, %v17910_v51 }
 0xffe   :  { %v15273_v12 = vadd.f32 %v4454_v14, %v15163_v28  ;;  %v4502_v17 = vadd.f32 %v4486_v48, %v14904_v25  ;;  %11480 = vmatprep.subr.bf16.mxu0 %v4512_v62 }
 0xfff   :  { %v15278_v58 = vadd.f32 %v4452_v1, %v17911_v19  ;;  %v4500_v24 = vadd.f32 %v4484_v5, %v17912_v53  ;;  %v11440_v26 = vpop.f32.mrb[120].mxu1 }
0x1000   :  { %v4441_v49 = vadd.f32 %v11440_v26, %v17913_v11  ;;  %v4400_v54 = vpop.f32.mrb[121].mxu1  ;;  %v4514_v57 = vpack.c.bf16 %v4502_v17, %v4501_v59 }
0x1001   :  { %v4439_v41 = vadd.f32 %v4400_v54, %v17888_v38  ;;  %11481 = vmatpush3.bf16.msra.mxu0 %v4512_v62  ;;  %v11441_v28 = vpop.f32.mrb[122].mxu1  ;;  %v4513_v9 = vpack.c.bf16 %v4500_v24, %v4499_v4 }
0x1002   :  { %v4457_v14 = vmul.f32 0.041666668, %v4441_v49  ;;  %v4489_v25 = vmul.f32 0.125, %v4441_v49  ;;  %v4442_v48 = vadd.f32 %v11441_v28, %v17889_v32  ;;  %v4403_v31 = vpop.f32.mrb[123].mxu1 }
0x1003   :  { %v4455_v51 = vmul.f32 0.041666668, %v4439_v41  ;;  %v4487_v1 = vmul.f32 0.125, %v4439_v41  ;;  %v4440_v19 = vadd.f32 %v4403_v31, %v17890_v8  ;;  %11466 = vmatprep.mubr.bf16.mxu0 %v4513_v9  ;;  %11482 = vmatprep.subr.bf16.mxu0 %v4513_v9  ;;  %v17914_v41 = vld [vmem:[#allocation23_spill] sm:$0xff] }
0x1004   :  { %v15286_v5 = vadd.f32 %v4457_v14, %v15180_v63  ;;  %v4458_v59 = vmul.f32 0.041666668, %v4442_v48  ;;  %v4490_v17 = vmul.f32 0.125, %v4442_v48  ;;  %11467 = vmatmul.mubr.bf16.gmra.mrb[132].mxu0 %v4514_v57  ;;  %v4505_v24 = vadd.f32 %v4489_v25, %v14918_v20 }
0x1005   :  { %v15289_v62 = vadd.f32 %v4455_v51, %v15183_v56  ;;  %v4456_v4 = vmul.f32 0.041666668, %v4440_v19  ;;  %v4488_v53 = vmul.f32 0.125, %v4440_v19  ;;  %11483 = vmatpush3.bf16.msra.mxu0 %v4513_v9  ;;  %v4503_v63 = vadd.f32 %v4487_v1, %v14921_v7 }
0x1006   :  { %v15293_v26 = vadd.f32 %v4458_v59, %v15187_v16  ;;  %v4506_v49 = vadd.f32 %v4490_v17, %v14924_v6  ;;  %11484 = vmatprep.subr.bf16.mxu0 %v4514_v57 }
0x1007   :  { %v15298_v54 = vadd.f32 %v4456_v4, %v15192_v35  ;;  %v4504_v28 = vadd.f32 %v4488_v53, %v17914_v41  ;;  %v11444_v56 = vpop.f32.mrb[124].mxu1 }
0x1008   :  { %v4445_v14 = vadd.f32 %v11444_v56, %v13421_v42  ;;  %v4416_v48 = vpop.f32.mrb[125].mxu1  ;;  %v4516_v9 = vpack.c.bf16 %v4506_v49, %v4505_v24 }
0x1009   :  { %v4443_v20 = vadd.f32 %v4416_v48, %v13423_v43  ;;  %11485 = vmatpush3.bf16.msra.mxu0 %v4514_v57  ;;  %v11445_v16 = vpop.f32.mrb[126].mxu1  ;;  %v4515_v25 = vpack.c.bf16 %v4504_v28, %v4503_v63 }
0x100a   :  { %v4461_v31 = vmul.f32 0.041666668, %v4445_v14  ;;  %v4493_v6 = vmul.f32 0.125, %v4445_v14  ;;  %v4446_v51 = vadd.f32 %v11445_v16, %v13425_v44  ;;  %v4419_v7 = vpop.f32.mrb[127].mxu1  ;;  %v17919_v16 = vld [vmem:[#allocation6_spill] sm:$0xff] }
0x100b   :  { %v4459_v1 = vmul.f32 0.041666668, %v4443_v20  ;;  %v4491_v35 = vmul.f32 0.125, %v4443_v20  ;;  %v4444_v19 = vadd.f32 %v4419_v7, %v13427_v45  ;;  %11470 = vmatprep.mubr.bf16.mxu0 %v4515_v25  ;;  %11486 = vmatprep.subr.bf16.mxu0 %v4515_v25  ;;  %v17921_v7 = vld [vmem:[#allocation19_spill] sm:$0xff] }
0x100c   :  { %v15306_v59 = vadd.f32 %v4461_v31, %v15204_v55  ;;  %v4462_v17 = vmul.f32 0.041666668, %v4446_v51  ;;  %v4494_v4 = vmul.f32 0.125, %v4446_v51  ;;  %11471 = vmatmul.mubr.bf16.gmra.mrb[136].mxu0 %v4516_v9  ;;  %v4509_v49 = vadd.f32 %v4493_v6, %v14938_v36  ;;  %v15325_v36 = vld [vmem:[%s17470_s3] sm:$0xff]   ;;  %v17920_v31 = vld [vmem:[#allocation15_spill] sm:$0xff] }
0x100d   :  { %v15309_v57 = vadd.f32 %v4459_v1, %v15207_v22  ;;  %v4460_v53 = vmul.f32 0.041666668, %v4444_v19  ;;  %v4492_v24 = vmul.f32 0.125, %v4444_v19  ;;  %11487 = vmatpush3.bf16.msra.mxu0 %v4515_v25  ;;  %v4507_v55 = vadd.f32 %v4491_v35, %v14941_v27  ;;  %v15334_v27 = vld [vmem:[%s17470_s3 + $0x8] sm:$0xff]   ;;  %v17922_v19 = vld [vmem:[#allocation26_spill] sm:$0xff] }
0x100e   :  { %v15313_v63 = vadd.f32 %v4462_v17, %v15210_v29  ;;  %v4510_v41 = vadd.f32 %v4494_v4, %v14944_v3  ;;  %11488 = vmatprep.subr.bf16.mxu0 %v4516_v9  ;;  %v15341_v3 = vld [vmem:[%s17470_s3 + $0x10] sm:$0xff]  }
0x100f   :  { %v15318_v28 = vadd.f32 %v4460_v53, %v15214_v52  ;;  %v4508_v56 = vadd.f32 %v4492_v24, %v14947_v34  ;;  %v15350_v34 = vld [vmem:[%s17470_s3 + $0x18] sm:$0xff]  }
0x1010   :  { %v4518_v22 = vpack.c.bf16 %v4510_v41, %v4509_v49 }
0x1011   :  { %11489 = vmatpush3.bf16.msra.mxu0 %v4516_v9  ;;  %v4517_v14 = vpack.c.bf16 %v4508_v56, %v4507_v55 }
0x1013   :  { %11474 = vmatprep.mubr.bf16.mxu0 %v4517_v14  ;;  %11490 = vmatprep.subr.bf16.mxu0 %v4517_v14 }
0x1014   :  { %11475 = vmatmul.mubr.bf16.gmra.mrb[140].mxu0 %v4518_v22 }
0x1015   :  { %11491 = vmatpush3.bf16.msra.mxu0 %v4517_v14  ;;  %11494 = vmatprep.mubr.bf16.mxu0 %v14956_v47  ;;  %v15357_v47 = vld [vmem:[%s17470_s3 + $0x20] sm:$0xff]  }
0x1016   :  { %11492 = vmatprep.subr.bf16.mxu0 %v4518_v22  ;;  %17915 = vst [vmem:[#allocation24_spill] sm:$0xff] %v15357_v47 }
0x1019   :  { %11493 = vmatpush3.bf16.msra.mxu0 %v4518_v22 }
0x101a   :  { %11574 = vmatprep.subr.bf16.mxu0 %v15325_v36 }
0x101c   :  { %11495 = vmatmul.mubr.bf16.vlgmr.msra.gmra.mrb[128].mxu0 %v14963_v40  ;;  %v15366_v40 = vld [vmem:[%s17470_s3 + $0x28] sm:$0xff]  }
0x101d   :  { %11498 = vmatprep.mubr.bf16.mxu0 %v14969_v10  ;;  %11575 = vmatpush3.bf16.msra.mxu0 %v15325_v36  ;;  %17916 = vst [vmem:[#allocation2_spill] sm:$0xff] %v15366_v40  ;;  %v15373_v10 = vld [vmem:[%s17470_s3 + $0x30] sm:$0xff]  }
0x101e   :  { %11576 = vmatprep.subr.bf16.mxu0 %v15334_v27  ;;  %17917 = vst [vmem:[#allocation14_spill] sm:$0xff] %v15373_v10 }
0x1021   :  { %11577 = vmatpush3.bf16.msra.mxu0 %v15334_v27 }
0x1022   :  { %11578 = vmatprep.subr.bf16.mxu0 %v15341_v3 }
0x1024   :  { %11499 = vmatmul.mubr.bf16.gmra.mrb[132].mxu0 %v14979_v46  ;;  %v15381_v46 = vld [vmem:[%s17470_s3 + $0x38] sm:$0xff]  }
0x1025   :  { %11502 = vmatprep.mubr.bf16.mxu0 %v14985_v60  ;;  %11579 = vmatpush3.bf16.msra.mxu0 %v15341_v3  ;;  %17918 = vst [vmem:[#allocation16_spill] sm:$0xff] %v15381_v46 }
0x1026   :  { %11580 = vmatprep.subr.bf16.mxu0 %v15350_v34 }
0x1029   :  { %11581 = vmatpush3.bf16.msra.mxu0 %v15350_v34 }
0x102a   :  { %11582 = vmatprep.subr.bf16.mxu0 %v15357_v47 }
0x102c   :  { %11503 = vmatmul.mubr.bf16.gmra.mrb[136].mxu0 %v17893_v39 }
0x102d   :  { %11506 = vmatprep.mubr.bf16.mxu0 %v17894_v37  ;;  %11583 = vmatpush3.bf16.msra.mxu0 %v15357_v47 }
0x102e   :  { %11584 = vmatprep.subr.bf16.mxu0 %v15366_v40 }
0x1031   :  { %11585 = vmatpush3.bf16.msra.mxu0 %v15366_v40 }
0x1032   :  { %11586 = vmatprep.subr.bf16.mxu0 %v15373_v10 }
0x1034   :  { %11507 = vmatmul.mubr.bf16.gmra.mrb[140].mxu0 %v17897_v18 }
0x1035   :  { %11587 = vmatpush3.bf16.msra.mxu0 %v15373_v10 }
0x1036   :  { %11588 = vmatprep.subr.bf16.mxu0 %v15381_v46 }
0x1039   :  { %11589 = vmatpush3.bf16.msra.mxu0 %v15381_v46 }
0x10ef   :  { %v11496_v60 = vpop.f32.mrb[128].mxu0 }
0x10f0   :  { %v4715_v29 = vadd.f32 %v11496_v60, %v17899_v50  ;;  %v4650_v52 = vpop.f32.mrb[129].mxu0 }
0x10f1   :  { %v4713_v39 = vadd.f32 %v4650_v52, %v17900_v2  ;;  %v11497_v37 = vpop.f32.mrb[130].mxu0 }
0x10f2   :  { %v4731_v48 = vmul.f32 0.020833334, %v4715_v29  ;;  %v4716_v18 = vadd.f32 %v11497_v37, %v17901_v23  ;;  %v4653_v9 = vpop.f32.mrb[131].mxu0 }
0x10f3   :  { %v4729_v20 = vmul.f32 0.020833334, %v4713_v39  ;;  %v4714_v25 = vadd.f32 %v4653_v9, %v17919_v16 }
0x10f4   :  { %v15390_v6 = vadd.f32 %v4731_v48, %v17920_v31  ;;  %v4732_v51 = vmul.f32 0.020833334, %v4716_v18 }
0x10f5   :  { %v15393_v1 = vadd.f32 %v4729_v20, %v17921_v7  ;;  %v4730_v35 = vmul.f32 0.020833334, %v4714_v25 }
0x10f6   :  { %v15396_v17 = vadd.f32 %v4732_v51, %v17922_v19 }
0x10f7   :  { %v15399_v4 = vadd.f32 %v4730_v35, %v15258_v61  ;;  %v11500_v53 = vpop.f32.mrb[132].mxu0 }
0x10f8   :  { %17923 = vst [vmem:[#allocation17_spill] sm:$0xff] %v15396_v17  ;;  %v4719_v24 = vadd.f32 %v11500_v53, %v13397_v30  ;;  %v4666_v49 = vpop.f32.mrb[133].mxu0  ;;  %v4762_v29 = vpack.c.bf16 %v15396_v17, %v15390_v6 }
0x10f9   :  { %17924 = vst [vmem:[#allocation20_spill] sm:$0xff] %v15399_v4  ;;  %v4717_v41 = vadd.f32 %v4666_v49, %v17908_v21  ;;  %v11501_v55 = vpop.f32.mrb[134].mxu0  ;;  %v4761_v56 = vpack.c.bf16 %v15399_v4, %v15393_v1 }
0x10fa   :  { %v4735_v22 = vmul.f32 0.020833334, %v4719_v24  ;;  %v4720_v14 = vadd.f32 %v11501_v55, %v17909_v0  ;;  %v4669_v60 = vpop.f32.mrb[135].mxu0 }
0x10fb   :  { %v4733_v52 = vmul.f32 0.020833334, %v4717_v41  ;;  %v4718_v61 = vadd.f32 %v4669_v60, %v17885_v13  ;;  %11526 = vmatprep.mubr.bf16.mxu1 %v4761_v56  ;;  %11542 = vmatprep.subr.bf16.mxu1 %v4761_v56 }
0x10fc   :  { %v15410_v39 = vadd.f32 %v4735_v22, %v15266_v33  ;;  %v4736_v37 = vmul.f32 0.020833334, %v4720_v14  ;;  %11527 = vmatmul.mubr.bf16.vlgmr.msra.gmra.mrb[128].mxu1 %v4762_v29 }
0x10fd   :  { %v15413_v48 = vadd.f32 %v4733_v52, %v15269_v15  ;;  %v4734_v18 = vmul.f32 0.020833334, %v4718_v61  ;;  %11543 = vmatpush3.bf16.msra.mxu1 %v4761_v56 }
0x10fe   :  { %v15416_v9 = vadd.f32 %v4736_v37, %v15273_v12  ;;  %11544 = vmatprep.subr.bf16.mxu1 %v4762_v29 }
0x10ff   :  { %17925 = vst [vmem:[#allocation22_spill] sm:$0xff] %v15413_v48  ;;  %v15419_v20 = vadd.f32 %v4734_v18, %v15278_v58  ;;  %v11504_v25 = vpop.f32.mrb[136].mxu0 }
0x1100   :  { %v4723_v31 = vadd.f32 %v11504_v25, %v17913_v11  ;;  %v4682_v51 = vpop.f32.mrb[137].mxu0  ;;  %v4764_v53 = vpack.c.bf16 %v15416_v9, %v15410_v39 }
0x1101   :  { %17926 = vst [vmem:[#allocation25_spill] sm:$0xff] %v15419_v20  ;;  %v4721_v33 = vadd.f32 %v4682_v51, %v17888_v38  ;;  %11545 = vmatpush3.bf16.msra.mxu1 %v4762_v29  ;;  %v11505_v7 = vpop.f32.mrb[138].mxu0  ;;  %v4763_v15 = vpack.c.bf16 %v15419_v20, %v15413_v48 }
0x1102   :  { %v4739_v35 = vmul.f32 0.020833334, %v4723_v31  ;;  %v4724_v19 = vadd.f32 %v11505_v7, %v17889_v32  ;;  %v4685_v12 = vpop.f32.mrb[139].mxu0 }
0x1103   :  { %v4737_v58 = vmul.f32 0.020833334, %v4721_v33  ;;  %v4722_v24 = vadd.f32 %v4685_v12, %v17890_v8  ;;  %11530 = vmatprep.mubr.bf16.mxu1 %v4763_v15  ;;  %11546 = vmatprep.subr.bf16.mxu1 %v4763_v15 }
0x1104   :  { %v15430_v49 = vadd.f32 %v4739_v35, %v15286_v5  ;;  %v4740_v41 = vmul.f32 0.020833334, %v4724_v19  ;;  %11531 = vmatmul.mubr.bf16.gmra.mrb[132].mxu1 %v4764_v53 }
0x1105   :  { %v15433_v55 = vadd.f32 %v4737_v58, %v15289_v62  ;;  %v4738_v56 = vmul.f32 0.020833334, %v4722_v24  ;;  %11547 = vmatpush3.bf16.msra.mxu1 %v4763_v15  ;;  %v15497_v58 = vld [vmem:[%s17471_s2 + $0x20] sm:$0xff]   ;;  %v15507_v24 = vld [vmem:[%s17471_s2 + $0x28] sm:$0xff]  }
0x1106   :  { %v15436_v22 = vadd.f32 %v4740_v41, %v15293_v26  ;;  %11548 = vmatprep.subr.bf16.mxu1 %v4764_v53  ;;  %17928 = vst [vmem:[#allocation18_spill] sm:$0xff] %v15507_v24  ;;  %v15513_v41 = vld [vmem:[%s17471_s2 + $0x30] sm:$0xff]  }
0x1107   :  { %v15439_v14 = vadd.f32 %v4738_v56, %v15298_v54  ;;  %v11508_v60 = vpop.f32.mrb[140].mxu0  ;;  %17929 = vst [vmem:[#allocation23_spill] sm:$0xff] %v15513_v41  ;;  %v15523_v56 = vld [vmem:[%s17471_s2 + $0x38] sm:$0xff]  }
0x1108   :  { %v4727_v29 = vadd.f32 %v11508_v60, %v13421_v42  ;;  %v4698_v52 = vpop.f32.mrb[141].mxu0  ;;  %v4766_v25 = vpack.c.bf16 %v15436_v22, %v15430_v49  ;;  %17930 = vst [vmem:[#allocation15_spill] sm:$0xff] %v15523_v56 }
0x1109   :  { %17927 = vst [vmem:[#allocation21_spill] sm:$0xff] %v15439_v14  ;;  %v4725_v5 = vadd.f32 %v4698_v52, %v13423_v43  ;;  %11549 = vmatpush3.bf16.msra.mxu1 %v4764_v53  ;;  %v11509_v61 = vpop.f32.mrb[142].mxu0  ;;  %v4765_v62 = vpack.c.bf16 %v15439_v14, %v15433_v55  ;;  %v15491_v53 = vld [vmem:[%s17471_s2 + $0x18] sm:$0xff]  }
0x110a   :  { %v4743_v37 = vmul.f32 0.020833334, %v4727_v29  ;;  %v4728_v18 = vadd.f32 %v11509_v61, %v13425_v44  ;;  %v4701_v26 = vpop.f32.mrb[143].mxu0 }
0x110b   :  { %v4741_v54 = vmul.f32 0.020833334, %v4725_v5  ;;  %v4726_v31 = vadd.f32 %v4701_v26, %v13427_v45  ;;  %11534 = vmatprep.mubr.bf16.mxu1 %v4765_v62  ;;  %11550 = vmatprep.subr.bf16.mxu1 %v4765_v62 }
0x110c   :  { %v15450_v51 = vadd.f32 %v4743_v37, %v15306_v59  ;;  %v4744_v33 = vmul.f32 0.020833334, %v4728_v18  ;;  %11535 = vmatmul.mubr.bf16.gmra.mrb[136].mxu1 %v4766_v25 }
0x110d   :  { %v15453_v7 = vadd.f32 %v4741_v54, %v15309_v57  ;;  %v4742_v15 = vmul.f32 0.020833334, %v4726_v31  ;;  %11551 = vmatpush3.bf16.msra.mxu1 %v4765_v62  ;;  %v15468_v57 = vld [vmem:[%s17471_s2] sm:$0xff]  }
0x110e   :  { %v15456_v35 = vadd.f32 %v4744_v33, %v15313_v63  ;;  %11552 = vmatprep.subr.bf16.mxu1 %v4766_v25  ;;  %v15475_v63 = vld [vmem:[%s17471_s2 + $0x8] sm:$0xff]  }
0x110f   :  { %v15459_v19 = vadd.f32 %v4742_v15, %v15318_v28  ;;  %v15481_v28 = vld [vmem:[%s17471_s2 + $0x10] sm:$0xff]  }
0x1110   :  { %v4768_v59 = vpack.c.bf16 %v15456_v35, %v15450_v51 }
0x1111   :  { %11553 = vmatpush3.bf16.msra.mxu1 %v4766_v25  ;;  %v4767_v12 = vpack.c.bf16 %v15459_v19, %v15453_v7 }
0x1113   :  { %11538 = vmatprep.mubr.bf16.mxu1 %v4767_v12  ;;  %11554 = vmatprep.subr.bf16.mxu1 %v4767_v12 }
0x1114   :  { %11539 = vmatmul.mubr.bf16.gmra.mrb[140].mxu1 %v4768_v59 }
0x1115   :  { %11555 = vmatpush3.bf16.msra.mxu1 %v4767_v12  ;;  %11558 = vmatprep.mubr.bf16.mxu1 %v15468_v57 }
0x1116   :  { %11556 = vmatprep.subr.bf16.mxu1 %v4768_v59 }
0x1119   :  { %11557 = vmatpush3.bf16.msra.mxu1 %v4768_v59 }
0x111a   :  { %11638 = vmatprep.subr.bf16.mxu1 %v15325_v36 }
0x111c   :  { %11559 = vmatmul.mubr.bf16.vlgmr.msra.gmra.mrb[128].mxu1 %v15475_v63 }
0x111d   :  { %11562 = vmatprep.mubr.bf16.mxu1 %v15481_v28  ;;  %11639 = vmatpush3.bf16.msra.mxu1 %v15325_v36 }
0x111e   :  { %11640 = vmatprep.subr.bf16.mxu1 %v15334_v27 }
0x1121   :  { %11641 = vmatpush3.bf16.msra.mxu1 %v15334_v27 }
0x1122   :  { %11642 = vmatprep.subr.bf16.mxu1 %v15341_v3 }
0x1124   :  { %11563 = vmatmul.mubr.bf16.gmra.mrb[132].mxu1 %v15491_v53 }
0x1125   :  { %11566 = vmatprep.mubr.bf16.mxu1 %v15497_v58  ;;  %11643 = vmatpush3.bf16.msra.mxu1 %v15341_v3 }
0x1126   :  { %11644 = vmatprep.subr.bf16.mxu1 %v15350_v34 }
0x1129   :  { %11645 = vmatpush3.bf16.msra.mxu1 %v15350_v34 }
0x112a   :  { %11646 = vmatprep.subr.bf16.mxu1 %v15357_v47 }
0x112c   :  { %11567 = vmatmul.mubr.bf16.gmra.mrb[136].mxu1 %v15507_v24 }
0x112d   :  { %11570 = vmatprep.mubr.bf16.mxu1 %v15513_v41  ;;  %11647 = vmatpush3.bf16.msra.mxu1 %v15357_v47 }
0x112e   :  { %11648 = vmatprep.subr.bf16.mxu1 %v15366_v40 }
0x1131   :  { %11649 = vmatpush3.bf16.msra.mxu1 %v15366_v40 }
0x1132   :  { %11650 = vmatprep.subr.bf16.mxu1 %v15373_v10 }
0x1134   :  { %11571 = vmatmul.mubr.bf16.gmra.mrb[140].mxu1 %v15523_v56 }
0x1135   :  { %11651 = vmatpush3.bf16.msra.mxu1 %v15373_v10 }
0x1136   :  { %11652 = vmatprep.subr.bf16.mxu1 %v15381_v46 }
0x1139   :  { %11653 = vmatpush3.bf16.msra.mxu1 %v15381_v46 }
0x11ef   :  { %v11560_v60 = vpop.f32.mrb[128].mxu1 }
0x11f0   :  { %v15530_v29 = vadd.f32 %v11560_v60, %v17899_v50  ;;  %v4900_v52 = vpop.f32.mrb[129].mxu1 }
0x11f1   :  { %v15533_v5 = vadd.f32 %v4900_v52, %v17900_v2  ;;  %v11561_v61 = vpop.f32.mrb[130].mxu1 }
0x11f2   :  { %v5013_v62 = vmul.f32 0.0625, %v15530_v29  ;;  %v15537_v37 = vadd.f32 %v11561_v61, %v17901_v23  ;;  %v4903_v18 = vpop.f32.mrb[131].mxu1 }
0x11f3   :  { %v5011_v26 = vmul.f32 0.0625, %v15533_v5  ;;  %v15541_v25 = vadd.f32 %v4903_v18, %v17919_v16 }
0x11f4   :  { %v5014_v54 = vmul.f32 0.0625, %v15537_v37  ;;  %v5029_v33 = vadd.f32 %v5013_v62, %v15390_v6 }
0x11f5   :  { %17931 = vst [vmem:[#allocation19_spill] sm:$0xff] %v15541_v25  ;;  %v5012_v31 = vmul.f32 0.0625, %v15541_v25  ;;  %v5027_v12 = vadd.f32 %v5011_v26, %v15393_v1 }
0x11f6   :  { %v5030_v15 = vadd.f32 %v5014_v54, %v15396_v17 }
0x11f7   :  { %v5028_v59 = vadd.f32 %v5012_v31, %v15399_v4  ;;  %v11564_v60 = vpop.f32.mrb[132].mxu1 }
0x11f8   :  { %v5044_v52 = vpack.c.bf16 %v5030_v15, %v5029_v33  ;;  %v15550_v61 = vadd.f32 %v11564_v60, %v13397_v30  ;;  %v4916_v23 = vpop.f32.mrb[133].mxu1 }
0x11f9   :  { %v15553_v18 = vadd.f32 %v4916_v23, %v17908_v21  ;;  %v11565_v16 = vpop.f32.mrb[134].mxu1  ;;  %v5043_v2 = vpack.c.bf16 %v5028_v59, %v5027_v12 }
0x11fa   :  { %v5017_v25 = vmul.f32 0.0625, %v15550_v61  ;;  %v15557_v62 = vadd.f32 %v11565_v16, %v17909_v0  ;;  %v4919_v54 = vpop.f32.mrb[135].mxu1 }
0x11fb   :  { %v5015_v26 = vmul.f32 0.0625, %v15553_v18  ;;  %v15561_v31 = vadd.f32 %v4919_v54, %v17885_v13  ;;  %11590 = vmatprep.mubr.bf16.mxu0 %v5043_v2  ;;  %11606 = vmatprep.subr.bf16.mxu0 %v5043_v2 }
0x11fc   :  { %v5018_v33 = vmul.f32 0.0625, %v15557_v62  ;;  %11591 = vmatmul.mubr.bf16.vlgmr.msra.gmra.mrb[144].mxu0 %v5044_v52  ;;  %v5033_v15 = vadd.f32 %v5017_v25, %v15410_v39 }
0x11fd   :  { %17932 = vst [vmem:[#allocation26_spill] sm:$0xff] %v15561_v31  ;;  %v5016_v23 = vmul.f32 0.0625, %v15561_v31  ;;  %11607 = vmatpush3.bf16.msra.mxu0 %v5043_v2  ;;  %v5031_v16 = vadd.f32 %v5015_v26, %v15413_v48 }
0x11fe   :  { %v5034_v12 = vadd.f32 %v5018_v33, %v15416_v9  ;;  %11608 = vmatprep.subr.bf16.mxu0 %v5044_v52 }
0x11ff   :  { %v5032_v59 = vadd.f32 %v5016_v23, %v15419_v20  ;;  %v11568_v60 = vpop.f32.mrb[136].mxu1 }
0x1200   :  { %v15570_v54 = vadd.f32 %v11568_v60, %v17913_v11  ;;  %v4932_v13 = vpop.f32.mrb[137].mxu1  ;;  %v5046_v0 = vpack.c.bf16 %v5034_v12, %v5033_v15 }
0x1201   :  { %v15573_v21 = vadd.f32 %v4932_v13, %v17888_v38  ;;  %11609 = vmatpush3.bf16.msra.mxu0 %v5044_v52  ;;  %v11569_v2 = vpop.f32.mrb[138].mxu1  ;;  %v5045_v31 = vpack.c.bf16 %v5032_v59, %v5031_v16 }
0x1202   :  { %v5021_v25 = vmul.f32 0.0625, %v15570_v54  ;;  %v15577_v33 = vadd.f32 %v11569_v2, %v17889_v32  ;;  %v4935_v26 = vpop.f32.mrb[139].mxu1 }
0x1203   :  { %v5019_v23 = vmul.f32 0.0625, %v15573_v21  ;;  %v15581_v20 = vadd.f32 %v4935_v26, %v17890_v8  ;;  %11594 = vmatprep.mubr.bf16.mxu0 %v5045_v31  ;;  %11610 = vmatprep.subr.bf16.mxu0 %v5045_v31 }
0x1204   :  { %v5022_v15 = vmul.f32 0.0625, %v15577_v33  ;;  %11595 = vmatmul.mubr.bf16.gmra.mrb[148].mxu0 %v5046_v0  ;;  %v5037_v52 = vadd.f32 %v5021_v25, %v15430_v49 }
0x1205   :  { %v5020_v13 = vmul.f32 0.0625, %v15581_v20  ;;  %11611 = vmatpush3.bf16.msra.mxu0 %v5045_v31  ;;  %v5035_v16 = vadd.f32 %v5019_v23, %v15433_v55 }
0x1206   :  { %v5038_v12 = vadd.f32 %v5022_v15, %v15436_v22  ;;  %11612 = vmatprep.subr.bf16.mxu0 %v5046_v0 }
0x1207   :  { %v5036_v59 = vadd.f32 %v5020_v13, %v15439_v14  ;;  %v11572_v60 = vpop.f32.mrb[140].mxu1 }
0x1208   :  { %v15590_v2 = vadd.f32 %v11572_v60, %v13421_v42  ;;  %v4948_v26 = vpop.f32.mrb[141].mxu1  ;;  %v5048_v8 = vpack.c.bf16 %v5038_v12, %v5037_v52 }
0x1209   :  { %v15593_v32 = vadd.f32 %v4948_v26, %v13423_v43  ;;  %11613 = vmatpush3.bf16.msra.mxu0 %v5046_v0  ;;  %v11573_v31 = vpop.f32.mrb[142].mxu1  ;;  %v5047_v38 = vpack.c.bf16 %v5036_v59, %v5035_v16 }
0x120a   :  { %v5025_v25 = vmul.f32 0.0625, %v15590_v2  ;;  %v15597_v15 = vadd.f32 %v11573_v31, %v13425_v44  ;;  %v4951_v23 = vpop.f32.mrb[143].mxu1 }
0x120b   :  { %v5023_v13 = vmul.f32 0.0625, %v15593_v32  ;;  %v15601_v14 = vadd.f32 %v4951_v23, %v13427_v45  ;;  %11598 = vmatprep.mubr.bf16.mxu0 %v5047_v38  ;;  %11614 = vmatprep.subr.bf16.mxu0 %v5047_v38  ;;  %v4982_v23 = vmul.f32 0.020833334, %v15537_v37  ;;  %v17936_v37 = vld [vmem:[#allocation6_spill] sm:$0xff] }
0x120c   :  { %v5026_v52 = vmul.f32 0.0625, %v15597_v15  ;;  %11599 = vmatmul.mubr.bf16.gmra.mrb[152].mxu0 %v5048_v8  ;;  %v5041_v12 = vadd.f32 %v5025_v25, %v15450_v51 }
0x120d   :  { %v5024_v0 = vmul.f32 0.0625, %v15601_v14  ;;  %11615 = vmatpush3.bf16.msra.mxu0 %v5047_v38  ;;  %v5039_v59 = vadd.f32 %v5023_v13, %v15453_v7  ;;  %v4979_v38 = vmul.f32 0.020833334, %v15533_v5 }
0x120e   :  { %v5042_v16 = vadd.f32 %v5026_v52, %v15456_v35  ;;  %11616 = vmatprep.subr.bf16.mxu0 %v5048_v8 }
0x120f   :  { %v5040_v60 = vadd.f32 %v5024_v0, %v15459_v19  ;;  %v17933_v0 = vld [vmem:[#allocation19_spill] sm:$0xff]  ;;  %v4995_v5 = vadd.f32 %v4979_v38, %v15393_v1 }
0x1210   :  { %v5050_v26 = vpack.c.bf16 %v5042_v16, %v5041_v12  ;;  %v4980_v12 = vmul.f32 0.020833334, %v17933_v0  ;;  %v17934_v16 = vld [vmem:[#allocation4_spill] sm:$0xff] }
0x1211   :  { %11617 = vmatpush3.bf16.msra.mxu0 %v5048_v8  ;;  %v5049_v31 = vpack.c.bf16 %v5040_v60, %v5039_v59  ;;  %v4981_v8 = vmul.f32 0.020833334, %v15530_v29 }
0x1213   :  { %11602 = vmatprep.mubr.bf16.mxu0 %v5049_v31  ;;  %11618 = vmatprep.subr.bf16.mxu0 %v5049_v31 }
0x1214   :  { %11603 = vmatmul.mubr.bf16.gmra.mrb[156].mxu0 %v5050_v26 }
0x1215   :  { %11619 = vmatpush3.bf16.msra.mxu0 %v5049_v31  ;;  %11622 = vmatprep.mubr.bf16.mxu0 %v15468_v57 }
0x1216   :  { %11620 = vmatprep.subr.bf16.mxu0 %v5050_v26 }
0x1219   :  { %11621 = vmatpush3.bf16.msra.mxu0 %v5050_v26  ;;  %v4997_v26 = vadd.f32 %v4981_v8, %v15390_v6 }
0x121a   :  { %11702 = vmatprep.subr.bf16.mxu0 %v15325_v36 }
0x121c   :  { %11623 = vmatmul.mubr.bf16.vlgmr.msra.gmra.mrb[144].mxu0 %v15475_v63 }
0x121d   :  { %11626 = vmatprep.mubr.bf16.mxu0 %v15481_v28  ;;  %11703 = vmatpush3.bf16.msra.mxu0 %v15325_v36 }
0x121e   :  { %11704 = vmatprep.subr.bf16.mxu0 %v15334_v27 }
0x1221   :  { %11705 = vmatpush3.bf16.msra.mxu0 %v15334_v27 }
0x1222   :  { %11706 = vmatprep.subr.bf16.mxu0 %v15341_v3 }
0x1224   :  { %11627 = vmatmul.mubr.bf16.gmra.mrb[148].mxu0 %v15491_v53 }
0x1225   :  { %11630 = vmatprep.mubr.bf16.mxu0 %v15497_v58  ;;  %11707 = vmatpush3.bf16.msra.mxu0 %v15341_v3 }
0x1226   :  { %11708 = vmatprep.subr.bf16.mxu0 %v15350_v34 }
0x1229   :  { %11709 = vmatpush3.bf16.msra.mxu0 %v15350_v34 }
0x122a   :  { %11710 = vmatprep.subr.bf16.mxu0 %v15357_v47 }
0x122c   :  { %11631 = vmatmul.mubr.bf16.gmra.mrb[152].mxu0 %v15507_v24 }
0x122d   :  { %11634 = vmatprep.mubr.bf16.mxu0 %v15513_v41  ;;  %11711 = vmatpush3.bf16.msra.mxu0 %v15357_v47 }
0x122e   :  { %11712 = vmatprep.subr.bf16.mxu0 %v15366_v40 }
0x1231   :  { %11713 = vmatpush3.bf16.msra.mxu0 %v15366_v40 }
0x1232   :  { %11714 = vmatprep.subr.bf16.mxu0 %v15373_v10 }
0x1234   :  { %11635 = vmatmul.mubr.bf16.gmra.mrb[156].mxu0 %v15523_v56 }
0x1235   :  { %11715 = vmatpush3.bf16.msra.mxu0 %v15373_v10 }
0x1236   :  { %11716 = vmatprep.subr.bf16.mxu0 %v15381_v46 }
0x1239   :  { %11717 = vmatpush3.bf16.msra.mxu0 %v15381_v46  ;;  %v17935_v46 = vld [vmem:[#allocation5_spill] sm:$0xff] }
0x12ef   :  { %v11624_v25 = vpop.f32.mrb[144].mxu0 }
0x12f0   :  { %v5247_v13 = vadd.f32 %v11624_v25, %v17899_v50  ;;  %v5182_v52 = vpop.f32.mrb[145].mxu0  ;;  %v4998_v25 = vadd.f32 %v4982_v23, %v15396_v17  ;;  %v4983_v23 = vmul.f32 0.020833334, %v15553_v18 }
0x12f1   :  { %v5245_v59 = vadd.f32 %v5182_v52, %v17934_v16  ;;  %v11625_v60 = vpop.f32.mrb[146].mxu0  ;;  %v4996_v16 = vadd.f32 %v4980_v12, %v15399_v4  ;;  %v4986_v12 = vmul.f32 0.020833334, %v15557_v62 }
0x12f2   :  { %v5263_v31 = vmul.f32 0.041666668, %v5247_v13  ;;  %v5295_v56 = vmul.f32 0.0625, %v5247_v13  ;;  %v5248_v10 = vadd.f32 %v11625_v60, %v17935_v46  ;;  %v5185_v29 = vpop.f32.mrb[147].mxu0  ;;  %v4985_v60 = vmul.f32 0.020833334, %v15550_v61 }
0x12f3   :  { %v5261_v40 = vmul.f32 0.041666668, %v5245_v59  ;;  %v5293_v41 = vmul.f32 0.0625, %v5245_v59  ;;  %v5246_v24 = vadd.f32 %v5185_v29, %v17936_v37 }
0x12f4   :  { %v15644_v50 = vadd.f32 %v5263_v31, %v4997_v26  ;;  %v5264_v0 = vmul.f32 0.041666668, %v5248_v10  ;;  %v5296_v52 = vmul.f32 0.0625, %v5248_v10  ;;  %v5311_v38 = vadd.f32 %v5295_v56, %v15390_v6  ;;  %v17938_v56 = vld [vmem:[#allocation26_spill] sm:$0xff] }
0x12f5   :  { %v15647_v8 = vadd.f32 %v5261_v40, %v4995_v5  ;;  %v5262_v13 = vmul.f32 0.041666668, %v5246_v24  ;;  %v5294_v47 = vmul.f32 0.0625, %v5246_v24  ;;  %v5309_v26 = vadd.f32 %v5293_v41, %v15393_v1 }
0x12f6   :  { %v15651_v46 = vadd.f32 %v5264_v0, %v4998_v25  ;;  %v5312_v59 = vadd.f32 %v5296_v52, %v15396_v17  ;;  %v4984_v5 = vmul.f32 0.020833334, %v17938_v56  ;;  %v17939_v25 = vld [vmem:[#allocation7_spill] sm:$0xff]  ;;  %v5001_v18 = vadd.f32 %v4985_v60, %v15410_v39  ;;  %v17942_v60 = vld [vmem:[#allocation25_spill] sm:$0xff] }
0x12f7   :  { %v15656_v31 = vadd.f32 %v5262_v13, %v4996_v16  ;;  %v5310_v10 = vadd.f32 %v5294_v47, %v15399_v4  ;;  %v11628_v40 = vpop.f32.mrb[148].mxu0  ;;  %v17940_v13 = vld [vmem:[#allocation8_spill] sm:$0xff]  ;;  %v4999_v4 = vadd.f32 %v4983_v23, %v15413_v48  ;;  %v5002_v56 = vadd.f32 %v4986_v12, %v15416_v9 }
0x12f8   :  { %v5326_v24 = vpack.c.bf16 %v5312_v59, %v5311_v38  ;;  %v5251_v61 = vadd.f32 %v11628_v40, %v13397_v30  ;;  %v5198_v29 = vpop.f32.mrb[149].mxu0  ;;  %v17941_v59 = vld [vmem:[#allocation9_spill] sm:$0xff]  ;;  %v4989_v23 = vmul.f32 0.020833334, %v15570_v54 }
0x12f9   :  { %17937 = vst [vmem:[#allocation19_spill] sm:$0xff] %v15656_v31  ;;  %v5249_v0 = vadd.f32 %v5198_v29, %v17939_v25  ;;  %v11629_v52 = vpop.f32.mrb[150].mxu0  ;;  %v5325_v17 = vpack.c.bf16 %v5310_v10, %v5309_v26 }
0x12fa   :  { %v5267_v41 = vmul.f32 0.041666668, %v5251_v61  ;;  %v5299_v16 = vmul.f32 0.0625, %v5251_v61  ;;  %v5252_v31 = vadd.f32 %v11629_v52, %v17940_v13  ;;  %v5201_v47 = vpop.f32.mrb[151].mxu0  ;;  %v5000_v61 = vadd.f32 %v4984_v5, %v17942_v60 }
0x12fb   :  { %v5265_v62 = vmul.f32 0.041666668, %v5249_v0  ;;  %v5297_v38 = vmul.f32 0.0625, %v5249_v0  ;;  %v5250_v40 = vadd.f32 %v5201_v47, %v17941_v59  ;;  %11654 = vmatprep.mubr.bf16.mxu1 %v5325_v17  ;;  %11670 = vmatprep.subr.bf16.mxu1 %v5325_v17 }
0x12fc   :  { %v15668_v29 = vadd.f32 %v5267_v41, %v5001_v18  ;;  %v5268_v26 = vmul.f32 0.041666668, %v5252_v31  ;;  %v5300_v10 = vmul.f32 0.0625, %v5252_v31  ;;  %11655 = vmatmul.mubr.bf16.vlgmr.msra.gmra.mrb[144].mxu1 %v5326_v24  ;;  %v5315_v0 = vadd.f32 %v5299_v16, %v15410_v39 }
0x12fd   :  { %v15671_v25 = vadd.f32 %v5265_v62, %v4999_v4  ;;  %v5266_v52 = vmul.f32 0.041666668, %v5250_v40  ;;  %v5298_v13 = vmul.f32 0.0625, %v5250_v40  ;;  %11671 = vmatpush3.bf16.msra.mxu1 %v5325_v17  ;;  %v4987_v18 = vmul.f32 0.020833334, %v15573_v21 }
0x12fe   :  { %v15675_v47 = vadd.f32 %v5268_v26, %v5002_v56  ;;  %v5316_v12 = vadd.f32 %v5300_v10, %v15416_v9  ;;  %11672 = vmatprep.subr.bf16.mxu1 %v5326_v24  ;;  %v5313_v31 = vadd.f32 %v5297_v38, %v15413_v48  ;;  %v4990_v17 = vmul.f32 0.020833334, %v15577_v33  ;;  %v17944_v56 = vld [vmem:[#allocation11_spill] sm:$0xff] }
0x12ff   :  { %v15680_v41 = vadd.f32 %v5266_v52, %v5000_v61  ;;  %v5314_v4 = vadd.f32 %v5298_v13, %v17942_v60  ;;  %v11632_v5 = vpop.f32.mrb[152].mxu0  ;;  %v4988_v40 = vmul.f32 0.020833334, %v15581_v20  ;;  %v5005_v38 = vadd.f32 %v4989_v23, %v15430_v49  ;;  %v17947_v23 = vld [vmem:[#allocation21_spill] sm:$0xff] }
0x1300   :  { %v5255_v54 = vadd.f32 %v11632_v5, %v17913_v11  ;;  %v5214_v62 = vpop.f32.mrb[153].mxu0  ;;  %v5328_v16 = vpack.c.bf16 %v5316_v12, %v5315_v0  ;;  %v5003_v33 = vadd.f32 %v4987_v18, %v15433_v55  ;;  %v17946_v11 = vld [vmem:[#allocation13_spill] sm:$0xff]  ;;  %v5006_v20 = vadd.f32 %v4990_v17, %v15436_v22 }
0x1301   :  { %17943 = vst [vmem:[#allocation26_spill] sm:$0xff] %v15680_v41  ;;  %v5253_v26 = vadd.f32 %v5214_v62, %v17944_v56  ;;  %11673 = vmatpush3.bf16.msra.mxu1 %v5326_v24  ;;  %v11633_v10 = vpop.f32.mrb[154].mxu0  ;;  %v5327_v21 = vpack.c.bf16 %v5314_v4, %v5313_v31  ;;  %v17945_v41 = vld [vmem:[#allocation12_spill] sm:$0xff]  ;;  %v5004_v4 = vadd.f32 %v4988_v40, %v17947_v23  ;;  %v4993_v18 = vmul.f32 0.020833334, %v15590_v2 }
0x1302   :  { %v5271_v61 = vmul.f32 0.041666668, %v5255_v54  ;;  %v5303_v52 = vmul.f32 0.0625, %v5255_v54  ;;  %v5256_v13 = vadd.f32 %v11633_v10, %v17945_v41  ;;  %v5217_v60 = vpop.f32.mrb[155].mxu0 }
0x1303   :  { %v5269_v48 = vmul.f32 0.041666668, %v5253_v26  ;;  %v5301_v5 = vmul.f32 0.0625, %v5253_v26  ;;  %v5254_v0 = vadd.f32 %v5217_v60, %v17946_v11  ;;  %11658 = vmatprep.mubr.bf16.mxu1 %v5327_v21  ;;  %11674 = vmatprep.subr.bf16.mxu1 %v5327_v21 }
0x1304   :  { %v15692_v24 = vadd.f32 %v5271_v61, %v5005_v38  ;;  %v5272_v12 = vmul.f32 0.041666668, %v5256_v13  ;;  %v5304_v31 = vmul.f32 0.0625, %v5256_v13  ;;  %11659 = vmatmul.mubr.bf16.gmra.mrb[148].mxu1 %v5328_v16  ;;  %v5319_v60 = vadd.f32 %v5303_v52, %v15430_v49 }
0x1305   :  { %v15695_v54 = vadd.f32 %v5269_v48, %v5003_v33  ;;  %v5270_v62 = vmul.f32 0.041666668, %v5254_v0  ;;  %v5302_v10 = vmul.f32 0.0625, %v5254_v0  ;;  %11675 = vmatpush3.bf16.msra.mxu1 %v5327_v21  ;;  %v4991_v38 = vmul.f32 0.020833334, %v15593_v32 }
0x1306   :  { %v15699_v26 = vadd.f32 %v5272_v12, %v5006_v20  ;;  %v5320_v17 = vadd.f32 %v5304_v31, %v15436_v22  ;;  %11676 = vmatprep.subr.bf16.mxu1 %v5328_v16  ;;  %v5317_v61 = vadd.f32 %v5301_v5, %v15433_v55  ;;  %v4994_v21 = vmul.f32 0.020833334, %v15597_v15 }
0x1307   :  { %v15704_v13 = vadd.f32 %v5270_v62, %v5004_v4  ;;  %v5318_v48 = vadd.f32 %v5302_v10, %v17947_v23  ;;  %v11636_v40 = vpop.f32.mrb[156].mxu0  ;;  %v4992_v0 = vmul.f32 0.020833334, %v15601_v14  ;;  %v5009_v5 = vadd.f32 %v4993_v18, %v15450_v51 }
0x1308   :  { %v5259_v2 = vadd.f32 %v11636_v40, %v13421_v42  ;;  %v5230_v33 = vpop.f32.mrb[157].mxu0  ;;  %v5330_v52 = vpack.c.bf16 %v5320_v17, %v5319_v60  ;;  %v5007_v15 = vadd.f32 %v4991_v38, %v15453_v7  ;;  %v5010_v14 = vadd.f32 %v4994_v21, %v15456_v35 }
0x1309   :  { %v5257_v20 = vadd.f32 %v5230_v33, %v13423_v43  ;;  %11677 = vmatpush3.bf16.msra.mxu1 %v5328_v16  ;;  %v11637_v12 = vpop.f32.mrb[158].mxu0  ;;  %v5329_v32 = vpack.c.bf16 %v5318_v48, %v5317_v61  ;;  %v5008_v18 = vadd.f32 %v4992_v0, %v15459_v19  ;;  %v17949_v0 = vld [vmem:[#allocation18_spill] sm:$0xff] }
0x130a   :  { %v5275_v31 = vmul.f32 0.041666668, %v5259_v2  ;;  %v5307_v4 = vmul.f32 0.0625, %v5259_v2  ;;  %v5260_v62 = vadd.f32 %v11637_v12, %v13425_v44  ;;  %v5233_v10 = vpop.f32.mrb[159].mxu0 }
0x130b   :  { %v5273_v23 = vmul.f32 0.041666668, %v5257_v20  ;;  %v5305_v40 = vmul.f32 0.0625, %v5257_v20  ;;  %v5258_v60 = vadd.f32 %v5233_v10, %v13427_v45  ;;  %11662 = vmatprep.mubr.bf16.mxu1 %v5329_v32  ;;  %11678 = vmatprep.subr.bf16.mxu1 %v5329_v32  ;;  %v17955_v10 = vld [vmem:[#allocation3_spill] sm:$0xff] }
0x130c   :  { %v15716_v16 = vadd.f32 %v5275_v31, %v5009_v5  ;;  %v5276_v17 = vmul.f32 0.041666668, %v5260_v62  ;;  %v5308_v61 = vmul.f32 0.0625, %v5260_v62  ;;  %11663 = vmatmul.mubr.bf16.gmra.mrb[152].mxu1 %v5330_v52  ;;  %v5323_v38 = vadd.f32 %v5307_v4, %v15450_v51  ;;  %v17953_v4 = vld [vmem:[#allocation15_spill] sm:$0xff] }
0x130d   :  { %v15719_v48 = vadd.f32 %v5273_v23, %v5007_v15  ;;  %v5274_v2 = vmul.f32 0.041666668, %v5258_v60  ;;  %v5306_v33 = vmul.f32 0.0625, %v5258_v60  ;;  %11679 = vmatpush3.bf16.msra.mxu1 %v5329_v32  ;;  %v5321_v21 = vadd.f32 %v5305_v40, %v15453_v7  ;;  %v17952_v32 = vld [vmem:[#allocation14_spill] sm:$0xff]  ;;  %v17956_v60 = vld [vmem:[#allocation4_spill] sm:$0xff] }
0x130e   :  { %v15722_v20 = vadd.f32 %v5276_v17, %v5010_v14  ;;  %v5324_v12 = vadd.f32 %v5308_v61, %v15456_v35  ;;  %11680 = vmatprep.subr.bf16.mxu1 %v5330_v52 }
0x130f   :  { %v15726_v5 = vadd.f32 %v5274_v2, %v5008_v18  ;;  %v5322_v31 = vadd.f32 %v5306_v33, %v15459_v19  ;;  %v17957_v2 = vld [vmem:[#allocation5_spill] sm:$0xff] }
0x1310   :  { %v5332_v62 = vpack.c.bf16 %v5324_v12, %v5323_v38 }
0x1311   :  { %11681 = vmatpush3.bf16.msra.mxu1 %v5330_v52  ;;  %v5331_v23 = vpack.c.bf16 %v5322_v31, %v5321_v21  ;;  %v17948_v52 = vld [vmem:[#allocation24_spill] sm:$0xff] }
0x1313   :  { %11666 = vmatprep.mubr.bf16.mxu1 %v5331_v23  ;;  %11682 = vmatprep.subr.bf16.mxu1 %v5331_v23 }
0x1314   :  { %11667 = vmatmul.mubr.bf16.gmra.mrb[156].mxu1 %v5332_v62 }
0x1315   :  { %11683 = vmatpush3.bf16.msra.mxu1 %v5331_v23  ;;  %11686 = vmatprep.mubr.bf16.mxu1 %v15468_v57 }
0x1316   :  { %11684 = vmatprep.subr.bf16.mxu1 %v5332_v62 }
0x1319   :  { %11685 = vmatpush3.bf16.msra.mxu1 %v5332_v62 }
0x131a   :  { %11766 = vmatprep.subr.bf16.mxu1 %v15325_v36 }
0x131c   :  { %11687 = vmatmul.mubr.bf16.vlgmr.msra.gmra.mrb[144].mxu1 %v15475_v63 }
0x131d   :  { %11690 = vmatprep.mubr.bf16.mxu1 %v15481_v28  ;;  %11767 = vmatpush3.bf16.msra.mxu1 %v15325_v36  ;;  %v17950_v36 = vld [vmem:[#allocation23_spill] sm:$0xff] }
0x131e   :  { %11768 = vmatprep.subr.bf16.mxu1 %v15334_v27 }
0x1321   :  { %11769 = vmatpush3.bf16.msra.mxu1 %v15334_v27  ;;  %v17951_v27 = vld [vmem:[#allocation2_spill] sm:$0xff] }
0x1322   :  { %11770 = vmatprep.subr.bf16.mxu1 %v15341_v3 }
0x1324   :  { %11691 = vmatmul.mubr.bf16.gmra.mrb[148].mxu1 %v15491_v53 }
0x1325   :  { %11694 = vmatprep.mubr.bf16.mxu1 %v15497_v58  ;;  %11771 = vmatpush3.bf16.msra.mxu1 %v15341_v3  ;;  %v17954_v3 = vld [vmem:[#allocation16_spill] sm:$0xff] }
0x1326   :  { %11772 = vmatprep.subr.bf16.mxu1 %v15350_v34 }
0x1329   :  { %11773 = vmatpush3.bf16.msra.mxu1 %v15350_v34 }
0x132a   :  { %11774 = vmatprep.subr.bf16.mxu1 %v17948_v52 }
0x132c   :  { %11695 = vmatmul.mubr.bf16.gmra.mrb[152].mxu1 %v17949_v0 }
0x132d   :  { %11698 = vmatprep.mubr.bf16.mxu1 %v17950_v36  ;;  %11775 = vmatpush3.bf16.msra.mxu1 %v17948_v52 }
0x132e   :  { %11776 = vmatprep.subr.bf16.mxu1 %v17951_v27 }
0x1331   :  { %11777 = vmatpush3.bf16.msra.mxu1 %v17951_v27 }
0x1332   :  { %11778 = vmatprep.subr.bf16.mxu1 %v17952_v32 }
0x1334   :  { %11699 = vmatmul.mubr.bf16.gmra.mrb[156].mxu1 %v17953_v4 }
0x1335   :  { %11779 = vmatpush3.bf16.msra.mxu1 %v17952_v32 }
0x1336   :  { %11780 = vmatprep.subr.bf16.mxu1 %v17954_v3 }
0x1339   :  { %11781 = vmatpush3.bf16.msra.mxu1 %v17954_v3 }
0x13ef   :  { %v11688_v34 = vpop.f32.mrb[144].mxu1 }
0x13f0   :  { %v5529_v15 = vadd.f32 %v11688_v34, %v17955_v10  ;;  %v5464_v40 = vpop.f32.mrb[145].mxu1 }
0x13f1   :  { %v5527_v14 = vadd.f32 %v5464_v40, %v17956_v60  ;;  %v11689_v17 = vpop.f32.mrb[146].mxu1  ;;  %v17961_v40 = vld [vmem:[#allocation17_spill] sm:$0xff] }
0x13f2   :  { %v5545_v61 = vmul.f32 0.041666668, %v5529_v15  ;;  %v5577_v18 = vmul.f32 0.125, %v5529_v15  ;;  %v5530_v33 = vadd.f32 %v11689_v17, %v17957_v2  ;;  %v5467_v38 = vpop.f32.mrb[147].mxu1 }
0x13f3   :  { %v5543_v12 = vmul.f32 0.041666668, %v5527_v14  ;;  %v5575_v21 = vmul.f32 0.125, %v5527_v14  ;;  %v5528_v31 = vadd.f32 %v5467_v38, %v17936_v37  ;;  %v17962_v38 = vld [vmem:[#allocation19_spill] sm:$0xff] }
0x13f4   :  { %v15758_v62 = vadd.f32 %v5545_v61, %v15644_v50  ;;  %v5546_v23 = vmul.f32 0.041666668, %v5530_v33  ;;  %v5578_v52 = vmul.f32 0.125, %v5530_v33  ;;  %v5593_v34 = vadd.f32 %v5577_v18, %v15390_v6  ;;  %v17963_v50 = vld [vmem:[#allocation20_spill] sm:$0xff] }
0x13f5   :  { %v15761_v27 = vadd.f32 %v5543_v12, %v15647_v8  ;;  %v5544_v32 = vmul.f32 0.041666668, %v5528_v31  ;;  %v5576_v3 = vmul.f32 0.125, %v5528_v31  ;;  %v5591_v14 = vadd.f32 %v5575_v21, %v15393_v1  ;;  %v17964_v31 = vld [vmem:[#allocation7_spill] sm:$0xff] }
0x13f6   :  { %17958 = vst [vmem:[#allocation24_spill] sm:$0xff] %v15758_v62  ;;  %v15765_v15 = vadd.f32 %v5546_v23, %v15651_v46  ;;  %v5594_v17 = vadd.f32 %v5578_v52, %v17961_v40 }
0x13f7   :  { %17959 = vst [vmem:[#allocation18_spill] sm:$0xff] %v15761_v27  ;;  %v15770_v37 = vadd.f32 %v5544_v32, %v17962_v38  ;;  %v5592_v61 = vadd.f32 %v5576_v3, %v17963_v50  ;;  %v11692_v33 = vpop.f32.mrb[148].mxu1 }
0x13f8   :  { %17960 = vst [vmem:[#allocation23_spill] sm:$0xff] %v15765_v15  ;;  %v5608_v62 = vpack.c.bf16 %v5594_v17, %v5593_v34  ;;  %v5533_v8 = vadd.f32 %v11692_v33, %v13397_v30  ;;  %v5480_v12 = vpop.f32.mrb[149].mxu1  ;;  %v17965_v15 = vld [vmem:[#allocation8_spill] sm:$0xff] }
0x13f9   :  { %v5531_v27 = vadd.f32 %v5480_v12, %v17964_v31  ;;  %v11693_v6 = vpop.f32.mrb[150].mxu1  ;;  %v5607_v18 = vpack.c.bf16 %v5592_v61, %v5591_v14  ;;  %v17967_v12 = vld [vmem:[#allocation26_spill] sm:$0xff] }
0x13fa   :  { %v5549_v46 = vmul.f32 0.041666668, %v5533_v8  ;;  %v5581_v23 = vmul.f32 0.125, %v5533_v8  ;;  %v5534_v52 = vadd.f32 %v11693_v6, %v17965_v15  ;;  %v5483_v40 = vpop.f32.mrb[151].mxu1  ;;  %v17966_v8 = vld [vmem:[#allocation22_spill] sm:$0xff] }
0x13fb   :  { %v5547_v1 = vmul.f32 0.041666668, %v5531_v27  ;;  %v5579_v21 = vmul.f32 0.125, %v5531_v27  ;;  %v5532_v32 = vadd.f32 %v5483_v40, %v17941_v59  ;;  %11718 = vmatprep.mubr.bf16.mxu0 %v5607_v18  ;;  %11734 = vmatprep.subr.bf16.mxu0 %v5607_v18  ;;  %v17969_v40 = vld [vmem:[#allocation10_spill] sm:$0xff] }
0x13fc   :  { %v15778_v3 = vadd.f32 %v5549_v46, %v15668_v29  ;;  %v5550_v34 = vmul.f32 0.041666668, %v5534_v52  ;;  %v5582_v17 = vmul.f32 0.125, %v5534_v52  ;;  %11719 = vmatmul.mubr.bf16.vlgmr.msra.gmra.mrb[160].mxu0 %v5608_v62  ;;  %v5597_v61 = vadd.f32 %v5581_v23, %v15410_v39  ;;  %v17968_v46 = vld [vmem:[#allocation25_spill] sm:$0xff] }
0x13fd   :  { %v15781_v38 = vadd.f32 %v5547_v1, %v15671_v25  ;;  %v5548_v14 = vmul.f32 0.041666668, %v5532_v32  ;;  %v5580_v50 = vmul.f32 0.125, %v5532_v32  ;;  %11735 = vmatpush3.bf16.msra.mxu0 %v5607_v18  ;;  %v5595_v29 = vadd.f32 %v5579_v21, %v17966_v8 }
0x13fe   :  { %v15785_v27 = vadd.f32 %v5550_v34, %v15675_v47  ;;  %v5598_v33 = vadd.f32 %v5582_v17, %v15416_v9  ;;  %11736 = vmatprep.subr.bf16.mxu0 %v5608_v62 }
0x13ff   :  { %v15790_v6 = vadd.f32 %v5548_v14, %v17967_v12  ;;  %v5596_v52 = vadd.f32 %v5580_v50, %v17968_v46  ;;  %v11696_v25 = vpop.f32.mrb[152].mxu1 }
0x1400   :  { %v5537_v1 = vadd.f32 %v11696_v25, %v17969_v40  ;;  %v5496_v32 = vpop.f32.mrb[153].mxu1  ;;  %v5610_v18 = vpack.c.bf16 %v5598_v33, %v5597_v61 }
0x1401   :  { %v5535_v39 = vadd.f32 %v5496_v32, %v17944_v56  ;;  %11737 = vmatpush3.bf16.msra.mxu0 %v5608_v62  ;;  %v11697_v47 = vpop.f32.mrb[154].mxu1  ;;  %v5609_v23 = vpack.c.bf16 %v5596_v52, %v5595_v29 }
0x1402   :  { %v5553_v34 = vmul.f32 0.041666668, %v5537_v1  ;;  %v5585_v9 = vmul.f32 0.125, %v5537_v1  ;;  %v5538_v17 = vadd.f32 %v11697_v47, %v17945_v41  ;;  %v5499_v21 = vpop.f32.mrb[155].mxu1 }
0x1403   :  { %v5551_v8 = vmul.f32 0.041666668, %v5535_v39  ;;  %v5583_v14 = vmul.f32 0.125, %v5535_v39  ;;  %v5536_v12 = vadd.f32 %v5499_v21, %v17946_v11  ;;  %11722 = vmatprep.mubr.bf16.mxu0 %v5609_v23  ;;  %11738 = vmatprep.subr.bf16.mxu0 %v5609_v23  ;;  %v17970_v39 = vld [vmem:[#allocation21_spill] sm:$0xff] }
0x1404   :  { %v15798_v50 = vadd.f32 %v5553_v34, %v15692_v24  ;;  %v5554_v61 = vmul.f32 0.041666668, %v5538_v17  ;;  %v5586_v33 = vmul.f32 0.125, %v5538_v17  ;;  %11723 = vmatmul.mubr.bf16.gmra.mrb[164].mxu0 %v5610_v18  ;;  %v5601_v52 = vadd.f32 %v5585_v9, %v15430_v49 }
0x1405   :  { %v15801_v62 = vadd.f32 %v5551_v8, %v15695_v54  ;;  %v5552_v29 = vmul.f32 0.041666668, %v5536_v12  ;;  %v5584_v46 = vmul.f32 0.125, %v5536_v12  ;;  %11739 = vmatpush3.bf16.msra.mxu0 %v5609_v23  ;;  %v5599_v24 = vadd.f32 %v5583_v14, %v15433_v55 }
0x1406   :  { %v15805_v25 = vadd.f32 %v5554_v61, %v15699_v26  ;;  %v5602_v1 = vadd.f32 %v5586_v33, %v15436_v22  ;;  %11740 = vmatprep.subr.bf16.mxu0 %v5610_v18 }
0x1407   :  { %v15810_v32 = vadd.f32 %v5552_v29, %v15704_v13  ;;  %v5600_v47 = vadd.f32 %v5584_v46, %v17970_v39  ;;  %v11700_v54 = vpop.f32.mrb[156].mxu1 }
0x1408   :  { %v5541_v34 = vadd.f32 %v11700_v54, %v13421_v42  ;;  %v5512_v17 = vpop.f32.mrb[157].mxu1  ;;  %v5612_v23 = vpack.c.bf16 %v5602_v1, %v5601_v52 }
0x1409   :  { %v5539_v49 = vadd.f32 %v5512_v17, %v13423_v43  ;;  %11741 = vmatpush3.bf16.msra.mxu0 %v5610_v18  ;;  %v11701_v26 = vpop.f32.mrb[158].mxu1  ;;  %v5611_v9 = vpack.c.bf16 %v5600_v47, %v5599_v24 }
0x140a   :  { %v5557_v21 = vmul.f32 0.041666668, %v5541_v34  ;;  %v5589_v22 = vmul.f32 0.125, %v5541_v34  ;;  %v5542_v8 = vadd.f32 %v11701_v26, %v13425_v44  ;;  %v5515_v55 = vpop.f32.mrb[159].mxu1  ;;  %v17975_v26 = vld [vmem:[#allocation6_spill] sm:$0xff] }
0x140b   :  { %v5555_v14 = vmul.f32 0.041666668, %v5539_v49  ;;  %v5587_v13 = vmul.f32 0.125, %v5539_v49  ;;  %v5540_v12 = vadd.f32 %v5515_v55, %v13427_v45  ;;  %11726 = vmatprep.mubr.bf16.mxu0 %v5611_v9  ;;  %11742 = vmatprep.subr.bf16.mxu0 %v5611_v9  ;;  %v17977_v55 = vld [vmem:[#allocation18_spill] sm:$0xff] }
0x140c   :  { %v15818_v61 = vadd.f32 %v5557_v21, %v15716_v16  ;;  %v5558_v33 = vmul.f32 0.041666668, %v5542_v8  ;;  %v5590_v29 = vmul.f32 0.125, %v5542_v8  ;;  %11727 = vmatmul.mubr.bf16.gmra.mrb[168].mxu0 %v5612_v23  ;;  %v5605_v1 = vadd.f32 %v5589_v22, %v15450_v51  ;;  %v15837_v51 = vld [vmem:[%s17470_s3] sm:$0xff]   ;;  %v17976_v21 = vld [vmem:[#allocation24_spill] sm:$0xff] }
0x140d   :  { %v15821_v18 = vadd.f32 %v5555_v14, %v15719_v48  ;;  %v5556_v46 = vmul.f32 0.041666668, %v5540_v12  ;;  %v5588_v52 = vmul.f32 0.125, %v5540_v12  ;;  %11743 = vmatpush3.bf16.msra.mxu0 %v5611_v9  ;;  %v5603_v16 = vadd.f32 %v5587_v13, %v15453_v7  ;;  %v15846_v7 = vld [vmem:[%s17470_s3 + $0x8] sm:$0xff]  }
0x140e   :  { %v15825_v24 = vadd.f32 %v5558_v33, %v15722_v20  ;;  %v5606_v39 = vadd.f32 %v5590_v29, %v15456_v35  ;;  %11744 = vmatprep.subr.bf16.mxu0 %v5612_v23  ;;  %v15853_v35 = vld [vmem:[%s17470_s3 + $0x10] sm:$0xff]   ;;  %v17978_v12 = vld [vmem:[#allocation23_spill] sm:$0xff] }
0x140f   :  { %v15830_v47 = vadd.f32 %v5556_v46, %v15726_v5  ;;  %v5604_v54 = vadd.f32 %v5588_v52, %v15459_v19  ;;  %v15862_v19 = vld [vmem:[%s17470_s3 + $0x18] sm:$0xff]  }
0x1410   :  { %v5614_v48 = vpack.c.bf16 %v5606_v39, %v5605_v1 }
0x1411   :  { %11745 = vmatpush3.bf16.msra.mxu0 %v5612_v23  ;;  %v5613_v34 = vpack.c.bf16 %v5604_v54, %v5603_v16 }
0x1413   :  { %11730 = vmatprep.mubr.bf16.mxu0 %v5613_v34  ;;  %11746 = vmatprep.subr.bf16.mxu0 %v5613_v34 }
0x1414   :  { %11731 = vmatmul.mubr.bf16.gmra.mrb[172].mxu0 %v5614_v48 }
0x1415   :  { %11747 = vmatpush3.bf16.msra.mxu0 %v5613_v34  ;;  %11750 = vmatprep.mubr.bf16.mxu0 %v15468_v57  ;;  %v15869_v57 = vld [vmem:[%s17470_s3 + $0x20] sm:$0xff]  }
0x1416   :  { %11748 = vmatprep.subr.bf16.mxu0 %v5614_v48  ;;  %17971 = vst [vmem:[#allocation2_spill] sm:$0xff] %v15869_v57 }
0x1419   :  { %11749 = vmatpush3.bf16.msra.mxu0 %v5614_v48 }
0x141a   :  { %11830 = vmatprep.subr.bf16.mxu0 %v15837_v51 }
0x141c   :  { %11751 = vmatmul.mubr.bf16.vlgmr.msra.gmra.mrb[160].mxu0 %v15475_v63  ;;  %v15878_v63 = vld [vmem:[%s17470_s3 + $0x28] sm:$0xff]  }
0x141d   :  { %11754 = vmatprep.mubr.bf16.mxu0 %v15481_v28  ;;  %11831 = vmatpush3.bf16.msra.mxu0 %v15837_v51  ;;  %17972 = vst [vmem:[#allocation14_spill] sm:$0xff] %v15878_v63  ;;  %v15885_v28 = vld [vmem:[%s17470_s3 + $0x30] sm:$0xff]  }
0x141e   :  { %11832 = vmatprep.subr.bf16.mxu0 %v15846_v7  ;;  %17973 = vst [vmem:[#allocation15_spill] sm:$0xff] %v15885_v28 }
0x1421   :  { %11833 = vmatpush3.bf16.msra.mxu0 %v15846_v7 }
0x1422   :  { %11834 = vmatprep.subr.bf16.mxu0 %v15853_v35 }
0x1424   :  { %11755 = vmatmul.mubr.bf16.gmra.mrb[164].mxu0 %v15491_v53  ;;  %v15893_v53 = vld [vmem:[%s17470_s3 + $0x38] sm:$0xff]  }
0x1425   :  { %11758 = vmatprep.mubr.bf16.mxu0 %v15497_v58  ;;  %11835 = vmatpush3.bf16.msra.mxu0 %v15853_v35  ;;  %17974 = vst [vmem:[#allocation16_spill] sm:$0xff] %v15893_v53 }
0x1426   :  { %11836 = vmatprep.subr.bf16.mxu0 %v15862_v19 }
0x1429   :  { %11837 = vmatpush3.bf16.msra.mxu0 %v15862_v19 }
0x142a   :  { %11838 = vmatprep.subr.bf16.mxu0 %v15869_v57 }
0x142c   :  { %11759 = vmatmul.mubr.bf16.gmra.mrb[168].mxu0 %v17949_v0 }
0x142d   :  { %11762 = vmatprep.mubr.bf16.mxu0 %v17950_v36  ;;  %11839 = vmatpush3.bf16.msra.mxu0 %v15869_v57 }
0x142e   :  { %11840 = vmatprep.subr.bf16.mxu0 %v15878_v63 }
0x1431   :  { %11841 = vmatpush3.bf16.msra.mxu0 %v15878_v63 }
0x1432   :  { %11842 = vmatprep.subr.bf16.mxu0 %v15885_v28 }
0x1434   :  { %11763 = vmatmul.mubr.bf16.gmra.mrb[172].mxu0 %v17953_v4 }
0x1435   :  { %11843 = vmatpush3.bf16.msra.mxu0 %v15885_v28 }
0x1436   :  { %11844 = vmatprep.subr.bf16.mxu0 %v15893_v53 }
0x1439   :  { %11845 = vmatpush3.bf16.msra.mxu0 %v15893_v53 }
0x14ef   :  { %v11752_v58 = vpop.f32.mrb[160].mxu0 }
0x14f0   :  { %v5811_v20 = vadd.f32 %v11752_v58, %v17955_v10  ;;  %v5746_v5 = vpop.f32.mrb[161].mxu0 }
0x14f1   :  { %v5809_v0 = vadd.f32 %v5746_v5, %v17956_v60  ;;  %v11753_v36 = vpop.f32.mrb[162].mxu0 }
0x14f2   :  { %v5827_v17 = vmul.f32 0.020833334, %v5811_v20  ;;  %v5812_v4 = vadd.f32 %v11753_v36, %v17957_v2  ;;  %v5749_v23 = vpop.f32.mrb[163].mxu0 }
0x14f3   :  { %v5825_v49 = vmul.f32 0.020833334, %v5809_v0  ;;  %v5810_v9 = vadd.f32 %v5749_v23, %v17975_v26 }
0x14f4   :  { %v15902_v22 = vadd.f32 %v5827_v17, %v17976_v21  ;;  %v5828_v8 = vmul.f32 0.020833334, %v5812_v4 }
0x14f5   :  { %v15905_v14 = vadd.f32 %v5825_v49, %v17977_v55  ;;  %v5826_v13 = vmul.f32 0.020833334, %v5810_v9 }
0x14f6   :  { %v15908_v33 = vadd.f32 %v5828_v8, %v17978_v12 }
0x14f7   :  { %v15911_v29 = vadd.f32 %v5826_v13, %v15770_v37  ;;  %v11756_v46 = vpop.f32.mrb[164].mxu0 }
0x14f8   :  { %17979 = vst [vmem:[#allocation17_spill] sm:$0xff] %v15908_v33  ;;  %v5815_v52 = vadd.f32 %v11756_v46, %v13397_v30  ;;  %v5762_v1 = vpop.f32.mrb[165].mxu0  ;;  %v5858_v20 = vpack.c.bf16 %v15908_v33, %v15902_v22 }
0x14f9   :  { %17980 = vst [vmem:[#allocation19_spill] sm:$0xff] %v15911_v29  ;;  %v5813_v39 = vadd.f32 %v5762_v1, %v17964_v31  ;;  %v11757_v16 = vpop.f32.mrb[166].mxu0  ;;  %v5857_v54 = vpack.c.bf16 %v15911_v29, %v15905_v14 }
0x14fa   :  { %v5831_v48 = vmul.f32 0.020833334, %v5815_v52  ;;  %v5816_v34 = vadd.f32 %v11757_v16, %v17965_v15  ;;  %v5765_v58 = vpop.f32.mrb[167].mxu0 }
0x14fb   :  { %v5829_v5 = vmul.f32 0.020833334, %v5813_v39  ;;  %v5814_v37 = vadd.f32 %v5765_v58, %v17941_v59  ;;  %11782 = vmatprep.mubr.bf16.mxu1 %v5857_v54  ;;  %11798 = vmatprep.subr.bf16.mxu1 %v5857_v54 }
0x14fc   :  { %v15922_v0 = vadd.f32 %v5831_v48, %v15778_v3  ;;  %v5832_v36 = vmul.f32 0.020833334, %v5816_v34  ;;  %11783 = vmatmul.mubr.bf16.vlgmr.msra.gmra.mrb[160].mxu1 %v5858_v20 }
0x14fd   :  { %v15925_v17 = vadd.f32 %v5829_v5, %v15781_v38  ;;  %v5830_v4 = vmul.f32 0.020833334, %v5814_v37  ;;  %11799 = vmatpush3.bf16.msra.mxu1 %v5857_v54 }
0x14fe   :  { %v15928_v23 = vadd.f32 %v5832_v36, %v15785_v27  ;;  %11800 = vmatprep.subr.bf16.mxu1 %v5858_v20 }
0x14ff   :  { %17981 = vst [vmem:[#allocation20_spill] sm:$0xff] %v15925_v17  ;;  %v15931_v49 = vadd.f32 %v5830_v4, %v15790_v6  ;;  %v11760_v9 = vpop.f32.mrb[168].mxu0 }
0x1500   :  { %v5819_v21 = vadd.f32 %v11760_v9, %v17969_v40  ;;  %v5778_v8 = vpop.f32.mrb[169].mxu0  ;;  %v5860_v46 = vpack.c.bf16 %v15928_v23, %v15922_v0 }
0x1501   :  { %17982 = vst [vmem:[#allocation22_spill] sm:$0xff] %v15931_v49  ;;  %v5817_v3 = vadd.f32 %v5778_v8, %v17944_v56  ;;  %11801 = vmatpush3.bf16.msra.mxu1 %v5858_v20  ;;  %v11761_v55 = vpop.f32.mrb[170].mxu0  ;;  %v5859_v38 = vpack.c.bf16 %v15931_v49, %v15925_v17 }
0x1502   :  { %v5835_v13 = vmul.f32 0.020833334, %v5819_v21  ;;  %v5820_v12 = vadd.f32 %v11761_v55, %v17945_v41  ;;  %v5781_v27 = vpop.f32.mrb[171].mxu0 }
0x1503   :  { %v5833_v6 = vmul.f32 0.020833334, %v5817_v3  ;;  %v5818_v52 = vadd.f32 %v5781_v27, %v17946_v11  ;;  %11786 = vmatprep.mubr.bf16.mxu1 %v5859_v38  ;;  %11802 = vmatprep.subr.bf16.mxu1 %v5859_v38 }
0x1504   :  { %v15942_v1 = vadd.f32 %v5835_v13, %v15798_v50  ;;  %v5836_v39 = vmul.f32 0.020833334, %v5820_v12  ;;  %11787 = vmatmul.mubr.bf16.gmra.mrb[164].mxu1 %v5860_v46 }
0x1505   :  { %v15945_v16 = vadd.f32 %v5833_v6, %v15801_v62  ;;  %v5834_v54 = vmul.f32 0.020833334, %v5818_v52  ;;  %11803 = vmatpush3.bf16.msra.mxu1 %v5859_v38  ;;  %v16009_v6 = vld [vmem:[%s17471_s2 + $0x20] sm:$0xff]   ;;  %v16019_v52 = vld [vmem:[%s17471_s2 + $0x28] sm:$0xff]  }
0x1506   :  { %v15948_v48 = vadd.f32 %v5836_v39, %v15805_v25  ;;  %11804 = vmatprep.subr.bf16.mxu1 %v5860_v46  ;;  %17984 = vst [vmem:[#allocation25_spill] sm:$0xff] %v16019_v52  ;;  %v16025_v39 = vld [vmem:[%s17471_s2 + $0x30] sm:$0xff]  }
0x1507   :  { %v15951_v34 = vadd.f32 %v5834_v54, %v15810_v32  ;;  %v11764_v58 = vpop.f32.mrb[172].mxu0  ;;  %17985 = vst [vmem:[#allocation21_spill] sm:$0xff] %v16025_v39  ;;  %v16035_v54 = vld [vmem:[%s17471_s2 + $0x38] sm:$0xff]  }
0x1508   :  { %v5823_v20 = vadd.f32 %v11764_v58, %v13421_v42  ;;  %v5794_v5 = vpop.f32.mrb[173].mxu0  ;;  %v5862_v9 = vpack.c.bf16 %v15948_v48, %v15942_v1  ;;  %17986 = vst [vmem:[#allocation24_spill] sm:$0xff] %v16035_v54 }
0x1509   :  { %17983 = vst [vmem:[#allocation26_spill] sm:$0xff] %v15951_v34  ;;  %v5821_v50 = vadd.f32 %v5794_v5, %v13423_v43  ;;  %11805 = vmatpush3.bf16.msra.mxu1 %v5860_v46  ;;  %v11765_v37 = vpop.f32.mrb[174].mxu0  ;;  %v5861_v62 = vpack.c.bf16 %v15951_v34, %v15945_v16  ;;  %v16003_v46 = vld [vmem:[%s17471_s2 + $0x18] sm:$0xff]  }
0x150a   :  { %v5839_v36 = vmul.f32 0.020833334, %v5823_v20  ;;  %v5824_v4 = vadd.f32 %v11765_v37, %v13425_v44  ;;  %v5797_v25 = vpop.f32.mrb[175].mxu0 }
0x150b   :  { %v5837_v32 = vmul.f32 0.020833334, %v5821_v50  ;;  %v5822_v21 = vadd.f32 %v5797_v25, %v13427_v45  ;;  %11790 = vmatprep.mubr.bf16.mxu1 %v5861_v62  ;;  %11806 = vmatprep.subr.bf16.mxu1 %v5861_v62 }
0x150c   :  { %v15962_v8 = vadd.f32 %v5839_v36, %v15818_v61  ;;  %v5840_v3 = vmul.f32 0.020833334, %v5824_v4  ;;  %11791 = vmatmul.mubr.bf16.gmra.mrb[168].mxu1 %v5862_v9 }
0x150d   :  { %v15965_v55 = vadd.f32 %v5837_v32, %v15821_v18  ;;  %v5838_v38 = vmul.f32 0.020833334, %v5822_v21  ;;  %11807 = vmatpush3.bf16.msra.mxu1 %v5861_v62  ;;  %v15980_v18 = vld [vmem:[%s17471_s2] sm:$0xff]  }
0x150e   :  { %v15968_v13 = vadd.f32 %v5840_v3, %v15825_v24  ;;  %11808 = vmatprep.subr.bf16.mxu1 %v5862_v9  ;;  %v15987_v24 = vld [vmem:[%s17471_s2 + $0x8] sm:$0xff]  }
0x150f   :  { %v15971_v12 = vadd.f32 %v5838_v38, %v15830_v47  ;;  %v15993_v47 = vld [vmem:[%s17471_s2 + $0x10] sm:$0xff]  }
0x1510   :  { %v5864_v61 = vpack.c.bf16 %v15968_v13, %v15962_v8 }
0x1511   :  { %11809 = vmatpush3.bf16.msra.mxu1 %v5862_v9  ;;  %v5863_v27 = vpack.c.bf16 %v15971_v12, %v15965_v55 }
0x1513   :  { %11794 = vmatprep.mubr.bf16.mxu1 %v5863_v27  ;;  %11810 = vmatprep.subr.bf16.mxu1 %v5863_v27 }
0x1514   :  { %11795 = vmatmul.mubr.bf16.gmra.mrb[172].mxu1 %v5864_v61 }
0x1515   :  { %11811 = vmatpush3.bf16.msra.mxu1 %v5863_v27  ;;  %11814 = vmatprep.mubr.bf16.mxu1 %v15980_v18 }
0x1516   :  { %11812 = vmatprep.subr.bf16.mxu1 %v5864_v61 }
0x1519   :  { %11813 = vmatpush3.bf16.msra.mxu1 %v5864_v61 }
0x151a   :  { %11894 = vmatprep.subr.bf16.mxu1 %v15837_v51 }
0x151c   :  { %11815 = vmatmul.mubr.bf16.vlgmr.msra.gmra.mrb[160].mxu1 %v15987_v24 }
0x151d   :  { %11818 = vmatprep.mubr.bf16.mxu1 %v15993_v47  ;;  %11895 = vmatpush3.bf16.msra.mxu1 %v15837_v51 }
0x151e   :  { %11896 = vmatprep.subr.bf16.mxu1 %v15846_v7 }
0x1521   :  { %11897 = vmatpush3.bf16.msra.mxu1 %v15846_v7 }
0x1522   :  { %11898 = vmatprep.subr.bf16.mxu1 %v15853_v35 }
0x1524   :  { %11819 = vmatmul.mubr.bf16.gmra.mrb[164].mxu1 %v16003_v46 }
0x1525   :  { %11822 = vmatprep.mubr.bf16.mxu1 %v16009_v6  ;;  %11899 = vmatpush3.bf16.msra.mxu1 %v15853_v35 }
0x1526   :  { %11900 = vmatprep.subr.bf16.mxu1 %v15862_v19 }
0x1529   :  { %11901 = vmatpush3.bf16.msra.mxu1 %v15862_v19 }
0x152a   :  { %11902 = vmatprep.subr.bf16.mxu1 %v15869_v57 }
0x152c   :  { %11823 = vmatmul.mubr.bf16.gmra.mrb[168].mxu1 %v16019_v52 }
0x152d   :  { %11826 = vmatprep.mubr.bf16.mxu1 %v16025_v39  ;;  %11903 = vmatpush3.bf16.msra.mxu1 %v15869_v57 }
0x152e   :  { %11904 = vmatprep.subr.bf16.mxu1 %v15878_v63 }
0x1531   :  { %11905 = vmatpush3.bf16.msra.mxu1 %v15878_v63 }
0x1532   :  { %11906 = vmatprep.subr.bf16.mxu1 %v15885_v28 }
0x1534   :  { %11827 = vmatmul.mubr.bf16.gmra.mrb[172].mxu1 %v16035_v54 }
0x1535   :  { %11907 = vmatpush3.bf16.msra.mxu1 %v15885_v28 }
0x1536   :  { %11908 = vmatprep.subr.bf16.mxu1 %v15893_v53 }
0x1539   :  { %11909 = vmatpush3.bf16.msra.mxu1 %v15893_v53 }
0x15ef   :  { %v11816_v58 = vpop.f32.mrb[160].mxu1 }
0x15f0   :  { %v16042_v20 = vadd.f32 %v11816_v58, %v17955_v10  ;;  %v5996_v5 = vpop.f32.mrb[161].mxu1 }
0x15f1   :  { %v16045_v50 = vadd.f32 %v5996_v5, %v17956_v60  ;;  %v11817_v37 = vpop.f32.mrb[162].mxu1 }
0x15f2   :  { %v6109_v62 = vmul.f32 0.0625, %v16042_v20  ;;  %v16049_v36 = vadd.f32 %v11817_v37, %v17957_v2  ;;  %v5999_v4 = vpop.f32.mrb[163].mxu1 }
0x15f3   :  { %v6107_v25 = vmul.f32 0.0625, %v16045_v50  ;;  %v16053_v9 = vadd.f32 %v5999_v4, %v17975_v26 }
0x15f4   :  { %v6110_v32 = vmul.f32 0.0625, %v16049_v36  ;;  %v6125_v3 = vadd.f32 %v6109_v62, %v15902_v22 }
0x15f5   :  { %17987 = vst [vmem:[#allocation18_spill] sm:$0xff] %v16053_v9  ;;  %v6108_v21 = vmul.f32 0.0625, %v16053_v9  ;;  %v6123_v27 = vadd.f32 %v6107_v25, %v15905_v14 }
0x15f6   :  { %v6126_v38 = vadd.f32 %v6110_v32, %v15908_v33 }
0x15f7   :  { %v6124_v61 = vadd.f32 %v6108_v21, %v15911_v29  ;;  %v11820_v58 = vpop.f32.mrb[164].mxu1 }
0x15f8   :  { %v6140_v5 = vpack.c.bf16 %v6126_v38, %v6125_v3  ;;  %v16062_v37 = vadd.f32 %v11820_v58, %v13397_v30  ;;  %v6012_v2 = vpop.f32.mrb[165].mxu1 }
0x15f9   :  { %v16065_v4 = vadd.f32 %v6012_v2, %v17964_v31  ;;  %v11821_v26 = vpop.f32.mrb[166].mxu1  ;;  %v6139_v60 = vpack.c.bf16 %v6124_v61, %v6123_v27 }
0x15fa   :  { %v6113_v9 = vmul.f32 0.0625, %v16062_v37  ;;  %v16069_v62 = vadd.f32 %v11821_v26, %v17965_v15  ;;  %v6015_v32 = vpop.f32.mrb[167].mxu1 }
0x15fb   :  { %v6111_v25 = vmul.f32 0.0625, %v16065_v4  ;;  %v16073_v21 = vadd.f32 %v6015_v32, %v17941_v59  ;;  %11846 = vmatprep.mubr.bf16.mxu0 %v6139_v60  ;;  %11862 = vmatprep.subr.bf16.mxu0 %v6139_v60 }
0x15fc   :  { %v6114_v3 = vmul.f32 0.0625, %v16069_v62  ;;  %11847 = vmatmul.mubr.bf16.vlgmr.msra.gmra.mrb[176].mxu0 %v6140_v5  ;;  %v6129_v38 = vadd.f32 %v6113_v9, %v15922_v0 }
0x15fd   :  { %17988 = vst [vmem:[#allocation23_spill] sm:$0xff] %v16073_v21  ;;  %v6112_v2 = vmul.f32 0.0625, %v16073_v21  ;;  %11863 = vmatpush3.bf16.msra.mxu0 %v6139_v60  ;;  %v6127_v26 = vadd.f32 %v6111_v25, %v15925_v17 }
0x15fe   :  { %v6130_v27 = vadd.f32 %v6114_v3, %v15928_v23  ;;  %11864 = vmatprep.subr.bf16.mxu0 %v6140_v5 }
0x15ff   :  { %v6128_v61 = vadd.f32 %v6112_v2, %v15931_v49  ;;  %v11824_v58 = vpop.f32.mrb[168].mxu1 }
0x1600   :  { %v16082_v32 = vadd.f32 %v11824_v58, %v17969_v40  ;;  %v6028_v59 = vpop.f32.mrb[169].mxu1  ;;  %v6142_v15 = vpack.c.bf16 %v6130_v27, %v6129_v38 }
0x1601   :  { %v16085_v31 = vadd.f32 %v6028_v59, %v17944_v56  ;;  %11865 = vmatpush3.bf16.msra.mxu0 %v6140_v5  ;;  %v11825_v60 = vpop.f32.mrb[170].mxu1  ;;  %v6141_v21 = vpack.c.bf16 %v6128_v61, %v6127_v26 }
0x1602   :  { %v6117_v9 = vmul.f32 0.0625, %v16082_v32  ;;  %v16089_v3 = vadd.f32 %v11825_v60, %v17945_v41  ;;  %v6031_v25 = vpop.f32.mrb[171].mxu1 }
0x1603   :  { %v6115_v2 = vmul.f32 0.0625, %v16085_v31  ;;  %v16093_v49 = vadd.f32 %v6031_v25, %v17946_v11  ;;  %11850 = vmatprep.mubr.bf16.mxu0 %v6141_v21  ;;  %11866 = vmatprep.subr.bf16.mxu0 %v6141_v21 }
0x1604   :  { %v6118_v38 = vmul.f32 0.0625, %v16089_v3  ;;  %11851 = vmatmul.mubr.bf16.gmra.mrb[180].mxu0 %v6142_v15  ;;  %v6133_v5 = vadd.f32 %v6117_v9, %v15942_v1 }
0x1605   :  { %v6116_v59 = vmul.f32 0.0625, %v16093_v49  ;;  %11867 = vmatpush3.bf16.msra.mxu0 %v6141_v21  ;;  %v6131_v26 = vadd.f32 %v6115_v2, %v15945_v16 }
0x1606   :  { %v6134_v27 = vadd.f32 %v6118_v38, %v15948_v48  ;;  %11868 = vmatprep.subr.bf16.mxu0 %v6142_v15 }
0x1607   :  { %v6132_v61 = vadd.f32 %v6116_v59, %v15951_v34  ;;  %v11828_v58 = vpop.f32.mrb[172].mxu1 }
0x1608   :  { %v16102_v60 = vadd.f32 %v11828_v58, %v13421_v42  ;;  %v6044_v25 = vpop.f32.mrb[173].mxu1  ;;  %v6144_v11 = vpack.c.bf16 %v6134_v27, %v6133_v5 }
0x1609   :  { %v16105_v41 = vadd.f32 %v6044_v25, %v13423_v43  ;;  %11869 = vmatpush3.bf16.msra.mxu0 %v6142_v15  ;;  %v11829_v21 = vpop.f32.mrb[174].mxu1  ;;  %v6143_v56 = vpack.c.bf16 %v6132_v61, %v6131_v26 }
0x160a   :  { %v6121_v9 = vmul.f32 0.0625, %v16102_v60  ;;  %v16109_v38 = vadd.f32 %v11829_v21, %v13425_v44  ;;  %v6047_v2 = vpop.f32.mrb[175].mxu1 }
0x160b   :  { %v6119_v59 = vmul.f32 0.0625, %v16105_v41  ;;  %v16113_v34 = vadd.f32 %v6047_v2, %v13427_v45  ;;  %11854 = vmatprep.mubr.bf16.mxu0 %v6143_v56  ;;  %11870 = vmatprep.subr.bf16.mxu0 %v6143_v56  ;;  %v6078_v2 = vmul.f32 0.020833334, %v16049_v36  ;;  %v17992_v36 = vld [vmem:[#allocation6_spill] sm:$0xff] }
0x160c   :  { %v6122_v5 = vmul.f32 0.0625, %v16109_v38  ;;  %11855 = vmatmul.mubr.bf16.gmra.mrb[184].mxu0 %v6144_v11  ;;  %v6137_v27 = vadd.f32 %v6121_v9, %v15962_v8 }
0x160d   :  { %v6120_v15 = vmul.f32 0.0625, %v16113_v34  ;;  %11871 = vmatpush3.bf16.msra.mxu0 %v6143_v56  ;;  %v6135_v61 = vadd.f32 %v6119_v59, %v15965_v55  ;;  %v6075_v56 = vmul.f32 0.020833334, %v16045_v50 }
0x160e   :  { %v6138_v26 = vadd.f32 %v6122_v5, %v15968_v13  ;;  %11872 = vmatprep.subr.bf16.mxu0 %v6144_v11 }
0x160f   :  { %v6136_v58 = vadd.f32 %v6120_v15, %v15971_v12  ;;  %v17989_v15 = vld [vmem:[#allocation18_spill] sm:$0xff]  ;;  %v6091_v50 = vadd.f32 %v6075_v56, %v15905_v14 }
0x1610   :  { %v6146_v25 = vpack.c.bf16 %v6138_v26, %v6137_v27  ;;  %v6076_v27 = vmul.f32 0.020833334, %v17989_v15  ;;  %v17990_v26 = vld [vmem:[#allocation4_spill] sm:$0xff] }
0x1611   :  { %11873 = vmatpush3.bf16.msra.mxu0 %v6144_v11  ;;  %v6145_v21 = vpack.c.bf16 %v6136_v58, %v6135_v61  ;;  %v6077_v11 = vmul.f32 0.020833334, %v16042_v20 }
0x1613   :  { %11858 = vmatprep.mubr.bf16.mxu0 %v6145_v21  ;;  %11874 = vmatprep.subr.bf16.mxu0 %v6145_v21 }
0x1614   :  { %11859 = vmatmul.mubr.bf16.gmra.mrb[188].mxu0 %v6146_v25 }
0x1615   :  { %11875 = vmatpush3.bf16.msra.mxu0 %v6145_v21  ;;  %11878 = vmatprep.mubr.bf16.mxu0 %v15980_v18 }
0x1616   :  { %11876 = vmatprep.subr.bf16.mxu0 %v6146_v25 }
0x1619   :  { %11877 = vmatpush3.bf16.msra.mxu0 %v6146_v25  ;;  %v6093_v25 = vadd.f32 %v6077_v11, %v15902_v22 }
0x161a   :  { %11958 = vmatprep.subr.bf16.mxu0 %v15837_v51 }
0x161c   :  { %11879 = vmatmul.mubr.bf16.vlgmr.msra.gmra.mrb[176].mxu0 %v15987_v24 }
0x161d   :  { %11882 = vmatprep.mubr.bf16.mxu0 %v15993_v47  ;;  %11959 = vmatpush3.bf16.msra.mxu0 %v15837_v51 }
0x161e   :  { %11960 = vmatprep.subr.bf16.mxu0 %v15846_v7 }
0x1621   :  { %11961 = vmatpush3.bf16.msra.mxu0 %v15846_v7 }
0x1622   :  { %11962 = vmatprep.subr.bf16.mxu0 %v15853_v35 }
0x1624   :  { %11883 = vmatmul.mubr.bf16.gmra.mrb[180].mxu0 %v16003_v46 }
0x1625   :  { %11886 = vmatprep.mubr.bf16.mxu0 %v16009_v6  ;;  %11963 = vmatpush3.bf16.msra.mxu0 %v15853_v35 }
0x1626   :  { %11964 = vmatprep.subr.bf16.mxu0 %v15862_v19 }
0x1629   :  { %11965 = vmatpush3.bf16.msra.mxu0 %v15862_v19 }
0x162a   :  { %11966 = vmatprep.subr.bf16.mxu0 %v15869_v57 }
0x162c   :  { %11887 = vmatmul.mubr.bf16.gmra.mrb[184].mxu0 %v16019_v52 }
0x162d   :  { %11890 = vmatprep.mubr.bf16.mxu0 %v16025_v39  ;;  %11967 = vmatpush3.bf16.msra.mxu0 %v15869_v57 }
0x162e   :  { %11968 = vmatprep.subr.bf16.mxu0 %v15878_v63 }
0x1631   :  { %11969 = vmatpush3.bf16.msra.mxu0 %v15878_v63 }
0x1632   :  { %11970 = vmatprep.subr.bf16.mxu0 %v15885_v28 }
0x1634   :  { %11891 = vmatmul.mubr.bf16.gmra.mrb[188].mxu0 %v16035_v54 }
0x1635   :  { %11971 = vmatpush3.bf16.msra.mxu0 %v15885_v28 }
0x1636   :  { %11972 = vmatprep.subr.bf16.mxu0 %v15893_v53 }
0x1639   :  { %11973 = vmatpush3.bf16.msra.mxu0 %v15893_v53  ;;  %v17991_v53 = vld [vmem:[#allocation5_spill] sm:$0xff] }
0x16ef   :  { %v11880_v9 = vpop.f32.mrb[176].mxu0 }
0x16f0   :  { %v6343_v59 = vadd.f32 %v11880_v9, %v17955_v10  ;;  %v6278_v5 = vpop.f32.mrb[177].mxu0  ;;  %v6094_v9 = vadd.f32 %v6078_v2, %v15908_v33  ;;  %v6079_v2 = vmul.f32 0.020833334, %v16065_v4 }
0x16f1   :  { %v6341_v61 = vadd.f32 %v6278_v5, %v17990_v26  ;;  %v11881_v58 = vpop.f32.mrb[178].mxu0  ;;  %v6092_v26 = vadd.f32 %v6076_v27, %v15911_v29  ;;  %v6082_v27 = vmul.f32 0.020833334, %v16069_v62 }
0x16f2   :  { %v6359_v21 = vmul.f32 0.041666668, %v6343_v59  ;;  %v6391_v54 = vmul.f32 0.0625, %v6343_v59  ;;  %v6344_v28 = vadd.f32 %v11881_v58, %v17991_v53  ;;  %v6281_v20 = vpop.f32.mrb[179].mxu0  ;;  %v6081_v58 = vmul.f32 0.020833334, %v16062_v37 }
0x16f3   :  { %v6357_v63 = vmul.f32 0.041666668, %v6341_v61  ;;  %v6389_v39 = vmul.f32 0.0625, %v6341_v61  ;;  %v6342_v52 = vadd.f32 %v6281_v20, %v17992_v36 }
0x16f4   :  { %v16156_v10 = vadd.f32 %v6359_v21, %v6093_v25  ;;  %v6360_v15 = vmul.f32 0.041666668, %v6344_v28  ;;  %v6392_v5 = vmul.f32 0.0625, %v6344_v28  ;;  %v6407_v56 = vadd.f32 %v6391_v54, %v15902_v22  ;;  %v17994_v54 = vld [vmem:[#allocation23_spill] sm:$0xff] }
0x16f5   :  { %v16159_v11 = vadd.f32 %v6357_v63, %v6091_v50  ;;  %v6358_v59 = vmul.f32 0.041666668, %v6342_v52  ;;  %v6390_v57 = vmul.f32 0.0625, %v6342_v52  ;;  %v6405_v25 = vadd.f32 %v6389_v39, %v15905_v14 }
0x16f6   :  { %v16163_v53 = vadd.f32 %v6360_v15, %v6094_v9  ;;  %v6408_v61 = vadd.f32 %v6392_v5, %v15908_v33  ;;  %v6080_v50 = vmul.f32 0.020833334, %v17994_v54  ;;  %v17995_v9 = vld [vmem:[#allocation7_spill] sm:$0xff]  ;;  %v6097_v4 = vadd.f32 %v6081_v58, %v15922_v0  ;;  %v17998_v58 = vld [vmem:[#allocation22_spill] sm:$0xff] }
0x16f7   :  { %v16168_v21 = vadd.f32 %v6358_v59, %v6092_v26  ;;  %v6406_v28 = vadd.f32 %v6390_v57, %v15911_v29  ;;  %v11884_v63 = vpop.f32.mrb[180].mxu0  ;;  %v17996_v59 = vld [vmem:[#allocation8_spill] sm:$0xff]  ;;  %v6095_v29 = vadd.f32 %v6079_v2, %v15925_v17  ;;  %v6098_v54 = vadd.f32 %v6082_v27, %v15928_v23 }
0x16f8   :  { %v6422_v52 = vpack.c.bf16 %v6408_v61, %v6407_v56  ;;  %v6347_v37 = vadd.f32 %v11884_v63, %v13397_v30  ;;  %v6294_v20 = vpop.f32.mrb[181].mxu0  ;;  %v17997_v61 = vld [vmem:[#allocation9_spill] sm:$0xff]  ;;  %v6085_v2 = vmul.f32 0.020833334, %v16082_v32 }
0x16f9   :  { %17993 = vst [vmem:[#allocation18_spill] sm:$0xff] %v16168_v21  ;;  %v6345_v15 = vadd.f32 %v6294_v20, %v17995_v9  ;;  %v11885_v5 = vpop.f32.mrb[182].mxu0  ;;  %v6421_v33 = vpack.c.bf16 %v6406_v28, %v6405_v25 }
0x16fa   :  { %v6363_v39 = vmul.f32 0.041666668, %v6347_v37  ;;  %v6395_v26 = vmul.f32 0.0625, %v6347_v37  ;;  %v6348_v21 = vadd.f32 %v11885_v5, %v17996_v59  ;;  %v6297_v57 = vpop.f32.mrb[183].mxu0  ;;  %v6096_v37 = vadd.f32 %v6080_v50, %v17998_v58 }
0x16fb   :  { %v6361_v62 = vmul.f32 0.041666668, %v6345_v15  ;;  %v6393_v56 = vmul.f32 0.0625, %v6345_v15  ;;  %v6346_v63 = vadd.f32 %v6297_v57, %v17997_v61  ;;  %11910 = vmatprep.mubr.bf16.mxu1 %v6421_v33  ;;  %11926 = vmatprep.subr.bf16.mxu1 %v6421_v33 }
0x16fc   :  { %v16180_v20 = vadd.f32 %v6363_v39, %v6097_v4  ;;  %v6364_v25 = vmul.f32 0.041666668, %v6348_v21  ;;  %v6396_v28 = vmul.f32 0.0625, %v6348_v21  ;;  %11911 = vmatmul.mubr.bf16.vlgmr.msra.gmra.mrb[176].mxu1 %v6422_v52  ;;  %v6411_v15 = vadd.f32 %v6395_v26, %v15922_v0 }
0x16fd   :  { %v16183_v9 = vadd.f32 %v6361_v62, %v6095_v29  ;;  %v6362_v5 = vmul.f32 0.041666668, %v6346_v63  ;;  %v6394_v59 = vmul.f32 0.0625, %v6346_v63  ;;  %11927 = vmatpush3.bf16.msra.mxu1 %v6421_v33  ;;  %v6083_v4 = vmul.f32 0.020833334, %v16085_v31 }
0x16fe   :  { %v16187_v57 = vadd.f32 %v6364_v25, %v6098_v54  ;;  %v6412_v27 = vadd.f32 %v6396_v28, %v15928_v23  ;;  %11928 = vmatprep.subr.bf16.mxu1 %v6422_v52  ;;  %v6409_v21 = vadd.f32 %v6393_v56, %v15925_v17  ;;  %v6086_v33 = vmul.f32 0.020833334, %v16089_v3  ;;  %v18000_v54 = vld [vmem:[#allocation11_spill] sm:$0xff] }
0x16ff   :  { %v16192_v39 = vadd.f32 %v6362_v5, %v6096_v37  ;;  %v6410_v29 = vadd.f32 %v6394_v59, %v17998_v58  ;;  %v11888_v50 = vpop.f32.mrb[184].mxu0  ;;  %v6084_v63 = vmul.f32 0.020833334, %v16093_v49  ;;  %v6101_v56 = vadd.f32 %v6085_v2, %v15942_v1  ;;  %v18003_v2 = vld [vmem:[#allocation26_spill] sm:$0xff] }
0x1700   :  { %v6351_v32 = vadd.f32 %v11888_v50, %v17969_v40  ;;  %v6310_v62 = vpop.f32.mrb[185].mxu0  ;;  %v6424_v26 = vpack.c.bf16 %v6412_v27, %v6411_v15  ;;  %v6099_v3 = vadd.f32 %v6083_v4, %v15945_v16  ;;  %v18002_v40 = vld [vmem:[#allocation13_spill] sm:$0xff]  ;;  %v6102_v49 = vadd.f32 %v6086_v33, %v15948_v48 }
0x1701   :  { %17999 = vst [vmem:[#allocation23_spill] sm:$0xff] %v16192_v39  ;;  %v6349_v25 = vadd.f32 %v6310_v62, %v18000_v54  ;;  %11929 = vmatpush3.bf16.msra.mxu1 %v6422_v52  ;;  %v11889_v28 = vpop.f32.mrb[186].mxu0  ;;  %v6423_v31 = vpack.c.bf16 %v6410_v29, %v6409_v21  ;;  %v18001_v39 = vld [vmem:[#allocation12_spill] sm:$0xff]  ;;  %v6100_v29 = vadd.f32 %v6084_v63, %v18003_v2  ;;  %v6089_v4 = vmul.f32 0.020833334, %v16102_v60 }
0x1702   :  { %v6367_v37 = vmul.f32 0.041666668, %v6351_v32  ;;  %v6399_v5 = vmul.f32 0.0625, %v6351_v32  ;;  %v6352_v59 = vadd.f32 %v11889_v28, %v18001_v39  ;;  %v6313_v58 = vpop.f32.mrb[187].mxu0 }
0x1703   :  { %v6365_v17 = vmul.f32 0.041666668, %v6349_v25  ;;  %v6397_v50 = vmul.f32 0.0625, %v6349_v25  ;;  %v6350_v15 = vadd.f32 %v6313_v58, %v18002_v40  ;;  %11914 = vmatprep.mubr.bf16.mxu1 %v6423_v31  ;;  %11930 = vmatprep.subr.bf16.mxu1 %v6423_v31 }
0x1704   :  { %v16204_v52 = vadd.f32 %v6367_v37, %v6101_v56  ;;  %v6368_v27 = vmul.f32 0.041666668, %v6352_v59  ;;  %v6400_v21 = vmul.f32 0.0625, %v6352_v59  ;;  %11915 = vmatmul.mubr.bf16.gmra.mrb[180].mxu1 %v6424_v26  ;;  %v6415_v58 = vadd.f32 %v6399_v5, %v15942_v1 }
0x1705   :  { %v16207_v32 = vadd.f32 %v6365_v17, %v6099_v3  ;;  %v6366_v62 = vmul.f32 0.041666668, %v6350_v15  ;;  %v6398_v28 = vmul.f32 0.0625, %v6350_v15  ;;  %11931 = vmatpush3.bf16.msra.mxu1 %v6423_v31  ;;  %v6087_v56 = vmul.f32 0.020833334, %v16105_v41 }
0x1706   :  { %v16211_v25 = vadd.f32 %v6368_v27, %v6102_v49  ;;  %v6416_v33 = vadd.f32 %v6400_v21, %v15948_v48  ;;  %11932 = vmatprep.subr.bf16.mxu1 %v6424_v26  ;;  %v6413_v37 = vadd.f32 %v6397_v50, %v15945_v16  ;;  %v6090_v31 = vmul.f32 0.020833334, %v16109_v38 }
0x1707   :  { %v16216_v59 = vadd.f32 %v6366_v62, %v6100_v29  ;;  %v6414_v17 = vadd.f32 %v6398_v28, %v18003_v2  ;;  %v11892_v63 = vpop.f32.mrb[188].mxu0  ;;  %v6088_v15 = vmul.f32 0.020833334, %v16113_v34  ;;  %v6105_v50 = vadd.f32 %v6089_v4, %v15962_v8 }
0x1708   :  { %v6355_v60 = vadd.f32 %v11892_v63, %v13421_v42  ;;  %v6326_v3 = vpop.f32.mrb[189].mxu0  ;;  %v6426_v5 = vpack.c.bf16 %v6416_v33, %v6415_v58  ;;  %v6103_v38 = vadd.f32 %v6087_v56, %v15965_v55  ;;  %v6106_v34 = vadd.f32 %v6090_v31, %v15968_v13 }
0x1709   :  { %v6353_v49 = vadd.f32 %v6326_v3, %v13423_v43  ;;  %11933 = vmatpush3.bf16.msra.mxu1 %v6424_v26  ;;  %v11893_v27 = vpop.f32.mrb[190].mxu0  ;;  %v6425_v41 = vpack.c.bf16 %v6414_v17, %v6413_v37  ;;  %v6104_v4 = vadd.f32 %v6088_v15, %v15971_v12  ;;  %v18005_v15 = vld [vmem:[#allocation25_spill] sm:$0xff] }
0x170a   :  { %v6371_v21 = vmul.f32 0.041666668, %v6355_v60  ;;  %v6403_v29 = vmul.f32 0.0625, %v6355_v60  ;;  %v6356_v62 = vadd.f32 %v11893_v27, %v13425_v44  ;;  %v6329_v28 = vpop.f32.mrb[191].mxu0 }
0x170b   :  { %v6369_v2 = vmul.f32 0.041666668, %v6353_v49  ;;  %v6401_v63 = vmul.f32 0.0625, %v6353_v49  ;;  %v6354_v58 = vadd.f32 %v6329_v28, %v13427_v45  ;;  %11918 = vmatprep.mubr.bf16.mxu1 %v6425_v41  ;;  %11934 = vmatprep.subr.bf16.mxu1 %v6425_v41  ;;  %v18011_v28 = vld [vmem:[#allocation3_spill] sm:$0xff] }
0x170c   :  { %v16228_v26 = vadd.f32 %v6371_v21, %v6105_v50  ;;  %v6372_v33 = vmul.f32 0.041666668, %v6356_v62  ;;  %v6404_v37 = vmul.f32 0.0625, %v6356_v62  ;;  %11919 = vmatmul.mubr.bf16.gmra.mrb[184].mxu1 %v6426_v5  ;;  %v6419_v56 = vadd.f32 %v6403_v29, %v15962_v8  ;;  %v18009_v29 = vld [vmem:[#allocation24_spill] sm:$0xff] }
0x170d   :  { %v16231_v17 = vadd.f32 %v6369_v2, %v6103_v38  ;;  %v6370_v60 = vmul.f32 0.041666668, %v6354_v58  ;;  %v6402_v3 = vmul.f32 0.0625, %v6354_v58  ;;  %11935 = vmatpush3.bf16.msra.mxu1 %v6425_v41  ;;  %v6417_v31 = vadd.f32 %v6401_v63, %v15965_v55  ;;  %v18008_v41 = vld [vmem:[#allocation15_spill] sm:$0xff]  ;;  %v18012_v58 = vld [vmem:[#allocation4_spill] sm:$0xff] }
0x170e   :  { %v16234_v49 = vadd.f32 %v6372_v33, %v6106_v34  ;;  %v6420_v27 = vadd.f32 %v6404_v37, %v15968_v13  ;;  %11936 = vmatprep.subr.bf16.mxu1 %v6426_v5 }
0x170f   :  { %v16238_v50 = vadd.f32 %v6370_v60, %v6104_v4  ;;  %v6418_v21 = vadd.f32 %v6402_v3, %v15971_v12  ;;  %v18013_v60 = vld [vmem:[#allocation5_spill] sm:$0xff] }
0x1710   :  { %v6428_v62 = vpack.c.bf16 %v6420_v27, %v6419_v56 }
0x1711   :  { %11937 = vmatpush3.bf16.msra.mxu1 %v6426_v5  ;;  %v6427_v2 = vpack.c.bf16 %v6418_v21, %v6417_v31  ;;  %v18004_v5 = vld [vmem:[#allocation2_spill] sm:$0xff] }
0x1713   :  { %11922 = vmatprep.mubr.bf16.mxu1 %v6427_v2  ;;  %11938 = vmatprep.subr.bf16.mxu1 %v6427_v2 }
0x1714   :  { %11923 = vmatmul.mubr.bf16.gmra.mrb[188].mxu1 %v6428_v62 }
0x1715   :  { %11939 = vmatpush3.bf16.msra.mxu1 %v6427_v2  ;;  %11942 = vmatprep.mubr.bf16.mxu1 %v15980_v18 }
0x1716   :  { %11940 = vmatprep.subr.bf16.mxu1 %v6428_v62 }
0x1719   :  { %11941 = vmatpush3.bf16.msra.mxu1 %v6428_v62 }
0x171a   :  { %12022 = vmatprep.subr.bf16.mxu1 %v15837_v51 }
0x171c   :  { %11943 = vmatmul.mubr.bf16.vlgmr.msra.gmra.mrb[176].mxu1 %v15987_v24 }
0x171d   :  { %11946 = vmatprep.mubr.bf16.mxu1 %v15993_v47  ;;  %12023 = vmatpush3.bf16.msra.mxu1 %v15837_v51  ;;  %v18006_v51 = vld [vmem:[#allocation21_spill] sm:$0xff] }
0x171e   :  { %12024 = vmatprep.subr.bf16.mxu1 %v15846_v7 }
0x1721   :  { %12025 = vmatpush3.bf16.msra.mxu1 %v15846_v7  ;;  %v18007_v7 = vld [vmem:[#allocation14_spill] sm:$0xff] }
0x1722   :  { %12026 = vmatprep.subr.bf16.mxu1 %v15853_v35 }
0x1724   :  { %11947 = vmatmul.mubr.bf16.gmra.mrb[180].mxu1 %v16003_v46 }
0x1725   :  { %11950 = vmatprep.mubr.bf16.mxu1 %v16009_v6  ;;  %12027 = vmatpush3.bf16.msra.mxu1 %v15853_v35  ;;  %v18010_v35 = vld [vmem:[#allocation16_spill] sm:$0xff] }
0x1726   :  { %12028 = vmatprep.subr.bf16.mxu1 %v15862_v19 }
0x1729   :  { %12029 = vmatpush3.bf16.msra.mxu1 %v15862_v19 }
0x172a   :  { %12030 = vmatprep.subr.bf16.mxu1 %v18004_v5 }
0x172c   :  { %11951 = vmatmul.mubr.bf16.gmra.mrb[184].mxu1 %v18005_v15 }
0x172d   :  { %11954 = vmatprep.mubr.bf16.mxu1 %v18006_v51  ;;  %12031 = vmatpush3.bf16.msra.mxu1 %v18004_v5 }
0x172e   :  { %12032 = vmatprep.subr.bf16.mxu1 %v18007_v7 }
0x1731   :  { %12033 = vmatpush3.bf16.msra.mxu1 %v18007_v7 }
0x1732   :  { %12034 = vmatprep.subr.bf16.mxu1 %v18008_v41 }
0x1734   :  { %11955 = vmatmul.mubr.bf16.gmra.mrb[188].mxu1 %v18009_v29 }
0x1735   :  { %12035 = vmatpush3.bf16.msra.mxu1 %v18008_v41 }
0x1736   :  { %12036 = vmatprep.subr.bf16.mxu1 %v18010_v35 }
0x1739   :  { %12037 = vmatpush3.bf16.msra.mxu1 %v18010_v35 }
0x17ef   :  { %v11944_v19 = vpop.f32.mrb[176].mxu1 }
0x17f0   :  { %v6625_v38 = vadd.f32 %v11944_v19, %v18011_v28  ;;  %v6560_v63 = vpop.f32.mrb[177].mxu1 }
0x17f1   :  { %v6623_v34 = vadd.f32 %v6560_v63, %v18012_v58  ;;  %v11945_v33 = vpop.f32.mrb[178].mxu1  ;;  %v18017_v63 = vld [vmem:[#allocation17_spill] sm:$0xff] }
0x17f2   :  { %v6641_v37 = vmul.f32 0.041666668, %v6625_v38  ;;  %v6673_v4 = vmul.f32 0.125, %v6625_v38  ;;  %v6626_v3 = vadd.f32 %v11945_v33, %v18013_v60  ;;  %v6563_v56 = vpop.f32.mrb[179].mxu1 }
0x17f3   :  { %v6639_v27 = vmul.f32 0.041666668, %v6623_v34  ;;  %v6671_v31 = vmul.f32 0.125, %v6623_v34  ;;  %v6624_v21 = vadd.f32 %v6563_v56, %v17992_v36  ;;  %v18018_v56 = vld [vmem:[#allocation18_spill] sm:$0xff] }
0x17f4   :  { %v16270_v62 = vadd.f32 %v6641_v37, %v16156_v10  ;;  %v6642_v2 = vmul.f32 0.041666668, %v6626_v3  ;;  %v6674_v5 = vmul.f32 0.125, %v6626_v3  ;;  %v6689_v19 = vadd.f32 %v6673_v4, %v15902_v22  ;;  %v18019_v10 = vld [vmem:[#allocation19_spill] sm:$0xff] }
0x17f5   :  { %v16273_v7 = vadd.f32 %v6639_v27, %v16159_v11  ;;  %v6640_v41 = vmul.f32 0.041666668, %v6624_v21  ;;  %v6672_v35 = vmul.f32 0.125, %v6624_v21  ;;  %v6687_v34 = vadd.f32 %v6671_v31, %v15905_v14  ;;  %v18020_v21 = vld [vmem:[#allocation7_spill] sm:$0xff] }
0x17f6   :  { %18014 = vst [vmem:[#allocation2_spill] sm:$0xff] %v16270_v62  ;;  %v16277_v38 = vadd.f32 %v6642_v2, %v16163_v53  ;;  %v6690_v33 = vadd.f32 %v6674_v5, %v18017_v63 }
0x17f7   :  { %18015 = vst [vmem:[#allocation25_spill] sm:$0xff] %v16273_v7  ;;  %v16282_v36 = vadd.f32 %v6640_v41, %v18018_v56  ;;  %v6688_v37 = vadd.f32 %v6672_v35, %v18019_v10  ;;  %v11948_v3 = vpop.f32.mrb[180].mxu1 }
0x17f8   :  { %18016 = vst [vmem:[#allocation21_spill] sm:$0xff] %v16277_v38  ;;  %v6704_v62 = vpack.c.bf16 %v6690_v33, %v6689_v19  ;;  %v6629_v11 = vadd.f32 %v11948_v3, %v13397_v30  ;;  %v6576_v27 = vpop.f32.mrb[181].mxu1  ;;  %v18021_v38 = vld [vmem:[#allocation8_spill] sm:$0xff] }
0x17f9   :  { %v6627_v7 = vadd.f32 %v6576_v27, %v18020_v21  ;;  %v11949_v22 = vpop.f32.mrb[182].mxu1  ;;  %v6703_v4 = vpack.c.bf16 %v6688_v37, %v6687_v34  ;;  %v18023_v27 = vld [vmem:[#allocation23_spill] sm:$0xff] }
0x17fa   :  { %v6645_v53 = vmul.f32 0.041666668, %v6629_v11  ;;  %v6677_v2 = vmul.f32 0.125, %v6629_v11  ;;  %v6630_v5 = vadd.f32 %v11949_v22, %v18021_v38  ;;  %v6579_v63 = vpop.f32.mrb[183].mxu1  ;;  %v18022_v11 = vld [vmem:[#allocation20_spill] sm:$0xff] }
0x17fb   :  { %v6643_v14 = vmul.f32 0.041666668, %v6627_v7  ;;  %v6675_v31 = vmul.f32 0.125, %v6627_v7  ;;  %v6628_v41 = vadd.f32 %v6579_v63, %v17997_v61  ;;  %11974 = vmatprep.mubr.bf16.mxu0 %v6703_v4  ;;  %11990 = vmatprep.subr.bf16.mxu0 %v6703_v4  ;;  %v18025_v63 = vld [vmem:[#allocation10_spill] sm:$0xff] }
0x17fc   :  { %v16290_v35 = vadd.f32 %v6645_v53, %v16180_v20  ;;  %v6646_v19 = vmul.f32 0.041666668, %v6630_v5  ;;  %v6678_v33 = vmul.f32 0.125, %v6630_v5  ;;  %11975 = vmatmul.mubr.bf16.vlgmr.msra.gmra.mrb[192].mxu0 %v6704_v62  ;;  %v6693_v37 = vadd.f32 %v6677_v2, %v15922_v0  ;;  %v18024_v53 = vld [vmem:[#allocation22_spill] sm:$0xff] }
0x17fd   :  { %v16293_v56 = vadd.f32 %v6643_v14, %v16183_v9  ;;  %v6644_v34 = vmul.f32 0.041666668, %v6628_v41  ;;  %v6676_v10 = vmul.f32 0.125, %v6628_v41  ;;  %11991 = vmatpush3.bf16.msra.mxu0 %v6703_v4  ;;  %v6691_v20 = vadd.f32 %v6675_v31, %v18022_v11 }
0x17fe   :  { %v16297_v7 = vadd.f32 %v6646_v19, %v16187_v57  ;;  %v6694_v3 = vadd.f32 %v6678_v33, %v15928_v23  ;;  %11992 = vmatprep.subr.bf16.mxu0 %v6704_v62 }
0x17ff   :  { %v16302_v22 = vadd.f32 %v6644_v34, %v18023_v27  ;;  %v6692_v5 = vadd.f32 %v6676_v10, %v18024_v53  ;;  %v11952_v9 = vpop.f32.mrb[184].mxu1 }
0x1800   :  { %v6633_v14 = vadd.f32 %v11952_v9, %v18025_v63  ;;  %v6592_v41 = vpop.f32.mrb[185].mxu1  ;;  %v6706_v4 = vpack.c.bf16 %v6694_v3, %v6693_v37 }
0x1801   :  { %v6631_v0 = vadd.f32 %v6592_v41, %v18000_v54  ;;  %11993 = vmatpush3.bf16.msra.mxu0 %v6704_v62  ;;  %v11953_v57 = vpop.f32.mrb[186].mxu1  ;;  %v6705_v2 = vpack.c.bf16 %v6692_v5, %v6691_v20 }
0x1802   :  { %v6649_v19 = vmul.f32 0.041666668, %v6633_v14  ;;  %v6681_v23 = vmul.f32 0.125, %v6633_v14  ;;  %v6634_v33 = vadd.f32 %v11953_v57, %v18001_v39  ;;  %v6595_v31 = vpop.f32.mrb[187].mxu1 }
0x1803   :  { %v6647_v11 = vmul.f32 0.041666668, %v6631_v0  ;;  %v6679_v34 = vmul.f32 0.125, %v6631_v0  ;;  %v6632_v27 = vadd.f32 %v6595_v31, %v18002_v40  ;;  %11978 = vmatprep.mubr.bf16.mxu0 %v6705_v2  ;;  %11994 = vmatprep.subr.bf16.mxu0 %v6705_v2  ;;  %v18026_v0 = vld [vmem:[#allocation26_spill] sm:$0xff] }
0x1804   :  { %v16310_v10 = vadd.f32 %v6649_v19, %v16204_v52  ;;  %v6650_v37 = vmul.f32 0.041666668, %v6634_v33  ;;  %v6682_v3 = vmul.f32 0.125, %v6634_v33  ;;  %11979 = vmatmul.mubr.bf16.gmra.mrb[196].mxu0 %v6706_v4  ;;  %v6697_v5 = vadd.f32 %v6681_v23, %v15942_v1 }
0x1805   :  { %v16313_v62 = vadd.f32 %v6647_v11, %v16207_v32  ;;  %v6648_v20 = vmul.f32 0.041666668, %v6632_v27  ;;  %v6680_v53 = vmul.f32 0.125, %v6632_v27  ;;  %11995 = vmatpush3.bf16.msra.mxu0 %v6705_v2  ;;  %v6695_v52 = vadd.f32 %v6679_v34, %v15945_v16 }
0x1806   :  { %v16317_v9 = vadd.f32 %v6650_v37, %v16211_v25  ;;  %v6698_v14 = vadd.f32 %v6682_v3, %v15948_v48  ;;  %11996 = vmatprep.subr.bf16.mxu0 %v6706_v4 }
0x1807   :  { %v16322_v41 = vadd.f32 %v6648_v20, %v16216_v59  ;;  %v6696_v57 = vadd.f32 %v6680_v53, %v18026_v0  ;;  %v11956_v32 = vpop.f32.mrb[188].mxu1 }
0x1808   :  { %v6637_v19 = vadd.f32 %v11956_v32, %v13421_v42  ;;  %v6608_v33 = vpop.f32.mrb[189].mxu1  ;;  %v6708_v2 = vpack.c.bf16 %v6698_v14, %v6697_v5 }
0x1809   :  { %v6635_v1 = vadd.f32 %v6608_v33, %v13423_v43  ;;  %11997 = vmatpush3.bf16.msra.mxu0 %v6706_v4  ;;  %v11957_v25 = vpop.f32.mrb[190].mxu1  ;;  %v6707_v23 = vpack.c.bf16 %v6696_v57, %v6695_v52 }
0x180a   :  { %v6653_v31 = vmul.f32 0.041666668, %v6637_v19  ;;  %v6685_v48 = vmul.f32 0.125, %v6637_v19  ;;  %v6638_v11 = vadd.f32 %v11957_v25, %v13425_v44  ;;  %v6611_v16 = vpop.f32.mrb[191].mxu1  ;;  %v18031_v25 = vld [vmem:[#allocation6_spill] sm:$0xff] }
0x180b   :  { %v6651_v34 = vmul.f32 0.041666668, %v6635_v1  ;;  %v6683_v59 = vmul.f32 0.125, %v6635_v1  ;;  %v6636_v27 = vadd.f32 %v6611_v16, %v13427_v45  ;;  %11982 = vmatprep.mubr.bf16.mxu0 %v6707_v23  ;;  %11998 = vmatprep.subr.bf16.mxu0 %v6707_v23  ;;  %v18033_v16 = vld [vmem:[#allocation25_spill] sm:$0xff] }
0x180c   :  { %v16330_v37 = vadd.f32 %v6653_v31, %v16228_v26  ;;  %v6654_v3 = vmul.f32 0.041666668, %v6638_v11  ;;  %v6686_v20 = vmul.f32 0.125, %v6638_v11  ;;  %11983 = vmatmul.mubr.bf16.gmra.mrb[200].mxu0 %v6708_v2  ;;  %v6701_v14 = vadd.f32 %v6685_v48, %v15962_v8  ;;  %v16349_v8 = vld [vmem:[%s17470_s3] sm:$0xff]  }
0x180d   :  { %v16333_v4 = vadd.f32 %v6651_v34, %v16231_v17  ;;  %v6652_v53 = vmul.f32 0.041666668, %v6636_v27  ;;  %v6684_v5 = vmul.f32 0.125, %v6636_v27  ;;  %11999 = vmatpush3.bf16.msra.mxu0 %v6707_v23  ;;  %v6699_v26 = vadd.f32 %v6683_v59, %v15965_v55  ;;  %v16358_v55 = vld [vmem:[%s17470_s3 + $0x8] sm:$0xff]   ;;  %v18032_v31 = vld [vmem:[#allocation2_spill] sm:$0xff]  ;;  %v18034_v27 = vld [vmem:[#allocation21_spill] sm:$0xff] }
0x180e   :  { %v16337_v52 = vadd.f32 %v6654_v3, %v16234_v49  ;;  %v6702_v0 = vadd.f32 %v6686_v20, %v15968_v13  ;;  %12000 = vmatprep.subr.bf16.mxu0 %v6708_v2  ;;  %v16365_v13 = vld [vmem:[%s17470_s3 + $0x10] sm:$0xff]  }
0x180f   :  { %v16342_v57 = vadd.f32 %v6652_v53, %v16238_v50  ;;  %v6700_v32 = vadd.f32 %v6684_v5, %v15971_v12  ;;  %v16374_v12 = vld [vmem:[%s17470_s3 + $0x18] sm:$0xff]  }
0x1810   :  { %v6710_v17 = vpack.c.bf16 %v6702_v0, %v6701_v14 }
0x1811   :  { %12001 = vmatpush3.bf16.msra.mxu0 %v6708_v2  ;;  %v6709_v19 = vpack.c.bf16 %v6700_v32, %v6699_v26 }
0x1813   :  { %11986 = vmatprep.mubr.bf16.mxu0 %v6709_v19  ;;  %12002 = vmatprep.subr.bf16.mxu0 %v6709_v19 }
0x1814   :  { %11987 = vmatmul.mubr.bf16.gmra.mrb[204].mxu0 %v6710_v17 }
0x1815   :  { %12003 = vmatpush3.bf16.msra.mxu0 %v6709_v19  ;;  %12006 = vmatprep.mubr.bf16.mxu0 %v15980_v18  ;;  %v16381_v18 = vld [vmem:[%s17470_s3 + $0x20] sm:$0xff]  }
0x1816   :  { %12004 = vmatprep.subr.bf16.mxu0 %v6710_v17  ;;  %18027 = vst [vmem:[#allocation14_spill] sm:$0xff] %v16381_v18 }
0x1819   :  { %12005 = vmatpush3.bf16.msra.mxu0 %v6710_v17 }
0x181a   :  { %12086 = vmatprep.subr.bf16.mxu0 %v16349_v8 }
0x181c   :  { %12007 = vmatmul.mubr.bf16.vlgmr.msra.gmra.mrb[192].mxu0 %v15987_v24  ;;  %v16390_v24 = vld [vmem:[%s17470_s3 + $0x28] sm:$0xff]  }
0x181d   :  { %12010 = vmatprep.mubr.bf16.mxu0 %v15993_v47  ;;  %12087 = vmatpush3.bf16.msra.mxu0 %v16349_v8  ;;  %18028 = vst [vmem:[#allocation15_spill] sm:$0xff] %v16390_v24  ;;  %v16397_v47 = vld [vmem:[%s17470_s3 + $0x30] sm:$0xff]  }
0x181e   :  { %12088 = vmatprep.subr.bf16.mxu0 %v16358_v55  ;;  %18029 = vst [vmem:[#allocation24_spill] sm:$0xff] %v16397_v47 }
0x1821   :  { %12089 = vmatpush3.bf16.msra.mxu0 %v16358_v55 }
0x1822   :  { %12090 = vmatprep.subr.bf16.mxu0 %v16365_v13 }
0x1824   :  { %12011 = vmatmul.mubr.bf16.gmra.mrb[196].mxu0 %v16003_v46  ;;  %v16405_v46 = vld [vmem:[%s17470_s3 + $0x38] sm:$0xff]  }
0x1825   :  { %12014 = vmatprep.mubr.bf16.mxu0 %v16009_v6  ;;  %12091 = vmatpush3.bf16.msra.mxu0 %v16365_v13  ;;  %18030 = vst [vmem:[#allocation16_spill] sm:$0xff] %v16405_v46 }
0x1826   :  { %12092 = vmatprep.subr.bf16.mxu0 %v16374_v12 }
0x1829   :  { %12093 = vmatpush3.bf16.msra.mxu0 %v16374_v12 }
0x182a   :  { %12094 = vmatprep.subr.bf16.mxu0 %v16381_v18 }
0x182c   :  { %12015 = vmatmul.mubr.bf16.gmra.mrb[200].mxu0 %v18005_v15 }
0x182d   :  { %12018 = vmatprep.mubr.bf16.mxu0 %v18006_v51  ;;  %12095 = vmatpush3.bf16.msra.mxu0 %v16381_v18 }
0x182e   :  { %12096 = vmatprep.subr.bf16.mxu0 %v16390_v24 }
0x1831   :  { %12097 = vmatpush3.bf16.msra.mxu0 %v16390_v24 }
0x1832   :  { %12098 = vmatprep.subr.bf16.mxu0 %v16397_v47 }
0x1834   :  { %12019 = vmatmul.mubr.bf16.gmra.mrb[204].mxu0 %v18009_v29 }
0x1835   :  { %12099 = vmatpush3.bf16.msra.mxu0 %v16397_v47 }
0x1836   :  { %12100 = vmatprep.subr.bf16.mxu0 %v16405_v46 }
0x1839   :  { %12101 = vmatpush3.bf16.msra.mxu0 %v16405_v46 }
0x18ef   :  { %v12008_v6 = vpop.f32.mrb[192].mxu0 }
0x18f0   :  { %v6907_v49 = vadd.f32 %v12008_v6, %v18011_v28  ;;  %v6842_v50 = vpop.f32.mrb[193].mxu0 }
0x18f1   :  { %v6905_v15 = vadd.f32 %v6842_v50, %v18012_v58  ;;  %v12009_v51 = vpop.f32.mrb[194].mxu0 }
0x18f2   :  { %v6923_v33 = vmul.f32 0.020833334, %v6907_v49  ;;  %v6908_v29 = vadd.f32 %v12009_v51, %v18013_v60  ;;  %v6845_v2 = vpop.f32.mrb[195].mxu0 }
0x18f3   :  { %v6921_v1 = vmul.f32 0.020833334, %v6905_v15  ;;  %v6906_v23 = vadd.f32 %v6845_v2, %v18031_v25 }
0x18f4   :  { %v16414_v48 = vadd.f32 %v6923_v33, %v18032_v31  ;;  %v6924_v11 = vmul.f32 0.020833334, %v6908_v29 }
0x18f5   :  { %v16417_v34 = vadd.f32 %v6921_v1, %v18033_v16  ;;  %v6922_v59 = vmul.f32 0.020833334, %v6906_v23 }
0x18f6   :  { %v16420_v3 = vadd.f32 %v6924_v11, %v18034_v27 }
0x18f7   :  { %v16423_v20 = vadd.f32 %v6922_v59, %v16282_v36  ;;  %v12012_v53 = vpop.f32.mrb[196].mxu0 }
0x18f8   :  { %18035 = vst [vmem:[#allocation17_spill] sm:$0xff] %v16420_v3  ;;  %v6911_v5 = vadd.f32 %v12012_v53, %v13397_v30  ;;  %v6858_v14 = vpop.f32.mrb[197].mxu0  ;;  %v6954_v49 = vpack.c.bf16 %v16420_v3, %v16414_v48 }
0x18f9   :  { %18036 = vst [vmem:[#allocation18_spill] sm:$0xff] %v16423_v20  ;;  %v6909_v0 = vadd.f32 %v6858_v14, %v18020_v21  ;;  %v12013_v26 = vpop.f32.mrb[198].mxu0  ;;  %v6953_v32 = vpack.c.bf16 %v16423_v20, %v16417_v34 }
0x18fa   :  { %v6927_v17 = vmul.f32 0.020833334, %v6911_v5  ;;  %v6912_v19 = vadd.f32 %v12013_v26, %v18021_v38  ;;  %v6861_v6 = vpop.f32.mrb[199].mxu0 }
0x18fb   :  { %v6925_v50 = vmul.f32 0.020833334, %v6909_v0  ;;  %v6910_v36 = vadd.f32 %v6861_v6, %v17997_v61  ;;  %12038 = vmatprep.mubr.bf16.mxu1 %v6953_v32  ;;  %12054 = vmatprep.subr.bf16.mxu1 %v6953_v32 }
0x18fc   :  { %v16434_v15 = vadd.f32 %v6927_v17, %v16290_v35  ;;  %v6928_v51 = vmul.f32 0.020833334, %v6912_v19  ;;  %12039 = vmatmul.mubr.bf16.vlgmr.msra.gmra.mrb[192].mxu1 %v6954_v49 }
0x18fd   :  { %v16437_v33 = vadd.f32 %v6925_v50, %v16293_v56  ;;  %v6926_v29 = vmul.f32 0.020833334, %v6910_v36  ;;  %12055 = vmatpush3.bf16.msra.mxu1 %v6953_v32 }
0x18fe   :  { %v16440_v2 = vadd.f32 %v6928_v51, %v16297_v7  ;;  %12056 = vmatprep.subr.bf16.mxu1 %v6954_v49 }
0x18ff   :  { %18037 = vst [vmem:[#allocation19_spill] sm:$0xff] %v16437_v33  ;;  %v16443_v1 = vadd.f32 %v6926_v29, %v16302_v22  ;;  %v12016_v23 = vpop.f32.mrb[200].mxu0 }
0x1900   :  { %v6915_v31 = vadd.f32 %v12016_v23, %v18025_v63  ;;  %v6874_v11 = vpop.f32.mrb[201].mxu0  ;;  %v6956_v53 = vpack.c.bf16 %v16440_v2, %v16434_v15 }
0x1901   :  { %18038 = vst [vmem:[#allocation20_spill] sm:$0xff] %v16443_v1  ;;  %v6913_v35 = vadd.f32 %v6874_v11, %v18000_v54  ;;  %12057 = vmatpush3.bf16.msra.mxu1 %v6954_v49  ;;  %v12017_v16 = vpop.f32.mrb[202].mxu0  ;;  %v6955_v56 = vpack.c.bf16 %v16443_v1, %v16437_v33 }
0x1902   :  { %v6931_v59 = vmul.f32 0.020833334, %v6915_v31  ;;  %v6916_v27 = vadd.f32 %v12017_v16, %v18001_v39  ;;  %v6877_v7 = vpop.f32.mrb[203].mxu0 }
0x1903   :  { %v6929_v22 = vmul.f32 0.020833334, %v6913_v35  ;;  %v6914_v5 = vadd.f32 %v6877_v7, %v18002_v40  ;;  %12042 = vmatprep.mubr.bf16.mxu1 %v6955_v56  ;;  %12058 = vmatprep.subr.bf16.mxu1 %v6955_v56 }
0x1904   :  { %v16454_v14 = vadd.f32 %v6931_v59, %v16310_v10  ;;  %v6932_v0 = vmul.f32 0.020833334, %v6916_v27  ;;  %12043 = vmatmul.mubr.bf16.gmra.mrb[196].mxu1 %v6956_v53 }
0x1905   :  { %v16457_v26 = vadd.f32 %v6929_v22, %v16313_v62  ;;  %v6930_v32 = vmul.f32 0.020833334, %v6914_v5  ;;  %12059 = vmatpush3.bf16.msra.mxu1 %v6955_v56  ;;  %v16521_v22 = vld [vmem:[%s17471_s2 + $0x20] sm:$0xff]   ;;  %v16531_v5 = vld [vmem:[%s17471_s2 + $0x28] sm:$0xff]  }
0x1906   :  { %v16460_v17 = vadd.f32 %v6932_v0, %v16317_v9  ;;  %12060 = vmatprep.subr.bf16.mxu1 %v6956_v53  ;;  %18040 = vst [vmem:[#allocation22_spill] sm:$0xff] %v16531_v5  ;;  %v16537_v0 = vld [vmem:[%s17471_s2 + $0x30] sm:$0xff]  }
0x1907   :  { %v16463_v19 = vadd.f32 %v6930_v32, %v16322_v41  ;;  %v12020_v6 = vpop.f32.mrb[204].mxu0  ;;  %18041 = vst [vmem:[#allocation26_spill] sm:$0xff] %v16537_v0  ;;  %v16547_v32 = vld [vmem:[%s17471_s2 + $0x38] sm:$0xff]  }
0x1908   :  { %v6919_v49 = vadd.f32 %v12020_v6, %v13421_v42  ;;  %v6890_v50 = vpop.f32.mrb[205].mxu0  ;;  %v6958_v23 = vpack.c.bf16 %v16460_v17, %v16454_v14  ;;  %18042 = vst [vmem:[#allocation2_spill] sm:$0xff] %v16547_v32 }
0x1909   :  { %18039 = vst [vmem:[#allocation23_spill] sm:$0xff] %v16463_v19  ;;  %v6917_v10 = vadd.f32 %v6890_v50, %v13423_v43  ;;  %12061 = vmatpush3.bf16.msra.mxu1 %v6956_v53  ;;  %v12021_v36 = vpop.f32.mrb[206].mxu0  ;;  %v6957_v62 = vpack.c.bf16 %v16463_v19, %v16457_v26  ;;  %v16515_v53 = vld [vmem:[%s17471_s2 + $0x18] sm:$0xff]  }
0x190a   :  { %v6935_v51 = vmul.f32 0.020833334, %v6919_v49  ;;  %v6920_v29 = vadd.f32 %v12021_v36, %v13425_v44  ;;  %v6893_v9 = vpop.f32.mrb[207].mxu0 }
0x190b   :  { %v6933_v41 = vmul.f32 0.020833334, %v6917_v10  ;;  %v6918_v31 = vadd.f32 %v6893_v9, %v13427_v45  ;;  %12046 = vmatprep.mubr.bf16.mxu1 %v6957_v62  ;;  %12062 = vmatprep.subr.bf16.mxu1 %v6957_v62 }
0x190c   :  { %v16474_v11 = vadd.f32 %v6935_v51, %v16330_v37  ;;  %v6936_v35 = vmul.f32 0.020833334, %v6920_v29  ;;  %12047 = vmatmul.mubr.bf16.gmra.mrb[200].mxu1 %v6958_v23 }
0x190d   :  { %v16477_v16 = vadd.f32 %v6933_v41, %v16333_v4  ;;  %v6934_v56 = vmul.f32 0.020833334, %v6918_v31  ;;  %12063 = vmatpush3.bf16.msra.mxu1 %v6957_v62  ;;  %v16492_v4 = vld [vmem:[%s17471_s2] sm:$0xff]  }
0x190e   :  { %v16480_v59 = vadd.f32 %v6936_v35, %v16337_v52  ;;  %12064 = vmatprep.subr.bf16.mxu1 %v6958_v23  ;;  %v16499_v52 = vld [vmem:[%s17471_s2 + $0x8] sm:$0xff]  }
0x190f   :  { %v16483_v27 = vadd.f32 %v6934_v56, %v16342_v57  ;;  %v16505_v57 = vld [vmem:[%s17471_s2 + $0x10] sm:$0xff]  }
0x1910   :  { %v6960_v37 = vpack.c.bf16 %v16480_v59, %v16474_v11 }
0x1911   :  { %12065 = vmatpush3.bf16.msra.mxu1 %v6958_v23  ;;  %v6959_v7 = vpack.c.bf16 %v16483_v27, %v16477_v16 }
0x1913   :  { %12050 = vmatprep.mubr.bf16.mxu1 %v6959_v7  ;;  %12066 = vmatprep.subr.bf16.mxu1 %v6959_v7 }
0x1914   :  { %12051 = vmatmul.mubr.bf16.gmra.mrb[204].mxu1 %v6960_v37 }
0x1915   :  { %12067 = vmatpush3.bf16.msra.mxu1 %v6959_v7  ;;  %12070 = vmatprep.mubr.bf16.mxu1 %v16492_v4 }
0x1916   :  { %12068 = vmatprep.subr.bf16.mxu1 %v6960_v37 }
0x1919   :  { %12069 = vmatpush3.bf16.msra.mxu1 %v6960_v37 }
0x191a   :  { %12150 = vmatprep.subr.bf16.mxu1 %v16349_v8 }
0x191c   :  { %12071 = vmatmul.mubr.bf16.vlgmr.msra.gmra.mrb[192].mxu1 %v16499_v52 }
0x191d   :  { %12074 = vmatprep.mubr.bf16.mxu1 %v16505_v57  ;;  %12151 = vmatpush3.bf16.msra.mxu1 %v16349_v8 }
0x191e   :  { %12152 = vmatprep.subr.bf16.mxu1 %v16358_v55 }
0x1921   :  { %12153 = vmatpush3.bf16.msra.mxu1 %v16358_v55 }
0x1922   :  { %12154 = vmatprep.subr.bf16.mxu1 %v16365_v13 }
0x1924   :  { %12075 = vmatmul.mubr.bf16.gmra.mrb[196].mxu1 %v16515_v53 }
0x1925   :  { %12078 = vmatprep.mubr.bf16.mxu1 %v16521_v22  ;;  %12155 = vmatpush3.bf16.msra.mxu1 %v16365_v13 }
0x1926   :  { %12156 = vmatprep.subr.bf16.mxu1 %v16374_v12 }
0x1929   :  { %12157 = vmatpush3.bf16.msra.mxu1 %v16374_v12 }
0x192a   :  { %12158 = vmatprep.subr.bf16.mxu1 %v16381_v18 }
0x192c   :  { %12079 = vmatmul.mubr.bf16.gmra.mrb[200].mxu1 %v16531_v5 }
0x192d   :  { %12082 = vmatprep.mubr.bf16.mxu1 %v16537_v0  ;;  %12159 = vmatpush3.bf16.msra.mxu1 %v16381_v18 }
0x192e   :  { %12160 = vmatprep.subr.bf16.mxu1 %v16390_v24 }
0x1931   :  { %12161 = vmatpush3.bf16.msra.mxu1 %v16390_v24 }
0x1932   :  { %12162 = vmatprep.subr.bf16.mxu1 %v16397_v47 }
0x1934   :  { %12083 = vmatmul.mubr.bf16.gmra.mrb[204].mxu1 %v16547_v32 }
0x1935   :  { %12163 = vmatpush3.bf16.msra.mxu1 %v16397_v47 }
0x1936   :  { %12164 = vmatprep.subr.bf16.mxu1 %v16405_v46 }
0x1939   :  { %12165 = vmatpush3.bf16.msra.mxu1 %v16405_v46 }
0x19ef   :  { %v12072_v6 = vpop.f32.mrb[192].mxu1 }
0x19f0   :  { %v16554_v49 = vadd.f32 %v12072_v6, %v18011_v28  ;;  %v7092_v50 = vpop.f32.mrb[193].mxu1 }
0x19f1   :  { %v16557_v10 = vadd.f32 %v7092_v50, %v18012_v58  ;;  %v12073_v36 = vpop.f32.mrb[194].mxu1 }
0x19f2   :  { %v7205_v62 = vmul.f32 0.0625, %v16554_v49  ;;  %v16561_v51 = vadd.f32 %v12073_v36, %v18013_v60  ;;  %v7095_v29 = vpop.f32.mrb[195].mxu1 }
0x19f3   :  { %v7203_v9 = vmul.f32 0.0625, %v16557_v10  ;;  %v16565_v23 = vadd.f32 %v7095_v29, %v18031_v25 }
0x19f4   :  { %v7206_v41 = vmul.f32 0.0625, %v16561_v51  ;;  %v7221_v35 = vadd.f32 %v7205_v62, %v16414_v48 }
0x19f5   :  { %18043 = vst [vmem:[#allocation25_spill] sm:$0xff] %v16565_v23  ;;  %v7204_v31 = vmul.f32 0.0625, %v16565_v23  ;;  %v7219_v7 = vadd.f32 %v7203_v9, %v16417_v34 }
0x19f6   :  { %v7222_v56 = vadd.f32 %v7206_v41, %v16420_v3 }
0x19f7   :  { %v7220_v37 = vadd.f32 %v7204_v31, %v16423_v20  ;;  %v12076_v6 = vpop.f32.mrb[196].mxu1 }
0x19f8   :  { %v7236_v50 = vpack.c.bf16 %v7222_v56, %v7221_v35  ;;  %v16574_v36 = vadd.f32 %v12076_v6, %v13397_v30  ;;  %v7108_v60 = vpop.f32.mrb[197].mxu1 }
0x19f9   :  { %v16577_v29 = vadd.f32 %v7108_v60, %v18020_v21  ;;  %v12077_v25 = vpop.f32.mrb[198].mxu1  ;;  %v7235_v58 = vpack.c.bf16 %v7220_v37, %v7219_v7 }
0x19fa   :  { %v7209_v23 = vmul.f32 0.0625, %v16574_v36  ;;  %v16581_v62 = vadd.f32 %v12077_v25, %v18021_v38  ;;  %v7111_v41 = vpop.f32.mrb[199].mxu1 }
0x19fb   :  { %v7207_v9 = vmul.f32 0.0625, %v16577_v29  ;;  %v16585_v31 = vadd.f32 %v7111_v41, %v17997_v61  ;;  %12102 = vmatprep.mubr.bf16.mxu0 %v7235_v58  ;;  %12118 = vmatprep.subr.bf16.mxu0 %v7235_v58 }
0x19fc   :  { %v7210_v35 = vmul.f32 0.0625, %v16581_v62  ;;  %12103 = vmatmul.mubr.bf16.vlgmr.msra.gmra.mrb[208].mxu0 %v7236_v50  ;;  %v7225_v56 = vadd.f32 %v7209_v23, %v16434_v15 }
0x19fd   :  { %18044 = vst [vmem:[#allocation21_spill] sm:$0xff] %v16585_v31  ;;  %v7208_v60 = vmul.f32 0.0625, %v16585_v31  ;;  %12119 = vmatpush3.bf16.msra.mxu0 %v7235_v58  ;;  %v7223_v25 = vadd.f32 %v7207_v9, %v16437_v33 }
0x19fe   :  { %v7226_v7 = vadd.f32 %v7210_v35, %v16440_v2  ;;  %12120 = vmatprep.subr.bf16.mxu0 %v7236_v50 }
0x19ff   :  { %v7224_v37 = vadd.f32 %v7208_v60, %v16443_v1  ;;  %v12080_v6 = vpop.f32.mrb[200].mxu1 }
0x1a00   :  { %v16594_v41 = vadd.f32 %v12080_v6, %v18025_v63  ;;  %v7124_v61 = vpop.f32.mrb[201].mxu1  ;;  %v7238_v38 = vpack.c.bf16 %v7226_v7, %v7225_v56 }
0x1a01   :  { %v16597_v21 = vadd.f32 %v7124_v61, %v18000_v54  ;;  %12121 = vmatpush3.bf16.msra.mxu0 %v7236_v50  ;;  %v12081_v58 = vpop.f32.mrb[202].mxu1  ;;  %v7237_v31 = vpack.c.bf16 %v7224_v37, %v7223_v25 }
0x1a02   :  { %v7213_v23 = vmul.f32 0.0625, %v16594_v41  ;;  %v16601_v35 = vadd.f32 %v12081_v58, %v18001_v39  ;;  %v7127_v9 = vpop.f32.mrb[203].mxu1 }
0x1a03   :  { %v7211_v60 = vmul.f32 0.0625, %v16597_v21  ;;  %v16605_v1 = vadd.f32 %v7127_v9, %v18002_v40  ;;  %12106 = vmatprep.mubr.bf16.mxu0 %v7237_v31  ;;  %12122 = vmatprep.subr.bf16.mxu0 %v7237_v31 }
0x1a04   :  { %v7214_v56 = vmul.f32 0.0625, %v16601_v35  ;;  %12107 = vmatmul.mubr.bf16.gmra.mrb[212].mxu0 %v7238_v38  ;;  %v7229_v50 = vadd.f32 %v7213_v23, %v16454_v14 }
0x1a05   :  { %v7212_v61 = vmul.f32 0.0625, %v16605_v1  ;;  %12123 = vmatpush3.bf16.msra.mxu0 %v7237_v31  ;;  %v7227_v25 = vadd.f32 %v7211_v60, %v16457_v26 }
0x1a06   :  { %v7230_v7 = vadd.f32 %v7214_v56, %v16460_v17  ;;  %12124 = vmatprep.subr.bf16.mxu0 %v7238_v38 }
0x1a07   :  { %v7228_v37 = vadd.f32 %v7212_v61, %v16463_v19  ;;  %v12084_v6 = vpop.f32.mrb[204].mxu1 }
0x1a08   :  { %v16614_v58 = vadd.f32 %v12084_v6, %v13421_v42  ;;  %v7140_v9 = vpop.f32.mrb[205].mxu1  ;;  %v7240_v40 = vpack.c.bf16 %v7230_v7, %v7229_v50 }
0x1a09   :  { %v16617_v39 = vadd.f32 %v7140_v9, %v13423_v43  ;;  %12125 = vmatpush3.bf16.msra.mxu0 %v7238_v38  ;;  %v12085_v31 = vpop.f32.mrb[206].mxu1  ;;  %v7239_v54 = vpack.c.bf16 %v7228_v37, %v7227_v25 }
0x1a0a   :  { %v7217_v23 = vmul.f32 0.0625, %v16614_v58  ;;  %v16621_v56 = vadd.f32 %v12085_v31, %v13425_v44  ;;  %v7143_v60 = vpop.f32.mrb[207].mxu1 }
0x1a0b   :  { %v7215_v61 = vmul.f32 0.0625, %v16617_v39  ;;  %v16625_v19 = vadd.f32 %v7143_v60, %v13427_v45  ;;  %12110 = vmatprep.mubr.bf16.mxu0 %v7239_v54  ;;  %12126 = vmatprep.subr.bf16.mxu0 %v7239_v54  ;;  %v7174_v60 = vmul.f32 0.020833334, %v16561_v51  ;;  %v18048_v51 = vld [vmem:[#allocation6_spill] sm:$0xff] }
0x1a0c   :  { %v7218_v50 = vmul.f32 0.0625, %v16621_v56  ;;  %12111 = vmatmul.mubr.bf16.gmra.mrb[216].mxu0 %v7240_v40  ;;  %v7233_v7 = vadd.f32 %v7217_v23, %v16474_v11 }
0x1a0d   :  { %v7216_v38 = vmul.f32 0.0625, %v16625_v19  ;;  %12127 = vmatpush3.bf16.msra.mxu0 %v7239_v54  ;;  %v7231_v37 = vadd.f32 %v7215_v61, %v16477_v16  ;;  %v7171_v54 = vmul.f32 0.020833334, %v16557_v10 }
0x1a0e   :  { %v7234_v25 = vadd.f32 %v7218_v50, %v16480_v59  ;;  %12128 = vmatprep.subr.bf16.mxu0 %v7240_v40 }
0x1a0f   :  { %v7232_v6 = vadd.f32 %v7216_v38, %v16483_v27  ;;  %v18045_v38 = vld [vmem:[#allocation25_spill] sm:$0xff]  ;;  %v7187_v10 = vadd.f32 %v7171_v54, %v16417_v34 }
0x1a10   :  { %v7242_v9 = vpack.c.bf16 %v7234_v25, %v7233_v7  ;;  %v7172_v7 = vmul.f32 0.020833334, %v18045_v38  ;;  %v18046_v25 = vld [vmem:[#allocation4_spill] sm:$0xff] }
0x1a11   :  { %12129 = vmatpush3.bf16.msra.mxu0 %v7240_v40  ;;  %v7241_v31 = vpack.c.bf16 %v7232_v6, %v7231_v37  ;;  %v7173_v40 = vmul.f32 0.020833334, %v16554_v49 }
0x1a13   :  { %12114 = vmatprep.mubr.bf16.mxu0 %v7241_v31  ;;  %12130 = vmatprep.subr.bf16.mxu0 %v7241_v31 }
0x1a14   :  { %12115 = vmatmul.mubr.bf16.gmra.mrb[220].mxu0 %v7242_v9 }
0x1a15   :  { %12131 = vmatpush3.bf16.msra.mxu0 %v7241_v31  ;;  %12134 = vmatprep.mubr.bf16.mxu0 %v16492_v4 }
0x1a16   :  { %12132 = vmatprep.subr.bf16.mxu0 %v7242_v9 }
0x1a19   :  { %12133 = vmatpush3.bf16.msra.mxu0 %v7242_v9  ;;  %v7189_v9 = vadd.f32 %v7173_v40, %v16414_v48 }
0x1a1a   :  { %12214 = vmatprep.subr.bf16.mxu0 %v16349_v8 }
0x1a1c   :  { %12135 = vmatmul.mubr.bf16.vlgmr.msra.gmra.mrb[208].mxu0 %v16499_v52 }
0x1a1d   :  { %12138 = vmatprep.mubr.bf16.mxu0 %v16505_v57  ;;  %12215 = vmatpush3.bf16.msra.mxu0 %v16349_v8 }
0x1a1e   :  { %12216 = vmatprep.subr.bf16.mxu0 %v16358_v55 }
0x1a21   :  { %12217 = vmatpush3.bf16.msra.mxu0 %v16358_v55 }
0x1a22   :  { %12218 = vmatprep.subr.bf16.mxu0 %v16365_v13 }
0x1a24   :  { %12139 = vmatmul.mubr.bf16.gmra.mrb[212].mxu0 %v16515_v53 }
0x1a25   :  { %12142 = vmatprep.mubr.bf16.mxu0 %v16521_v22  ;;  %12219 = vmatpush3.bf16.msra.mxu0 %v16365_v13 }
0x1a26   :  { %12220 = vmatprep.subr.bf16.mxu0 %v16374_v12 }
0x1a29   :  { %12221 = vmatpush3.bf16.msra.mxu0 %v16374_v12 }
0x1a2a   :  { %12222 = vmatprep.subr.bf16.mxu0 %v16381_v18 }
0x1a2c   :  { %12143 = vmatmul.mubr.bf16.gmra.mrb[216].mxu0 %v16531_v5 }
0x1a2d   :  { %12146 = vmatprep.mubr.bf16.mxu0 %v16537_v0  ;;  %12223 = vmatpush3.bf16.msra.mxu0 %v16381_v18 }
0x1a2e   :  { %12224 = vmatprep.subr.bf16.mxu0 %v16390_v24 }
0x1a31   :  { %12225 = vmatpush3.bf16.msra.mxu0 %v16390_v24 }
0x1a32   :  { %12226 = vmatprep.subr.bf16.mxu0 %v16397_v47 }
0x1a34   :  { %12147 = vmatmul.mubr.bf16.gmra.mrb[220].mxu0 %v16547_v32 }
0x1a35   :  { %12227 = vmatpush3.bf16.msra.mxu0 %v16397_v47 }
0x1a36   :  { %12228 = vmatprep.subr.bf16.mxu0 %v16405_v46 }
0x1a39   :  { %12229 = vmatpush3.bf16.msra.mxu0 %v16405_v46  ;;  %v18047_v46 = vld [vmem:[#allocation5_spill] sm:$0xff] }
0x1aef   :  { %v12136_v23 = vpop.f32.mrb[208].mxu0 }
0x1af0   :  { %v7439_v61 = vadd.f32 %v12136_v23, %v18011_v28  ;;  %v7374_v50 = vpop.f32.mrb[209].mxu0  ;;  %v7190_v23 = vadd.f32 %v7174_v60, %v16420_v3  ;;  %v7175_v60 = vmul.f32 0.020833334, %v16577_v29 }
0x1af1   :  { %v7437_v37 = vadd.f32 %v7374_v50, %v18046_v25  ;;  %v12137_v6 = vpop.f32.mrb[210].mxu0  ;;  %v7188_v25 = vadd.f32 %v7172_v7, %v16423_v20  ;;  %v7178_v7 = vmul.f32 0.020833334, %v16581_v62 }
0x1af2   :  { %v7455_v31 = vmul.f32 0.041666668, %v7439_v61  ;;  %v7487_v32 = vmul.f32 0.0625, %v7439_v61  ;;  %v7440_v47 = vadd.f32 %v12137_v6, %v18047_v46  ;;  %v7377_v49 = vpop.f32.mrb[211].mxu0  ;;  %v7177_v6 = vmul.f32 0.020833334, %v16574_v36 }
0x1af3   :  { %v7453_v24 = vmul.f32 0.041666668, %v7437_v37  ;;  %v7485_v0 = vmul.f32 0.0625, %v7437_v37  ;;  %v7438_v5 = vadd.f32 %v7377_v49, %v18048_v51 }
0x1af4   :  { %v16668_v28 = vadd.f32 %v7455_v31, %v7189_v9  ;;  %v7456_v38 = vmul.f32 0.041666668, %v7440_v47  ;;  %v7488_v50 = vmul.f32 0.0625, %v7440_v47  ;;  %v7503_v54 = vadd.f32 %v7487_v32, %v16414_v48  ;;  %v18050_v32 = vld [vmem:[#allocation21_spill] sm:$0xff] }
0x1af5   :  { %v16671_v40 = vadd.f32 %v7453_v24, %v7187_v10  ;;  %v7454_v61 = vmul.f32 0.041666668, %v7438_v5  ;;  %v7486_v18 = vmul.f32 0.0625, %v7438_v5  ;;  %v7501_v9 = vadd.f32 %v7485_v0, %v16417_v34 }
0x1af6   :  { %v16675_v46 = vadd.f32 %v7456_v38, %v7190_v23  ;;  %v7504_v37 = vadd.f32 %v7488_v50, %v16420_v3  ;;  %v7176_v10 = vmul.f32 0.020833334, %v18050_v32  ;;  %v18051_v23 = vld [vmem:[#allocation7_spill] sm:$0xff]  ;;  %v7193_v29 = vadd.f32 %v7177_v6, %v16434_v15  ;;  %v18054_v6 = vld [vmem:[#allocation20_spill] sm:$0xff] }
0x1af7   :  { %v16680_v31 = vadd.f32 %v7454_v61, %v7188_v25  ;;  %v7502_v47 = vadd.f32 %v7486_v18, %v16423_v20  ;;  %v12140_v24 = vpop.f32.mrb[212].mxu0  ;;  %v18052_v61 = vld [vmem:[#allocation8_spill] sm:$0xff]  ;;  %v7191_v20 = vadd.f32 %v7175_v60, %v16437_v33  ;;  %v7194_v32 = vadd.f32 %v7178_v7, %v16440_v2 }
0x1af8   :  { %v7518_v5 = vpack.c.bf16 %v7504_v37, %v7503_v54  ;;  %v7443_v36 = vadd.f32 %v12140_v24, %v13397_v30  ;;  %v7390_v49 = vpop.f32.mrb[213].mxu0  ;;  %v18053_v37 = vld [vmem:[#allocation9_spill] sm:$0xff]  ;;  %v7181_v60 = vmul.f32 0.020833334, %v16594_v41 }
0x1af9   :  { %18049 = vst [vmem:[#allocation25_spill] sm:$0xff] %v16680_v31  ;;  %v7441_v38 = vadd.f32 %v7390_v49, %v18051_v23  ;;  %v12141_v50 = vpop.f32.mrb[214].mxu0  ;;  %v7517_v3 = vpack.c.bf16 %v7502_v47, %v7501_v9 }
0x1afa   :  { %v7459_v0 = vmul.f32 0.041666668, %v7443_v36  ;;  %v7491_v25 = vmul.f32 0.0625, %v7443_v36  ;;  %v7444_v31 = vadd.f32 %v12141_v50, %v18052_v61  ;;  %v7393_v18 = vpop.f32.mrb[215].mxu0  ;;  %v7192_v36 = vadd.f32 %v7176_v10, %v18054_v6 }
0x1afb   :  { %v7457_v62 = vmul.f32 0.041666668, %v7441_v38  ;;  %v7489_v54 = vmul.f32 0.0625, %v7441_v38  ;;  %v7442_v24 = vadd.f32 %v7393_v18, %v18053_v37  ;;  %12166 = vmatprep.mubr.bf16.mxu1 %v7517_v3  ;;  %12182 = vmatprep.subr.bf16.mxu1 %v7517_v3 }
0x1afc   :  { %v16692_v49 = vadd.f32 %v7459_v0, %v7193_v29  ;;  %v7460_v9 = vmul.f32 0.041666668, %v7444_v31  ;;  %v7492_v47 = vmul.f32 0.0625, %v7444_v31  ;;  %12167 = vmatmul.mubr.bf16.vlgmr.msra.gmra.mrb[208].mxu1 %v7518_v5  ;;  %v7507_v38 = vadd.f32 %v7491_v25, %v16434_v15 }
0x1afd   :  { %v16695_v23 = vadd.f32 %v7457_v62, %v7191_v20  ;;  %v7458_v50 = vmul.f32 0.041666668, %v7442_v24  ;;  %v7490_v61 = vmul.f32 0.0625, %v7442_v24  ;;  %12183 = vmatpush3.bf16.msra.mxu1 %v7517_v3  ;;  %v7179_v29 = vmul.f32 0.020833334, %v16597_v21 }
0x1afe   :  { %v16699_v18 = vadd.f32 %v7460_v9, %v7194_v32  ;;  %v7508_v7 = vadd.f32 %v7492_v47, %v16440_v2  ;;  %12184 = vmatprep.subr.bf16.mxu1 %v7518_v5  ;;  %v7505_v31 = vadd.f32 %v7489_v54, %v16437_v33  ;;  %v7182_v3 = vmul.f32 0.020833334, %v16601_v35  ;;  %v18056_v32 = vld [vmem:[#allocation11_spill] sm:$0xff] }
0x1aff   :  { %v16704_v0 = vadd.f32 %v7458_v50, %v7192_v36  ;;  %v7506_v20 = vadd.f32 %v7490_v61, %v18054_v6  ;;  %v12144_v10 = vpop.f32.mrb[216].mxu0  ;;  %v7180_v24 = vmul.f32 0.020833334, %v16605_v1  ;;  %v7197_v54 = vadd.f32 %v7181_v60, %v16454_v14  ;;  %v18059_v60 = vld [vmem:[#allocation23_spill] sm:$0xff] }
0x1b00   :  { %v7447_v41 = vadd.f32 %v12144_v10, %v18025_v63  ;;  %v7406_v62 = vpop.f32.mrb[217].mxu0  ;;  %v7520_v25 = vpack.c.bf16 %v7508_v7, %v7507_v38  ;;  %v7195_v35 = vadd.f32 %v7179_v29, %v16457_v26  ;;  %v18058_v63 = vld [vmem:[#allocation13_spill] sm:$0xff]  ;;  %v7198_v1 = vadd.f32 %v7182_v3, %v16460_v17 }
0x1b01   :  { %18055 = vst [vmem:[#allocation21_spill] sm:$0xff] %v16704_v0  ;;  %v7445_v9 = vadd.f32 %v7406_v62, %v18056_v32  ;;  %12185 = vmatpush3.bf16.msra.mxu1 %v7518_v5  ;;  %v12145_v47 = vpop.f32.mrb[218].mxu0  ;;  %v7519_v21 = vpack.c.bf16 %v7506_v20, %v7505_v31  ;;  %v18057_v0 = vld [vmem:[#allocation12_spill] sm:$0xff]  ;;  %v7196_v20 = vadd.f32 %v7180_v24, %v18059_v60  ;;  %v7185_v29 = vmul.f32 0.020833334, %v16614_v58 }
0x1b02   :  { %v7463_v36 = vmul.f32 0.041666668, %v7447_v41  ;;  %v7495_v50 = vmul.f32 0.0625, %v7447_v41  ;;  %v7448_v61 = vadd.f32 %v12145_v47, %v18057_v0  ;;  %v7409_v6 = vpop.f32.mrb[219].mxu0 }
0x1b03   :  { %v7461_v33 = vmul.f32 0.041666668, %v7445_v9  ;;  %v7493_v10 = vmul.f32 0.0625, %v7445_v9  ;;  %v7446_v38 = vadd.f32 %v7409_v6, %v18058_v63  ;;  %12170 = vmatprep.mubr.bf16.mxu1 %v7519_v21  ;;  %12186 = vmatprep.subr.bf16.mxu1 %v7519_v21 }
0x1b04   :  { %v16716_v5 = vadd.f32 %v7463_v36, %v7197_v54  ;;  %v7464_v7 = vmul.f32 0.041666668, %v7448_v61  ;;  %v7496_v31 = vmul.f32 0.0625, %v7448_v61  ;;  %12171 = vmatmul.mubr.bf16.gmra.mrb[212].mxu1 %v7520_v25  ;;  %v7511_v6 = vadd.f32 %v7495_v50, %v16454_v14 }
0x1b05   :  { %v16719_v41 = vadd.f32 %v7461_v33, %v7195_v35  ;;  %v7462_v62 = vmul.f32 0.041666668, %v7446_v38  ;;  %v7494_v47 = vmul.f32 0.0625, %v7446_v38  ;;  %12187 = vmatpush3.bf16.msra.mxu1 %v7519_v21  ;;  %v7183_v54 = vmul.f32 0.020833334, %v16617_v39 }
0x1b06   :  { %v16723_v9 = vadd.f32 %v7464_v7, %v7198_v1  ;;  %v7512_v3 = vadd.f32 %v7496_v31, %v16460_v17  ;;  %12188 = vmatprep.subr.bf16.mxu1 %v7520_v25  ;;  %v7509_v36 = vadd.f32 %v7493_v10, %v16457_v26  ;;  %v7186_v21 = vmul.f32 0.020833334, %v16621_v56 }
0x1b07   :  { %v16728_v61 = vadd.f32 %v7462_v62, %v7196_v20  ;;  %v7510_v33 = vadd.f32 %v7494_v47, %v18059_v60  ;;  %v12148_v24 = vpop.f32.mrb[220].mxu0  ;;  %v7184_v38 = vmul.f32 0.020833334, %v16625_v19  ;;  %v7201_v10 = vadd.f32 %v7185_v29, %v16474_v11 }
0x1b08   :  { %v7451_v58 = vadd.f32 %v12148_v24, %v13421_v42  ;;  %v7422_v35 = vpop.f32.mrb[221].mxu0  ;;  %v7522_v50 = vpack.c.bf16 %v7512_v3, %v7511_v6  ;;  %v7199_v56 = vadd.f32 %v7183_v54, %v16477_v16  ;;  %v7202_v19 = vadd.f32 %v7186_v21, %v16480_v59 }
0x1b09   :  { %v7449_v1 = vadd.f32 %v7422_v35, %v13423_v43  ;;  %12189 = vmatpush3.bf16.msra.mxu1 %v7520_v25  ;;  %v12149_v7 = vpop.f32.mrb[222].mxu0  ;;  %v7521_v39 = vpack.c.bf16 %v7510_v33, %v7509_v36  ;;  %v7200_v29 = vadd.f32 %v7184_v38, %v16483_v27  ;;  %v18061_v38 = vld [vmem:[#allocation22_spill] sm:$0xff] }
0x1b0a   :  { %v7467_v31 = vmul.f32 0.041666668, %v7451_v58  ;;  %v7499_v20 = vmul.f32 0.0625, %v7451_v58  ;;  %v7452_v62 = vadd.f32 %v12149_v7, %v13425_v44  ;;  %v7425_v47 = vpop.f32.mrb[223].mxu0 }
0x1b0b   :  { %v7465_v60 = vmul.f32 0.041666668, %v7449_v1  ;;  %v7497_v24 = vmul.f32 0.0625, %v7449_v1  ;;  %v7450_v6 = vadd.f32 %v7425_v47, %v13427_v45  ;;  %12174 = vmatprep.mubr.bf16.mxu1 %v7521_v39  ;;  %12190 = vmatprep.subr.bf16.mxu1 %v7521_v39  ;;  %v18067_v47 = vld [vmem:[#allocation3_spill] sm:$0xff] }
0x1b0c   :  { %v16740_v25 = vadd.f32 %v7467_v31, %v7201_v10  ;;  %v7468_v3 = vmul.f32 0.041666668, %v7452_v62  ;;  %v7500_v36 = vmul.f32 0.0625, %v7452_v62  ;;  %12175 = vmatmul.mubr.bf16.gmra.mrb[216].mxu1 %v7522_v50  ;;  %v7515_v54 = vadd.f32 %v7499_v20, %v16474_v11  ;;  %v18065_v20 = vld [vmem:[#allocation2_spill] sm:$0xff] }
0x1b0d   :  { %v16743_v33 = vadd.f32 %v7465_v60, %v7199_v56  ;;  %v7466_v58 = vmul.f32 0.041666668, %v7450_v6  ;;  %v7498_v35 = vmul.f32 0.0625, %v7450_v6  ;;  %12191 = vmatpush3.bf16.msra.mxu1 %v7521_v39  ;;  %v7513_v21 = vadd.f32 %v7497_v24, %v16477_v16  ;;  %v18064_v39 = vld [vmem:[#allocation24_spill] sm:$0xff] }
0x1b0e   :  { %v16746_v1 = vadd.f32 %v7468_v3, %v7202_v19  ;;  %v7516_v7 = vadd.f32 %v7500_v36, %v16480_v59  ;;  %12192 = vmatprep.subr.bf16.mxu1 %v7522_v50  ;;  %v18068_v6 = vld [vmem:[#allocation4_spill] sm:$0xff] }
0x1b0f   :  { %v16750_v10 = vadd.f32 %v7466_v58, %v7200_v29  ;;  %v7514_v31 = vadd.f32 %v7498_v35, %v16483_v27  ;;  %v18069_v58 = vld [vmem:[#allocation5_spill] sm:$0xff] }
0x1b10   :  { %v7524_v62 = vpack.c.bf16 %v7516_v7, %v7515_v54 }
0x1b11   :  { %12193 = vmatpush3.bf16.msra.mxu1 %v7522_v50  ;;  %v7523_v60 = vpack.c.bf16 %v7514_v31, %v7513_v21  ;;  %v18060_v50 = vld [vmem:[#allocation14_spill] sm:$0xff] }
0x1b13   :  { %12178 = vmatprep.mubr.bf16.mxu1 %v7523_v60  ;;  %12194 = vmatprep.subr.bf16.mxu1 %v7523_v60 }
0x1b14   :  { %12179 = vmatmul.mubr.bf16.gmra.mrb[220].mxu1 %v7524_v62 }
0x1b15   :  { %12195 = vmatpush3.bf16.msra.mxu1 %v7523_v60  ;;  %12198 = vmatprep.mubr.bf16.mxu1 %v16492_v4 }
0x1b16   :  { %12196 = vmatprep.subr.bf16.mxu1 %v7524_v62 }
0x1b19   :  { %12197 = vmatpush3.bf16.msra.mxu1 %v7524_v62 }
0x1b1a   :  { %12278 = vmatprep.subr.bf16.mxu1 %v16349_v8 }
0x1b1c   :  { %12199 = vmatmul.mubr.bf16.vlgmr.msra.gmra.mrb[208].mxu1 %v16499_v52 }
0x1b1d   :  { %12202 = vmatprep.mubr.bf16.mxu1 %v16505_v57  ;;  %12279 = vmatpush3.bf16.msra.mxu1 %v16349_v8  ;;  %v18062_v8 = vld [vmem:[#allocation26_spill] sm:$0xff] }
0x1b1e   :  { %12280 = vmatprep.subr.bf16.mxu1 %v16358_v55 }
0x1b21   :  { %12281 = vmatpush3.bf16.msra.mxu1 %v16358_v55  ;;  %v18063_v55 = vld [vmem:[#allocation15_spill] sm:$0xff] }
0x1b22   :  { %12282 = vmatprep.subr.bf16.mxu1 %v16365_v13 }
0x1b24   :  { %12203 = vmatmul.mubr.bf16.gmra.mrb[212].mxu1 %v16515_v53 }
0x1b25   :  { %12206 = vmatprep.mubr.bf16.mxu1 %v16521_v22  ;;  %12283 = vmatpush3.bf16.msra.mxu1 %v16365_v13  ;;  %v18066_v13 = vld [vmem:[#allocation16_spill] sm:$0xff] }
0x1b26   :  { %12284 = vmatprep.subr.bf16.mxu1 %v16374_v12 }
0x1b29   :  { %12285 = vmatpush3.bf16.msra.mxu1 %v16374_v12 }
0x1b2a   :  { %12286 = vmatprep.subr.bf16.mxu1 %v18060_v50 }
0x1b2c   :  { %12207 = vmatmul.mubr.bf16.gmra.mrb[216].mxu1 %v18061_v38 }
0x1b2d   :  { %12210 = vmatprep.mubr.bf16.mxu1 %v18062_v8  ;;  %12287 = vmatpush3.bf16.msra.mxu1 %v18060_v50 }
0x1b2e   :  { %12288 = vmatprep.subr.bf16.mxu1 %v18063_v55 }
0x1b31   :  { %12289 = vmatpush3.bf16.msra.mxu1 %v18063_v55 }
0x1b32   :  { %12290 = vmatprep.subr.bf16.mxu1 %v18064_v39 }
0x1b34   :  { %12211 = vmatmul.mubr.bf16.gmra.mrb[220].mxu1 %v18065_v20 }
0x1b35   :  { %12291 = vmatpush3.bf16.msra.mxu1 %v18064_v39 }
0x1b36   :  { %12292 = vmatprep.subr.bf16.mxu1 %v18066_v13 }
0x1b39   :  { %12293 = vmatpush3.bf16.msra.mxu1 %v18066_v13 }
0x1bef   :  { %v12200_v12 = vpop.f32.mrb[208].mxu1 }
0x1bf0   :  { %v7721_v56 = vadd.f32 %v12200_v12, %v18067_v47  ;;  %v7656_v24 = vpop.f32.mrb[209].mxu1 }
0x1bf1   :  { %v7719_v19 = vadd.f32 %v7656_v24, %v18068_v6  ;;  %v12201_v3 = vpop.f32.mrb[210].mxu1  ;;  %v18073_v24 = vld [vmem:[#allocation17_spill] sm:$0xff] }
0x1bf2   :  { %v7737_v36 = vmul.f32 0.041666668, %v7721_v56  ;;  %v7769_v29 = vmul.f32 0.125, %v7721_v56  ;;  %v7722_v35 = vadd.f32 %v12201_v3, %v18069_v58  ;;  %v7659_v54 = vpop.f32.mrb[211].mxu1 }
0x1bf3   :  { %v7735_v7 = vmul.f32 0.041666668, %v7719_v19  ;;  %v7767_v21 = vmul.f32 0.125, %v7719_v19  ;;  %v7720_v31 = vadd.f32 %v7659_v54, %v18048_v51  ;;  %v18074_v54 = vld [vmem:[#allocation25_spill] sm:$0xff] }
0x1bf4   :  { %v16782_v62 = vadd.f32 %v7737_v36, %v16668_v28  ;;  %v7738_v60 = vmul.f32 0.041666668, %v7722_v35  ;;  %v7770_v50 = vmul.f32 0.125, %v7722_v35  ;;  %v7785_v12 = vadd.f32 %v7769_v29, %v16414_v48  ;;  %v18075_v28 = vld [vmem:[#allocation18_spill] sm:$0xff] }
0x1bf5   :  { %v16785_v55 = vadd.f32 %v7735_v7, %v16671_v40  ;;  %v7736_v39 = vmul.f32 0.041666668, %v7720_v31  ;;  %v7768_v13 = vmul.f32 0.125, %v7720_v31  ;;  %v7783_v19 = vadd.f32 %v7767_v21, %v16417_v34  ;;  %v18076_v31 = vld [vmem:[#allocation7_spill] sm:$0xff] }
0x1bf6   :  { %18070 = vst [vmem:[#allocation14_spill] sm:$0xff] %v16782_v62  ;;  %v16789_v56 = vadd.f32 %v7738_v60, %v16675_v46  ;;  %v7786_v3 = vadd.f32 %v7770_v50, %v18073_v24 }
0x1bf7   :  { %18071 = vst [vmem:[#allocation22_spill] sm:$0xff] %v16785_v55  ;;  %v16794_v51 = vadd.f32 %v7736_v39, %v18074_v54  ;;  %v7784_v36 = vadd.f32 %v7768_v13, %v18075_v28  ;;  %v12204_v35 = vpop.f32.mrb[212].mxu1 }
0x1bf8   :  { %18072 = vst [vmem:[#allocation26_spill] sm:$0xff] %v16789_v56  ;;  %v7800_v62 = vpack.c.bf16 %v7786_v3, %v7785_v12  ;;  %v7725_v40 = vadd.f32 %v12204_v35, %v13397_v30  ;;  %v7672_v7 = vpop.f32.mrb[213].mxu1  ;;  %v18077_v56 = vld [vmem:[#allocation8_spill] sm:$0xff] }
0x1bf9   :  { %v7723_v55 = vadd.f32 %v7672_v7, %v18076_v31  ;;  %v12205_v48 = vpop.f32.mrb[214].mxu1  ;;  %v7799_v29 = vpack.c.bf16 %v7784_v36, %v7783_v19  ;;  %v18079_v7 = vld [vmem:[#allocation21_spill] sm:$0xff] }
0x1bfa   :  { %v7741_v46 = vmul.f32 0.041666668, %v7725_v40  ;;  %v7773_v60 = vmul.f32 0.125, %v7725_v40  ;;  %v7726_v50 = vadd.f32 %v12205_v48, %v18077_v56  ;;  %v7675_v24 = vpop.f32.mrb[215].mxu1  ;;  %v18078_v40 = vld [vmem:[#allocation19_spill] sm:$0xff] }
0x1bfb   :  { %v7739_v34 = vmul.f32 0.041666668, %v7723_v55  ;;  %v7771_v21 = vmul.f32 0.125, %v7723_v55  ;;  %v7724_v39 = vadd.f32 %v7675_v24, %v18053_v37  ;;  %12230 = vmatprep.mubr.bf16.mxu0 %v7799_v29  ;;  %12246 = vmatprep.subr.bf16.mxu0 %v7799_v29  ;;  %v18081_v24 = vld [vmem:[#allocation10_spill] sm:$0xff] }
0x1bfc   :  { %v16802_v13 = vadd.f32 %v7741_v46, %v16692_v49  ;;  %v7742_v12 = vmul.f32 0.041666668, %v7726_v50  ;;  %v7774_v3 = vmul.f32 0.125, %v7726_v50  ;;  %12231 = vmatmul.mubr.bf16.vlgmr.msra.gmra.mrb[224].mxu0 %v7800_v62  ;;  %v7789_v36 = vadd.f32 %v7773_v60, %v16434_v15  ;;  %v18080_v46 = vld [vmem:[#allocation20_spill] sm:$0xff] }
0x1bfd   :  { %v16805_v54 = vadd.f32 %v7739_v34, %v16695_v23  ;;  %v7740_v19 = vmul.f32 0.041666668, %v7724_v39  ;;  %v7772_v28 = vmul.f32 0.125, %v7724_v39  ;;  %12247 = vmatpush3.bf16.msra.mxu0 %v7799_v29  ;;  %v7787_v49 = vadd.f32 %v7771_v21, %v18078_v40 }
0x1bfe   :  { %v16809_v55 = vadd.f32 %v7742_v12, %v16699_v18  ;;  %v7790_v35 = vadd.f32 %v7774_v3, %v16440_v2  ;;  %12248 = vmatprep.subr.bf16.mxu0 %v7800_v62 }
0x1bff   :  { %v16814_v48 = vadd.f32 %v7740_v19, %v18079_v7  ;;  %v7788_v50 = vadd.f32 %v7772_v28, %v18080_v46  ;;  %v12208_v23 = vpop.f32.mrb[216].mxu1 }
0x1c00   :  { %v7729_v34 = vadd.f32 %v12208_v23, %v18081_v24  ;;  %v7688_v39 = vpop.f32.mrb[217].mxu1  ;;  %v7802_v29 = vpack.c.bf16 %v7790_v35, %v7789_v36 }
0x1c01   :  { %v7727_v15 = vadd.f32 %v7688_v39, %v18056_v32  ;;  %12249 = vmatpush3.bf16.msra.mxu0 %v7800_v62  ;;  %v12209_v18 = vpop.f32.mrb[218].mxu1  ;;  %v7801_v60 = vpack.c.bf16 %v7788_v50, %v7787_v49 }
0x1c02   :  { %v7745_v12 = vmul.f32 0.041666668, %v7729_v34  ;;  %v7777_v2 = vmul.f32 0.125, %v7729_v34  ;;  %v7730_v3 = vadd.f32 %v12209_v18, %v18057_v0  ;;  %v7691_v21 = vpop.f32.mrb[219].mxu1 }
0x1c03   :  { %v7743_v40 = vmul.f32 0.041666668, %v7727_v15  ;;  %v7775_v19 = vmul.f32 0.125, %v7727_v15  ;;  %v7728_v7 = vadd.f32 %v7691_v21, %v18058_v63  ;;  %12234 = vmatprep.mubr.bf16.mxu0 %v7801_v60  ;;  %12250 = vmatprep.subr.bf16.mxu0 %v7801_v60  ;;  %v18082_v15 = vld [vmem:[#allocation23_spill] sm:$0xff] }
0x1c04   :  { %v16822_v28 = vadd.f32 %v7745_v12, %v16716_v5  ;;  %v7746_v36 = vmul.f32 0.041666668, %v7730_v3  ;;  %v7778_v35 = vmul.f32 0.125, %v7730_v3  ;;  %12235 = vmatmul.mubr.bf16.gmra.mrb[228].mxu0 %v7802_v29  ;;  %v7793_v50 = vadd.f32 %v7777_v2, %v16454_v14 }
0x1c05   :  { %v16825_v62 = vadd.f32 %v7743_v40, %v16719_v41  ;;  %v7744_v49 = vmul.f32 0.041666668, %v7728_v7  ;;  %v7776_v46 = vmul.f32 0.125, %v7728_v7  ;;  %12251 = vmatpush3.bf16.msra.mxu0 %v7801_v60  ;;  %v7791_v5 = vadd.f32 %v7775_v19, %v16457_v26 }
0x1c06   :  { %v16829_v23 = vadd.f32 %v7746_v36, %v16723_v9  ;;  %v7794_v34 = vadd.f32 %v7778_v35, %v16460_v17  ;;  %12252 = vmatprep.subr.bf16.mxu0 %v7802_v29 }
0x1c07   :  { %v16834_v39 = vadd.f32 %v7744_v49, %v16728_v61  ;;  %v7792_v18 = vadd.f32 %v7776_v46, %v18082_v15  ;;  %v12212_v41 = vpop.f32.mrb[220].mxu1 }
0x1c08   :  { %v7733_v12 = vadd.f32 %v12212_v41, %v13421_v42  ;;  %v7704_v3 = vpop.f32.mrb[221].mxu1  ;;  %v7804_v60 = vpack.c.bf16 %v7794_v34, %v7793_v50 }
0x1c09   :  { %v7731_v14 = vadd.f32 %v7704_v3, %v13423_v43  ;;  %12253 = vmatpush3.bf16.msra.mxu0 %v7802_v29  ;;  %v12213_v9 = vpop.f32.mrb[222].mxu1  ;;  %v7803_v2 = vpack.c.bf16 %v7792_v18, %v7791_v5 }
0x1c0a   :  { %v7749_v21 = vmul.f32 0.041666668, %v7733_v12  ;;  %v7781_v17 = vmul.f32 0.125, %v7733_v12  ;;  %v7734_v40 = vadd.f32 %v12213_v9, %v13425_v44  ;;  %v7707_v26 = vpop.f32.mrb[223].mxu1  ;;  %v18083_v9 = vld [vmem:[#allocation6_spill] sm:$0xff] }
0x1c0b   :  { %v7747_v19 = vmul.f32 0.041666668, %v7731_v14  ;;  %v7779_v61 = vmul.f32 0.125, %v7731_v14  ;;  %v7732_v7 = vadd.f32 %v7707_v26, %v13427_v45  ;;  %12238 = vmatprep.mubr.bf16.mxu0 %v7803_v2  ;;  %12254 = vmatprep.subr.bf16.mxu0 %v7803_v2  ;;  %v18085_v26 = vld [vmem:[#allocation22_spill] sm:$0xff] }
0x1c0c   :  { %v16842_v36 = vadd.f32 %v7749_v21, %v16740_v25  ;;  %v7750_v35 = vmul.f32 0.041666668, %v7734_v40  ;;  %v7782_v49 = vmul.f32 0.125, %v7734_v40  ;;  %12239 = vmatmul.mubr.bf16.gmra.mrb[232].mxu0 %v7804_v60  ;;  %v7797_v34 = vadd.f32 %v7781_v17, %v16474_v11  ;;  %v16861_v11 = vld [vmem:[%s17470_s3] sm:$0xff]  }
0x1c0d   :  { %v16845_v29 = vadd.f32 %v7747_v19, %v16743_v33  ;;  %v7748_v46 = vmul.f32 0.041666668, %v7732_v7  ;;  %v7780_v50 = vmul.f32 0.125, %v7732_v7  ;;  %12255 = vmatpush3.bf16.msra.mxu0 %v7803_v2  ;;  %v7795_v25 = vadd.f32 %v7779_v61, %v16477_v16  ;;  %v16870_v16 = vld [vmem:[%s17470_s3 + $0x8] sm:$0xff]   ;;  %v18084_v21 = vld [vmem:[#allocation14_spill] sm:$0xff] }
0x1c0e   :  { %v16849_v5 = vadd.f32 %v7750_v35, %v16746_v1  ;;  %v7798_v15 = vadd.f32 %v7782_v49, %v16480_v59  ;;  %12256 = vmatprep.subr.bf16.mxu0 %v7804_v60  ;;  %v16877_v59 = vld [vmem:[%s17470_s3 + $0x10] sm:$0xff]   ;;  %v18086_v7 = vld [vmem:[#allocation26_spill] sm:$0xff] }
0x1c0f   :  { %v16854_v18 = vadd.f32 %v7748_v46, %v16750_v10  ;;  %v7796_v41 = vadd.f32 %v7780_v50, %v16483_v27  ;;  %v16886_v27 = vld [vmem:[%s17470_s3 + $0x18] sm:$0xff]  }
0x1c10   :  { %v7806_v33 = vpack.c.bf16 %v7798_v15, %v7797_v34 }
0x1c11   :  { %12257 = vmatpush3.bf16.msra.mxu0 %v7804_v60  ;;  %v7805_v12 = vpack.c.bf16 %v7796_v41, %v7795_v25 }
0x1c13   :  { %12242 = vmatprep.mubr.bf16.mxu0 %v7805_v12  ;;  %12258 = vmatprep.subr.bf16.mxu0 %v7805_v12 }
0x1c14   :  { %12243 = vmatmul.mubr.bf16.gmra.mrb[236].mxu0 %v7806_v33 }
0x1c15   :  { %12259 = vmatpush3.bf16.msra.mxu0 %v7805_v12  ;;  %12262 = vmatprep.mubr.bf16.mxu0 %v16492_v4  ;;  %v16893_v4 = vld [vmem:[%s17470_s3 + $0x20] sm:$0xff]  }
0x1c16   :  { %12260 = vmatprep.subr.bf16.mxu0 %v7806_v33 }
0x1c19   :  { %12261 = vmatpush3.bf16.msra.mxu0 %v7806_v33 }
0x1c1a   :  { %12342 = vmatprep.subr.bf16.mxu0 %v16861_v11 }
0x1c1c   :  { %12263 = vmatmul.mubr.bf16.vlgmr.msra.gmra.mrb[224].mxu0 %v16499_v52  ;;  %v16902_v52 = vld [vmem:[%s17470_s3 + $0x28] sm:$0xff]  }
0x1c1d   :  { %12266 = vmatprep.mubr.bf16.mxu0 %v16505_v57  ;;  %12343 = vmatpush3.bf16.msra.mxu0 %v16861_v11  ;;  %v16909_v57 = vld [vmem:[%s17470_s3 + $0x30] sm:$0xff]  }
0x1c1e   :  { %12344 = vmatprep.subr.bf16.mxu0 %v16870_v16 }
0x1c21   :  { %12345 = vmatpush3.bf16.msra.mxu0 %v16870_v16 }
0x1c22   :  { %12346 = vmatprep.subr.bf16.mxu0 %v16877_v59 }
0x1c24   :  { %12267 = vmatmul.mubr.bf16.gmra.mrb[228].mxu0 %v16515_v53  ;;  %v16917_v53 = vld [vmem:[%s17470_s3 + $0x38] sm:$0xff]  }
0x1c25   :  { %12270 = vmatprep.mubr.bf16.mxu0 %v16521_v22  ;;  %12347 = vmatpush3.bf16.msra.mxu0 %v16877_v59 }
0x1c26   :  { %12348 = vmatprep.subr.bf16.mxu0 %v16886_v27 }
0x1c29   :  { %12349 = vmatpush3.bf16.msra.mxu0 %v16886_v27 }
0x1c2a   :  { %12350 = vmatprep.subr.bf16.mxu0 %v16893_v4 }
0x1c2c   :  { %12271 = vmatmul.mubr.bf16.gmra.mrb[232].mxu0 %v18061_v38 }
0x1c2d   :  { %12274 = vmatprep.mubr.bf16.mxu0 %v18062_v8  ;;  %12351 = vmatpush3.bf16.msra.mxu0 %v16893_v4 }
0x1c2e   :  { %12352 = vmatprep.subr.bf16.mxu0 %v16902_v52 }
0x1c31   :  { %12353 = vmatpush3.bf16.msra.mxu0 %v16902_v52 }
0x1c32   :  { %12354 = vmatprep.subr.bf16.mxu0 %v16909_v57 }
0x1c34   :  { %12275 = vmatmul.mubr.bf16.gmra.mrb[236].mxu0 %v18065_v20 }
0x1c35   :  { %12355 = vmatpush3.bf16.msra.mxu0 %v16909_v57 }
0x1c36   :  { %12356 = vmatprep.subr.bf16.mxu0 %v16917_v53 }
0x1c39   :  { %12357 = vmatpush3.bf16.msra.mxu0 %v16917_v53 }
0x1cef   :  { %v12264_v22 = vpop.f32.mrb[224].mxu0 }
0x1cf0   :  { %v8003_v1 = vadd.f32 %v12264_v22, %v18067_v47  ;;  %v7938_v10 = vpop.f32.mrb[225].mxu0 }
0x1cf1   :  { %v8001_v38 = vadd.f32 %v7938_v10, %v18068_v6  ;;  %v12265_v8 = vpop.f32.mrb[226].mxu0 }
0x1cf2   :  { %v8019_v3 = vmul.f32 0.020833334, %v8003_v1  ;;  %v8004_v20 = vadd.f32 %v12265_v8, %v18069_v58  ;;  %v7941_v60 = vpop.f32.mrb[227].mxu0 }
0x1cf3   :  { %v8017_v14 = vmul.f32 0.020833334, %v8001_v38  ;;  %v8002_v2 = vadd.f32 %v7941_v60, %v18083_v9 }
0x1cf4   :  { %v16926_v17 = vadd.f32 %v8019_v3, %v18084_v21  ;;  %v8020_v40 = vmul.f32 0.020833334, %v8004_v20 }
0x1cf5   :  { %v16929_v19 = vadd.f32 %v8017_v14, %v18085_v26  ;;  %v8018_v61 = vmul.f32 0.020833334, %v8002_v2 }
0x1cf6   :  { %v16932_v35 = vadd.f32 %v8020_v40, %v18086_v7 }
0x1cf7   :  { %v16935_v49 = vadd.f32 %v8018_v61, %v16794_v51  ;;  %v12268_v46 = vpop.f32.mrb[228].mxu0 }
0x1cf8   :  { %18087 = vst [vmem:[#allocation15_spill] sm:$0xff] %v16932_v35  ;;  %v8007_v50 = vadd.f32 %v12268_v46, %v13397_v30  ;;  %v7954_v34 = vpop.f32.mrb[229].mxu0  ;;  %v8050_v1 = vpack.c.bf16 %v16932_v35, %v16926_v17 }
0x1cf9   :  { %18088 = vst [vmem:[#allocation24_spill] sm:$0xff] %v16935_v49  ;;  %v8005_v15 = vadd.f32 %v7954_v34, %v18076_v31  ;;  %v12269_v25 = vpop.f32.mrb[230].mxu0  ;;  %v8049_v41 = vpack.c.bf16 %v16935_v49, %v16929_v19 }
0x1cfa   :  { %v8023_v33 = vmul.f32 0.020833334, %v8007_v50  ;;  %v8008_v12 = vadd.f32 %v12269_v25, %v18077_v56  ;;  %v7957_v22 = vpop.f32.mrb[231].mxu0 }
0x1cfb   :  { %v8021_v10 = vmul.f32 0.020833334, %v8005_v15  ;;  %v8006_v51 = vadd.f32 %v7957_v22, %v18053_v37  ;;  %12294 = vmatprep.mubr.bf16.mxu1 %v8049_v41  ;;  %12310 = vmatprep.subr.bf16.mxu1 %v8049_v41 }
0x1cfc   :  { %v16946_v38 = vadd.f32 %v8023_v33, %v16802_v13  ;;  %v8024_v8 = vmul.f32 0.020833334, %v8008_v12  ;;  %12295 = vmatmul.mubr.bf16.vlgmr.msra.gmra.mrb[224].mxu1 %v8050_v1 }
0x1cfd   :  { %v16949_v3 = vadd.f32 %v8021_v10, %v16805_v54  ;;  %v8022_v20 = vmul.f32 0.020833334, %v8006_v51  ;;  %12311 = vmatpush3.bf16.msra.mxu1 %v8049_v41 }
0x1cfe   :  { %v16952_v60 = vadd.f32 %v8024_v8, %v16809_v55  ;;  %12312 = vmatprep.subr.bf16.mxu1 %v8050_v1 }
0x1cff   :  { %18089 = vst [vmem:[#allocation2_spill] sm:$0xff] %v16949_v3  ;;  %v16955_v14 = vadd.f32 %v8022_v20, %v16814_v48  ;;  %v12272_v2 = vpop.f32.mrb[232].mxu0 }
0x1d00   :  { %v8011_v21 = vadd.f32 %v12272_v2, %v18081_v24  ;;  %v7970_v40 = vpop.f32.mrb[233].mxu0  ;;  %v8052_v46 = vpack.c.bf16 %v16952_v60, %v16946_v38 }
0x1d01   :  { %18090 = vst [vmem:[#allocation16_spill] sm:$0xff] %v16955_v14  ;;  %v8009_v13 = vadd.f32 %v7970_v40, %v18056_v32  ;;  %12313 = vmatpush3.bf16.msra.mxu1 %v8050_v1  ;;  %v12273_v26 = vpop.f32.mrb[234].mxu0  ;;  %v8051_v54 = vpack.c.bf16 %v16955_v14, %v16949_v3 }
0x1d02   :  { %v8027_v61 = vmul.f32 0.020833334, %v8011_v21  ;;  %v8012_v7 = vadd.f32 %v12273_v26, %v18057_v0  ;;  %v7973_v55 = vpop.f32.mrb[235].mxu0 }
0x1d03   :  { %v8025_v48 = vmul.f32 0.020833334, %v8009_v13  ;;  %v8010_v50 = vadd.f32 %v7973_v55, %v18058_v63  ;;  %12298 = vmatprep.mubr.bf16.mxu1 %v8051_v54  ;;  %12314 = vmatprep.subr.bf16.mxu1 %v8051_v54 }
0x1d04   :  { %v16966_v34 = vadd.f32 %v8027_v61, %v16822_v28  ;;  %v8028_v15 = vmul.f32 0.020833334, %v8012_v7  ;;  %12299 = vmatmul.mubr.bf16.gmra.mrb[228].mxu1 %v8052_v46 }
0x1d05   :  { %v16969_v25 = vadd.f32 %v8025_v48, %v16825_v62  ;;  %v8026_v41 = vmul.f32 0.020833334, %v8010_v50  ;;  %12315 = vmatpush3.bf16.msra.mxu1 %v8051_v54  ;;  %v17033_v48 = vld [vmem:[%s17471_s2 + $0x20] sm:$0xff]   ;;  %v17043_v50 = vld [vmem:[%s17471_s2 + $0x28] sm:$0xff]  }
0x1d06   :  { %v16972_v33 = vadd.f32 %v8028_v15, %v16829_v23  ;;  %12316 = vmatprep.subr.bf16.mxu1 %v8052_v46  ;;  %v17049_v15 = vld [vmem:[%s17471_s2 + $0x30] sm:$0xff]  }
0x1d07   :  { %v16975_v12 = vadd.f32 %v8026_v41, %v16834_v39  ;;  %v12276_v22 = vpop.f32.mrb[236].mxu0  ;;  %v17059_v41 = vld [vmem:[%s17471_s2 + $0x38] sm:$0xff]  }
0x1d08   :  { %v8015_v1 = vadd.f32 %v12276_v22, %v13421_v42  ;;  %v7986_v10 = vpop.f32.mrb[237].mxu0  ;;  %v8054_v2 = vpack.c.bf16 %v16972_v33, %v16966_v34 }
0x1d09   :  { %18091 = vst [vmem:[#allocation3_spill] sm:$0xff] %v16975_v12  ;;  %v8013_v28 = vadd.f32 %v7986_v10, %v13423_v43  ;;  %12317 = vmatpush3.bf16.msra.mxu1 %v8052_v46  ;;  %v12277_v51 = vpop.f32.mrb[238].mxu0  ;;  %v8053_v62 = vpack.c.bf16 %v16975_v12, %v16969_v25  ;;  %v17027_v46 = vld [vmem:[%s17471_s2 + $0x18] sm:$0xff]  }
0x1d0a   :  { %v8031_v8 = vmul.f32 0.020833334, %v8015_v1  ;;  %v8016_v20 = vadd.f32 %v12277_v51, %v13425_v44  ;;  %v7989_v23 = vpop.f32.mrb[239].mxu0 }
0x1d0b   :  { %v8029_v39 = vmul.f32 0.020833334, %v8013_v28  ;;  %v8014_v21 = vadd.f32 %v7989_v23, %v13427_v45  ;;  %12302 = vmatprep.mubr.bf16.mxu1 %v8053_v62  ;;  %12318 = vmatprep.subr.bf16.mxu1 %v8053_v62 }
0x1d0c   :  { %v16986_v40 = vadd.f32 %v8031_v8, %v16842_v36  ;;  %v8032_v13 = vmul.f32 0.020833334, %v8016_v20  ;;  %12303 = vmatmul.mubr.bf16.gmra.mrb[232].mxu1 %v8054_v2 }
0x1d0d   :  { %v16989_v26 = vadd.f32 %v8029_v39, %v16845_v29  ;;  %v8030_v54 = vmul.f32 0.020833334, %v8014_v21  ;;  %12319 = vmatpush3.bf16.msra.mxu1 %v8053_v62  ;;  %v17004_v29 = vld [vmem:[%s17471_s2] sm:$0xff]  }
0x1d0e   :  { %v16992_v61 = vadd.f32 %v8032_v13, %v16849_v5  ;;  %12320 = vmatprep.subr.bf16.mxu1 %v8054_v2  ;;  %v17011_v5 = vld [vmem:[%s17471_s2 + $0x8] sm:$0xff]  }
0x1d0f   :  { %v16995_v7 = vadd.f32 %v8030_v54, %v16854_v18  ;;  %v17017_v18 = vld [vmem:[%s17471_s2 + $0x10] sm:$0xff]  }
0x1d10   :  { %v8056_v36 = vpack.c.bf16 %v16992_v61, %v16986_v40 }
0x1d11   :  { %12321 = vmatpush3.bf16.msra.mxu1 %v8054_v2  ;;  %v8055_v55 = vpack.c.bf16 %v16995_v7, %v16989_v26 }
0x1d13   :  { %12306 = vmatprep.mubr.bf16.mxu1 %v8055_v55  ;;  %12322 = vmatprep.subr.bf16.mxu1 %v8055_v55 }
0x1d14   :  { %12307 = vmatmul.mubr.bf16.gmra.mrb[236].mxu1 %v8056_v36 }
0x1d15   :  { %12323 = vmatpush3.bf16.msra.mxu1 %v8055_v55  ;;  %12326 = vmatprep.mubr.bf16.mxu1 %v17004_v29 }
0x1d16   :  { %12324 = vmatprep.subr.bf16.mxu1 %v8056_v36 }
0x1d19   :  { %12325 = vmatpush3.bf16.msra.mxu1 %v8056_v36 }
0x1d1a   :  { %12406 = vmatprep.subr.bf16.mxu1 %v16861_v11 }
0x1d1c   :  { %12327 = vmatmul.mubr.bf16.vlgmr.msra.gmra.mrb[224].mxu1 %v17011_v5 }
0x1d1d   :  { %12330 = vmatprep.mubr.bf16.mxu1 %v17017_v18  ;;  %12407 = vmatpush3.bf16.msra.mxu1 %v16861_v11 }
0x1d1e   :  { %12408 = vmatprep.subr.bf16.mxu1 %v16870_v16 }
0x1d21   :  { %12409 = vmatpush3.bf16.msra.mxu1 %v16870_v16 }
0x1d22   :  { %12410 = vmatprep.subr.bf16.mxu1 %v16877_v59 }
0x1d24   :  { %12331 = vmatmul.mubr.bf16.gmra.mrb[228].mxu1 %v17027_v46 }
0x1d25   :  { %12334 = vmatprep.mubr.bf16.mxu1 %v17033_v48  ;;  %12411 = vmatpush3.bf16.msra.mxu1 %v16877_v59 }
0x1d26   :  { %12412 = vmatprep.subr.bf16.mxu1 %v16886_v27 }
0x1d29   :  { %12413 = vmatpush3.bf16.msra.mxu1 %v16886_v27 }
0x1d2a   :  { %12414 = vmatprep.subr.bf16.mxu1 %v16893_v4 }
0x1d2c   :  { %12335 = vmatmul.mubr.bf16.gmra.mrb[232].mxu1 %v17043_v50 }
0x1d2d   :  { %12338 = vmatprep.mubr.bf16.mxu1 %v17049_v15  ;;  %12415 = vmatpush3.bf16.msra.mxu1 %v16893_v4 }
0x1d2e   :  { %12416 = vmatprep.subr.bf16.mxu1 %v16902_v52 }
0x1d31   :  { %12417 = vmatpush3.bf16.msra.mxu1 %v16902_v52 }
0x1d32   :  { %12418 = vmatprep.subr.bf16.mxu1 %v16909_v57 }
0x1d34   :  { %12339 = vmatmul.mubr.bf16.gmra.mrb[236].mxu1 %v17059_v41 }
0x1d35   :  { %12419 = vmatpush3.bf16.msra.mxu1 %v16909_v57 }
0x1d36   :  { %12420 = vmatprep.subr.bf16.mxu1 %v16917_v53 }
0x1d39   :  { %12421 = vmatpush3.bf16.msra.mxu1 %v16917_v53 }
0x1def   :  { %v12328_v22 = vpop.f32.mrb[224].mxu1 }
0x1df0   :  { %v17066_v1 = vadd.f32 %v12328_v22, %v18067_v47  ;;  %v8188_v10 = vpop.f32.mrb[225].mxu1 }
0x1df1   :  { %v17069_v28 = vadd.f32 %v8188_v10, %v18068_v6  ;;  %v12329_v51 = vpop.f32.mrb[226].mxu1 }
0x1df2   :  { %v8301_v62 = vmul.f32 0.0625, %v17066_v1  ;;  %v17073_v8 = vadd.f32 %v12329_v51, %v18069_v58  ;;  %v8191_v20 = vpop.f32.mrb[227].mxu1 }
0x1df3   :  { %v8299_v23 = vmul.f32 0.0625, %v17069_v28  ;;  %v17077_v2 = vadd.f32 %v8191_v20, %v18083_v9 }
0x1df4   :  { %v8302_v39 = vmul.f32 0.0625, %v17073_v8  ;;  %v8317_v13 = vadd.f32 %v8301_v62, %v16926_v17 }
0x1df5   :  { %18092 = vst [vmem:[#allocation17_spill] sm:$0xff] %v17077_v2  ;;  %v8300_v21 = vmul.f32 0.0625, %v17077_v2  ;;  %v8315_v55 = vadd.f32 %v8299_v23, %v16929_v19 }
0x1df6   :  { %v8318_v54 = vadd.f32 %v8302_v39, %v16932_v35 }
0x1df7   :  { %v8316_v36 = vadd.f32 %v8300_v21, %v16935_v49  ;;  %v12332_v22 = vpop.f32.mrb[228].mxu1 }
0x1df8   :  { %v8332_v10 = vpack.c.bf16 %v8318_v54, %v8317_v13  ;;  %v17086_v51 = vadd.f32 %v12332_v22, %v13397_v30  ;;  %v8204_v58 = vpop.f32.mrb[229].mxu1 }
0x1df9   :  { %v17089_v20 = vadd.f32 %v8204_v58, %v18076_v31  ;;  %v12333_v9 = vpop.f32.mrb[230].mxu1  ;;  %v8331_v6 = vpack.c.bf16 %v8316_v36, %v8315_v55 }
0x1dfa   :  { %v8305_v2 = vmul.f32 0.0625, %v17086_v51  ;;  %v17093_v62 = vadd.f32 %v12333_v9, %v18077_v56  ;;  %v8207_v39 = vpop.f32.mrb[231].mxu1 }
0x1dfb   :  { %v8303_v23 = vmul.f32 0.0625, %v17089_v20  ;;  %v17097_v21 = vadd.f32 %v8207_v39, %v18053_v37  ;;  %12358 = vmatprep.mubr.bf16.mxu0 %v8331_v6  ;;  %12374 = vmatprep.subr.bf16.mxu0 %v8331_v6 }
0x1dfc   :  { %v8306_v13 = vmul.f32 0.0625, %v17093_v62  ;;  %12359 = vmatmul.mubr.bf16.vlgmr.msra.gmra.mrb[240].mxu0 %v8332_v10  ;;  %v8321_v54 = vadd.f32 %v8305_v2, %v16946_v38 }
0x1dfd   :  { %18093 = vst [vmem:[#allocation25_spill] sm:$0xff] %v17097_v21  ;;  %v8304_v58 = vmul.f32 0.0625, %v17097_v21  ;;  %12375 = vmatpush3.bf16.msra.mxu0 %v8331_v6  ;;  %v8319_v9 = vadd.f32 %v8303_v23, %v16949_v3 }
0x1dfe   :  { %v8322_v55 = vadd.f32 %v8306_v13, %v16952_v60  ;;  %12376 = vmatprep.subr.bf16.mxu0 %v8332_v10 }
0x1dff   :  { %v8320_v36 = vadd.f32 %v8304_v58, %v16955_v14  ;;  %v12336_v22 = vpop.f32.mrb[232].mxu1 }
0x1e00   :  { %v17106_v39 = vadd.f32 %v12336_v22, %v18081_v24  ;;  %v8220_v37 = vpop.f32.mrb[233].mxu1  ;;  %v8334_v56 = vpack.c.bf16 %v8322_v55, %v8321_v54 }
0x1e01   :  { %v17109_v31 = vadd.f32 %v8220_v37, %v18056_v32  ;;  %12377 = vmatpush3.bf16.msra.mxu0 %v8332_v10  ;;  %v12337_v6 = vpop.f32.mrb[234].mxu1  ;;  %v8333_v21 = vpack.c.bf16 %v8320_v36, %v8319_v9 }
0x1e02   :  { %v8309_v2 = vmul.f32 0.0625, %v17106_v39  ;;  %v17113_v13 = vadd.f32 %v12337_v6, %v18057_v0  ;;  %v8223_v23 = vpop.f32.mrb[235].mxu1 }
0x1e03   :  { %v8307_v58 = vmul.f32 0.0625, %v17109_v31  ;;  %v17117_v14 = vadd.f32 %v8223_v23, %v18058_v63  ;;  %12362 = vmatprep.mubr.bf16.mxu0 %v8333_v21  ;;  %12378 = vmatprep.subr.bf16.mxu0 %v8333_v21 }
0x1e04   :  { %v8310_v54 = vmul.f32 0.0625, %v17113_v13  ;;  %12363 = vmatmul.mubr.bf16.gmra.mrb[244].mxu0 %v8334_v56  ;;  %v8325_v10 = vadd.f32 %v8309_v2, %v16966_v34 }
0x1e05   :  { %v8308_v37 = vmul.f32 0.0625, %v17117_v14  ;;  %12379 = vmatpush3.bf16.msra.mxu0 %v8333_v21  ;;  %v8323_v9 = vadd.f32 %v8307_v58, %v16969_v25 }
0x1e06   :  { %v8326_v55 = vadd.f32 %v8310_v54, %v16972_v33  ;;  %12380 = vmatprep.subr.bf16.mxu0 %v8334_v56 }
0x1e07   :  { %v8324_v36 = vadd.f32 %v8308_v37, %v16975_v12  ;;  %v12340_v22 = vpop.f32.mrb[236].mxu1 }
0x1e08   :  { %v17126_v6 = vadd.f32 %v12340_v22, %v13421_v42  ;;  %v8236_v23 = vpop.f32.mrb[237].mxu1  ;;  %v8336_v63 = vpack.c.bf16 %v8326_v55, %v8325_v10 }
0x1e09   :  { %v17129_v0 = vadd.f32 %v8236_v23, %v13423_v43  ;;  %12381 = vmatpush3.bf16.msra.mxu0 %v8334_v56  ;;  %v12341_v21 = vpop.f32.mrb[238].mxu1  ;;  %v8335_v32 = vpack.c.bf16 %v8324_v36, %v8323_v9 }
0x1e0a   :  { %v8313_v2 = vmul.f32 0.0625, %v17126_v6  ;;  %v17133_v54 = vadd.f32 %v12341_v21, %v13425_v44  ;;  %v8239_v58 = vpop.f32.mrb[239].mxu1 }
0x1e0b   :  { %v8311_v37 = vmul.f32 0.0625, %v17129_v0  ;;  %v17137_v12 = vadd.f32 %v8239_v58, %v13427_v45  ;;  %12366 = vmatprep.mubr.bf16.mxu0 %v8335_v32  ;;  %12382 = vmatprep.subr.bf16.mxu0 %v8335_v32 }
0x1e0c   :  { %v8314_v10 = vmul.f32 0.0625, %v17133_v54  ;;  %12367 = vmatmul.mubr.bf16.gmra.mrb[248].mxu0 %v8336_v63  ;;  %v8329_v55 = vadd.f32 %v8313_v2, %v16986_v40  ;;  %v18095_v2 = vld [vmem:[#allocation4_spill] sm:$0xff] }
0x1e0d   :  { %v8312_v56 = vmul.f32 0.0625, %v17137_v12  ;;  %12383 = vmatpush3.bf16.msra.mxu0 %v8335_v32  ;;  %v8327_v36 = vadd.f32 %v8311_v37, %v16989_v26  ;;  %v8267_v32 = vmul.f32 0.020833334, %v17069_v28 }
0x1e0e   :  { %v8330_v9 = vadd.f32 %v8314_v10, %v16992_v61  ;;  %12384 = vmatprep.subr.bf16.mxu0 %v8336_v63 }
0x1e0f   :  { %v8328_v22 = vadd.f32 %v8312_v56, %v16995_v7  ;;  %v8283_v28 = vadd.f32 %v8267_v32, %v16929_v19 }
0x1e10   :  { %v8338_v23 = vpack.c.bf16 %v8330_v9, %v8329_v55 }
0x1e11   :  { %12385 = vmatpush3.bf16.msra.mxu0 %v8336_v63  ;;  %v8337_v21 = vpack.c.bf16 %v8328_v22, %v8327_v36  ;;  %v8269_v63 = vmul.f32 0.020833334, %v17066_v1 }
0x1e13   :  { %12370 = vmatprep.mubr.bf16.mxu0 %v8337_v21  ;;  %12386 = vmatprep.subr.bf16.mxu0 %v8337_v21 }
0x1e14   :  { %12371 = vmatmul.mubr.bf16.gmra.mrb[252].mxu0 %v8338_v23 }
0x1e15   :  { %12387 = vmatpush3.bf16.msra.mxu0 %v8337_v21  ;;  %12390 = vmatprep.mubr.bf16.mxu0 %v17004_v29 }
0x1e16   :  { %12388 = vmatprep.subr.bf16.mxu0 %v8338_v23 }
0x1e19   :  { %12389 = vmatpush3.bf16.msra.mxu0 %v8338_v23 }
0x1e1a   :  { %12470 = vmatprep.subr.bf16.mxu0 %v16861_v11 }
0x1e1c   :  { %12391 = vmatmul.mubr.bf16.vlgmr.msra.gmra.mrb[240].mxu0 %v17011_v5 }
0x1e1d   :  { %12394 = vmatprep.mubr.bf16.mxu0 %v17017_v18  ;;  %12471 = vmatpush3.bf16.msra.mxu0 %v16861_v11 }
0x1e1e   :  { %12472 = vmatprep.subr.bf16.mxu0 %v16870_v16 }
0x1e21   :  { %12473 = vmatpush3.bf16.msra.mxu0 %v16870_v16  ;;  %v8270_v16 = vmul.f32 0.020833334, %v17073_v8  ;;  %v18097_v8 = vld [vmem:[#allocation6_spill] sm:$0xff] }
0x1e22   :  { %12474 = vmatprep.subr.bf16.mxu0 %v16877_v59 }
0x1e23   :  { %v8286_v23 = vadd.f32 %v8270_v16, %v16932_v35  ;;  %v8271_v16 = vmul.f32 0.020833334, %v17089_v20 }
0x1e24   :  { %12395 = vmatmul.mubr.bf16.gmra.mrb[244].mxu0 %v17027_v46 }
0x1e25   :  { %12398 = vmatprep.mubr.bf16.mxu0 %v17033_v48  ;;  %12475 = vmatpush3.bf16.msra.mxu0 %v16877_v59 }
0x1e26   :  { %12476 = vmatprep.subr.bf16.mxu0 %v16886_v27 }
0x1e29   :  { %12477 = vmatpush3.bf16.msra.mxu0 %v16886_v27 }
0x1e2a   :  { %12478 = vmatprep.subr.bf16.mxu0 %v16893_v4 }
0x1e2c   :  { %12399 = vmatmul.mubr.bf16.gmra.mrb[248].mxu0 %v17043_v50 }
0x1e2d   :  { %12402 = vmatprep.mubr.bf16.mxu0 %v17049_v15  ;;  %12479 = vmatpush3.bf16.msra.mxu0 %v16893_v4  ;;  %v18094_v4 = vld [vmem:[#allocation17_spill] sm:$0xff] }
0x1e2e   :  { %12480 = vmatprep.subr.bf16.mxu0 %v16902_v52 }
0x1e31   :  { %12481 = vmatpush3.bf16.msra.mxu0 %v16902_v52  ;;  %v8268_v52 = vmul.f32 0.020833334, %v18094_v4 }
0x1e32   :  { %12482 = vmatprep.subr.bf16.mxu0 %v16909_v57 }
0x1e33   :  { %v8284_v4 = vadd.f32 %v8268_v52, %v16935_v49 }
0x1e34   :  { %12403 = vmatmul.mubr.bf16.gmra.mrb[252].mxu0 %v17059_v41 }
0x1e35   :  { %12483 = vmatpush3.bf16.msra.mxu0 %v16909_v57  ;;  %v8285_v57 = vadd.f32 %v8269_v63, %v16926_v17 }
0x1e36   :  { %12484 = vmatprep.subr.bf16.mxu0 %v16917_v53 }
0x1e39   :  { %12485 = vmatpush3.bf16.msra.mxu0 %v16917_v53  ;;  %v18096_v53 = vld [vmem:[#allocation5_spill] sm:$0xff] }
0x1eef   :  { %v12392_v11 = vpop.f32.mrb[240].mxu0 }
0x1ef0   :  { %v8535_v59 = vadd.f32 %v12392_v11, %v18067_v47  ;;  %v8470_v27 = vpop.f32.mrb[241].mxu0 }
0x1ef1   :  { %v8533_v58 = vadd.f32 %v8470_v27, %v18095_v2  ;;  %v12393_v37 = vpop.f32.mrb[242].mxu0 }
0x1ef2   :  { %v8551_v10 = vmul.f32 0.041666668, %v8535_v59  ;;  %v8583_v56 = vmul.f32 0.0625, %v8535_v59  ;;  %v8536_v55 = vadd.f32 %v12393_v37, %v18096_v53  ;;  %v8473_v1 = vpop.f32.mrb[243].mxu0  ;;  %v8273_v37 = vmul.f32 0.020833334, %v17086_v51 }
0x1ef3   :  { %v8549_v9 = vmul.f32 0.041666668, %v8533_v58  ;;  %v8581_v36 = vmul.f32 0.0625, %v8533_v58  ;;  %v8534_v22 = vadd.f32 %v8473_v1, %v18097_v8  ;;  %v8274_v1 = vmul.f32 0.020833334, %v17093_v62 }
0x1ef4   :  { %v17180_v21 = vadd.f32 %v8551_v10, %v8285_v57  ;;  %v8552_v11 = vmul.f32 0.041666668, %v8536_v55  ;;  %v8584_v27 = vmul.f32 0.0625, %v8536_v55  ;;  %v8599_v32 = vadd.f32 %v8583_v56, %v16926_v17  ;;  %v18099_v56 = vld [vmem:[#allocation25_spill] sm:$0xff] }
0x1ef5   :  { %v17183_v63 = vadd.f32 %v8549_v9, %v8283_v28  ;;  %v8550_v59 = vmul.f32 0.041666668, %v8534_v22  ;;  %v8582_v2 = vmul.f32 0.0625, %v8534_v22  ;;  %v8597_v57 = vadd.f32 %v8581_v36, %v16929_v19 }
0x1ef6   :  { %v17187_v53 = vadd.f32 %v8552_v11, %v8286_v23  ;;  %v8600_v58 = vadd.f32 %v8584_v27, %v16932_v35  ;;  %v8272_v22 = vmul.f32 0.020833334, %v18099_v56  ;;  %v18100_v23 = vld [vmem:[#allocation7_spill] sm:$0xff]  ;;  %v8289_v20 = vadd.f32 %v8273_v37, %v16946_v38  ;;  %v18103_v37 = vld [vmem:[#allocation16_spill] sm:$0xff] }
0x1ef7   :  { %v17192_v10 = vadd.f32 %v8550_v59, %v8284_v4  ;;  %v8598_v52 = vadd.f32 %v8582_v2, %v16935_v49  ;;  %v12396_v55 = vpop.f32.mrb[244].mxu0  ;;  %v18101_v59 = vld [vmem:[#allocation8_spill] sm:$0xff]  ;;  %v8287_v49 = vadd.f32 %v8271_v16, %v16949_v3  ;;  %v8290_v56 = vadd.f32 %v8274_v1, %v16952_v60 }
0x1ef8   :  { %v8614_v28 = vpack.c.bf16 %v8600_v58, %v8599_v32  ;;  %v8539_v51 = vadd.f32 %v12396_v55, %v13397_v30  ;;  %v8486_v9 = vpop.f32.mrb[245].mxu0  ;;  %v18102_v58 = vld [vmem:[#allocation9_spill] sm:$0xff]  ;;  %v8277_v16 = vmul.f32 0.020833334, %v17106_v39 }
0x1ef9   :  { %18098 = vst [vmem:[#allocation18_spill] sm:$0xff] %v17192_v10  ;;  %v8537_v11 = vadd.f32 %v8486_v9, %v18100_v23  ;;  %v12397_v27 = vpop.f32.mrb[246].mxu0  ;;  %v8613_v35 = vpack.c.bf16 %v8598_v52, %v8597_v57 }
0x1efa   :  { %v8555_v36 = vmul.f32 0.041666668, %v8539_v51  ;;  %v8587_v4 = vmul.f32 0.0625, %v8539_v51  ;;  %v8540_v10 = vadd.f32 %v12397_v27, %v18101_v59  ;;  %v8489_v2 = vpop.f32.mrb[247].mxu0  ;;  %v8288_v51 = vadd.f32 %v8272_v22, %v18103_v37 }
0x1efb   :  { %v8553_v62 = vmul.f32 0.041666668, %v8537_v11  ;;  %v8585_v32 = vmul.f32 0.0625, %v8537_v11  ;;  %v8538_v55 = vadd.f32 %v8489_v2, %v18102_v58  ;;  %12422 = vmatprep.mubr.bf16.mxu1 %v8613_v35  ;;  %12438 = vmatprep.subr.bf16.mxu1 %v8613_v35 }
0x1efc   :  { %v17204_v9 = vadd.f32 %v8555_v36, %v8289_v20  ;;  %v8556_v57 = vmul.f32 0.041666668, %v8540_v10  ;;  %v8588_v52 = vmul.f32 0.0625, %v8540_v10  ;;  %12423 = vmatmul.mubr.bf16.vlgmr.msra.gmra.mrb[240].mxu1 %v8614_v28  ;;  %v8603_v11 = vadd.f32 %v8587_v4, %v16946_v38 }
0x1efd   :  { %v17207_v23 = vadd.f32 %v8553_v62, %v8287_v49  ;;  %v8554_v27 = vmul.f32 0.041666668, %v8538_v55  ;;  %v8586_v59 = vmul.f32 0.0625, %v8538_v55  ;;  %12439 = vmatpush3.bf16.msra.mxu1 %v8613_v35  ;;  %v8275_v20 = vmul.f32 0.020833334, %v17109_v31 }
0x1efe   :  { %v17211_v2 = vadd.f32 %v8556_v57, %v8290_v56  ;;  %v8604_v1 = vadd.f32 %v8588_v52, %v16952_v60  ;;  %12440 = vmatprep.subr.bf16.mxu1 %v8614_v28  ;;  %v8601_v10 = vadd.f32 %v8585_v32, %v16949_v3  ;;  %v8278_v35 = vmul.f32 0.020833334, %v17113_v13  ;;  %v18105_v56 = vld [vmem:[#allocation11_spill] sm:$0xff] }
0x1eff   :  { %v17216_v36 = vadd.f32 %v8554_v27, %v8288_v51  ;;  %v8602_v49 = vadd.f32 %v8586_v59, %v18103_v37  ;;  %v12400_v22 = vpop.f32.mrb[248].mxu0  ;;  %v8276_v55 = vmul.f32 0.020833334, %v17117_v14  ;;  %v8293_v32 = vadd.f32 %v8277_v16, %v16966_v34  ;;  %v18108_v16 = vld [vmem:[#allocation3_spill] sm:$0xff] }
0x1f00   :  { %v8543_v39 = vadd.f32 %v12400_v22, %v18081_v24  ;;  %v8502_v62 = vpop.f32.mrb[249].mxu0  ;;  %v8616_v4 = vpack.c.bf16 %v8604_v1, %v8603_v11  ;;  %v8291_v13 = vadd.f32 %v8275_v20, %v16969_v25  ;;  %v18107_v24 = vld [vmem:[#allocation13_spill] sm:$0xff]  ;;  %v8294_v14 = vadd.f32 %v8278_v35, %v16972_v33 }
0x1f01   :  { %18104 = vst [vmem:[#allocation19_spill] sm:$0xff] %v17216_v36  ;;  %v8541_v57 = vadd.f32 %v8502_v62, %v18105_v56  ;;  %12441 = vmatpush3.bf16.msra.mxu1 %v8614_v28  ;;  %v12401_v52 = vpop.f32.mrb[250].mxu0  ;;  %v8615_v31 = vpack.c.bf16 %v8602_v49, %v8601_v10  ;;  %v18106_v36 = vld [vmem:[#allocation12_spill] sm:$0xff]  ;;  %v8292_v49 = vadd.f32 %v8276_v55, %v18108_v16  ;;  %v8281_v20 = vmul.f32 0.020833334, %v17126_v6 }
0x1f02   :  { %v8559_v51 = vmul.f32 0.041666668, %v8543_v39  ;;  %v8591_v27 = vmul.f32 0.0625, %v8543_v39  ;;  %v8544_v59 = vadd.f32 %v12401_v52, %v18106_v36  ;;  %v8505_v37 = vpop.f32.mrb[251].mxu0 }
0x1f03   :  { %v8557_v3 = vmul.f32 0.041666668, %v8541_v57  ;;  %v8589_v22 = vmul.f32 0.0625, %v8541_v57  ;;  %v8542_v11 = vadd.f32 %v8505_v37, %v18107_v24  ;;  %12426 = vmatprep.mubr.bf16.mxu1 %v8615_v31  ;;  %12442 = vmatprep.subr.bf16.mxu1 %v8615_v31 }
0x1f04   :  { %v17228_v28 = vadd.f32 %v8559_v51, %v8293_v32  ;;  %v8560_v1 = vmul.f32 0.041666668, %v8544_v59  ;;  %v8592_v10 = vmul.f32 0.0625, %v8544_v59  ;;  %12427 = vmatmul.mubr.bf16.gmra.mrb[244].mxu1 %v8616_v4  ;;  %v8607_v37 = vadd.f32 %v8591_v27, %v16966_v34 }
0x1f05   :  { %v17231_v39 = vadd.f32 %v8557_v3, %v8291_v13  ;;  %v8558_v62 = vmul.f32 0.041666668, %v8542_v11  ;;  %v8590_v52 = vmul.f32 0.0625, %v8542_v11  ;;  %12443 = vmatpush3.bf16.msra.mxu1 %v8615_v31  ;;  %v8279_v32 = vmul.f32 0.020833334, %v17129_v0 }
0x1f06   :  { %v17235_v57 = vadd.f32 %v8560_v1, %v8294_v14  ;;  %v8608_v35 = vadd.f32 %v8592_v10, %v16972_v33  ;;  %12444 = vmatprep.subr.bf16.mxu1 %v8616_v4  ;;  %v8605_v51 = vadd.f32 %v8589_v22, %v16969_v25  ;;  %v8282_v31 = vmul.f32 0.020833334, %v17133_v54 }
0x1f07   :  { %v17240_v59 = vadd.f32 %v8558_v62, %v8292_v49  ;;  %v8606_v3 = vadd.f32 %v8590_v52, %v18108_v16  ;;  %v12404_v55 = vpop.f32.mrb[252].mxu0  ;;  %v8280_v11 = vmul.f32 0.020833334, %v17137_v12  ;;  %v8297_v22 = vadd.f32 %v8281_v20, %v16986_v40 }
0x1f08   :  { %v8547_v6 = vadd.f32 %v12404_v55, %v13421_v42  ;;  %v8518_v13 = vpop.f32.mrb[253].mxu0  ;;  %v8618_v27 = vpack.c.bf16 %v8608_v35, %v8607_v37  ;;  %v8295_v54 = vadd.f32 %v8279_v32, %v16989_v26  ;;  %v8298_v12 = vadd.f32 %v8282_v31, %v16992_v61 }
0x1f09   :  { %v8545_v14 = vadd.f32 %v8518_v13, %v13423_v43  ;;  %12445 = vmatpush3.bf16.msra.mxu1 %v8616_v4  ;;  %v12405_v1 = vpop.f32.mrb[254].mxu0  ;;  %v8617_v0 = vpack.c.bf16 %v8606_v3, %v8605_v51  ;;  %v8296_v20 = vadd.f32 %v8280_v11, %v16995_v7  ;;  %v13111_v11 = vld [vmem:[%s17472_s4 + $0x8] sm:$0xff]  }
0x1f0a   :  { %v8563_v10 = vmul.f32 0.041666668, %v8547_v6  ;;  %v8595_v49 = vmul.f32 0.0625, %v8547_v6  ;;  %v8548_v62 = vadd.f32 %v12405_v1, %v13425_v44  ;;  %v8521_v52 = vpop.f32.mrb[255].mxu0 }
0x1f0b   :  { %v8561_v16 = vmul.f32 0.041666668, %v8545_v14  ;;  %v8593_v55 = vmul.f32 0.0625, %v8545_v14  ;;  %v8546_v37 = vadd.f32 %v8521_v52, %v13427_v45  ;;  %12430 = vmatprep.mubr.bf16.mxu1 %v8617_v0  ;;  %12446 = vmatprep.subr.bf16.mxu1 %v8617_v0  ;;  %v13114_v52 = vld [vmem:[%s17472_s4 + $0x20] sm:$0xff]  }
0x1f0c   :  { %v17252_v4 = vadd.f32 %v8563_v10, %v8297_v22  ;;  %v8564_v35 = vmul.f32 0.041666668, %v8548_v62  ;;  %v8596_v51 = vmul.f32 0.0625, %v8548_v62  ;;  %12431 = vmatmul.mubr.bf16.gmra.mrb[248].mxu1 %v8618_v27  ;;  %v8611_v32 = vadd.f32 %v8595_v49, %v16986_v40  ;;  %v13113_v49 = vld [vmem:[%s17472_s4 + $0x18] sm:$0xff]  }
0x1f0d   :  { %v17255_v3 = vadd.f32 %v8561_v16, %v8295_v54  ;;  %v8562_v6 = vmul.f32 0.041666668, %v8546_v37  ;;  %v8594_v13 = vmul.f32 0.0625, %v8546_v37  ;;  %12447 = vmatpush3.bf16.msra.mxu1 %v8617_v0  ;;  %v8609_v31 = vadd.f32 %v8593_v55, %v16989_v26  ;;  %v13112_v0 = vld [vmem:[%s17472_s4 + $0x10] sm:$0xff]  }
0x1f0e   :  { %v17258_v14 = vadd.f32 %v8564_v35, %v8298_v12  ;;  %v8612_v1 = vadd.f32 %v8596_v51, %v16992_v61  ;;  %12448 = vmatprep.subr.bf16.mxu1 %v8618_v27  ;;  %v18109_v12 = vld [vmem:[#allocation4_spill] sm:$0xff] }
0x1f0f   :  { %v17262_v22 = vadd.f32 %v8562_v6, %v8296_v20  ;;  %v8610_v10 = vadd.f32 %v8594_v13, %v16995_v7  ;;  %v18110_v13 = vld [vmem:[#allocation5_spill] sm:$0xff] }
0x1f10   :  { %v8620_v62 = vpack.c.bf16 %v8612_v1, %v8611_v32 }
0x1f11   :  { %12449 = vmatpush3.bf16.msra.mxu1 %v8618_v27  ;;  %v8619_v16 = vpack.c.bf16 %v8610_v10, %v8609_v31  ;;  %v13110_v27 = vld [vmem:[%s17472_s4] sm:$0xff]  }
0x1f13   :  { %12434 = vmatprep.mubr.bf16.mxu1 %v8619_v16  ;;  %12450 = vmatprep.subr.bf16.mxu1 %v8619_v16 }
0x1f14   :  { %12435 = vmatmul.mubr.bf16.gmra.mrb[252].mxu1 %v8620_v62 }
0x1f15   :  { %12451 = vmatpush3.bf16.msra.mxu1 %v8619_v16  ;;  %12454 = vmatprep.mubr.bf16.mxu1 %v17004_v29 }
0x1f16   :  { %12452 = vmatprep.subr.bf16.mxu1 %v8620_v62 }
0x1f19   :  { %12453 = vmatpush3.bf16.msra.mxu1 %v8620_v62 }
0x1f1a   :  { %12534 = vmatprep.subr.bf16.mxu1 %v13110_v27 }
0x1f1c   :  { %12455 = vmatmul.mubr.bf16.vlgmr.msra.gmra.mrb[240].mxu1 %v17011_v5 }
0x1f1d   :  { %12458 = vmatprep.mubr.bf16.mxu1 %v17017_v18  ;;  %12535 = vmatpush3.bf16.msra.mxu1 %v13110_v27 }
0x1f1e   :  { %12536 = vmatprep.subr.bf16.mxu1 %v13111_v11 }
0x1f21   :  { %12537 = vmatpush3.bf16.msra.mxu1 %v13111_v11 }
0x1f22   :  { %12538 = vmatprep.subr.bf16.mxu1 %v13112_v0 }
0x1f24   :  { %12459 = vmatmul.mubr.bf16.gmra.mrb[244].mxu1 %v17027_v46 }
0x1f25   :  { %12462 = vmatprep.mubr.bf16.mxu1 %v17033_v48  ;;  %12539 = vmatpush3.bf16.msra.mxu1 %v13112_v0 }
0x1f26   :  { %12540 = vmatprep.subr.bf16.mxu1 %v13113_v49 }
0x1f29   :  { %12541 = vmatpush3.bf16.msra.mxu1 %v13113_v49 }
0x1f2a   :  { %12542 = vmatprep.subr.bf16.mxu1 %v13114_v52 }
0x1f2c   :  { %12463 = vmatmul.mubr.bf16.gmra.mrb[248].mxu1 %v17043_v50 }
0x1f2d   :  { %12466 = vmatprep.mubr.bf16.mxu1 %v17049_v15  ;;  %12543 = vmatpush3.bf16.msra.mxu1 %v13114_v52 }
0x1f34   :  { %12467 = vmatmul.mubr.bf16.gmra.mrb[252].mxu1 %v17059_v41 }
0x1fef   :  { %v12456_v54 = vpop.f32.mrb[240].mxu1 }
0x1ff0   :  { %v8817_v55 = vadd.f32 %v12456_v54, %v18067_v47  ;;  %v8752_v37 = vpop.f32.mrb[241].mxu1 }
0x1ff1   :  { %v8815_v35 = vadd.f32 %v8752_v37, %v18109_v12  ;;  %v12457_v51 = vpop.f32.mrb[242].mxu1  ;;  %v18114_v37 = vld [vmem:[#allocation15_spill] sm:$0xff] }
0x1ff2   :  { %v8833_v20 = vmul.f32 0.041666668, %v8817_v55  ;;  %v8865_v6 = vmul.f32 0.125, %v8817_v55  ;;  %v8818_v32 = vadd.f32 %v12457_v51, %v18110_v13  ;;  %v8755_v1 = vpop.f32.mrb[243].mxu1 }
0x1ff3   :  { %v8831_v31 = vmul.f32 0.041666668, %v8815_v35  ;;  %v8863_v10 = vmul.f32 0.125, %v8815_v35  ;;  %v8816_v62 = vadd.f32 %v8755_v1, %v18097_v8  ;;  %v18115_v1 = vld [vmem:[#allocation18_spill] sm:$0xff] }
0x1ff4   :  { %v17293_v16 = vadd.f32 %v8833_v20, %v17180_v21  ;;  %v8834_v27 = vmul.f32 0.041666668, %v8818_v32  ;;  %v8866_v11 = vmul.f32 0.125, %v8818_v32  ;;  %v8881_v54 = vadd.f32 %v8865_v6, %v16926_v17  ;;  %v18116_v21 = vld [vmem:[#allocation24_spill] sm:$0xff] }
0x1ff5   :  { %v17296_v0 = vadd.f32 %v8831_v31, %v17183_v63  ;;  %v8832_v49 = vmul.f32 0.041666668, %v8816_v62  ;;  %v8864_v52 = vmul.f32 0.125, %v8816_v62  ;;  %v8879_v35 = vadd.f32 %v8863_v10, %v16929_v19  ;;  %v18117_v62 = vld [vmem:[#allocation7_spill] sm:$0xff] }
0x1ff6   :  { %18111 = vst [vmem:[#allocation21_spill] sm:$0xff] %v17293_v16  ;;  %v17300_v55 = vadd.f32 %v8834_v27, %v17187_v53  ;;  %v8882_v51 = vadd.f32 %v8866_v11, %v18114_v37 }
0x1ff7   :  { %18112 = vst [vmem:[#allocation20_spill] sm:$0xff] %v17296_v0  ;;  %v17305_v8 = vadd.f32 %v8832_v49, %v18115_v1  ;;  %v8880_v20 = vadd.f32 %v8864_v52, %v18116_v21  ;;  %v12460_v32 = vpop.f32.mrb[244].mxu1 }
0x1ff8   :  { %18113 = vst [vmem:[#allocation23_spill] sm:$0xff] %v17300_v55  ;;  %v8896_v16 = vpack.c.bf16 %v8882_v51, %v8881_v54  ;;  %v8821_v63 = vadd.f32 %v12460_v32, %v13397_v30  ;;  %v8768_v31 = vpop.f32.mrb[245].mxu1  ;;  %v18118_v55 = vld [vmem:[#allocation8_spill] sm:$0xff] }
0x1ff9   :  { %v8819_v0 = vadd.f32 %v8768_v31, %v18117_v62  ;;  %v12461_v17 = vpop.f32.mrb[246].mxu1  ;;  %v8895_v6 = vpack.c.bf16 %v8880_v20, %v8879_v35  ;;  %v18120_v31 = vld [vmem:[#allocation19_spill] sm:$0xff] }
0x1ffa   :  { %v8837_v53 = vmul.f32 0.041666668, %v8821_v63  ;;  %v8869_v27 = vmul.f32 0.125, %v8821_v63  ;;  %v8822_v11 = vadd.f32 %v12461_v17, %v18118_v55  ;;  %v8771_v37 = vpop.f32.mrb[247].mxu1  ;;  %v18119_v63 = vld [vmem:[#allocation2_spill] sm:$0xff] }
0x1ffb   :  { %v8835_v19 = vmul.f32 0.041666668, %v8819_v0  ;;  %v8867_v10 = vmul.f32 0.125, %v8819_v0  ;;  %v8820_v49 = vadd.f32 %v8771_v37, %v18102_v58  ;;  %12486 = vmatprep.mubr.bf16.mxu0 %v8895_v6  ;;  %12502 = vmatprep.subr.bf16.mxu0 %v8895_v6 }
0x1ffc   :  { %v17313_v52 = vadd.f32 %v8837_v53, %v17204_v9  ;;  %v8838_v54 = vmul.f32 0.041666668, %v8822_v11  ;;  %v8870_v51 = vmul.f32 0.125, %v8822_v11  ;;  %12487 = vmatmul.mubr.bf16.vlgmr.msra.gmra.mrb[0].mxu0 %v8896_v16  ;;  %v8885_v20 = vadd.f32 %v8869_v27, %v16946_v38  ;;  %v18121_v53 = vld [vmem:[#allocation16_spill] sm:$0xff] }
0x1ffd   :  { %v17316_v1 = vadd.f32 %v8835_v19, %v17207_v23  ;;  %v8836_v35 = vmul.f32 0.041666668, %v8820_v49  ;;  %v8868_v21 = vmul.f32 0.125, %v8820_v49  ;;  %12503 = vmatpush3.bf16.msra.mxu0 %v8895_v6  ;;  %v8883_v9 = vadd.f32 %v8867_v10, %v18119_v63  ;;  %v18122_v19 = vld [vmem:[#allocation10_spill] sm:$0xff] }
0x1ffe   :  { %v17320_v0 = vadd.f32 %v8838_v54, %v17211_v2  ;;  %v8886_v32 = vadd.f32 %v8870_v51, %v16952_v60  ;;  %12504 = vmatprep.subr.bf16.mxu0 %v8896_v16 }
0x1fff   :  { %v17325_v17 = vadd.f32 %v8836_v35, %v18120_v31  ;;  %v8884_v11 = vadd.f32 %v8868_v21, %v18121_v53  ;;  %v12464_v23 = vpop.f32.mrb[248].mxu1 }
0x2000   :  { %v8898_v37 = vpack.c.bf16 %v8886_v32, %v8885_v20  ;;  %v8825_v49 = vadd.f32 %v12464_v23, %v18122_v19  ;;  %v8784_v6 = vpop.f32.mrb[249].mxu1 }
0x2001   :  { %v8823_v38 = vadd.f32 %v8784_v6, %v18105_v56  ;;  %12505 = vmatpush3.bf16.msra.mxu0 %v8896_v16  ;;  %v12465_v2 = vpop.f32.mrb[250].mxu1  ;;  %v8897_v27 = vpack.c.bf16 %v8884_v11, %v8883_v9 }
0x2002   :  { %v8841_v54 = vmul.f32 0.041666668, %v8825_v49  ;;  %v8873_v60 = vmul.f32 0.125, %v8825_v49  ;;  %v8826_v51 = vadd.f32 %v12465_v2, %v18106_v36  ;;  %v8787_v10 = vpop.f32.mrb[251].mxu1 }
0x2003   :  { %v8839_v63 = vmul.f32 0.041666668, %v8823_v38  ;;  %v8871_v35 = vmul.f32 0.125, %v8823_v38  ;;  %v8824_v31 = vadd.f32 %v8787_v10, %v18107_v24  ;;  %12490 = vmatprep.mubr.bf16.mxu0 %v8897_v27  ;;  %12506 = vmatprep.subr.bf16.mxu0 %v8897_v27  ;;  %v18123_v38 = vld [vmem:[#allocation3_spill] sm:$0xff] }
0x2004   :  { %v17333_v21 = vadd.f32 %v8841_v54, %v17228_v28  ;;  %v8842_v20 = vmul.f32 0.041666668, %v8826_v51  ;;  %v8874_v32 = vmul.f32 0.125, %v8826_v51  ;;  %12491 = vmatmul.mubr.bf16.gmra.mrb[4].mxu0 %v8898_v37  ;;  %v8889_v11 = vadd.f32 %v8873_v60, %v16966_v34 }
0x2005   :  { %v17336_v16 = vadd.f32 %v8839_v63, %v17231_v39  ;;  %v8840_v9 = vmul.f32 0.041666668, %v8824_v31  ;;  %v8872_v53 = vmul.f32 0.125, %v8824_v31  ;;  %12507 = vmatpush3.bf16.msra.mxu0 %v8897_v27  ;;  %v8887_v28 = vadd.f32 %v8871_v35, %v16969_v25 }
0x2006   :  { %v17340_v23 = vadd.f32 %v8842_v20, %v17235_v57  ;;  %v8890_v49 = vadd.f32 %v8874_v32, %v16972_v33  ;;  %12508 = vmatprep.subr.bf16.mxu0 %v8898_v37 }
0x2007   :  { %v17345_v6 = vadd.f32 %v8840_v9, %v17240_v59  ;;  %v8888_v2 = vadd.f32 %v8872_v53, %v18123_v38  ;;  %v12468_v39 = vpop.f32.mrb[252].mxu1 }
0x2008   :  { %v8900_v54 = vpack.c.bf16 %v8890_v49, %v8889_v11  ;;  %v8829_v51 = vadd.f32 %v12468_v39, %v13421_v42  ;;  %v8800_v27 = vpop.f32.mrb[253].mxu1 }
0x2009   :  { %v8827_v34 = vadd.f32 %v8800_v27, %v13423_v43  ;;  %12509 = vmatpush3.bf16.msra.mxu0 %v8898_v37  ;;  %v12469_v57 = vpop.f32.mrb[254].mxu1  ;;  %v8899_v60 = vpack.c.bf16 %v8888_v2, %v8887_v28 }
0x200a   :  { %v8845_v10 = vmul.f32 0.041666668, %v8829_v51  ;;  %v8877_v33 = vmul.f32 0.125, %v8829_v51  ;;  %v8830_v63 = vadd.f32 %v12469_v57, %v13425_v44  ;;  %v8803_v25 = vpop.f32.mrb[255].mxu1  ;;  %v18126_v57 = vld [vmem:[#allocation20_spill] sm:$0xff] }
0x200b   :  { %v8843_v35 = vmul.f32 0.041666668, %v8827_v34  ;;  %v8875_v59 = vmul.f32 0.125, %v8827_v34  ;;  %v8828_v31 = vadd.f32 %v8803_v25, %v13427_v45  ;;  %12494 = vmatprep.mubr.bf16.mxu0 %v8899_v60  ;;  %12510 = vmatprep.subr.bf16.mxu0 %v8899_v60 }
0x200c   :  { %v17353_v20 = vadd.f32 %v8845_v10, %v17252_v4  ;;  %v8846_v32 = vmul.f32 0.041666668, %v8830_v63  ;;  %v8878_v9 = vmul.f32 0.125, %v8830_v63  ;;  %12495 = vmatmul.mubr.bf16.gmra.mrb[8].mxu0 %v8900_v54  ;;  %v8893_v49 = vadd.f32 %v8877_v33, %v16986_v40  ;;  %v13115_v40 = vld [vmem:[%s17472_s4 + $0x28] sm:$0xff]  }
0x200d   :  { %v17356_v37 = vadd.f32 %v8843_v35, %v17255_v3  ;;  %v8844_v53 = vmul.f32 0.041666668, %v8828_v31  ;;  %v8876_v11 = vmul.f32 0.125, %v8828_v31  ;;  %12511 = vmatpush3.bf16.msra.mxu0 %v8899_v60  ;;  %v8891_v4 = vadd.f32 %v8875_v59, %v16989_v26  ;;  %12544 = vmatprep.subr.bf16.mxu1 %v13115_v40  ;;  %v13116_v26 = vld [vmem:[%s17472_s4 + $0x30] sm:$0xff]   ;;  %v18127_v33 = vld [vmem:[#allocation23_spill] sm:$0xff] }
0x200e   :  { %v17360_v28 = vadd.f32 %v8846_v32, %v17258_v14  ;;  %v8894_v38 = vadd.f32 %v8878_v9, %v16992_v61  ;;  %12512 = vmatprep.subr.bf16.mxu0 %v8900_v54  ;;  %12545 = vmatpush3.bf16.msra.mxu1 %v13115_v40  ;;  %v13117_v61 = vld [vmem:[%s17472_s4 + $0x38] sm:$0xff]   ;;  %v18124_v14 = vld [vmem:[#allocation6_spill] sm:$0xff] }
0x200f   :  { %v17365_v2 = vadd.f32 %v8844_v53, %v17262_v22  ;;  %v8892_v39 = vadd.f32 %v8876_v11, %v16995_v7  ;;  %12546 = vmatprep.subr.bf16.mxu1 %v13116_v26 }
0x2010   :  { %v8902_v3 = vpack.c.bf16 %v8894_v38, %v8893_v49 }
0x2011   :  { %12513 = vmatpush3.bf16.msra.mxu0 %v8900_v54  ;;  %v8901_v51 = vpack.c.bf16 %v8892_v39, %v8891_v4  ;;  %v18125_v54 = vld [vmem:[#allocation21_spill] sm:$0xff] }
0x2012   :  { %12547 = vmatpush3.bf16.msra.mxu1 %v13116_v26 }
0x2013   :  { %12498 = vmatprep.mubr.bf16.mxu0 %v8901_v51  ;;  %12514 = vmatprep.subr.bf16.mxu0 %v8901_v51 }
0x2014   :  { %12499 = vmatmul.mubr.bf16.gmra.mrb[12].mxu0 %v8902_v3  ;;  %12548 = vmatprep.subr.bf16.mxu1 %v13117_v61 }
0x2015   :  { %12515 = vmatpush3.bf16.msra.mxu0 %v8901_v51  ;;  %12518 = vmatprep.mubr.bf16.mxu0 %v17004_v29 }
0x2016   :  { %12516 = vmatprep.subr.bf16.mxu0 %v8902_v3  ;;  %12549 = vmatpush3.bf16.msra.mxu1 %v13117_v61 }
0x2019   :  { %12517 = vmatpush3.bf16.msra.mxu0 %v8902_v3 }
0x201c   :  { %12519 = vmatmul.mubr.bf16.vlgmr.msra.gmra.mrb[0].mxu0 %v17011_v5 }
0x201d   :  { %12522 = vmatprep.mubr.bf16.mxu0 %v17017_v18 }
0x2024   :  { %12523 = vmatmul.mubr.bf16.gmra.mrb[4].mxu0 %v17027_v46 }
0x2025   :  { %12526 = vmatprep.mubr.bf16.mxu0 %v17033_v48 }
0x202c   :  { %12527 = vmatmul.mubr.bf16.gmra.mrb[8].mxu0 %v17043_v50 }
0x202d   :  { %12530 = vmatprep.mubr.bf16.mxu0 %v17049_v15 }
0x2034   :  { %12531 = vmatmul.mubr.bf16.gmra.mrb[12].mxu0 %v17059_v41 }
0x20ef   :  { %v12520_v7 = vpop.f32.mrb[0].mxu0 }
0x20f0   :  { %v9099_v29 = vadd.f32 %v12520_v7, %v18067_v47  ;;  %v9034_v5 = vpop.f32.mrb[1].mxu0 }
0x20f1   :  { %v9097_v18 = vadd.f32 %v9034_v5, %v18109_v12  ;;  %v12521_v46 = vpop.f32.mrb[2].mxu0 }
0x20f2   :  { %v9115_v48 = vmul.f32 0.020833334, %v9099_v29  ;;  %v9100_v50 = vadd.f32 %v12521_v46, %v18110_v13  ;;  %v9037_v15 = vpop.f32.mrb[3].mxu0 }
0x20f3   :  { %v9113_v41 = vmul.f32 0.020833334, %v9097_v18  ;;  %v9098_v22 = vadd.f32 %v9037_v15, %v18124_v14 }
0x20f4   :  { %v9131_v27 = vadd.f32 %v9115_v48, %v18125_v54  ;;  %v9116_v34 = vmul.f32 0.020833334, %v9100_v50 }
0x20f5   :  { %v9129_v60 = vadd.f32 %v9113_v41, %v18126_v57  ;;  %v9114_v10 = vmul.f32 0.020833334, %v9098_v22 }
0x20f6   :  { %v9132_v63 = vadd.f32 %v9116_v34, %v18127_v33  ;;  %v9147_v12 = vmax.f32 %v9131_v27, 0.0 }
0x20f7   :  { %v9130_v47 = vadd.f32 %v9114_v10, %v17305_v8  ;;  %v12524_v25 = vpop.f32.mrb[4].mxu0  ;;  %v9145_v31 = vmax.f32 %v9129_v60, 0.0 }
0x20f8   :  { %v9148_v35 = vmax.f32 %v9132_v63, 0.0  ;;  %v9103_v59 = vadd.f32 %v12524_v25, %v13397_v30  ;;  %v9050_v13 = vpop.f32.mrb[5].mxu0 }
0x20f9   :  { %v9146_v32 = vmax.f32 %v9130_v47, 0.0  ;;  %v9101_v9 = vadd.f32 %v9050_v13, %v18117_v62  ;;  %v12525_v53 = vpop.f32.mrb[6].mxu0 }
0x20fa   :  { %v9162_v11 = vpack.c.bf16 %v9148_v35, %v9147_v12  ;;  %v9119_v49 = vmul.f32 0.020833334, %v9103_v59  ;;  %v9104_v38 = vadd.f32 %v12525_v53, %v18118_v55  ;;  %v9053_v4 = vpop.f32.mrb[7].mxu0 }
0x20fb   :  { %v9117_v39 = vmul.f32 0.020833334, %v9101_v9  ;;  %v9102_v3 = vadd.f32 %v9053_v4, %v18102_v58  ;;  %v9161_v8 = vpack.c.bf16 %v9146_v32, %v9145_v31 }
0x20fc   :  { %v9135_v51 = vadd.f32 %v9119_v49, %v17313_v52  ;;  %v9120_v40 = vmul.f32 0.020833334, %v9104_v38 }
0x20fd   :  { %v9133_v30 = vadd.f32 %v9117_v39, %v17316_v1  ;;  %v9118_v26 = vmul.f32 0.020833334, %v9102_v3  ;;  %12550 = vmatprep.mubr.bf16.mxu1 %v9161_v8 }
0x20fe   :  { %v9136_v61 = vadd.f32 %v9120_v40, %v17320_v0  ;;  %12551 = vmatmul.mubr.bf16.vlgmr.msra.gmra.mrb[0].mxu1 %v9162_v11  ;;  %v9151_v29 = vmax.f32 %v9135_v51, 0.0 }
0x20ff   :  { %v9134_v62 = vadd.f32 %v9118_v26, %v17325_v17  ;;  %v12528_v7 = vpop.f32.mrb[8].mxu0  ;;  %v9149_v58 = vmax.f32 %v9133_v30, 0.0 }
0x2100   :  { %v9152_v55 = vmax.f32 %v9136_v61, 0.0  ;;  %v9107_v5 = vadd.f32 %v12528_v7, %v18122_v19  ;;  %v9066_v18 = vpop.f32.mrb[9].mxu0 }
0x2101   :  { %v9150_v46 = vmax.f32 %v9134_v62, 0.0  ;;  %v9105_v52 = vadd.f32 %v9066_v18, %v18105_v56  ;;  %v12529_v48 = vpop.f32.mrb[10].mxu0 }
0x2102   :  { %v9164_v50 = vpack.c.bf16 %v9152_v55, %v9151_v29  ;;  %v9123_v1 = vmul.f32 0.020833334, %v9107_v5  ;;  %v9108_v15 = vadd.f32 %v12529_v48, %v18106_v36  ;;  %v9069_v41 = vpop.f32.mrb[11].mxu0 }
0x2103   :  { %v9121_v0 = vmul.f32 0.020833334, %v9105_v52  ;;  %v9106_v14 = vadd.f32 %v9069_v41, %v18107_v24  ;;  %v9163_v17 = vpack.c.bf16 %v9150_v46, %v9149_v58 }
0x2104   :  { %v9139_v22 = vadd.f32 %v9123_v1, %v17333_v21  ;;  %v9124_v54 = vmul.f32 0.020833334, %v9108_v15 }
0x2105   :  { %v9137_v19 = vadd.f32 %v9121_v0, %v17336_v16  ;;  %v9122_v27 = vmul.f32 0.020833334, %v9106_v14  ;;  %12554 = vmatprep.mubr.bf16.mxu1 %v9163_v17 }
0x2106   :  { %v9140_v34 = vadd.f32 %v9124_v54, %v17340_v23  ;;  %12555 = vmatmul.mubr.bf16.gmra.mrb[4].mxu1 %v9164_v50  ;;  %v9155_v60 = vmax.f32 %v9139_v22, 0.0 }
0x2107   :  { %v9138_v56 = vadd.f32 %v9122_v27, %v17345_v6  ;;  %v12532_v57 = vpop.f32.mrb[12].mxu0  ;;  %v9153_v24 = vmax.f32 %v9137_v19, 0.0 }
0x2108   :  { %v9156_v36 = vmax.f32 %v9140_v34, 0.0  ;;  %v9111_v10 = vadd.f32 %v12532_v57, %v13421_v42  ;;  %v9082_v33 = vpop.f32.mrb[13].mxu0 }
0x2109   :  { %v9154_v63 = vmax.f32 %v9138_v56, 0.0  ;;  %v9109_v21 = vadd.f32 %v9082_v33, %v13423_v43  ;;  %v12533_v47 = vpop.f32.mrb[14].mxu0 }
0x210a   :  { %v9166_v25 = vpack.c.bf16 %v9156_v36, %v9155_v60  ;;  %v9127_v16 = vmul.f32 0.020833334, %v9111_v10  ;;  %v9112_v12 = vadd.f32 %v12533_v47, %v13425_v44  ;;  %v9085_v35 = vpop.f32.mrb[15].mxu0 }
0x210b   :  { %v9125_v23 = vmul.f32 0.020833334, %v9109_v21  ;;  %v9110_v59 = vadd.f32 %v9085_v35, %v13427_v45  ;;  %v9165_v6 = vpack.c.bf16 %v9154_v63, %v9153_v24  ;;  %v9389_v45 = vld [vmem:[%s17473_s5] ss:$0 sm:$0xff] }
0x210c   :  { %v9143_v13 = vadd.f32 %v9127_v16, %v17353_v20  ;;  %v9128_v31 = vmul.f32 0.020833334, %v9112_v12 }
0x210d   :  { %v9141_v42 = vadd.f32 %v9125_v23, %v17356_v37  ;;  %v9126_v32 = vmul.f32 0.020833334, %v9110_v59  ;;  %12558 = vmatprep.mubr.bf16.mxu1 %v9165_v6 }
0x210e   :  { %v9144_v9 = vadd.f32 %v9128_v31, %v17360_v28  ;;  %12559 = vmatmul.mubr.bf16.gmra.mrb[8].mxu1 %v9166_v25  ;;  %v9159_v53 = vmax.f32 %v9143_v13, 0.0 }
0x210f   :  { %v9142_v43 = vadd.f32 %v9126_v32, %v17365_v2  ;;  %v9157_v44 = vmax.f32 %v9141_v42, 0.0 }
0x2110   :  { %v9160_v11 = vmax.f32 %v9144_v9, 0.0 }
0x2111   :  { %v9158_v49 = vmax.f32 %v9142_v43, 0.0 }
0x2112   :  { %v9168_v38 = vpack.c.bf16 %v9160_v11, %v9159_v53 }
0x2113   :  { %v9167_v4 = vpack.c.bf16 %v9158_v49, %v9157_v44 }
0x2115   :  { %12562 = vmatprep.mubr.bf16.mxu1 %v9167_v4 }
0x2116   :  { %12563 = vmatmul.mubr.bf16.gmra.mrb[12].mxu1 %v9168_v38 }
0x21d1   :  { %v12552_v20 = vpop.f32.mrb[0].mxu1 }
0x21d2   :  { %v9283_v37 = vadd.f32 %v12552_v20, %v9389_v45  ;;  %v9274_v39 = vpop.f32.mrb[1].mxu1 }
0x21d3   :  { %v9275_v3 = vadd.f32 %v9389_v45, %v9274_v39  ;;  %v12553_v28 = vpop.f32.mrb[2].mxu1 }
0x21d4   :  { %9339 = vst [vmem:[%s17474_s6 + $0x10] sm:$0xff] %v9283_v37  ;;  %v9286_v2 = vadd.f32 %v12553_v28, %v9389_v45  ;;  %v9277_v8 = vpop.f32.mrb[3].mxu1 }
0x21d5   :  { %9337 = vst [vmem:[%s17474_s6] sm:$0xff] %v9275_v3  ;;  %v9278_v51 = vadd.f32 %v9389_v45, %v9277_v8 }
0x21d6   :  { %9340 = vst [vmem:[%s17474_s6 + $0x18] sm:$0xff] %v9286_v2 }
0x21d7   :  { %9338 = vst [vmem:[%s17474_s6 + $0x8] sm:$0xff] %v9278_v51 }
0x21d9   :  { %v12556_v40 = vpop.f32.mrb[4].mxu1 }
0x21da   :  { %v9299_v30 = vadd.f32 %v12556_v40, %v9389_v45  ;;  %v9290_v26 = vpop.f32.mrb[5].mxu1 }
0x21db   :  { %v9291_v61 = vadd.f32 %v9389_v45, %v9290_v26  ;;  %v12557_v62 = vpop.f32.mrb[6].mxu1 }
0x21dc   :  { %9343 = vst [vmem:[%s17474_s6 + $0x30] sm:$0xff] %v9299_v30  ;;  %v9302_v7 = vadd.f32 %v12557_v62, %v9389_v45  ;;  %v9293_v29 = vpop.f32.mrb[7].mxu1 }
0x21dd   :  { %9341 = vst [vmem:[%s17474_s6 + $0x20] sm:$0xff] %v9291_v61  ;;  %v9294_v55 = vadd.f32 %v9389_v45, %v9293_v29 }
0x21de   :  { %9344 = vst [vmem:[%s17474_s6 + $0x38] sm:$0xff] %v9302_v7 }
0x21df   :  { %9342 = vst [vmem:[%s17474_s6 + $0x28] sm:$0xff] %v9294_v55 }
0x21e1   :  { %v12560_v5 = vpop.f32.mrb[8].mxu1 }
0x21e2   :  { %v9315_v18 = vadd.f32 %v12560_v5, %v9389_v45  ;;  %v9306_v58 = vpop.f32.mrb[9].mxu1 }
0x21e3   :  { %v9307_v46 = vadd.f32 %v9389_v45, %v9306_v58  ;;  %v12561_v52 = vpop.f32.mrb[10].mxu1 }
0x21e4   :  { %9347 = vst [vmem:[%s17474_s6 + $0x50] sm:$0xff] %v9315_v18  ;;  %v9318_v48 = vadd.f32 %v12561_v52, %v9389_v45  ;;  %v9309_v50 = vpop.f32.mrb[11].mxu1 }
0x21e5   :  { %9345 = vst [vmem:[%s17474_s6 + $0x40] sm:$0xff] %v9307_v46  ;;  %v9310_v1 = vadd.f32 %v9389_v45, %v9309_v50 }
0x21e6   :  { %9348 = vst [vmem:[%s17474_s6 + $0x58] sm:$0xff] %v9318_v48 }
0x21e7   :  { %9346 = vst [vmem:[%s17474_s6 + $0x48] sm:$0xff] %v9310_v1 }
0x21e9   :  { %v12564_v15 = vpop.f32.mrb[12].mxu1 }
0x21ea   :  { %v9331_v41 = vadd.f32 %v12564_v15, %v9389_v45  ;;  %v9322_v0 = vpop.f32.mrb[13].mxu1 }
0x21eb   :  { %v9323_v14 = vadd.f32 %v9389_v45, %v9322_v0  ;;  %v12565_v17 = vpop.f32.mrb[14].mxu1 }
0x21ec   :  { %9351 = vst [vmem:[%s17474_s6 + $0x70] sm:$0xff] %v9331_v41  ;;  %v9334_v22 = vadd.f32 %v12565_v17, %v9389_v45  ;;  %v9325_v54 = vpop.f32.mrb[15].mxu1 }
0x21ed   :  { %9349 = vst [vmem:[%s17474_s6 + $0x60] sm:$0xff] %v9323_v14  ;;  %v9326_v19 = vadd.f32 %v9389_v45, %v9325_v54 }
0x21ee   :  { %9352 = vst [vmem:[%s17474_s6 + $0x78] sm:$0xff] %v9334_v22 }
0x21ef   :  { %9350 = vst [vmem:[%s17474_s6 + $0x68] sm:$0xff] %v9326_v19 }

</bundles_post_ra>
